<compile_context>
chip_gen: v5e
topology: v5e:2x2
jax: 0.10.0
libtpu: 0.0.40
codegen_flags: <defaults>
</compile_context>

<pallas_src>
import functools

import jax
import jax.numpy as jnp
import numpy as np
from jax.experimental import pallas as pl
from jax.experimental.pallas import tpu as pltpu

EPS = 1e-5
LANE = 128


def _round_up(n, m):
    return (n + m - 1) // m * m


def _double_conv_kernel(x_ref, mask_ref, w1_ref, s1_ref, b1_ref,
                        w2_ref, s2_ref, b2_ref, o_ref, mid_ref,
                        *, H, Wp2, C2):
    """Fused (conv3x3 -> BN -> ReLU) x 2 for one batch element.

    Flat "wide-row" layout: padded image rows of pitch Wp2 are flattened, so
    the 3x3 tap (ky, kx) of every output pixel is the contiguous row slice
    [ky*Wp2+kx : ky*Wp2+kx + H*Wp2) of the flat buffer.

    x_ref   : ((H+3)*Wp2, C1)  bf16 flat spatially-padded input
    mask_ref: (H*Wp2, 1)       f32  1.0 for valid columns, 0.0 for junk
    w1_ref  : (9, C1, C2)      bf16 per-tap conv1 weights
    s1/b1   : (1, C2)          f32  folded BN1 scale / bias (pad channels = 0)
    w2_ref  : (9, C2, C2)      bf16 per-tap conv2 weights
    s2/b2   : (1, C2)          f32  folded BN2 scale / bias (pad channels = 0)
    o_ref   : (H*Wp2, C2)      bf16 extended (junk-column) output
    mid_ref : ((H+3)*Wp2, C2)  bf16 VMEM scratch: flat padded intermediate
    """
    M = H * Wp2

    def conv3x3(src_ref, w_ref):
        # 9 accumulating MXU dots; each LHS is a contiguous row slice.
        acc = None
        for t in range(9):
            ky, kx = divmod(t, 3)
            q0 = ky * Wp2 + kx
            d = jnp.dot(src_ref[q0:q0 + M, :], w_ref[t],
                        preferred_element_type=jnp.float32)
            acc = d if acc is None else acc + d
        return acc

    # ---- stage 1: conv1 + BN1 + ReLU ------------------------------------
    acc1 = conv3x3(x_ref, w1_ref)
    y1 = jnp.maximum(acc1 * s1_ref[...] + b1_ref[...], 0.0) * mask_ref[...]

    # Place the intermediate (and its zero halo) into the flat VMEM buffer.
    # Everything a valid conv2 output can read is rewritten every step.
    R2 = mid_ref.shape[0]
    mid_ref[0:Wp2 + 1, :] = jnp.zeros((Wp2 + 1, C2), jnp.bfloat16)
    mid_ref[Wp2 + 1:Wp2 + 1 + M, :] = y1.astype(jnp.bfloat16)
    tail = Wp2 + 1 + M
    mid_ref[tail:R2, :] = jnp.zeros((R2 - tail, C2), jnp.bfloat16)

    # ---- stage 2: conv2 + BN2 + ReLU; intermediate never leaves VMEM ----
    acc2 = conv3x3(mid_ref, w2_ref)
    y2 = jnp.maximum(acc2 * s2_ref[...] + b2_ref[...], 0.0)
    o_ref[...] = y2.astype(o_ref.dtype)


def _fold_bn(conv_bias, gamma, beta, mean, var):
    scale = gamma / jnp.sqrt(var + EPS)
    bias = beta + (conv_bias - mean) * scale
    return scale, bias


def _pack_weights(w_oihw, cin_p, cout_p):
    """OIHW -> zero-padded (9, cin_p, cout_p) bf16, tap-major (ky*3 + kx)."""
    o, i, _, _ = w_oihw.shape
    w = jnp.transpose(w_oihw, (2, 3, 1, 0))                 # (3, 3, I, O)
    w = jnp.pad(w, ((0, 0), (0, 0), (0, cin_p - i), (0, cout_p - o)))
    return w.reshape(9, cin_p, cout_p).astype(jnp.bfloat16)


def _pack_affine(scale, bias, cout_p):
    c = scale.shape[0]
    s = jnp.pad(scale, (0, cout_p - c)).reshape(1, cout_p).astype(jnp.float32)
    b = jnp.pad(bias, (0, cout_p - c)).reshape(1, cout_p).astype(jnp.float32)
    return s, b


def double_conv_forward(x_nchw, p):
    """Matches double_conv(in_ch, out_ch).forward for NCHW input (eval-mode BN)."""
    N, Cin, H, W = x_nchw.shape
    Cout = p["w1"].shape[0]
    C1 = _round_up(Cin, 8)         # minimal sublane pad of input channels
    C2 = _round_up(Cout, LANE)     # lane-dense intermediate / output channels
    Wp2 = _round_up(W + 2, 8)      # padded row pitch (sublane-aligned)
    R = (H + 3) * Wp2              # flat rows: (H+2) halo rows + 1 spare row
    M = H * Wp2                    # extended-output rows per image

    # NCHW -> NHWC bf16, 1px spatial halo + width/channel rounding, flatten.
    x = jnp.transpose(x_nchw, (0, 2, 3, 1)).astype(jnp.bfloat16)
    x = jnp.pad(x, ((0, 0), (1, 2), (1, Wp2 - W - 1), (0, C1 - Cin)))
    x = x.reshape(N, R, C1)

    # Column-validity mask (zero the junk columns of the conv1 result so they
    # become the zero halo of the conv2 input).
    col = np.arange(M) % Wp2
    mask = jnp.asarray((col < W).astype(np.float32)).reshape(M, 1)

    s1, b1 = _fold_bn(p["b1"], *p["bn1"])
    s2, b2 = _fold_bn(p["b2"], *p["bn2"])
    w1 = _pack_weights(p["w1"], C1, C2)
    w2 = _pack_weights(p["w2"], C2, C2)
    s1p, b1p = _pack_affine(s1, b1, C2)
    s2p, b2p = _pack_affine(s2, b2, C2)

    kernel = functools.partial(_double_conv_kernel, H=H, Wp2=Wp2, C2=C2)
    out = pl.pallas_call(
        kernel,
        out_shape=jax.ShapeDtypeStruct((N, M, C2), jnp.bfloat16),
        grid_spec=pltpu.PrefetchScalarGridSpec(
            num_scalar_prefetch=0,
            grid=(N,),
            in_specs=[
                pl.BlockSpec((None, R, C1), lambda n: (n, 0, 0)),
                pl.BlockSpec((M, 1), lambda n: (0, 0)),
                pl.BlockSpec((9, C1, C2), lambda n: (0, 0, 0)),
                pl.BlockSpec((1, C2), lambda n: (0, 0)),
                pl.BlockSpec((1, C2), lambda n: (0, 0)),
                pl.BlockSpec((9, C2, C2), lambda n: (0, 0, 0)),
                pl.BlockSpec((1, C2), lambda n: (0, 0)),
                pl.BlockSpec((1, C2), lambda n: (0, 0)),
            ],
            out_specs=pl.BlockSpec((None, M, C2), lambda n: (n, 0, 0)),
            scratch_shapes=[pltpu.VMEM(((H + 3) * Wp2, C2), jnp.bfloat16)],
        ),
        compiler_params=pltpu.CompilerParams(
            dimension_semantics=("parallel",),
            vmem_limit_bytes=32 * 1024 * 1024),
    )(x, mask, w1, s1p, b1p, w2, s2p, b2p)

    # One fused XLA pass outside the kernel: drop junk columns / channel pad,
    # NHWC -> NCHW, cast back to f32 to match the PyTorch module's output.
    out = out.reshape(N, H, Wp2, C2)[:, :, :W, :Cout]
    return jnp.transpose(out, (0, 3, 1, 2)).astype(jnp.float32)


def make_params(key, in_ch, out_ch):
    ks = jax.random.split(key, 12)

    def bn_params(k0, k1, k2, k3, c):
        gamma = 1.0 + 0.1 * jax.random.normal(k0, (c,), jnp.float32)
        beta = 0.1 * jax.random.normal(k1, (c,), jnp.float32)
        mean = 0.1 * jax.random.normal(k2, (c,), jnp.float32)
        var = 0.5 + jnp.abs(jax.random.normal(k3, (c,), jnp.float32))
        return gamma, beta, mean, var

    return {
        "w1": 0.1 * jax.random.normal(ks[0], (out_ch, in_ch, 3, 3), jnp.float32),
        "b1": 0.1 * jax.random.normal(ks[1], (out_ch,), jnp.float32),
        "bn1": bn_params(ks[2], ks[3], ks[4], ks[5], out_ch),
        "w2": 0.1 * jax.random.normal(ks[6], (out_ch, out_ch, 3, 3), jnp.float32),
        "b2": 0.1 * jax.random.normal(ks[7], (out_ch,), jnp.float32),
        "bn2": bn_params(ks[8], ks[9], ks[10], ks[11], out_ch),
    }


def ref_forward(x, p, *, use_bf16):
    """Pure-JAX NCHW reference (eval-mode BN). use_bf16=True mirrors the
    kernel's bf16 matmul inputs / bf16 intermediate for a tight comparison."""
    def conv(x, w, b):
        if use_bf16:
            x = x.astype(jnp.bfloat16)
            w = w.astype(jnp.bfloat16)
        y = jax.lax.conv_general_dilated(
            x, w, window_strides=(1, 1), padding=((1, 1), (1, 1)),
            dimension_numbers=("NCHW", "OIHW", "NCHW"),
            preferred_element_type=jnp.float32)
        return y + b[None, :, None, None]

    def bn(y, g, be, m, v):
        return ((y - m[None, :, None, None]) /
                jnp.sqrt(v[None, :, None, None] + EPS)) * g[None, :, None, None] \
               + be[None, :, None, None]

    y = jnp.maximum(bn(conv(x, p["w1"], p["b1"]), *p["bn1"]), 0.0)
    y = jnp.maximum(bn(conv(y, p["w2"], p["b2"]), *p["bn2"]), 0.0)
    return y


if __name__ == "__main__":
    key = jax.random.PRNGKey(0)
    k_x, k_p = jax.random.split(key)

    N, in_ch, out_ch, H, W = 2, 4, 8, 16, 16
    x = jax.random.normal(k_x, (N, in_ch, H, W), jnp.float32)   # NCHW like PyTorch
    params = make_params(k_p, in_ch, out_ch)

    out = jax.block_until_ready(jax.jit(double_conv_forward)(x, params))
    assert out.shape == (N, out_ch, H, W), out.shape

    # Tight check vs. a reference mirroring the kernel's bf16 matmul inputs.
    ref_b = jax.block_until_ready(ref_forward(x, params, use_bf16=True))
    # Loose check vs. the pure-f32 reference (bf16 path needs slack).
    ref_f = jax.block_until_ready(ref_forward(x, params, use_bf16=False))
    np.testing.assert_allclose(np.asarray(out), np.asarray(ref_b), rtol=2e-2, atol=2e-2)
    np.testing.assert_allclose(np.asarray(out), np.asarray(ref_f), rtol=1e-1, atol=1e-1)
    print("KERNEL_OK")
</pallas_src>

<mosaic_0001>
module attributes {stable_mosaic.version = 11 : i64} {
  func.func @_double_conv_kernel(%arg0: i32, %arg1: memref<1x456x8xbf16, #tpu.memory_space<vmem>>, %arg2: memref<384x1xf32, #tpu.memory_space<vmem>>, %arg3: memref<9x8x128xbf16, #tpu.memory_space<vmem>>, %arg4: memref<1x128xf32, #tpu.memory_space<vmem>>, %arg5: memref<1x128xf32, #tpu.memory_space<vmem>>, %arg6: memref<9x128x128xbf16, #tpu.memory_space<vmem>>, %arg7: memref<1x128xf32, #tpu.memory_space<vmem>>, %arg8: memref<1x128xf32, #tpu.memory_space<vmem>>, %arg9: memref<1x384x128xbf16, #tpu.memory_space<vmem>>, %arg10: memref<456x128xbf16, #tpu.memory_space<vmem>>) attributes {dimension_semantics = [#tpu.dimension_semantics<parallel>], iteration_bounds = array<i64: 2>, scalar_prefetch = 0 : i64, scratch_operands = 1 : i64, tpu.core_type = #tpu.core_type<tc>, window_params = [{transform_indices = @transform_0, window_bounds = array<i64: 1, 456, 8>}, {pipeline_mode = #tpu.pipeline_mode<synchronous>, transform_indices = @transform_1, window_bounds = array<i64: 384, 1>}, {pipeline_mode = #tpu.pipeline_mode<synchronous>, transform_indices = @transform_2, window_bounds = array<i64: 9, 8, 128>}, {pipeline_mode = #tpu.pipeline_mode<synchronous>, transform_indices = @transform_3, window_bounds = array<i64: 1, 128>}, {pipeline_mode = #tpu.pipeline_mode<synchronous>, transform_indices = @transform_4, window_bounds = array<i64: 1, 128>}, {pipeline_mode = #tpu.pipeline_mode<synchronous>, transform_indices = @transform_5, window_bounds = array<i64: 9, 128, 128>}, {pipeline_mode = #tpu.pipeline_mode<synchronous>, transform_indices = @transform_6, window_bounds = array<i64: 1, 128>}, {pipeline_mode = #tpu.pipeline_mode<synchronous>, transform_indices = @transform_7, window_bounds = array<i64: 1, 128>}, {transform_indices = @transform_8, window_bounds = array<i64: 1, 384, 128>}]} {
    %c0 = arith.constant 0 : index
    %c0_0 = arith.constant 0 : index
    %c0_1 = arith.constant 0 : index
    %0 = vector.load %arg1[%c0, %c0_0, %c0_1] : memref<1x456x8xbf16, #tpu.memory_space<vmem>>, vector<1x384x8xbf16>
    %1 = vector.shape_cast %0 : vector<1x384x8xbf16> to vector<384x8xbf16>
    %c0_2 = arith.constant 0 : index
    %c0_3 = arith.constant 0 : index
    %c0_4 = arith.constant 0 : index
    %2 = vector.load %arg3[%c0_2, %c0_3, %c0_4] : memref<9x8x128xbf16, #tpu.memory_space<vmem>>, vector<1x8x128xbf16>
    %3 = vector.shape_cast %2 : vector<1x8x128xbf16> to vector<8x128xbf16>
    %cst = arith.constant dense<0.000000e+00> : vector<384x128xf32>
    %4 = tpu.matmul %1, %3, %cst {dimension_numbers = #tpu.dot_dimension_numbers<[1], [0], [0], [1], [0, 0, 1, 1], [], []>} : vector<384x8xbf16>, vector<8x128xbf16>, vector<384x128xf32> -> vector<384x128xf32>
    %c0_5 = arith.constant 0 : index
    %c1 = arith.constant 1 : index
    %c0_6 = arith.constant 0 : index
    %5 = vector.load %arg1[%c0_5, %c1, %c0_6] : memref<1x456x8xbf16, #tpu.memory_space<vmem>>, vector<1x384x8xbf16>
    %6 = vector.shape_cast %5 : vector<1x384x8xbf16> to vector<384x8xbf16>
    %c1_7 = arith.constant 1 : index
    %c0_8 = arith.constant 0 : index
    %c0_9 = arith.constant 0 : index
    %7 = vector.load %arg3[%c1_7, %c0_8, %c0_9] : memref<9x8x128xbf16, #tpu.memory_space<vmem>>, vector<1x8x128xbf16>
    %8 = vector.shape_cast %7 : vector<1x8x128xbf16> to vector<8x128xbf16>
    %cst_10 = arith.constant dense<0.000000e+00> : vector<384x128xf32>
    %9 = tpu.matmul %6, %8, %cst_10 {dimension_numbers = #tpu.dot_dimension_numbers<[1], [0], [0], [1], [0, 0, 1, 1], [], []>} : vector<384x8xbf16>, vector<8x128xbf16>, vector<384x128xf32> -> vector<384x128xf32>
    %10 = arith.addf %4, %9 : vector<384x128xf32>
    %c0_11 = arith.constant 0 : index
    %c2 = arith.constant 2 : index
    %c0_12 = arith.constant 0 : index
    %11 = vector.load %arg1[%c0_11, %c2, %c0_12] : memref<1x456x8xbf16, #tpu.memory_space<vmem>>, vector<1x384x8xbf16>
    %12 = vector.shape_cast %11 : vector<1x384x8xbf16> to vector<384x8xbf16>
    %c2_13 = arith.constant 2 : index
    %c0_14 = arith.constant 0 : index
    %c0_15 = arith.constant 0 : index
    %13 = vector.load %arg3[%c2_13, %c0_14, %c0_15] : memref<9x8x128xbf16, #tpu.memory_space<vmem>>, vector<1x8x128xbf16>
    %14 = vector.shape_cast %13 : vector<1x8x128xbf16> to vector<8x128xbf16>
    %cst_16 = arith.constant dense<0.000000e+00> : vector<384x128xf32>
    %15 = tpu.matmul %12, %14, %cst_16 {dimension_numbers = #tpu.dot_dimension_numbers<[1], [0], [0], [1], [0, 0, 1, 1], [], []>} : vector<384x8xbf16>, vector<8x128xbf16>, vector<384x128xf32> -> vector<384x128xf32>
    %16 = arith.addf %10, %15 : vector<384x128xf32>
    %c0_17 = arith.constant 0 : index
    %c24 = arith.constant 24 : index
    %c0_18 = arith.constant 0 : index
    %17 = vector.load %arg1[%c0_17, %c24, %c0_18] : memref<1x456x8xbf16, #tpu.memory_space<vmem>>, vector<1x384x8xbf16>
    %18 = vector.shape_cast %17 : vector<1x384x8xbf16> to vector<384x8xbf16>
    %c3 = arith.constant 3 : index
    %c0_19 = arith.constant 0 : index
    %c0_20 = arith.constant 0 : index
    %19 = vector.load %arg3[%c3, %c0_19, %c0_20] : memref<9x8x128xbf16, #tpu.memory_space<vmem>>, vector<1x8x128xbf16>
    %20 = vector.shape_cast %19 : vector<1x8x128xbf16> to vector<8x128xbf16>
    %cst_21 = arith.constant dense<0.000000e+00> : vector<384x128xf32>
    %21 = tpu.matmul %18, %20, %cst_21 {dimension_numbers = #tpu.dot_dimension_numbers<[1], [0], [0], [1], [0, 0, 1, 1], [], []>} : vector<384x8xbf16>, vector<8x128xbf16>, vector<384x128xf32> -> vector<384x128xf32>
    %22 = arith.addf %16, %21 : vector<384x128xf32>
    %c0_22 = arith.constant 0 : index
    %c25 = arith.constant 25 : index
    %c0_23 = arith.constant 0 : index
    %23 = vector.load %arg1[%c0_22, %c25, %c0_23] : memref<1x456x8xbf16, #tpu.memory_space<vmem>>, vector<1x384x8xbf16>
    %24 = vector.shape_cast %23 : vector<1x384x8xbf16> to vector<384x8xbf16>
    %c4 = arith.constant 4 : index
    %c0_24 = arith.constant 0 : index
    %c0_25 = arith.constant 0 : index
    %25 = vector.load %arg3[%c4, %c0_24, %c0_25] : memref<9x8x128xbf16, #tpu.memory_space<vmem>>, vector<1x8x128xbf16>
    %26 = vector.shape_cast %25 : vector<1x8x128xbf16> to vector<8x128xbf16>
    %cst_26 = arith.constant dense<0.000000e+00> : vector<384x128xf32>
    %27 = tpu.matmul %24, %26, %cst_26 {dimension_numbers = #tpu.dot_dimension_numbers<[1], [0], [0], [1], [0, 0, 1, 1], [], []>} : vector<384x8xbf16>, vector<8x128xbf16>, vector<384x128xf32> -> vector<384x128xf32>
    %28 = arith.addf %22, %27 : vector<384x128xf32>
    %c0_27 = arith.constant 0 : index
    %c26 = arith.constant 26 : index
    %c0_28 = arith.constant 0 : index
    %29 = vector.load %arg1[%c0_27, %c26, %c0_28] : memref<1x456x8xbf16, #tpu.memory_space<vmem>>, vector<1x384x8xbf16>
    %30 = vector.shape_cast %29 : vector<1x384x8xbf16> to vector<384x8xbf16>
    %c5 = arith.constant 5 : index
    %c0_29 = arith.constant 0 : index
    %c0_30 = arith.constant 0 : index
    %31 = vector.load %arg3[%c5, %c0_29, %c0_30] : memref<9x8x128xbf16, #tpu.memory_space<vmem>>, vector<1x8x128xbf16>
    %32 = vector.shape_cast %31 : vector<1x8x128xbf16> to vector<8x128xbf16>
    %cst_31 = arith.constant dense<0.000000e+00> : vector<384x128xf32>
    %33 = tpu.matmul %30, %32, %cst_31 {dimension_numbers = #tpu.dot_dimension_numbers<[1], [0], [0], [1], [0, 0, 1, 1], [], []>} : vector<384x8xbf16>, vector<8x128xbf16>, vector<384x128xf32> -> vector<384x128xf32>
    %34 = arith.addf %28, %33 : vector<384x128xf32>
    %c0_32 = arith.constant 0 : index
    %c48 = arith.constant 48 : index
    %c0_33 = arith.constant 0 : index
    %35 = vector.load %arg1[%c0_32, %c48, %c0_33] : memref<1x456x8xbf16, #tpu.memory_space<vmem>>, vector<1x384x8xbf16>
    %36 = vector.shape_cast %35 : vector<1x384x8xbf16> to vector<384x8xbf16>
    %c6 = arith.constant 6 : index
    %c0_34 = arith.constant 0 : index
    %c0_35 = arith.constant 0 : index
    %37 = vector.load %arg3[%c6, %c0_34, %c0_35] : memref<9x8x128xbf16, #tpu.memory_space<vmem>>, vector<1x8x128xbf16>
    %38 = vector.shape_cast %37 : vector<1x8x128xbf16> to vector<8x128xbf16>
    %cst_36 = arith.constant dense<0.000000e+00> : vector<384x128xf32>
    %39 = tpu.matmul %36, %38, %cst_36 {dimension_numbers = #tpu.dot_dimension_numbers<[1], [0], [0], [1], [0, 0, 1, 1], [], []>} : vector<384x8xbf16>, vector<8x128xbf16>, vector<384x128xf32> -> vector<384x128xf32>
    %40 = arith.addf %34, %39 : vector<384x128xf32>
    %c0_37 = arith.constant 0 : index
    %c49 = arith.constant 49 : index
    %c0_38 = arith.constant 0 : index
    %41 = vector.load %arg1[%c0_37, %c49, %c0_38] : memref<1x456x8xbf16, #tpu.memory_space<vmem>>, vector<1x384x8xbf16>
    %42 = vector.shape_cast %41 : vector<1x384x8xbf16> to vector<384x8xbf16>
    %c7 = arith.constant 7 : index
    %c0_39 = arith.constant 0 : index
    %c0_40 = arith.constant 0 : index
    %43 = vector.load %arg3[%c7, %c0_39, %c0_40] : memref<9x8x128xbf16, #tpu.memory_space<vmem>>, vector<1x8x128xbf16>
    %44 = vector.shape_cast %43 : vector<1x8x128xbf16> to vector<8x128xbf16>
    %cst_41 = arith.constant dense<0.000000e+00> : vector<384x128xf32>
    %45 = tpu.matmul %42, %44, %cst_41 {dimension_numbers = #tpu.dot_dimension_numbers<[1], [0], [0], [1], [0, 0, 1, 1], [], []>} : vector<384x8xbf16>, vector<8x128xbf16>, vector<384x128xf32> -> vector<384x128xf32>
    %46 = arith.addf %40, %45 : vector<384x128xf32>
    %c0_42 = arith.constant 0 : index
    %c50 = arith.constant 50 : index
    %c0_43 = arith.constant 0 : index
    %47 = vector.load %arg1[%c0_42, %c50, %c0_43] : memref<1x456x8xbf16, #tpu.memory_space<vmem>>, vector<1x384x8xbf16>
    %48 = vector.shape_cast %47 : vector<1x384x8xbf16> to vector<384x8xbf16>
    %c8 = arith.constant 8 : index
    %c0_44 = arith.constant 0 : index
    %c0_45 = arith.constant 0 : index
    %49 = vector.load %arg3[%c8, %c0_44, %c0_45] : memref<9x8x128xbf16, #tpu.memory_space<vmem>>, vector<1x8x128xbf16>
    %50 = vector.shape_cast %49 : vector<1x8x128xbf16> to vector<8x128xbf16>
    %cst_46 = arith.constant dense<0.000000e+00> : vector<384x128xf32>
    %51 = tpu.matmul %48, %50, %cst_46 {dimension_numbers = #tpu.dot_dimension_numbers<[1], [0], [0], [1], [0, 0, 1, 1], [], []>} : vector<384x8xbf16>, vector<8x128xbf16>, vector<384x128xf32> -> vector<384x128xf32>
    %52 = arith.addf %46, %51 : vector<384x128xf32>
    %c0_47 = arith.constant 0 : index
    %c0_48 = arith.constant 0 : index
    %53 = vector.load %arg4[%c0_47, %c0_48] : memref<1x128xf32, #tpu.memory_space<vmem>>, vector<1x128xf32>
    %54 = vector.broadcast %53 : vector<1x128xf32> to vector<384x128xf32>
    %55 = arith.mulf %52, %54 : vector<384x128xf32>
    %c0_49 = arith.constant 0 : index
    %c0_50 = arith.constant 0 : index
    %56 = vector.load %arg5[%c0_49, %c0_50] : memref<1x128xf32, #tpu.memory_space<vmem>>, vector<1x128xf32>
    %57 = vector.broadcast %56 : vector<1x128xf32> to vector<384x128xf32>
    %58 = arith.addf %55, %57 : vector<384x128xf32>
    %cst_51 = arith.constant 0.000000e+00 : f32
    %59 = vector.broadcast %cst_51 : f32 to vector<384x128xf32>
    %60 = arith.maximumf %58, %59 : vector<384x128xf32>
    %c0_52 = arith.constant 0 : index
    %c0_53 = arith.constant 0 : index
    %61 = vector.load %arg2[%c0_52, %c0_53] : memref<384x1xf32, #tpu.memory_space<vmem>>, vector<384x1xf32>
    %62 = vector.broadcast %61 : vector<384x1xf32> to vector<384x128xf32>
    %63 = arith.mulf %60, %62 : vector<384x128xf32>
    %cst_54 = arith.constant 0.000000e+00 : bf16
    %64 = vector.broadcast %cst_54 : bf16 to vector<25x128xbf16>
    %c0_55 = arith.constant 0 : index
    %c0_56 = arith.constant 0 : index
    %65 = vector.load %arg10[%c0_55, %c0_56] : memref<456x128xbf16, #tpu.memory_space<vmem>>, vector<25x128xbf16>
    tpu.vector_store %arg10[%c0_55, %c0_56], %64 {strides = array<i32>} : memref<456x128xbf16, #tpu.memory_space<vmem>>, vector<25x128xbf16>,
    %66 = arith.truncf %63 : vector<384x128xf32> to vector<384x128xbf16>
    %c25_57 = arith.constant 25 : index
    %c0_58 = arith.constant 0 : index
    %67 = vector.load %arg10[%c25_57, %c0_58] : memref<456x128xbf16, #tpu.memory_space<vmem>>, vector<384x128xbf16>
    tpu.vector_store %arg10[%c25_57, %c0_58], %66 {strides = array<i32>} : memref<456x128xbf16, #tpu.memory_space<vmem>>, vector<384x128xbf16>,
    %cst_59 = arith.constant 0.000000e+00 : bf16
    %68 = vector.broadcast %cst_59 : bf16 to vector<47x128xbf16>
    %c409 = arith.constant 409 : index
    %c0_60 = arith.constant 0 : index
    %69 = vector.load %arg10[%c409, %c0_60] : memref<456x128xbf16, #tpu.memory_space<vmem>>, vector<47x128xbf16>
    tpu.vector_store %arg10[%c409, %c0_60], %68 {strides = array<i32>} : memref<456x128xbf16, #tpu.memory_space<vmem>>, vector<47x128xbf16>,
    %c0_61 = arith.constant 0 : index
    %c0_62 = arith.constant 0 : index
    %70 = vector.load %arg10[%c0_61, %c0_62] : memref<456x128xbf16, #tpu.memory_space<vmem>>, vector<384x128xbf16>
    %c0_63 = arith.constant 0 : index
    %c0_64 = arith.constant 0 : index
    %c0_65 = arith.constant 0 : index
    %71 = vector.load %arg6[%c0_63, %c0_64, %c0_65] : memref<9x128x128xbf16, #tpu.memory_space<vmem>>, vector<1x128x128xbf16>
    %72 = vector.shape_cast %71 : vector<1x128x128xbf16> to vector<128x128xbf16>
    %cst_66 = arith.constant dense<0.000000e+00> : vector<384x128xf32>
    %73 = tpu.matmul %70, %72, %cst_66 {dimension_numbers = #tpu.dot_dimension_numbers<[1], [0], [0], [1], [0, 0, 1, 1], [], []>} : vector<384x128xbf16>, vector<128x128xbf16>, vector<384x128xf32> -> vector<384x128xf32>
    %c1_67 = arith.constant 1 : index
    %c0_68 = arith.constant 0 : index
    %74 = vector.load %arg10[%c1_67, %c0_68] : memref<456x128xbf16, #tpu.memory_space<vmem>>, vector<384x128xbf16>
    %c1_69 = arith.constant 1 : index
    %c0_70 = arith.constant 0 : index
    %c0_71 = arith.constant 0 : index
    %75 = vector.load %arg6[%c1_69, %c0_70, %c0_71] : memref<9x128x128xbf16, #tpu.memory_space<vmem>>, vector<1x128x128xbf16>
    %76 = vector.shape_cast %75 : vector<1x128x128xbf16> to vector<128x128xbf16>
    %cst_72 = arith.constant dense<0.000000e+00> : vector<384x128xf32>
    %77 = tpu.matmul %74, %76, %cst_72 {dimension_numbers = #tpu.dot_dimension_numbers<[1], [0], [0], [1], [0, 0, 1, 1], [], []>} : vector<384x128xbf16>, vector<128x128xbf16>, vector<384x128xf32> -> vector<384x128xf32>
    %78 = arith.addf %73, %77 : vector<384x128xf32>
    %c2_73 = arith.constant 2 : index
    %c0_74 = arith.constant 0 : index
    %79 = vector.load %arg10[%c2_73, %c0_74] : memref<456x128xbf16, #tpu.memory_space<vmem>>, vector<384x128xbf16>
    %c2_75 = arith.constant 2 : index
    %c0_76 = arith.constant 0 : index
    %c0_77 = arith.constant 0 : index
    %80 = vector.load %arg6[%c2_75, %c0_76, %c0_77] : memref<9x128x128xbf16, #tpu.memory_space<vmem>>, vector<1x128x128xbf16>
    %81 = vector.shape_cast %80 : vector<1x128x128xbf16> to vector<128x128xbf16>
    %cst_78 = arith.constant dense<0.000000e+00> : vector<384x128xf32>
    %82 = tpu.matmul %79, %81, %cst_78 {dimension_numbers = #tpu.dot_dimension_numbers<[1], [0], [0], [1], [0, 0, 1, 1], [], []>} : vector<384x128xbf16>, vector<128x128xbf16>, vector<384x128xf32> -> vector<384x128xf32>
    %83 = arith.addf %78, %82 : vector<384x128xf32>
    %c24_79 = arith.constant 24 : index
    %c0_80 = arith.constant 0 : index
    %84 = vector.load %arg10[%c24_79, %c0_80] : memref<456x128xbf16, #tpu.memory_space<vmem>>, vector<384x128xbf16>
    %c3_81 = arith.constant 3 : index
    %c0_82 = arith.constant 0 : index
    %c0_83 = arith.constant 0 : index
    %85 = vector.load %arg6[%c3_81, %c0_82, %c0_83] : memref<9x128x128xbf16, #tpu.memory_space<vmem>>, vector<1x128x128xbf16>
    %86 = vector.shape_cast %85 : vector<1x128x128xbf16> to vector<128x128xbf16>
    %cst_84 = arith.constant dense<0.000000e+00> : vector<384x128xf32>
    %87 = tpu.matmul %84, %86, %cst_84 {dimension_numbers = #tpu.dot_dimension_numbers<[1], [0], [0], [1], [0, 0, 1, 1], [], []>} : vector<384x128xbf16>, vector<128x128xbf16>, vector<384x128xf32> -> vector<384x128xf32>
    %88 = arith.addf %83, %87 : vector<384x128xf32>
    %c25_85 = arith.constant 25 : index
    %c0_86 = arith.constant 0 : index
    %89 = vector.load %arg10[%c25_85, %c0_86] : memref<456x128xbf16, #tpu.memory_space<vmem>>, vector<384x128xbf16>
    %c4_87 = arith.constant 4 : index
    %c0_88 = arith.constant 0 : index
    %c0_89 = arith.constant 0 : index
    %90 = vector.load %arg6[%c4_87, %c0_88, %c0_89] : memref<9x128x128xbf16, #tpu.memory_space<vmem>>, vector<1x128x128xbf16>
    %91 = vector.shape_cast %90 : vector<1x128x128xbf16> to vector<128x128xbf16>
    %cst_90 = arith.constant dense<0.000000e+00> : vector<384x128xf32>
    %92 = tpu.matmul %89, %91, %cst_90 {dimension_numbers = #tpu.dot_dimension_numbers<[1], [0], [0], [1], [0, 0, 1, 1], [], []>} : vector<384x128xbf16>, vector<128x128xbf16>, vector<384x128xf32> -> vector<384x128xf32>
    %93 = arith.addf %88, %92 : vector<384x128xf32>
    %c26_91 = arith.constant 26 : index
    %c0_92 = arith.constant 0 : index
    %94 = vector.load %arg10[%c26_91, %c0_92] : memref<456x128xbf16, #tpu.memory_space<vmem>>, vector<384x128xbf16>
    %c5_93 = arith.constant 5 : index
    %c0_94 = arith.constant 0 : index
    %c0_95 = arith.constant 0 : index
    %95 = vector.load %arg6[%c5_93, %c0_94, %c0_95] : memref<9x128x128xbf16, #tpu.memory_space<vmem>>, vector<1x128x128xbf16>
    %96 = vector.shape_cast %95 : vector<1x128x128xbf16> to vector<128x128xbf16>
    %cst_96 = arith.constant dense<0.000000e+00> : vector<384x128xf32>
    %97 = tpu.matmul %94, %96, %cst_96 {dimension_numbers = #tpu.dot_dimension_numbers<[1], [0], [0], [1], [0, 0, 1, 1], [], []>} : vector<384x128xbf16>, vector<128x128xbf16>, vector<384x128xf32> -> vector<384x128xf32>
    %98 = arith.addf %93, %97 : vector<384x128xf32>
    %c48_97 = arith.constant 48 : index
    %c0_98 = arith.constant 0 : index
    %99 = vector.load %arg10[%c48_97, %c0_98] : memref<456x128xbf16, #tpu.memory_space<vmem>>, vector<384x128xbf16>
    %c6_99 = arith.constant 6 : index
    %c0_100 = arith.constant 0 : index
    %c0_101 = arith.constant 0 : index
    %100 = vector.load %arg6[%c6_99, %c0_100, %c0_101] : memref<9x128x128xbf16, #tpu.memory_space<vmem>>, vector<1x128x128xbf16>
    %101 = vector.shape_cast %100 : vector<1x128x128xbf16> to vector<128x128xbf16>
    %cst_102 = arith.constant dense<0.000000e+00> : vector<384x128xf32>
    %102 = tpu.matmul %99, %101, %cst_102 {dimension_numbers = #tpu.dot_dimension_numbers<[1], [0], [0], [1], [0, 0, 1, 1], [], []>} : vector<384x128xbf16>, vector<128x128xbf16>, vector<384x128xf32> -> vector<384x128xf32>
    %103 = arith.addf %98, %102 : vector<384x128xf32>
    %c49_103 = arith.constant 49 : index
    %c0_104 = arith.constant 0 : index
    %104 = vector.load %arg10[%c49_103, %c0_104] : memref<456x128xbf16, #tpu.memory_space<vmem>>, vector<384x128xbf16>
    %c7_105 = arith.constant 7 : index
    %c0_106 = arith.constant 0 : index
    %c0_107 = arith.constant 0 : index
    %105 = vector.load %arg6[%c7_105, %c0_106, %c0_107] : memref<9x128x128xbf16, #tpu.memory_space<vmem>>, vector<1x128x128xbf16>
    %106 = vector.shape_cast %105 : vector<1x128x128xbf16> to vector<128x128xbf16>
    %cst_108 = arith.constant dense<0.000000e+00> : vector<384x128xf32>
    %107 = tpu.matmul %104, %106, %cst_108 {dimension_numbers = #tpu.dot_dimension_numbers<[1], [0], [0], [1], [0, 0, 1, 1], [], []>} : vector<384x128xbf16>, vector<128x128xbf16>, vector<384x128xf32> -> vector<384x128xf32>
    %108 = arith.addf %103, %107 : vector<384x128xf32>
    %c50_109 = arith.constant 50 : index
    %c0_110 = arith.constant 0 : index
    %109 = vector.load %arg10[%c50_109, %c0_110] : memref<456x128xbf16, #tpu.memory_space<vmem>>, vector<384x128xbf16>
    %c8_111 = arith.constant 8 : index
    %c0_112 = arith.constant 0 : index
    %c0_113 = arith.constant 0 : index
    %110 = vector.load %arg6[%c8_111, %c0_112, %c0_113] : memref<9x128x128xbf16, #tpu.memory_space<vmem>>, vector<1x128x128xbf16>
    %111 = vector.shape_cast %110 : vector<1x128x128xbf16> to vector<128x128xbf16>
    %cst_114 = arith.constant dense<0.000000e+00> : vector<384x128xf32>
    %112 = tpu.matmul %109, %111, %cst_114 {dimension_numbers = #tpu.dot_dimension_numbers<[1], [0], [0], [1], [0, 0, 1, 1], [], []>} : vector<384x128xbf16>, vector<128x128xbf16>, vector<384x128xf32> -> vector<384x128xf32>
    %113 = arith.addf %108, %112 : vector<384x128xf32>
    %c0_115 = arith.constant 0 : index
    %c0_116 = arith.constant 0 : index
    %114 = vector.load %arg7[%c0_115, %c0_116] : memref<1x128xf32, #tpu.memory_space<vmem>>, vector<1x128xf32>
    %115 = vector.broadcast %114 : vector<1x128xf32> to vector<384x128xf32>
    %116 = arith.mulf %113, %115 : vector<384x128xf32>
    %c0_117 = arith.constant 0 : index
    %c0_118 = arith.constant 0 : index
    %117 = vector.load %arg8[%c0_117, %c0_118] : memref<1x128xf32, #tpu.memory_space<vmem>>, vector<1x128xf32>
    %118 = vector.broadcast %117 : vector<1x128xf32> to vector<384x128xf32>
    %119 = arith.addf %116, %118 : vector<384x128xf32>
    %cst_119 = arith.constant 0.000000e+00 : f32
    %120 = vector.broadcast %cst_119 : f32 to vector<384x128xf32>
    %121 = arith.maximumf %119, %120 : vector<384x128xf32>
    %122 = arith.truncf %121 : vector<384x128xf32> to vector<384x128xbf16>
    %c0_120 = arith.constant 0 : index
    %c0_121 = arith.constant 0 : index
    %c0_122 = arith.constant 0 : index
    %123 = vector.load %arg9[%c0_120, %c0_121, %c0_122] : memref<1x384x128xbf16, #tpu.memory_space<vmem>>, vector<1x384x128xbf16>
    %124 = vector.shape_cast %123 : vector<1x384x128xbf16> to vector<384x128xbf16>
    %125 = vector.shape_cast %122 : vector<384x128xbf16> to vector<1x384x128xbf16>
    tpu.vector_store %arg9[%c0_120, %c0_121, %c0_122], %125 {strides = array<i32>} : memref<1x384x128xbf16, #tpu.memory_space<vmem>>, vector<1x384x128xbf16>,
    return
  }
  func.func @transform_0(%arg0: i32) -> (i32, i32, i32) {
    %c0_i32 = arith.constant 0 : i32
    %c0_i32_0 = arith.constant 0 : i32
    %c0_i32_1 = arith.constant 0 : i32
    return %arg0, %c0_i32, %c0_i32_0 : i32, i32, i32
  }
  func.func @transform_1(%arg0: i32) -> (i32, i32) {
    %c0_i32 = arith.constant 0 : i32
    %c0_i32_0 = arith.constant 0 : i32
    %c0_i32_1 = arith.constant 0 : i32
    return %c0_i32, %c0_i32_0 : i32, i32
  }
  func.func @transform_2(%arg0: i32) -> (i32, i32, i32) {
    %c0_i32 = arith.constant 0 : i32
    %c0_i32_0 = arith.constant 0 : i32
    %c0_i32_1 = arith.constant 0 : i32
    %c0_i32_2 = arith.constant 0 : i32
    return %c0_i32, %c0_i32_0, %c0_i32_1 : i32, i32, i32
  }
  func.func @transform_3(%arg0: i32) -> (i32, i32) {
    %c0_i32 = arith.constant 0 : i32
    %c0_i32_0 = arith.constant 0 : i32
    %c0_i32_1 = arith.constant 0 : i32
    return %c0_i32, %c0_i32_0 : i32, i32
  }
  func.func @transform_4(%arg0: i32) -> (i32, i32) {
    %c0_i32 = arith.constant 0 : i32
    %c0_i32_0 = arith.constant 0 : i32
    %c0_i32_1 = arith.constant 0 : i32
    return %c0_i32, %c0_i32_0 : i32, i32
  }
  func.func @transform_5(%arg0: i32) -> (i32, i32, i32) {
    %c0_i32 = arith.constant 0 : i32
    %c0_i32_0 = arith.constant 0 : i32
    %c0_i32_1 = arith.constant 0 : i32
    %c0_i32_2 = arith.constant 0 : i32
    return %c0_i32, %c0_i32_0, %c0_i32_1 : i32, i32, i32
  }
  func.func @transform_6(%arg0: i32) -> (i32, i32) {
    %c0_i32 = arith.constant 0 : i32
    %c0_i32_0 = arith.constant 0 : i32
    %c0_i32_1 = arith.constant 0 : i32
    return %c0_i32, %c0_i32_0 : i32, i32
  }
  func.func @transform_7(%arg0: i32) -> (i32, i32) {
    %c0_i32 = arith.constant 0 : i32
    %c0_i32_0 = arith.constant 0 : i32
    %c0_i32_1 = arith.constant 0 : i32
    return %c0_i32, %c0_i32_0 : i32, i32
  }
  func.func @transform_8(%arg0: i32) -> (i32, i32, i32) {
    %c0_i32 = arith.constant 0 : i32
    %c0_i32_0 = arith.constant 0 : i32
    %c0_i32_1 = arith.constant 0 : i32
    return %arg0, %c0_i32, %c0_i32_0 : i32, i32, i32
  }
}

</mosaic_0001>

<bundles_post_ra>
// kernel: double_conv_forward.1
= control target key start
LH: loop header
LB: loop body
LE: loop exit
PB: predicated region body
PF: predicated region fallthrough
CT: control target
= control target key end

     0   :  { %s11591_s27 = smov 0   ;;  %s14886_s0 = inlined_call_operand.vmem [shape: bf16[2,456,8], index: 0, kind: input, shape index: {}]   ;;  %s14887_s1 = inlined_call_operand.vmem [shape: f32[384,1], index: 1, kind: input, shape index: {}]   ;;  %s14888_s2 = inlined_call_operand.vmem [shape: bf16[9,8,128], index: 2, kind: input, shape index: {}]   ;;  %s14889_s3 = inlined_call_operand.vmem [shape: f32[1,128], index: 3, kind: input, shape index: {}]   ;;  %s14890_s4 = inlined_call_operand.vmem [shape: f32[1,128], index: 4, kind: input, shape index: {}]   ;;  %s14891_s5 = inlined_call_operand.vmem [shape: bf16[9,128,128], index: 5, kind: input, shape index: {}]   ;;  %s14892_s6 = inlined_call_operand.vmem [shape: f32[1,128], index: 6, kind: input, shape index: {}]   ;;  %s14893_s7 = inlined_call_operand.vmem [shape: f32[1,128], index: 7, kind: input, shape index: {}]   ;;  %s14894_s8 = inlined_call_operand.vmem [shape: bf16[2,384,128], index: 8, kind: output, shape index: {}]  }
   0x1 LB: > { %s9365_s28 = sadd.s32 4294967295, %s11543_s27   ;;  %p9369_p0 = scmp.ge.s32.totalorder %s11543_s27, 1  ;;  %s11543_s27 = sphi %s11591_s27, %s18_s27  }
   0x2   : > { %p262_p1 = scmp.lt.s32.totalorder %s11543_s27, 3 }
   0x4   : > { %p263_p2 = pnand %p9369_p0, %p262_p1 }
   0x6   : > { %266 = sbr.rel (%p263_p2) target bundleno = 2051 (0x803), region = 52 }
   0xb   : > { %v355_v0 = vld [vmem:[%s14888_s2] sm:$0xf]  ;;  %vm752_vm0 = vcmask 1043456   ;;  %p296_p3 = scmp.lt.s32.totalorder %s9365_s28, 1  ;;  %v9372_v2 = vld [vmem:[%s14888_s2 + $0x4] sm:$0xf] }
   0xc   : > { %v934_v1 = vsel %vm752_vm0, %v355_v0, 0  ;;  %v754_v3 = vsel %vm752_vm0, %v9372_v2, 0  ;;  %v9513_v4 = vld [vmem:[%s14888_s2 + $0x8] sm:$0xf]  ;;  %v9538_v5 = vld [vmem:[%s14888_s2 + $0xc] sm:$0xf] }
   0xd   : > { %11430 = vmatpush.bf16.msra.mxu3 %v934_v1  ;;  %s15233_s28 = smov (!%p296_p3, %s9365_s28), 1  ;;  %943 = vmatpush.bf16.msra.mxu1 %v934_v1  ;;  %v1194_v6 = vsel %vm752_vm0, %v9513_v4, 0  ;;  %v1616_v7 = vsel %vm752_vm0, %v9538_v5, 0  ;;  %v9659_v8 = vld [vmem:[%s14888_s2 + $0x10] sm:$0xf]  ;;  %vm679_vm1 = vcmask 64512  }
   0xe   : > { %763 = vmatpush.bf16.msra.mxu0 %v754_v3  ;;  %11429 = vmatpush.bf16.msra.mxu2 %v754_v3  ;;  %s11431_s17 = smul.u32 228, %s15233_s28  ;;  %v2238_v9 = vsel %vm752_vm0, %v9659_v8, 0  ;;  %vm482_vm2 = vsmask.f32 7424  ;;  %vm1071_vm3 = vcmask 1046528   ;;  %vm4566_vm4 = vcmask 1040384  }
   0xf   : > { %vm4567_vm5 = vsmask.f32 256  ;;  %vm5103_vm7 = vsmask.f32 7938  ;;  %vm4620_vm9 = vsmask.f32 4368 }
  0x10   : > { %s11625_s20 = scalar_lea.vmem %s14886_s0, %s11431_s17  ;;  %vm12590_vm6 = vmand %vm4566_vm4, %vm4567_vm5  ;;  %s11432_s14 = smul.u32 192, %s15233_s28 }
  0x11   : > { %1625 = vmatpush.bf16.msrb.mxu3 %v1616_v7  ;;  %v10961_v10 = vld [vmem:[%s11625_s20 + $0x60] sm:$0xff]  ;;  %v11630_v12 = vld [vmem:[%s11625_s20 + $0x8] sm:$0xff]  ;;  %v11644_v28 = vld [vmem:[%s11625_s20 + $0x10] sm:$0xff] }
  0x12   : > { %1203 = vmatpush.bf16.msrb.mxu2 %v1194_v6  ;;  %2247 = vmatpush.bf16.msrb.mxu0 %v2238_v9  ;;  %v11257_v11 = vld [vmem:[%s11625_s20] sm:$0xff]   ;;  %v10962_v15 = vld [vmem:[%s11625_s20 + $0x68] sm:$0xff]  ;;  %v491_v16 = vshll.u32 %v11630_v12, 16  ;;  %v579_v17 = vshll.u32 %v10961_v10, 16  ;;  %v583_v18 = vshrl.u32 %v10961_v10, 16  ;;  %v10963_v29 = vld [vmem:[%s11625_s20 + $0x70] sm:$0xff]  ;;  %s14674_s16 = scalar_lea.vmem %s14894_s8, %s11432_s14 }
  0x13   : > { %v484_v13 = vshrl.u32 %v11257_v11, 16  ;;  %v486_v14 = vshll.u32 %v11257_v11, 16  ;;  %9489 = vmatmul.msk.bf16.vlgmr.msra.gmra.mxu1 %vm679_vm1, %v11257_v11  ;;  %9501 = vmatmul.msk.bf16.vlgmr.msra.gmra.mxu3 %vm679_vm1, %v10961_v10  ;;  %v587_v20 = vshll.u32 %v10962_v15, 16  ;;  %v495_v30 = vshrl.u32 %v11630_v12, 16  ;;  %v11657_v40 = vld [vmem:[%s11625_s20 + $0x18] sm:$0xff]  ;;  %v11670_v52 = vld [vmem:[%s11625_s20 + $0x20] sm:$0xff]  ;;  %vm12653_vm8 = vmand %vm752_vm0, %vm5103_vm7 }
  0x14   : > { %v493_v21 = vrot.slane %v491_v16, 1  ;;  %v11636_v22 = vrot.slane %v579_v17, 1  ;;  %v499_v31 = vshll.u32 %v11644_v28, 16  ;;  %v591_v32 = vshrl.u32 %v10962_v15, 16  ;;  %v10964_v41 = vld [vmem:[%s11625_s20 + $0x78] sm:$0xff]  ;;  %v10965_v53 = vld [vmem:[%s11625_s20 + $0x80] sm:$0xff]  ;;  %vm12683_vm10 = vmor %vm4567_vm5, %vm4620_vm9 }
  0x15   : > { %v488_v19 = vrot.slane %v486_v14, 1  ;;  %v589_v24 = vrot.slane %v587_v20, 1  ;;  %v595_v33 = vshll.u32 %v10963_v29, 16  ;;  %v503_v42 = vshrl.u32 %v11644_v28, 16  ;;  %v11683_v0 = vld [vmem:[%s11625_s20 + $0x28] sm:$0xff]  ;;  %v10967_v14 = vld [vmem:[%s11625_s20 + $0x90] sm:$0xff] }
  0x16   : > { %v585_v25 = vor.u32 %v583_v18, %v11636_v22  ;;  %v497_v34 = vor.u32 %v495_v30, %v493_v21  ;;  %v501_v35 = vrot.slane %v499_v31, 1  ;;  %v507_v43 = vshll.u32 %v11657_v40, 16  ;;  %v10966_v1 = vld [vmem:[%s11625_s20 + $0x88] sm:$0xff] }
  0x17   : > { %v489_v23 = vor.u32 %v488_v19, %v484_v13  ;;  %v593_v36 = vor.u32 %v591_v32, %v589_v24  ;;  %v597_v37 = vrot.slane %v595_v33, 1  ;;  %v599_v44 = vshrl.u32 %v10963_v29, 16  ;;  %v11696_v13 = vld [vmem:[%s11625_s20 + $0x30] sm:$0xff] }
  0x18   : > { %v590_v27 = vsel %vm482_vm2, %v585_v25, %v589_v24  ;;  %v502_v38 = vsel %vm482_vm2, %v497_v34, %v501_v35  ;;  %v603_v45 = vshll.u32 %v10964_v41, 16  ;;  %v505_v46 = vor.u32 %v503_v42, %v501_v35 }
  0x19   : > { %v494_v26 = vsel %vm482_vm2, %v489_v23, %v493_v21  ;;  %9477 = vmatmul.msk.bf16.vlgmr.msra.gmra.mxu2 %vm679_vm1, %v590_v27  ;;  %v598_v39 = vsel %vm482_vm2, %v593_v36, %v597_v37  ;;  %v509_v47 = vrot.slane %v507_v43, 1  ;;  %v601_v48 = vor.u32 %v599_v44, %v597_v37  ;;  %v10968_v27 = vld [vmem:[%s11625_s20 + $0x98] sm:$0xff] }
  0x1a   : > { %9465 = vmatmul.msk.bf16.vlgmr.msra.gmra.mxu0 %vm679_vm1, %v494_v26  ;;  %v605_v49 = vrot.slane %v603_v45, 1  ;;  %v511_v54 = vshrl.u32 %v11657_v40, 16  ;;  %v515_v55 = vshll.u32 %v11670_v52, 16  ;;  %v607_v56 = vshrl.u32 %v10964_v41, 16  ;;  %v11709_v26 = vld [vmem:[%s11625_s20 + $0x38] sm:$0xff] }
  0x1b   : > { %v510_v50 = vsel %vm482_vm2, %v505_v46, %v509_v47  ;;  %v611_v57 = vshll.u32 %v10965_v53, 16  ;;  %v519_v2 = vshrl.u32 %v11670_v52, 16  ;;  %v523_v3 = vshll.u32 %v11683_v0, 16 }
  0x1c   : > { %v606_v51 = vsel %vm482_vm2, %v601_v48, %v605_v49  ;;  %v513_v58 = vor.u32 %v511_v54, %v509_v47  ;;  %v517_v59 = vrot.slane %v515_v55, 1  ;;  %v609_v60 = vor.u32 %v607_v56, %v605_v49  ;;  %v10970_v54 = vld [vmem:[%s11625_s20 + $0xa8] sm:$0xff] }
  0x1d   : > { %v613_v61 = vrot.slane %v611_v57, 1  ;;  %v615_v4 = vshrl.u32 %v10965_v53, 16  ;;  %v619_v5 = vshll.u32 %v10966_v1, 16  ;;  %v525_v7 = vrot.slane %v523_v3, 1 }
  0x1e   : > { %v518_v62 = vsel %vm482_vm2, %v513_v58, %v517_v59  ;;  %v521_v6 = vor.u32 %v519_v2, %v517_v59  ;;  %v531_v16 = vshll.u32 %v11696_v13, 16  ;;  %v623_v17 = vshrl.u32 %v10966_v1, 16 }
  0x1f   : > { %v614_v63 = vsel %vm482_vm2, %v609_v60, %v613_v61  ;;  %v617_v8 = vor.u32 %v615_v4, %v613_v61  ;;  %v621_v9 = vrot.slane %v619_v5, 1  ;;  %v627_v18 = vshll.u32 %v10967_v14, 16 }
  0x20   : > { %v526_v10 = vsel %vm482_vm2, %v521_v6, %v525_v7  ;;  %v533_v20 = vrot.slane %v531_v16, 1  ;;  %v539_v30 = vshll.u32 %v11709_v26, 16  ;;  %v631_v31 = vshrl.u32 %v10967_v14, 16 }
  0x21   : > { %v622_v11 = vsel %vm482_vm2, %v617_v8, %v621_v9  ;;  %v625_v21 = vor.u32 %v623_v17, %v621_v9  ;;  %v629_v23 = vrot.slane %v627_v18, 1  ;;  %v635_v32 = vshll.u32 %v10968_v27, 16  ;;  %v10971_v8 = vld [vmem:[%s11625_s20 + $0xb0] sm:$0xff] }
  0x22   : > { %v541_v34 = vrot.slane %v539_v30, 1  ;;  %v543_v42 = vshrl.u32 %v11709_v26, 16  ;;  %v639_v44 = vshrl.u32 %v10968_v27, 16  ;;  %v651_v59 = vshll.u32 %v10970_v54, 16 }
  0x23   : > { %9490 = vmatmul.msk.bf16.gmra.mxu1 %vm679_vm1, %v11630_v12  ;;  %9502 = vmatmul.msk.bf16.gmra.mxu3 %vm679_vm1, %v10962_v15  ;;  %v527_v15 = vshrl.u32 %v11683_v0, 16  ;;  %v630_v25 = vsel %vm482_vm2, %v625_v21, %v629_v23  ;;  %v633_v35 = vor.u32 %v631_v31, %v629_v23  ;;  %v637_v36 = vrot.slane %v635_v32, 1 }
  0x24   : > { %v545_v46 = vor.u32 %v543_v42, %v541_v34 }
  0x25   : > { %v529_v19 = vor.u32 %v527_v15, %v525_v7  ;;  %v641_v48 = vor.u32 %v639_v44, %v637_v36  ;;  %v11750_v7 = vld [vmem:[%s11625_s20 + $0x50] sm:$0xff] }
  0x26   : > { %v563_v16 = vshll.u32 %v11750_v7, 16 }
  0x27   : > { %v534_v24 = vsel %vm482_vm2, %v529_v19, %v533_v20  ;;  %v655_v19 = vshrl.u32 %v10970_v54, 16 }
  0x28   : > { %v565_v23 = vrot.slane %v563_v16, 1 }
  0x29   : > { %9478 = vmatmul.msk.bf16.gmra.mxu2 %vm679_vm1, %v598_v39  ;;  %v11722_v39 = vld [vmem:[%s11625_s20 + $0x40] sm:$0xff] }
  0x2a   : > { %9466 = vmatmul.msk.bf16.gmra.mxu0 %vm679_vm1, %v502_v38  ;;  %v638_v38 = vsel %vm482_vm2, %v633_v35, %v637_v36  ;;  %v547_v43 = vshll.u32 %v11722_v39, 16  ;;  %v551_v55 = vshrl.u32 %v11722_v39, 16 }
  0x2c   : > { %v549_v47 = vrot.slane %v547_v43, 1 }
  0x2e   : > { %v553_v60 = vor.u32 %v551_v55, %v549_v47 }
  0x33   : > { %9491 = vmatmul.msk.bf16.gmra.mxu1 %vm679_vm1, %v11644_v28  ;;  %9503 = vmatmul.msk.bf16.gmra.mxu3 %vm679_vm1, %v10963_v29  ;;  %v535_v29 = vshrl.u32 %v11696_v13, 16 }
  0x35   : > { %v537_v33 = vor.u32 %v535_v29, %v533_v20  ;;  %v659_v20 = vshll.u32 %v10971_v8, 16 }
  0x37   : > { %v542_v37 = vsel %vm482_vm2, %v537_v33, %v541_v34 }
  0x39   : > { %9479 = vmatmul.msk.bf16.gmra.mxu2 %vm679_vm1, %v606_v51 }
  0x3a   : > { %9467 = vmatmul.msk.bf16.gmra.mxu0 %vm679_vm1, %v510_v50  ;;  %v550_v50 = vsel %vm482_vm2, %v545_v46, %v549_v47  ;;  %v567_v46 = vshrl.u32 %v11750_v7, 16 }
  0x43   : > { %9492 = vmatmul.msk.bf16.gmra.mxu1 %vm679_vm1, %v11657_v40  ;;  %9504 = vmatmul.msk.bf16.gmra.mxu3 %vm679_vm1, %v10964_v41  ;;  %v10969_v41 = vld [vmem:[%s11625_s20 + $0xa0] sm:$0xff] }
  0x44   : > { %v643_v45 = vshll.u32 %v10969_v41, 16  ;;  %v647_v58 = vshrl.u32 %v10969_v41, 16 }
  0x46   : > { %v645_v49 = vrot.slane %v643_v45, 1 }
  0x48   : > { %v646_v51 = vsel %vm482_vm2, %v641_v48, %v645_v49 }
  0x49   : > { %9480 = vmatmul.msk.bf16.gmra.mxu2 %vm679_vm1, %v614_v63  ;;  %v653_v63 = vrot.slane %v651_v59, 1 }
  0x4a   : > { %9468 = vmatmul.msk.bf16.gmra.mxu0 %vm679_vm1, %v518_v62  ;;  %v649_v62 = vor.u32 %v647_v58, %v645_v49  ;;  %v356_v58 = vld [vmem:[%s11625_s20 + $0xc0] sm:$0x1] }
  0x4c   : > { %v654_v5 = vsel %vm482_vm2, %v649_v62, %v653_v63 }
  0x53   : > { %9493 = vmatmul.msk.bf16.gmra.mxu1 %vm679_vm1, %v11670_v52  ;;  %9505 = vmatmul.msk.bf16.gmra.mxu3 %vm679_vm1, %v10965_v53  ;;  %v11735_v53 = vld [vmem:[%s11625_s20 + $0x48] sm:$0xff] }
  0x54   : > { %v555_v56 = vshll.u32 %v11735_v53, 16  ;;  %v559_v15 = vshrl.u32 %v11735_v53, 16 }
  0x56   : > { %v557_v61 = vrot.slane %v555_v56, 1 }
  0x58   : > { %v558_v3 = vsel %vm482_vm2, %v553_v60, %v557_v61  ;;  %v561_v21 = vor.u32 %v559_v15, %v557_v61 }
  0x59   : > { %9481 = vmatmul.msk.bf16.gmra.mxu2 %vm679_vm1, %v622_v11 }
  0x5a   : > { %9469 = vmatmul.msk.bf16.gmra.mxu0 %vm679_vm1, %v526_v10  ;;  %v566_v34 = vsel %vm482_vm2, %v561_v21, %v565_v23 }
  0x63   : > { %9494 = vmatmul.msk.bf16.gmra.mxu1 %vm679_vm1, %v11683_v0  ;;  %9506 = vmatmul.msk.bf16.gmra.mxu3 %vm679_vm1, %v10966_v1 }
  0x69   : > { %9482 = vmatmul.msk.bf16.gmra.mxu2 %vm679_vm1, %v630_v25  ;;  %v661_v25 = vrot.slane %v659_v20, 1 }
  0x6a   : > { %9470 = vmatmul.msk.bf16.gmra.mxu0 %vm679_vm1, %v534_v24  ;;  %v657_v24 = vor.u32 %v655_v19, %v653_v63 }
  0x6c   : > { %v662_v36 = vsel %vm482_vm2, %v657_v24, %v661_v25 }
  0x73   : > { %9495 = vmatmul.msk.bf16.gmra.mxu1 %vm679_vm1, %v11696_v13  ;;  %9507 = vmatmul.msk.bf16.gmra.mxu3 %vm679_vm1, %v10967_v14 }
  0x79   : > { %9483 = vmatmul.msk.bf16.gmra.mxu2 %vm679_vm1, %v638_v38  ;;  %v11775_v38 = vld [vmem:[%s11625_s20 + $0x58] sm:$0xff] }
  0x7a   : > { %9471 = vmatmul.msk.bf16.gmra.mxu0 %vm679_vm1, %v542_v37  ;;  %v571_v47 = vshll.u32 %v11775_v38, 16  ;;  %v575_v20 = vshrl.u32 %v11775_v38, 16 }
  0x7c   : > { %v573_v55 = vrot.slane %v571_v47, 1 }
  0x83   : > { %9496 = vmatmul.msk.bf16.gmra.mxu1 %vm679_vm1, %v11709_v26  ;;  %9508 = vmatmul.msk.bf16.gmra.mxu3 %vm679_vm1, %v10968_v27  ;;  %v9776_v27 = vld [vmem:[%s14888_s2 + $0x14] sm:$0xf] }
  0x84   : > { %v2545_v29 = vsel %vm752_vm0, %v9776_v27, 0  ;;  %v1795_v27 = vld [vmem:[%s11625_s20 + $0xc] sm:$0xff]  }
  0x85   : > { %2554 = vmatpush.bf16.msrb.mxu1 %v2545_v29  ;;  %v11534_v29 = vld [vmem:[%s11625_s20 + $0xc] sm:$0xf0] }
  0x89   : > { %9484 = vmatmul.msk.bf16.gmra.mxu2 %vm679_vm1, %v646_v51 }
  0x8a   : > { %9472 = vmatmul.msk.bf16.gmra.mxu0 %vm679_vm1, %v550_v50  ;;  %v663_v50 = vshrl.u32 %v10971_v8, 16 }
  0x8c   : > { %v665_v56 = vor.u32 %v663_v50, %v661_v25 }
  0x90   : > { %v945_v57 = vpop.f32.mrf.mxu1 }
  0x93   : > { %9497 = vmatmul.msk.bf16.gmra.mxu1 %vm679_vm1, %v11722_v39  ;;  %9509 = vmatmul.msk.bf16.gmra.mxu3 %vm679_vm1, %v10969_v41  ;;  %v10972_v41 = vld [vmem:[%s11625_s20 + $0xb8] sm:$0xff] }
  0x94   : > { %v667_v51 = vshll.u32 %v10972_v41, 16  ;;  %v671_v24 = vshrl.u32 %v10972_v41, 16 }
  0x96   : > { %v1005_v2 = vpop.f32.mrf.mxu3 }
  0x97   : > { %v765_v1 = vpop.f32.mrf.mxu0 }
  0x98   : > { %v11744_v4 = vadd.f32 %v945_v57, %v765_v1  ;;  %v947_v6 = vpop.f32.mrf.mxu1  ;;  %v669_v57 = vrot.slane %v667_v51, 1 }
  0x99   : > { %9485 = vmatmul.msk.bf16.gmra.mxu2 %vm679_vm1, %v654_v5  ;;  %v456_v5 = vunpack.c.l.b16 %v356_v58  ;;  %v11392_v58 = vld [vmem:[%s11625_s20] sm:$0xf0] }
  0x9a   : > { %9473 = vmatmul.msk.bf16.gmra.mxu0 %vm679_vm1, %v558_v3 }
  0x9c   : > { %v825_v9 = vpop.f32.mrf.mxu2 }
  0x9d   : > { %v11753_v11 = vadd.f32 %v1005_v2, %v825_v9  ;;  %v670_v2 = vsel %vm482_vm2, %v665_v56, %v669_v57  ;;  %v11802_v9 = vpack.c.b16 %v456_v5, %v456_v5 }
  0x9e   : > { %v1007_v14 = vpop.f32.mrf.mxu3 }
  0x9f   : > { %v767_v10 = vpop.f32.mrf.mxu0  ;;  %v675_v25 = vshll.u32 %v11802_v9, 16 }
  0xa0   : > { %v11757_v17 = vadd.f32 %v947_v6, %v767_v10  ;;  %v950_v18 = vpop.f32.mrf.mxu1  ;;  %v9801_v6 = vld [vmem:[%s14888_s2 + $0x18] sm:$0xf] }
  0xa1   : > { %v2967_v10 = vsel %vm752_vm0, %v9801_v6, 0 }
  0xa2   : > { %2976 = vmatpush.bf16.msra.mxu2 %v2967_v10 }
  0xa3   : > { %9498 = vmatmul.msk.bf16.gmra.mxu1 %vm679_vm1, %v11735_v53  ;;  %9510 = vmatmul.msk.bf16.gmra.mxu3 %vm679_vm1, %v10970_v54  ;;  %v569_v54 = vor.u32 %v567_v46, %v565_v23 }
  0xa4   : > { %v827_v30 = vpop.f32.mrf.mxu2 }
  0xa5   : > { %v11766_v32 = vadd.f32 %v1007_v14, %v827_v30  ;;  %v574_v63 = vsel %vm482_vm2, %v569_v54, %v573_v55  ;;  %v11535_v30 = vld [vmem:[%s11625_s20 + $0xc] sm:$0xe]  ;;  %v10997_v54 = vld [vmem:[%s11625_s20 + $0x14] sm:$0xff] }
  0xa6   : > { %v1010_v33 = vpop.f32.mrf.mxu3  ;;  %v11536_v51 = vor.u32 %v11535_v30, %v11534_v29  ;;  %v1977_v5 = vshll.u32 %v10997_v54, 16 }
  0xa7   : > { %v770_v31 = vpop.f32.mrf.mxu0 }
  0xa8   : > { %v11769_v35 = vadd.f32 %v950_v18, %v770_v31  ;;  %v952_v37 = vpop.f32.mrf.mxu1  ;;  %v577_v31 = vor.u32 %v575_v20, %v573_v55  ;;  %v1972_v55 = vshll.u32 %v1795_v27, 16  ;;  %v2423_v56 = vrot.slane %v11536_v51, 1  ;;  %v10974_v51 = vld [vmem:[%s11625_s20 + $0x14] sm:$0xff] }
  0xa9   : > { %9486 = vmatmul.msk.bf16.gmra.mxu2 %vm679_vm1, %v662_v36  ;;  %v10039_v36 = vld [vmem:[%s14888_s2 + $0x20] sm:$0xf] }
  0xaa   : > { %9474 = vmatmul.msk.bf16.gmra.mxu0 %vm679_vm1, %v566_v34  ;;  %v677_v34 = vrot.slane %v675_v25, 1 }
  0xac   : > { %v830_v42 = vpop.f32.mrf.mxu2 }
  0xad   : > { %v11778_v44 = vadd.f32 %v1010_v33, %v830_v42  ;;  %v673_v33 = vor.u32 %v671_v24, %v669_v57  ;;  %v2424_v57 = vrot.slane %v10997_v54, 1 }
  0xae   : > { %v1012_v45 = vpop.f32.mrf.mxu3 }
  0xaf   : > { %v772_v43 = vpop.f32.mrf.mxu0 }
  0xb0   : > { %v11782_v48 = vadd.f32 %v952_v37, %v772_v43  ;;  %v955_v49 = vpop.f32.mrf.mxu1  ;;  %v3896_v37 = vsel %vm752_vm0, %v10039_v36, 0  ;;  %v10998_v36 = vld [vmem:[%s11625_s20 + $0x1c] sm:$0xff] }
  0xb1   : > { %3905 = vmatpush.bf16.msra.mxu0 %v3896_v37  ;;  %v2426_v37 = vrot.slane %v10998_v36, 1 }
  0xb3   : > { %9499 = vmatmul.msk.bf16.gmra.mxu1 %vm679_vm1, %v11750_v7  ;;  %9511 = vmatmul.msk.bf16.gmra.mxu3 %vm679_vm1, %v10971_v8  ;;  %v9922_v8 = vld [vmem:[%s14888_s2 + $0x1c] sm:$0xf] }
  0xb4   : > { %v832_v59 = vpop.f32.mrf.mxu2  ;;  %v3589_v14 = vsel %vm752_vm0, %v9922_v8, 0  ;;  %v10973_v8 = vld [vmem:[%s11625_s20 + $0xc] sm:$0xff] }
  0xb5   : > { %v11788_v61 = vadd.f32 %v1012_v45, %v832_v59  ;;  %3598 = vmatpush.bf16.msra.mxu3 %v3589_v14  ;;  %v11393_v59 = vld [vmem:[%s11625_s20] sm:$0xe] }
  0xb6   : > { %v1015_v62 = vpop.f32.mrf.mxu3  ;;  %v11394_v14 = vor.u32 %v11393_v59, %v11392_v58 }
  0xb7   : > { %v775_v60 = vpop.f32.mrf.mxu0 }
  0xb8   : > { %v11791_v1 = vadd.f32 %v955_v49, %v775_v60  ;;  %v957_v3 = vpop.f32.mrf.mxu1  ;;  %v678_v49 = vsel %vm482_vm2, %v673_v33, %v677_v34  ;;  %v1072_v20 = vrot.slane %v11394_v14, 1 }
  0xb9   : > { %9487 = vmatmul.msk.bf16.gmra.mxu2 %vm679_vm1, %v670_v2 }
  0xba   : > { %9475 = vmatmul.msk.bf16.gmra.mxu0 %vm679_vm1, %v574_v63 }
  0xbc   : > { %v835_v15 = vpop.f32.mrf.mxu2 }
  0xbd   : > { %v11806_v18 = vadd.f32 %v1015_v62, %v835_v15  ;;  %v1970_v62 = vshrl.u32 %v1795_v27, 16  ;;  %v2425_v15 = vsel %vm1071_vm3, %v2423_v56, %v2424_v57  ;;  %v2427_v56 = vsel %vm1071_vm3, %v2424_v57, %v2426_v37 }
  0xbe   : > { %v1017_v19 = vpop.f32.mrf.mxu3 }
  0xbf   : > { %v777_v16 = vpop.f32.mrf.mxu0 }
  0xc0   : > { %v11809_v21 = vadd.f32 %v957_v3, %v777_v16  ;;  %v960_v23 = vpop.f32.mrf.mxu1  ;;  %v1974_v3 = vrot.slane %v1972_v55, 1 }
  0xc2   : > { %v1975_v16 = vor.u32 %v1974_v3, %v1970_v62 }
  0xc3   : > { %9500 = vmatmul.msk.bf16.gmra.mxu1 %vm679_vm1, %v11775_v38  ;;  %9512 = vmatmul.msk.bf16.gmra.mxu3 %vm679_vm1, %v10972_v41  ;;  %v582_v41 = vsel %vm482_vm2, %v577_v31, %v11636_v22 }
  0xc4   : > { %v837_v42 = vpop.f32.mrf.mxu2 }
  0xc5   : > { %v11822_v45 = vadd.f32 %v1017_v19, %v837_v42  ;;  %v1979_v19 = vrot.slane %v1977_v5, 1 }
  0xc6   : > { %v1020_v46 = vpop.f32.mrf.mxu3 }
  0xc7   : > { %v780_v43 = vpop.f32.mrf.mxu0  ;;  %v1980_v30 = vsel %vm482_vm2, %v1975_v16, %v1979_v19 }
  0xc8   : > { %v11826_v47 = vadd.f32 %v960_v23, %v780_v43  ;;  %v962_v50 = vpop.f32.mrf.mxu1  ;;  %v1073_v23 = vrot.slane %v11630_v12, 1 }
  0xc9   : > { %9488 = vmatmul.msk.bf16.gmra.mxu2 %vm679_vm1, %v678_v49  ;;  %v1985_v49 = vshll.u32 %v10998_v36, 16 }
  0xca   : > { %9476 = vmatmul.msk.bf16.gmra.mxu0 %vm679_vm1, %v582_v41  ;;  %v1074_v33 = vsel %vm1071_vm3, %v1072_v20, %v1073_v23  ;;  %v1981_v41 = vshrl.u32 %v10997_v54, 16  ;;  %v1989_v20 = vshrl.u32 %v10998_v36, 16 }
  0xcb   : > { %v1987_v59 = vrot.slane %v1985_v49, 1 }
  0xcc   : > { %v840_v60 = vpop.f32.mrf.mxu2  ;;  %v1983_v58 = vor.u32 %v1981_v41, %v1979_v19 }
  0xcd   : > { %v11834_v63 = vadd.f32 %v1020_v46, %v840_v60  ;;  %v1075_v60 = vrot.slane %v11644_v28, 1 }
  0xce   : > { %v1022_v2 = vpop.f32.mrf.mxu3  ;;  %v1988_v3 = vsel %vm482_vm2, %v1983_v58, %v1987_v59 }
  0xcf   : > { %v782_v22 = vpop.f32.mrf.mxu0  ;;  %v1076_v57 = vsel %vm1071_vm3, %v1073_v23, %v1075_v60 }
  0xd0   : > { %v11836_v6 = vadd.f32 %v962_v50, %v782_v22  ;;  %v965_v10 = vpop.f32.mrf.mxu1 }
  0xd3   : > { %9777 = vmatmul.msk.bf16.vlgmr.msrb.gmra.mxu1 %vm679_vm1, %v2425_v15  ;;  %9635 = vmatmul.msk.bf16.vlgmr.msrb.gmra.mxu3 %vm679_vm1, %v10973_v8 }
  0xd4   : > { %v842_v24 = vpop.f32.mrf.mxu2 }
  0xd5   : > { %v11843_v27 = vadd.f32 %v1022_v2, %v842_v24 }
  0xd6   : > { %v1025_v29 = vpop.f32.mrf.mxu3 }
  0xd7   : > { %v785_v25 = vpop.f32.mrf.mxu0 }
  0xd8   : > { %v11846_v31 = vadd.f32 %v965_v10, %v785_v25  ;;  %v967_v34 = vpop.f32.mrf.mxu1  ;;  %v10999_v10 = vld [vmem:[%s11625_s20 + $0x24] sm:$0xff] }
  0xd9   : > { %9514 = vmatmul.msk.bf16.vlgmr.msrb.gmra.mxu2 %vm679_vm1, %v1074_v33  ;;  %v2428_v14 = vrot.slane %v10999_v10, 1  ;;  %v1993_v24 = vshll.u32 %v10999_v10, 16  ;;  %v1991_v33 = vor.u32 %v1989_v20, %v1987_v59  ;;  %v1079_v20 = vrot.slane %v11670_v52, 1 }
  0xda   : > { %9752 = vmatmul.msk.bf16.vlgmr.msrb.gmra.mxu0 %vm679_vm1, %v1980_v30 }
  0xdb   : > { %v2429_v23 = vsel %vm1071_vm3, %v2426_v37, %v2428_v14 }
  0xdc   : > { %v845_v12 = vpop.f32.mrf.mxu2 }
  0xdd   : > { %v11852_v43 = vadd.f32 %v1025_v29, %v845_v12  ;;  %v10975_v29 = vld [vmem:[%s11625_s20 + $0x1c] sm:$0xff]  ;;  %v1077_v12 = vrot.slane %v11657_v40, 1 }
  0xde   : > { %v1027_v46 = vpop.f32.mrf.mxu3 }
  0xdf   : > { %v787_v42 = vpop.f32.mrf.mxu0  ;;  %v1078_v37 = vsel %vm1071_vm3, %v1075_v60, %v1077_v12 }
  0xe0   : > { %v11854_v50 = vadd.f32 %v967_v34, %v787_v42  ;;  %v970_v55 = vpop.f32.mrf.mxu1  ;;  %v1995_v34 = vrot.slane %v1993_v24, 1 }
  0xe2   : > { %v1996_v49 = vsel %vm482_vm2, %v1991_v33, %v1995_v34 }
  0xe3   : > { %9778 = vmatmul.msk.bf16.gmra.mxu1 %vm679_vm1, %v2427_v56  ;;  %9636 = vmatmul.msk.bf16.gmra.mxu3 %vm679_vm1, %v10974_v51  ;;  %v11000_v56 = vld [vmem:[%s11625_s20 + $0x2c] sm:$0xff] }
  0xe4   : > { %v847_v62 = vpop.f32.mrf.mxu2  ;;  %v2430_v58 = vrot.slane %v11000_v56, 1 }
  0xe5   : > { %v11861_v2 = vadd.f32 %v1027_v46, %v847_v62 }
  0xe6   : > { %v1030_v54 = vpop.f32.mrf.mxu3  ;;  %v2431_v60 = vsel %vm1071_vm3, %v2428_v14, %v2430_v58  ;;  %v1080_v14 = vsel %vm1071_vm3, %v1077_v12, %v1079_v20 }
  0xe7   : > { %v790_v22 = vpop.f32.mrf.mxu0 }
  0xe8   : > { %v11864_v5 = vadd.f32 %v970_v55, %v790_v22  ;;  %v972_v8 = vpop.f32.mrf.mxu1 }
  0xe9   : > { %9515 = vmatmul.msk.bf16.gmra.mxu2 %vm679_vm1, %v1076_v57 }
  0xea   : > { %9753 = vmatmul.msk.bf16.gmra.mxu0 %vm679_vm1, %v1988_v3  ;;  %v2001_v3 = vshll.u32 %v11000_v56, 16 }
  0xec   : > { %v850_v28 = vpop.f32.mrf.mxu2 }
  0xed   : > { %v11870_v16 = vadd.f32 %v1030_v54, %v850_v28  ;;  %v1997_v54 = vshrl.u32 %v10999_v10, 16 }
  0xee   : > { %v1032_v19 = vpop.f32.mrf.mxu3 }
  0xef   : > { %v792_v15 = vpop.f32.mrf.mxu0 }
  0xf0   : > { %v11872_v25 = vadd.f32 %v972_v8, %v792_v15  ;;  %v975_v30 = vpop.f32.mrf.mxu1  ;;  %v10976_v8 = vld [vmem:[%s11625_s20 + $0x24] sm:$0xff]  ;;  %v1999_v15 = vor.u32 %v1997_v54, %v1995_v34 }
  0xf3   : > { %9779 = vmatmul.msk.bf16.gmra.mxu1 %vm679_vm1, %v2429_v23  ;;  %9637 = vmatmul.msk.bf16.gmra.mxu3 %vm679_vm1, %v10975_v29 }
  0xf4   : > { %v852_v42 = vpop.f32.mrf.mxu2 }
  0xf5   : > { %v11879_v41 = vadd.f32 %v1032_v19, %v852_v42  ;;  %v2003_v19 = vrot.slane %v2001_v3, 1  ;;  %v11001_v42 = vld [vmem:[%s11625_s20 + $0x34] sm:$0xff] }
  0xf6   : > { %v1035_v36 = vpop.f32.mrf.mxu3 }
  0xf7   : > { %v795_v46 = vpop.f32.mrf.mxu0  ;;  %v2004_v23 = vsel %vm482_vm2, %v1999_v15, %v2003_v19 }
  0xf8   : > { %v11882_v51 = vadd.f32 %v975_v30, %v795_v46  ;;  %v977_v55 = vpop.f32.mrf.mxu1  ;;  %v2432_v46 = vrot.slane %v11001_v42, 1 }
  0xf9   : > { %9516 = vmatmul.msk.bf16.gmra.mxu2 %vm679_vm1, %v1078_v37 }
  0xfa   : > { %9754 = vmatmul.msk.bf16.gmra.mxu0 %vm679_vm1, %v1996_v49  ;;  %v2433_v12 = vsel %vm1071_vm3, %v2430_v58, %v2432_v46 }
  0xfc   : > { %v855_v40 = vpop.f32.mrf.mxu2 }
  0xfd   : > { %v11888_v62 = vadd.f32 %v1035_v36, %v855_v40  ;;  %v2009_v40 = vshll.u32 %v11001_v42, 16 }
  0xfe   : > { %v1037_v22 = vpop.f32.mrf.mxu3 }
  0xff   : > { %v797_v59 = vpop.f32.mrf.mxu0  ;;  %14948 = vst [vmem:[#allocation3_spill] sm:$0xff] %v11888_v62 }
 0x100   : > { %v11890_v57 = vadd.f32 %v977_v55, %v797_v59  ;;  %v980_v28 = vpop.f32.mrf.mxu1  ;;  %v2005_v55 = vshrl.u32 %v11000_v56, 16 }
 0x102   : > { %v2007_v3 = vor.u32 %v2005_v55, %v2003_v19 }
 0x103   : > { %9780 = vmatmul.msk.bf16.gmra.mxu1 %vm679_vm1, %v2431_v60  ;;  %9638 = vmatmul.msk.bf16.gmra.mxu3 %vm679_vm1, %v10976_v8  ;;  %v2011_v8 = vrot.slane %v2009_v40, 1 }
 0x104   : > { %v857_v24 = vpop.f32.mrf.mxu2 }
 0x105   : > { %v11897_v30 = vadd.f32 %v1037_v22, %v857_v24  ;;  %v10977_v22 = vld [vmem:[%s11625_s20 + $0x2c] sm:$0xff] }
 0x106   : > { %v1040_v10 = vpop.f32.mrf.mxu3 }
 0x107   : > { %v800_v29 = vpop.f32.mrf.mxu0  ;;  %14949 = vst [vmem:[#allocation4_spill] sm:$0xff] %v11897_v30 }
 0x108   : > { %v11900_v33 = vadd.f32 %v980_v28, %v800_v29  ;;  %v982_v34 = vpop.f32.mrf.mxu1  ;;  %v1081_v28 = vrot.slane %v11683_v0, 1  ;;  %v2012_v29 = vsel %vm482_vm2, %v2007_v3, %v2011_v8 }
 0x109   : > { %9517 = vmatmul.msk.bf16.gmra.mxu2 %vm679_vm1, %v1080_v14 }
 0x10a   : > { %9755 = vmatmul.msk.bf16.gmra.mxu0 %vm679_vm1, %v2004_v23  ;;  %v1082_v58 = vsel %vm1071_vm3, %v1079_v20, %v1081_v28  ;;  %v11002_v23 = vld [vmem:[%s11625_s20 + $0x3c] sm:$0xff] }
 0x10b   : > { %v2434_v14 = vrot.slane %v11002_v23, 1  ;;  %v2017_v55 = vshll.u32 %v11002_v23, 16 }
 0x10c   : > { %v860_v52 = vpop.f32.mrf.mxu2 }
 0x10d   : > { %v11906_v49 = vadd.f32 %v1040_v10, %v860_v52  ;;  %v2435_v20 = vsel %vm1071_vm3, %v2432_v46, %v2434_v14  ;;  %v2019_v3 = vrot.slane %v2017_v55, 1 }
 0x10e   : > { %v1042_v37 = vpop.f32.mrf.mxu3 }
 0x10f   : > { %v802_v36 = vpop.f32.mrf.mxu0  ;;  %14950 = vst [vmem:[#allocation5_spill] sm:$0xff] %v11906_v49 }
 0x110   : > { %v11908_v59 = vadd.f32 %v982_v34, %v802_v36  ;;  %v985_v54 = vpop.f32.mrf.mxu1 }
 0x113   : > { %9781 = vmatmul.msk.bf16.gmra.mxu1 %vm679_vm1, %v2433_v12  ;;  %9639 = vmatmul.msk.bf16.gmra.mxu3 %vm679_vm1, %v10977_v22  ;;  %v10978_v22 = vld [vmem:[%s11625_s20 + $0x34] sm:$0xff] }
 0x114   : > { %v862_v60 = vpop.f32.mrf.mxu2 }
 0x115   : > { %v11915_v24 = vadd.f32 %v1042_v37, %v862_v60  ;;  %v2013_v37 = vshrl.u32 %v11001_v42, 16  ;;  %v1083_v60 = vrot.slane %v11696_v13, 1 }
 0x116   : > { %v1045_v56 = vpop.f32.mrf.mxu3 }
 0x117   : > { %v805_v15 = vpop.f32.mrf.mxu0  ;;  %14951 = vst [vmem:[#allocation6_spill] sm:$0xff] %v11915_v24  ;;  %v2015_v12 = vor.u32 %v2013_v37, %v2011_v8  ;;  %v1084_v46 = vsel %vm1071_vm3, %v1081_v28, %v1083_v60 }
 0x118   : > { %v11918_v10 = vadd.f32 %v985_v54, %v805_v15  ;;  %v987_v19 = vpop.f32.mrf.mxu1 }
 0x119   : > { %9518 = vmatmul.msk.bf16.gmra.mxu2 %vm679_vm1, %v1082_v58  ;;  %v2020_v58 = vsel %vm482_vm2, %v2015_v12, %v2019_v3 }
 0x11a   : > { %9756 = vmatmul.msk.bf16.gmra.mxu0 %vm679_vm1, %v2012_v29 }
 0x11c   : > { %v865_v0 = vpop.f32.mrf.mxu2 }
 0x11d   : > { %v11924_v52 = vadd.f32 %v1045_v56, %v865_v0  ;;  %v11003_v0 = vld [vmem:[%s11625_s20 + $0x44] sm:$0xff] }
 0x11e   : > { %v1047_v36 = vpop.f32.mrf.mxu3 }
 0x11f   : > { %v807_v34 = vpop.f32.mrf.mxu0  ;;  %14952 = vst [vmem:[#allocation7_spill] sm:$0xff] %v11924_v52 }
 0x120   : > { %v11926_v40 = vadd.f32 %v987_v19, %v807_v34  ;;  %v990_v54 = vpop.f32.mrf.mxu1  ;;  %v2436_v34 = vrot.slane %v11003_v0, 1 }
 0x122   : > { %v2437_v28 = vsel %vm1071_vm3, %v2434_v14, %v2436_v34 }
 0x123   : > { %9782 = vmatmul.msk.bf16.gmra.mxu1 %vm679_vm1, %v2435_v20  ;;  %9640 = vmatmul.msk.bf16.gmra.mxu3 %vm679_vm1, %v10978_v22  ;;  %v2021_v22 = vshrl.u32 %v11002_v23, 16  ;;  %v2025_v20 = vshll.u32 %v11003_v0, 16 }
 0x124   : > { %v867_v15 = vpop.f32.mrf.mxu2 }
 0x125   : > { %v11933_v29 = vadd.f32 %v1047_v36, %v867_v15 }
 0x126   : > { %v1050_v42 = vpop.f32.mrf.mxu3 }
 0x127   : > { %v810_v56 = vpop.f32.mrf.mxu0  ;;  %14953 = vst [vmem:[#allocation8_spill] sm:$0xff] %v11933_v29 }
 0x128   : > { %v11936_v19 = vadd.f32 %v990_v54, %v810_v56  ;;  %v992_v8 = vpop.f32.mrf.mxu1  ;;  %v10979_v54 = vld [vmem:[%s11625_s20 + $0x3c] sm:$0xff]  ;;  %v2023_v56 = vor.u32 %v2021_v22, %v2019_v3  ;;  %v11004_v22 = vld [vmem:[%s11625_s20 + $0x4c] sm:$0xff] }
 0x129   : > { %9519 = vmatmul.msk.bf16.gmra.mxu2 %vm679_vm1, %v1084_v46  ;;  %v1085_v46 = vrot.slane %v11709_v26, 1 }
 0x12a   : > { %9757 = vmatmul.msk.bf16.gmra.mxu0 %vm679_vm1, %v2020_v58  ;;  %v2027_v58 = vrot.slane %v2025_v20, 1  ;;  %v2438_v20 = vrot.slane %v11004_v22, 1 }
 0x12b   : > { %v1086_v14 = vsel %vm1071_vm3, %v1083_v60, %v1085_v46 }
 0x12c   : > { %v870_v13 = vpop.f32.mrf.mxu2  ;;  %v2439_v60 = vsel %vm1071_vm3, %v2436_v34, %v2438_v20 }
 0x12d   : > { %v11942_v55 = vadd.f32 %v1050_v42, %v870_v13 }
 0x12e   : > { %v1052_v36 = vpop.f32.mrf.mxu3 }
 0x12f   : > { %v812_v37 = vpop.f32.mrf.mxu0  ;;  %14954 = vst [vmem:[#allocation9_spill] sm:$0xff] %v11942_v55 }
 0x130   : > { %v11944_v15 = vadd.f32 %v992_v8, %v812_v37  ;;  %v995_v12 = vpop.f32.mrf.mxu1  ;;  %v2028_v8 = vsel %vm482_vm2, %v2023_v56, %v2027_v58 }
 0x133   : > { %9783 = vmatmul.msk.bf16.gmra.mxu1 %vm679_vm1, %v2437_v28  ;;  %9641 = vmatmul.msk.bf16.gmra.mxu3 %vm679_vm1, %v10979_v54 }
 0x134   : > { %v872_v42 = vpop.f32.mrf.mxu2 }
 0x135   : > { %v11951_v55 = vadd.f32 %v1052_v36, %v872_v42  ;;  %v2029_v42 = vshrl.u32 %v11003_v0, 16 }
 0x136   : > { %v1055_v23 = vpop.f32.mrf.mxu3 }
 0x137   : > { %v815_v13 = vpop.f32.mrf.mxu0  ;;  %14955 = vst [vmem:[#allocation10_spill] sm:$0xff] %v11951_v55  ;;  %v2033_v55 = vshll.u32 %v11004_v22, 16 }
 0x138   : > { %v11954_v37 = vadd.f32 %v995_v12, %v815_v13  ;;  %v997_v3 = vpop.f32.mrf.mxu1  ;;  %v10980_v12 = vld [vmem:[%s11625_s20 + $0x44] sm:$0xff]  ;;  %v2031_v13 = vor.u32 %v2029_v42, %v2027_v58 }
 0x139   : > { %9520 = vmatmul.msk.bf16.gmra.mxu2 %vm679_vm1, %v1086_v14  ;;  %v1087_v14 = vrot.slane %v11722_v39, 1 }
 0x13a   : > { %9758 = vmatmul.msk.bf16.gmra.mxu0 %vm679_vm1, %v2028_v8  ;;  %v2035_v8 = vrot.slane %v2033_v55, 1  ;;  %v11005_v55 = vld [vmem:[%s11625_s20 + $0x54] sm:$0xff] }
 0x13b   : > { %v1088_v34 = vsel %vm1071_vm3, %v1085_v46, %v1087_v14  ;;  %v2440_v42 = vrot.slane %v11005_v55, 1 }
 0x13c   : > { %v875_v26 = vpop.f32.mrf.mxu2 }
 0x13d   : > { %v11960_v28 = vadd.f32 %v1055_v23, %v875_v26  ;;  %v2441_v46 = vsel %vm1071_vm3, %v2438_v20, %v2440_v42  ;;  %v11006_v20 = vld [vmem:[%s11625_s20 + $0x5c] sm:$0xff] }
 0x13e   : > { %v1057_v36 = vpop.f32.mrf.mxu3 }
 0x13f   : > { %v817_v54 = vpop.f32.mrf.mxu0  ;;  %14956 = vst [vmem:[#allocation11_spill] sm:$0xff] %v11960_v28 }
 0x140   : > { %v11962_v29 = vadd.f32 %v997_v3, %v817_v54  ;;  %v1000_v56 = vpop.f32.mrf.mxu1  ;;  %v2036_v3 = vsel %vm482_vm2, %v2031_v13, %v2035_v8 }
 0x143   : > { %9784 = vmatmul.msk.bf16.gmra.mxu1 %vm679_vm1, %v2439_v60  ;;  %9642 = vmatmul.msk.bf16.gmra.mxu3 %vm679_vm1, %v10980_v12 }
 0x144   : > { %v877_v23 = vpop.f32.mrf.mxu2 }
 0x145   : > { %v11969_v28 = vadd.f32 %v1057_v36, %v877_v23  ;;  %v2037_v23 = vshrl.u32 %v11004_v22, 16 }
 0x146   : > { %v1060_v0 = vpop.f32.mrf.mxu3 }
 0x147   : > { %v820_v26 = vpop.f32.mrf.mxu0  ;;  %14957 = vst [vmem:[#allocation12_spill] sm:$0xff] %v11969_v28  ;;  %v2041_v28 = vshll.u32 %v11005_v55, 16 }
 0x148   : > { %v11972_v54 = vadd.f32 %v1000_v56, %v820_v26  ;;  %v1002_v58 = vpop.f32.mrf.mxu1  ;;  %v10981_v56 = vld [vmem:[%s11625_s20 + $0x4c] sm:$0xff]  ;;  %v2039_v26 = vor.u32 %v2037_v23, %v2035_v8 }
 0x149   : > { %9521 = vmatmul.msk.bf16.gmra.mxu2 %vm679_vm1, %v1088_v34  ;;  %v1089_v34 = vrot.slane %v11735_v53, 1 }
 0x14a   : > { %9759 = vmatmul.msk.bf16.gmra.mxu0 %vm679_vm1, %v2036_v3  ;;  %v2043_v3 = vrot.slane %v2041_v28, 1  ;;  %v2442_v28 = vrot.slane %v11006_v20, 1 }
 0x14c   : > { %v880_v39 = vpop.f32.mrf.mxu2 }
 0x14d   : > { %v11978_v60 = vadd.f32 %v1060_v0, %v880_v39 }
 0x14e   : > { %v1062_v36 = vpop.f32.mrf.mxu3 }
 0x14f   : > { %v822_v12 = vpop.f32.mrf.mxu0  ;;  %14958 = vst [vmem:[#allocation13_spill] sm:$0xff] %v11978_v60  ;;  %v1090_v60 = vsel %vm1071_vm3, %v1087_v14, %v1089_v34 }
 0x150   : > { %v11980_v52 = vadd.f32 %v1002_v58, %v822_v12  ;;  %v2556_v13 = vpop.f32.mrf.mxu1  ;;  %v2044_v12 = vsel %vm482_vm2, %v2039_v26, %v2043_v3  ;;  %v2443_v26 = vsel %vm1071_vm3, %v2440_v42, %v2442_v28 }
 0x153   : > { %9785 = vmatmul.msk.bf16.gmra.mxu1 %vm679_vm1, %v2441_v46  ;;  %9643 = vmatmul.msk.bf16.gmra.mxu3 %vm679_vm1, %v10981_v56  ;;  %v2045_v56 = vshrl.u32 %v11005_v55, 16  ;;  %v2049_v46 = vshll.u32 %v11006_v20, 16  ;;  %v11105_v55 = vld [vmem:[%s14891_s5 + $0x78] sm:$0xff] }
 0x154   : > { %v882_v0 = vpop.f32.mrf.mxu2  ;;  %5639 = vmatpush.bf16.msra.mxu1 %v11105_v55 }
 0x155   : > { %v11987_v39 = vadd.f32 %v1062_v36, %v882_v0  ;;  %v10982_v0 = vld [vmem:[%s11625_s20 + $0x54] sm:$0xff]  ;;  %v2047_v30 = vor.u32 %v2045_v56, %v2043_v3  ;;  %v2051_v62 = vrot.slane %v2049_v46, 1 }
 0x156   : > { %v1627_v58 = vpop.f32.mrf.mxu3 }
 0x157   : > { %14959 = vst [vmem:[#allocation14_spill] sm:$0xff] %v11987_v39  ;;  %v2249_v22 = vpop.f32.mrf.mxu0  ;;  %v2052_v3 = vsel %vm482_vm2, %v2047_v30, %v2051_v62 }
 0x158   : > { %v2558_v24 = vpop.f32.mrf.mxu1 }
 0x159   : > { %9522 = vmatmul.msk.bf16.gmra.mxu2 %vm679_vm1, %v1090_v60  ;;  %v1091_v60 = vrot.slane %v11750_v7, 1  ;;  %v11007_v7 = vld [vmem:[%s11625_s20 + $0x64] sm:$0xff] }
 0x15a   : > { %9760 = vmatmul.msk.bf16.gmra.mxu0 %vm679_vm1, %v2044_v12  ;;  %v2444_v56 = vrot.slane %v11007_v7, 1  ;;  %v2057_v55 = vshll.u32 %v11007_v7, 16 }
 0x15c   : > { %v1205_v8 = vpop.f32.mrf.mxu2 }
 0x15d   : > { %v1325_v53 = vadd.f32 %v1205_v8, %v11744_v4 }
 0x15e   : > { %v1629_v36 = vpop.f32.mrf.mxu3 }
 0x15f   : > { %v2251_v23 = vpop.f32.mrf.mxu0  ;;  %v1747_v49 = vadd.f32 %v1627_v58, %v1325_v53 }
 0x160   : > { %v2561_v39 = vpop.f32.mrf.mxu1 }
 0x161   : > { %v2369_v14 = vadd.f32 %v2249_v22, %v1747_v49  ;;  %v1092_v22 = vsel %vm1071_vm3, %v1089_v34, %v1091_v60 }
 0x163   : > { %9786 = vmatmul.msk.bf16.gmra.mxu1 %vm679_vm1, %v2443_v26  ;;  %9644 = vmatmul.msk.bf16.gmra.mxu3 %vm679_vm1, %v10982_v0  ;;  %v12000_v4 = vadd.f32 %v2556_v13, %v2369_v14  ;;  %v2053_v14 = vshrl.u32 %v11006_v20, 16 }
 0x164   : > { %v1207_v12 = vpop.f32.mrf.mxu2 }
 0x165   : > { %14960 = vst [vmem:[#allocation15_spill] sm:$0xff] %v12000_v4  ;;  %v1326_v42 = vadd.f32 %v1207_v12, %v11757_v17  ;;  %v10983_v12 = vld [vmem:[%s11625_s20 + $0x5c] sm:$0xff]  ;;  %v2055_v4 = vor.u32 %v2053_v14, %v2051_v62 }
 0x166   : > { %v1632_v49 = vpop.f32.mrf.mxu3 }
 0x167   : > { %v2254_v58 = vpop.f32.mrf.mxu0  ;;  %v1748_v53 = vadd.f32 %v1629_v36, %v1326_v42  ;;  %v2445_v36 = vsel %vm1071_vm3, %v2442_v28, %v2444_v56 }
 0x168   : > { %v2563_v8 = vpop.f32.mrf.mxu1 }
 0x169   : > { %9523 = vmatmul.msk.bf16.gmra.mxu2 %vm679_vm1, %v1092_v22  ;;  %v2370_v13 = vadd.f32 %v2251_v23, %v1748_v53  ;;  %v2059_v22 = vrot.slane %v2057_v55, 1 }
 0x16a   : > { %9761 = vmatmul.msk.bf16.gmra.mxu0 %vm679_vm1, %v2052_v3 }
 0x16b   : > { %v12011_v46 = vadd.f32 %v2558_v24, %v2370_v13  ;;  %v1093_v24 = vrot.slane %v11775_v38, 1  ;;  %v2060_v28 = vsel %vm482_vm2, %v2055_v4, %v2059_v22 }
 0x16c   : > { %v1210_v17 = vpop.f32.mrf.mxu2 }
 0x16d   : > { %v1327_v0 = vadd.f32 %v1210_v17, %v11769_v35  ;;  %v11008_v17 = vld [vmem:[%s11625_s20 + $0x6c] sm:$0xff] }
 0x16e   : > { %v1634_v30 = vpop.f32.mrf.mxu3 }
 0x16f   : > { %v2256_v26 = vpop.f32.mrf.mxu0  ;;  %v1749_v42 = vadd.f32 %v1632_v49, %v1327_v0 }
 0x170   : > { %v2566_v34 = vpop.f32.mrf.mxu1 }
 0x171   : > { %v2371_v3 = vadd.f32 %v2254_v58, %v1749_v42  ;;  %v1094_v58 = vsel %vm1071_vm3, %v1091_v60, %v1093_v24  ;;  %v10984_v60 = vld [vmem:[%s11625_s20 + $0x64] sm:$0xff] }
 0x173   : > { %9787 = vmatmul.msk.bf16.gmra.mxu1 %vm679_vm1, %v2445_v36  ;;  %9645 = vmatmul.msk.bf16.gmra.mxu3 %vm679_vm1, %v10983_v12  ;;  %v12019_v35 = vadd.f32 %v2561_v39, %v2371_v3  ;;  %v2446_v39 = vrot.slane %v11008_v17, 1  ;;  %v2061_v12 = vshrl.u32 %v11007_v7, 16  ;;  %v2065_v36 = vshll.u32 %v11008_v17, 16 }
 0x174   : > { %v1212_v23 = vpop.f32.mrf.mxu2 }
 0x175   : > { %v1328_v20 = vadd.f32 %v1212_v23, %v11782_v48 }
 0x176   : > { %v1637_v13 = vpop.f32.mrf.mxu3 }
 0x177   : > { %v2259_v53 = vpop.f32.mrf.mxu0  ;;  %v1750_v49 = vadd.f32 %v1634_v30, %v1328_v20  ;;  %v2447_v30 = vsel %vm1071_vm3, %v2444_v56, %v2446_v39  ;;  %v2063_v20 = vor.u32 %v2061_v12, %v2059_v22 }
 0x178   : > { %v2568_v62 = vpop.f32.mrf.mxu1 }
 0x179   : > { %9524 = vmatmul.msk.bf16.gmra.mxu2 %vm679_vm1, %v1094_v58  ;;  %v2372_v38 = vadd.f32 %v2256_v26, %v1750_v49  ;;  %v2067_v26 = vrot.slane %v2065_v36, 1 }
 0x17a   : > { %9762 = vmatmul.msk.bf16.gmra.mxu0 %vm679_vm1, %v2060_v28 }
 0x17b   : > { %v12027_v0 = vadd.f32 %v2563_v8, %v2372_v38  ;;  %v11449_v8 = vld [vmem:[%s11625_s20 + $0x60] sm:$0xff]  ;;  %v2068_v56 = vsel %vm482_vm2, %v2063_v20, %v2067_v26 }
 0x17c   : > { %v1215_v48 = vpop.f32.mrf.mxu2  ;;  %v1095_v28 = vrot.slane %v11449_v8, 1 }
 0x17d   : > { %v1329_v14 = vadd.f32 %v1215_v48, %v11791_v1  ;;  %v11009_v48 = vld [vmem:[%s11625_s20 + $0x74] sm:$0xff] }
 0x17e   : > { %v1639_v4 = vpop.f32.mrf.mxu3  ;;  %v1096_v22 = vsel %vm1071_vm3, %v1093_v24, %v1095_v28  ;;  %v10985_v24 = vld [vmem:[%s11625_s20 + $0x6c] sm:$0xff] }
 0x17f   : > { %v2261_v55 = vpop.f32.mrf.mxu0  ;;  %v1751_v3 = vadd.f32 %v1637_v13, %v1329_v14 }
 0x180   : > { %v2571_v42 = vpop.f32.mrf.mxu1 }
 0x181   : > { %v2373_v23 = vadd.f32 %v2259_v53, %v1751_v3  ;;  %v2069_v3 = vshrl.u32 %v11008_v17, 16  ;;  %v11104_v17 = vld [vmem:[%s14891_s5 + $0x70] sm:$0xff] }
 0x182   : > { %5640 = vmatpush.bf16.msra.mxu1 %v11104_v17 }
 0x183   : > { %9788 = vmatmul.msk.bf16.gmra.mxu1 %vm679_vm1, %v2447_v30  ;;  %9646 = vmatmul.msk.bf16.gmra.mxu3 %vm679_vm1, %v10984_v60  ;;  %v12035_v1 = vadd.f32 %v2566_v34, %v2373_v23  ;;  %v2448_v34 = vrot.slane %v11009_v48, 1  ;;  %v2073_v23 = vshll.u32 %v11009_v48, 16 }
 0x184   : > { %v1217_v58 = vpop.f32.mrf.mxu2 }
 0x185   : > { %v1330_v7 = vadd.f32 %v1217_v58, %v11809_v21 }
 0x186   : > { %v1642_v38 = vpop.f32.mrf.mxu3 }
 0x187   : > { %v2264_v49 = vpop.f32.mrf.mxu0  ;;  %v1752_v13 = vadd.f32 %v1639_v4, %v1330_v7  ;;  %v2449_v4 = vsel %vm1071_vm3, %v2446_v39, %v2448_v34  ;;  %v2071_v7 = vor.u32 %v2069_v3, %v2067_v26 }
 0x188   : > { %v2573_v53 = vpop.f32.mrf.mxu1 }
 0x189   : > { %9525 = vmatmul.msk.bf16.gmra.mxu2 %vm679_vm1, %v1096_v22  ;;  %v2374_v14 = vadd.f32 %v2261_v55, %v1752_v13 }
 0x18a   : > { %9763 = vmatmul.msk.bf16.gmra.mxu0 %vm679_vm1, %v2068_v56  ;;  %v2075_v56 = vrot.slane %v2073_v23, 1 }
 0x18b   : > { %v12043_v12 = vadd.f32 %v2568_v62, %v2374_v14  ;;  %v11450_v62 = vld [vmem:[%s11625_s20 + $0x68] sm:$0xff] }
 0x18c   : > { %v1220_v21 = vpop.f32.mrf.mxu2  ;;  %v1097_v55 = vrot.slane %v11450_v62, 1  ;;  %v2076_v26 = vsel %vm482_vm2, %v2071_v7, %v2075_v56 }
 0x18d   : > { %v1331_v36 = vadd.f32 %v1220_v21, %v11826_v47 }
 0x18e   : > { %v1644_v30 = vpop.f32.mrf.mxu3  ;;  %v1098_v13 = vsel %vm1071_vm3, %v1095_v28, %v1097_v55  ;;  %v10986_v28 = vld [vmem:[%s11625_s20 + $0x74] sm:$0xff] }
 0x18f   : > { %v2266_v60 = vpop.f32.mrf.mxu0  ;;  %v1753_v8 = vadd.f32 %v1642_v38, %v1331_v36 }
 0x190   : > { %v2576_v20 = vpop.f32.mrf.mxu1 }
 0x191   : > { %v2375_v58 = vadd.f32 %v2264_v49, %v1753_v8 }
 0x193   : > { %9789 = vmatmul.msk.bf16.gmra.mxu1 %vm679_vm1, %v2449_v4  ;;  %9647 = vmatmul.msk.bf16.gmra.mxu3 %vm679_vm1, %v10985_v24  ;;  %v12051_v47 = vadd.f32 %v2571_v42, %v2375_v58  ;;  %v11010_v42 = vld [vmem:[%s11625_s20 + $0x7c] sm:$0xff]  ;;  %v2077_v58 = vshrl.u32 %v11009_v48, 16 }
 0x194   : > { %v1222_v22 = vpop.f32.mrf.mxu2  ;;  %v2450_v3 = vrot.slane %v11010_v42, 1  ;;  %v2081_v7 = vshll.u32 %v11010_v42, 16 }
 0x195   : > { %v1332_v39 = vadd.f32 %v1222_v22, %v11836_v6 }
 0x196   : > { %v1647_v49 = vpop.f32.mrf.mxu3 }
 0x197   : > { %v2269_v38 = vpop.f32.mrf.mxu0  ;;  %v1754_v21 = vadd.f32 %v1644_v30, %v1332_v39  ;;  %v2451_v30 = vsel %vm1071_vm3, %v2448_v34, %v2450_v3  ;;  %v2079_v39 = vor.u32 %v2077_v58, %v2075_v56 }
 0x198   : > { %v2578_v14 = vpop.f32.mrf.mxu1 }
 0x199   : > { %9526 = vmatmul.msk.bf16.gmra.mxu2 %vm679_vm1, %v1098_v13  ;;  %v2376_v36 = vadd.f32 %v2266_v60, %v1754_v21  ;;  %v2083_v60 = vrot.slane %v2081_v7, 1 }
 0x19a   : > { %9764 = vmatmul.msk.bf16.gmra.mxu0 %vm679_vm1, %v2076_v26 }
 0x19b   : > { %v12062_v23 = vadd.f32 %v2573_v53, %v2376_v36  ;;  %v11451_v53 = vld [vmem:[%s11625_s20 + $0x70] sm:$0xff]  ;;  %v2084_v34 = vsel %vm482_vm2, %v2079_v39, %v2083_v60 }
 0x19c   : > { %v1225_v6 = vpop.f32.mrf.mxu2  ;;  %v1099_v26 = vrot.slane %v11451_v53, 1 }
 0x19d   : > { %v1333_v24 = vadd.f32 %v1225_v6, %v11846_v31  ;;  %v11011_v6 = vld [vmem:[%s11625_s20 + $0x84] sm:$0xff] }
 0x19e   : > { %v1649_v8 = vpop.f32.mrf.mxu3  ;;  %v1100_v56 = vsel %vm1071_vm3, %v1097_v55, %v1099_v26  ;;  %v10987_v55 = vld [vmem:[%s11625_s20 + $0x7c] sm:$0xff] }
 0x19f   : > { %v2271_v4 = vpop.f32.mrf.mxu0  ;;  %v1755_v17 = vadd.f32 %v1647_v49, %v1333_v24 }
 0x1a0   : > { %v2581_v62 = vpop.f32.mrf.mxu1 }
 0x1a1   : > { %v2377_v22 = vadd.f32 %v2269_v38, %v1755_v17  ;;  %v2085_v17 = vshrl.u32 %v11010_v42, 16 }
 0x1a3   : > { %9790 = vmatmul.msk.bf16.gmra.mxu1 %vm679_vm1, %v2451_v30  ;;  %9648 = vmatmul.msk.bf16.gmra.mxu3 %vm679_vm1, %v10986_v28  ;;  %v12070_v31 = vadd.f32 %v2576_v20, %v2377_v22  ;;  %v2452_v20 = vrot.slane %v11011_v6, 1  ;;  %v2089_v22 = vshll.u32 %v11011_v6, 16 }
 0x1a4   : > { %v1227_v13 = vpop.f32.mrf.mxu2 }
 0x1a5   : > { %v1334_v48 = vadd.f32 %v1227_v13, %v11854_v50 }
 0x1a6   : > { %v1652_v36 = vpop.f32.mrf.mxu3 }
 0x1a7   : > { %v2274_v21 = vpop.f32.mrf.mxu0  ;;  %v1756_v49 = vadd.f32 %v1649_v8, %v1334_v48  ;;  %v2453_v8 = vsel %vm1071_vm3, %v2450_v3, %v2452_v20  ;;  %v2087_v48 = vor.u32 %v2085_v17, %v2083_v60 }
 0x1a8   : > { %v2583_v38 = vpop.f32.mrf.mxu1 }
 0x1a9   : > { %9527 = vmatmul.msk.bf16.gmra.mxu2 %vm679_vm1, %v1100_v56  ;;  %v2378_v24 = vadd.f32 %v2271_v4, %v1756_v49  ;;  %v2091_v4 = vrot.slane %v2089_v22, 1 }
 0x1aa   : > { %9765 = vmatmul.msk.bf16.gmra.mxu0 %vm679_vm1, %v2084_v34 }
 0x1ab   : > { %v12078_v58 = vadd.f32 %v2578_v14, %v2378_v24  ;;  %v11452_v14 = vld [vmem:[%s11625_s20 + $0x78] sm:$0xff]  ;;  %v2092_v3 = vsel %vm482_vm2, %v2087_v48, %v2091_v4 }
 0x1ac   : > { %v1230_v50 = vpop.f32.mrf.mxu2  ;;  %v1101_v34 = vrot.slane %v11452_v14, 1 }
 0x1ad   : > { %v1335_v7 = vadd.f32 %v1230_v50, %v11864_v5  ;;  %v11012_v50 = vld [vmem:[%s11625_s20 + $0x8c] sm:$0xff] }
 0x1ae   : > { %v1654_v30 = vpop.f32.mrf.mxu3  ;;  %v1102_v60 = vsel %vm1071_vm3, %v1099_v26, %v1101_v34  ;;  %v10988_v26 = vld [vmem:[%s11625_s20 + $0x84] sm:$0xff] }
 0x1af   : > { %v2276_v28 = vpop.f32.mrf.mxu0  ;;  %v1757_v53 = vadd.f32 %v1652_v36, %v1335_v7 }
 0x1b0   : > { %v2586_v39 = vpop.f32.mrf.mxu1 }
 0x1b1   : > { %v2379_v13 = vadd.f32 %v2274_v21, %v1757_v53  ;;  %v2093_v53 = vshrl.u32 %v11011_v6, 16  ;;  %v11103_v6 = vld [vmem:[%s14891_s5 + $0x68] sm:$0xff] }
 0x1b2   : > { %5641 = vmatpush.bf16.msra.mxu1 %v11103_v6 }
 0x1b3   : > { %9791 = vmatmul.msk.bf16.gmra.mxu1 %vm679_vm1, %v2453_v8  ;;  %9649 = vmatmul.msk.bf16.gmra.mxu3 %vm679_vm1, %v10987_v55  ;;  %v12086_v5 = vadd.f32 %v2581_v62, %v2379_v13  ;;  %v2454_v62 = vrot.slane %v11012_v50, 1  ;;  %v2097_v13 = vshll.u32 %v11012_v50, 16 }
 0x1b4   : > { %v1232_v56 = vpop.f32.mrf.mxu2 }
 0x1b5   : > { %v1336_v42 = vadd.f32 %v1232_v56, %v11872_v25 }
 0x1b6   : > { %v1657_v24 = vpop.f32.mrf.mxu3 }
 0x1b7   : > { %v2279_v49 = vpop.f32.mrf.mxu0  ;;  %v1758_v36 = vadd.f32 %v1654_v30, %v1336_v42  ;;  %v2455_v30 = vsel %vm1071_vm3, %v2452_v20, %v2454_v62  ;;  %v2095_v42 = vor.u32 %v2093_v53, %v2091_v4 }
 0x1b8   : > { %v2588_v21 = vpop.f32.mrf.mxu1 }
 0x1b9   : > { %9528 = vmatmul.msk.bf16.gmra.mxu2 %vm679_vm1, %v1102_v60  ;;  %v2380_v7 = vadd.f32 %v2276_v28, %v1758_v36 }
 0x1ba   : > { %9766 = vmatmul.msk.bf16.gmra.mxu0 %vm679_vm1, %v2092_v3  ;;  %v2099_v3 = vrot.slane %v2097_v13, 1 }
 0x1bb   : > { %v12094_v17 = vadd.f32 %v2583_v38, %v2380_v7  ;;  %v11453_v38 = vld [vmem:[%s11625_s20 + $0x80] sm:$0xff] }
 0x1bc   : > { %v1235_v25 = vpop.f32.mrf.mxu2  ;;  %v1103_v28 = vrot.slane %v11453_v38, 1  ;;  %v2100_v4 = vsel %vm482_vm2, %v2095_v42, %v2099_v3 }
 0x1bd   : > { %v1337_v22 = vadd.f32 %v1235_v25, %v11882_v51 }
 0x1be   : > { %v1659_v8 = vpop.f32.mrf.mxu3  ;;  %v1104_v36 = vsel %vm1071_vm3, %v1101_v34, %v1103_v28  ;;  %v10989_v34 = vld [vmem:[%s11625_s20 + $0x8c] sm:$0xff] }
 0x1bf   : > { %v2281_v55 = vpop.f32.mrf.mxu0  ;;  %v1759_v14 = vadd.f32 %v1657_v24, %v1337_v22 }
 0x1c0   : > { %v2591_v48 = vpop.f32.mrf.mxu1 }
 0x1c1   : > { %v2381_v56 = vadd.f32 %v2279_v49, %v1759_v14 }
 0x1c3   : > { %9792 = vmatmul.msk.bf16.gmra.mxu1 %vm679_vm1, %v2455_v30  ;;  %9650 = vmatmul.msk.bf16.gmra.mxu3 %vm679_vm1, %v10988_v26  ;;  %v12102_v51 = vadd.f32 %v2586_v39, %v2381_v56  ;;  %v11013_v39 = vld [vmem:[%s11625_s20 + $0x94] sm:$0xff]  ;;  %v2101_v56 = vshrl.u32 %v11012_v50, 16 }
 0x1c4   : > { %v1237_v60 = vpop.f32.mrf.mxu2  ;;  %v2456_v53 = vrot.slane %v11013_v39, 1  ;;  %v2105_v42 = vshll.u32 %v11013_v39, 16 }
 0x1c5   : > { %v1338_v20 = vadd.f32 %v1237_v60, %v11890_v57 }
 0x1c6   : > { %v1662_v49 = vpop.f32.mrf.mxu3 }
 0x1c7   : > { %v2284_v24 = vpop.f32.mrf.mxu0  ;;  %v1760_v25 = vadd.f32 %v1659_v8, %v1338_v20  ;;  %v2457_v8 = vsel %vm1071_vm3, %v2454_v62, %v2456_v53  ;;  %v2103_v20 = vor.u32 %v2101_v56, %v2099_v3 }
 0x1c8   : > { %v2593_v7 = vpop.f32.mrf.mxu1 }
 0x1c9   : > { %9529 = vmatmul.msk.bf16.gmra.mxu2 %vm679_vm1, %v1104_v36  ;;  %v2382_v22 = vadd.f32 %v2281_v55, %v1760_v25  ;;  %v2107_v55 = vrot.slane %v2105_v42, 1 }
 0x1ca   : > { %9767 = vmatmul.msk.bf16.gmra.mxu0 %vm679_vm1, %v2100_v4 }
 0x1cb   : > { %v12113_v13 = vadd.f32 %v2588_v21, %v2382_v22  ;;  %v11454_v21 = vld [vmem:[%s11625_s20 + $0x88] sm:$0xff]  ;;  %v2108_v62 = vsel %vm482_vm2, %v2103_v20, %v2107_v55 }
 0x1cc   : > { %v1240_v57 = vpop.f32.mrf.mxu2  ;;  %v1105_v4 = vrot.slane %v11454_v21, 1 }
 0x1cd   : > { %v1339_v26 = vadd.f32 %v1240_v57, %v11900_v33  ;;  %v12128_v57 = vld [vmem:[%s11625_s20 + $0x9c] sm:$0xff] }
 0x1ce   : > { %v1664_v14 = vpop.f32.mrf.mxu3 }
 0x1cf   : > { %v2286_v30 = vpop.f32.mrf.mxu0  ;;  %v1761_v6 = vadd.f32 %v1662_v49, %v1339_v26  ;;  %v2458_v26 = vrot.slane %v12128_v57, 1 }
 0x1d0   : > { %v2596_v38 = vpop.f32.mrf.mxu1 }
 0x1d1   : > { %v2383_v60 = vadd.f32 %v2284_v24, %v1761_v6  ;;  %v1106_v24 = vsel %vm1071_vm3, %v1103_v28, %v1105_v4  ;;  %v2109_v28 = vshrl.u32 %v11013_v39, 16  ;;  %v11545_v6 = vmov 0  }
 0x1d2   : > { %11442 = vset.pattern.permute.xlu0 %v11545_v6  ;;  %11443 = vset.pattern.permute.xlu1 %v11545_v6  ;;  %4563 = vst [vmem:[#allocation2] sm:$0xf] %v11545_v6 }
 0x1d3   : > { %9793 = vmatmul.msk.bf16.gmra.mxu1 %vm679_vm1, %v2457_v8  ;;  %9651 = vmatmul.msk.bf16.gmra.mxu3 %vm679_vm1, %v10989_v34  ;;  %v12121_v33 = vadd.f32 %v2591_v48, %v2383_v60  ;;  %v4227_v60 = vld [vmem:[%s14887_s1] sm:$0xff]  ;;  %4564 = vst [vmem:[#allocation2 + $0x4] sm:$0xf] %v11545_v6  ;;  %v2111_v21 = vor.u32 %v2109_v28, %v2107_v55 }
 0x1d4   : > { %v1242_v36 = vpop.f32.mrf.mxu2  ;;  %4277 = vperm.xlu0 %11442, %v4227_v60   ;;  %11444 = vset.pattern.permute.xlu2 %v11545_v6  ;;  %4565 = vst [vmem:[#allocation2 + $0x8] sm:$0xf] %v11545_v6  ;;  %v12154_v28 = vld [vmem:[%s11625_s20 + $0xa4] sm:$0xff] }
 0x1d5   : > { %v1340_v50 = vadd.f32 %v1242_v36, %v11908_v59  ;;  %5161 = vst [vmem:[#allocation2 + $0xd0] sm:$0xf] %v11545_v6 }
 0x1d6   : > { %v1667_v22 = vpop.f32.mrf.mxu3  ;;  %5162 = vst [vmem:[#allocation2 + $0xd4] sm:$0xf] %v11545_v6 }
 0x1d7   : > { %v2289_v25 = vpop.f32.mrf.mxu0  ;;  %v1762_v49 = vadd.f32 %v1664_v14, %v1340_v50  ;;  %v2113_v14 = vshll.u32 %v12128_v57, 16  ;;  %v11455_v50 = vld [vmem:[%s11625_s20 + $0x90] sm:$0xff]  ;;  %5163 = vst [vmem:[#allocation2 + $0xd8] sm:$0xf] %v11545_v6 }
 0x1d8   : > { %v2598_v3 = vpop.f32.mrf.mxu1 }
 0x1d9   : > { %9530 = vmatmul.msk.bf16.gmra.mxu2 %vm679_vm1, %v1106_v24  ;;  %v2384_v48 = vadd.f32 %v2286_v30, %v1762_v49  ;;  %v10990_v30 = vld [vmem:[%s11625_s20 + $0x94] sm:$0xff]  ;;  %v2115_v36 = vrot.slane %v2113_v14, 1  ;;  %v2460_v14 = vrot.slane %v12154_v28, 1 }
 0x1da   : > { %9768 = vmatmul.msk.bf16.gmra.mxu0 %vm679_vm1, %v2108_v62  ;;  %v1107_v62 = vrot.slane %v11455_v50, 1 }
 0x1db   : > { %v12132_v56 = vadd.f32 %v2593_v7, %v2384_v48  ;;  %v2459_v7 = vsel %vm1071_vm3, %v2456_v53, %v2458_v26  ;;  %v2116_v55 = vsel %vm482_vm2, %v2111_v21, %v2115_v36  ;;  %v4228_v48 = vld [vmem:[%s14887_s1 + $0x8] sm:$0xff]  ;;  %v2461_v50 = vsel %vm1071_vm3, %v2458_v26, %v2460_v14 }
 0x1dc   : > { %v1245_v59 = vpop.f32.mrf.mxu2  ;;  %4282 = vperm.xlu0 %11442, %v4228_v48  }
 0x1dd   : > { %v1341_v42 = vadd.f32 %v1245_v59, %v11918_v10  ;;  %v1108_v59 = vsel %vm1071_vm3, %v1105_v4, %v1107_v62 }
 0x1de   : > { %v1669_v8 = vpop.f32.mrf.mxu3 }
 0x1df   : > { %v2291_v34 = vpop.f32.mrf.mxu0  ;;  %v1763_v10 = vadd.f32 %v1667_v22, %v1341_v42 }
 0x1e0   : > { %v2601_v20 = vpop.f32.mrf.mxu1 }
 0x1e1   : > { %v2385_v39 = vadd.f32 %v2289_v25, %v1763_v10  ;;  %v2117_v10 = vshrl.u32 %v12128_v57, 16 }
 0x1e3   : > { %9794 = vmatmul.msk.bf16.gmra.mxu1 %vm679_vm1, %v2459_v7  ;;  %9652 = vmatmul.msk.bf16.gmra.mxu3 %vm679_vm1, %v10990_v30  ;;  %v12144_v24 = vadd.f32 %v2596_v38, %v2385_v39  ;;  %v4229_v39 = vld [vmem:[%s14887_s1 + $0x10] sm:$0xff] }
 0x1e4   : > { %v1247_v53 = vpop.f32.mrf.mxu2  ;;  %4287 = vperm.xlu1 %11443, %v4229_v39  }
 0x1e5   : > { %v1342_v22 = vadd.f32 %v1247_v53, %v11926_v40 }
 0x1e6   : > { %v1672_v25 = vpop.f32.mrf.mxu3 }
 0x1e7   : > { %v2294_v49 = vpop.f32.mrf.mxu0  ;;  %v1764_v38 = vadd.f32 %v1669_v8, %v1342_v22  ;;  %v2121_v8 = vshll.u32 %v12154_v28, 16  ;;  %v2119_v22 = vor.u32 %v2117_v10, %v2115_v36 }
 0x1e8   : > { %v2603_v42 = vpop.f32.mrf.mxu1 }
 0x1e9   : > { %9531 = vmatmul.msk.bf16.gmra.mxu2 %vm679_vm1, %v1108_v59  ;;  %v2386_v40 = vadd.f32 %v2291_v34, %v1764_v38  ;;  %v4233_v34 = vld [vmem:[%s14887_s1 + $0x30] sm:$0xff]  ;;  %v2123_v57 = vrot.slane %v2121_v8, 1  ;;  %v11102_v38 = vld [vmem:[%s14891_s5 + $0x60] sm:$0xff] }
 0x1ea   : > { %9769 = vmatmul.msk.bf16.gmra.mxu0 %vm679_vm1, %v2116_v55  ;;  %4307 = vperm.xlu0 %11442, %v4233_v34   ;;  %v11456_v55 = vld [vmem:[%s11625_s20 + $0x98] sm:$0xff]  ;;  %v11016_v8 = vld [vmem:[%s11625_s20 + $0xac] sm:$0xff] }
 0x1eb   : > { %v12158_v6 = vadd.f32 %v2598_v3, %v2386_v40  ;;  %v10991_v3 = vld [vmem:[%s11625_s20 + $0x9c] sm:$0xff]  ;;  %v1109_v48 = vrot.slane %v11456_v55, 1  ;;  %v2124_v36 = vsel %vm482_vm2, %v2119_v22, %v2123_v57  ;;  %5642 = vmatpush.bf16.msra.mxu1 %v11102_v38  ;;  %v2462_v34 = vrot.slane %v11016_v8, 1  ;;  %v10992_v38 = vld [vmem:[%s11625_s20 + $0xa4] sm:$0xff] }
 0x1ec   : > { %v1250_v60 = vpop.f32.mrf.mxu2  ;;  %v2129_v55 = vshll.u32 %v11016_v8, 16 }
 0x1ed   : > { %v1343_v30 = vadd.f32 %v1250_v60, %v11936_v19  ;;  %v4230_v60 = vld [vmem:[%s14887_s1 + $0x18] sm:$0xff] }
 0x1ee   : > { %v1674_v4 = vpop.f32.mrf.mxu3  ;;  %4292 = vperm.xlu1 %11443, %v4230_v60   ;;  %v2131_v60 = vrot.slane %v2129_v55, 1 }
 0x1ef   : > { %v2296_v7 = vpop.f32.mrf.mxu0  ;;  %v1765_v19 = vadd.f32 %v1672_v25, %v1343_v30  ;;  %v1110_v30 = vsel %vm1071_vm3, %v1107_v62, %v1109_v48  ;;  %v2125_v62 = vshrl.u32 %v12154_v28, 16  ;;  %v11457_v28 = vld [vmem:[%s11625_s20 + $0xa0] sm:$0xff] }
 0x1f0   : > { %v2606_v21 = vpop.f32.mrf.mxu1 }
 0x1f1   : > { %v2387_v53 = vadd.f32 %v2294_v49, %v1765_v19 }
 0x1f3   : > { %9795 = vmatmul.msk.bf16.gmra.mxu1 %vm679_vm1, %v2461_v50  ;;  %9653 = vmatmul.msk.bf16.gmra.mxu3 %vm679_vm1, %v10991_v3  ;;  %v12174_v59 = vadd.f32 %v2601_v20, %v2387_v53  ;;  %v4236_v20 = vld [vmem:[%s14887_s1 + $0x48] sm:$0xff] }
 0x1f4   : > { %v1252_v26 = vpop.f32.mrf.mxu2  ;;  %4322 = vperm.xlu0 %11442, %v4236_v20   ;;  %v1111_v20 = vrot.slane %v11457_v28, 1  ;;  %v10993_v28 = vld [vmem:[%s11625_s20 + $0xac] sm:$0xff] }
 0x1f5   : > { %v1344_v40 = vadd.f32 %v1252_v26, %v11944_v15  ;;  %v2463_v26 = vsel %vm1071_vm3, %v2460_v14, %v2462_v34 }
 0x1f6   : > { %v1677_v49 = vpop.f32.mrf.mxu3 }
 0x1f7   : > { %v2299_v25 = vpop.f32.mrf.mxu0  ;;  %v1766_v15 = vadd.f32 %v1674_v4, %v1344_v40  ;;  %v4234_v4 = vld [vmem:[%s14887_s1 + $0x38] sm:$0xff] }
 0x1f8   : > { %v2608_v10 = vpop.f32.mrf.mxu1  ;;  %4312 = vperm.xlu1 %11443, %v4234_v4  }
 0x1f9   : > { %9532 = vmatmul.msk.bf16.gmra.mxu2 %vm679_vm1, %v1110_v30  ;;  %v2388_v39 = vadd.f32 %v2296_v7, %v1766_v15  ;;  %v4239_v7 = vld [vmem:[%s14887_s1 + $0x60] sm:$0xff] }
 0x1fa   : > { %9770 = vmatmul.msk.bf16.gmra.mxu0 %vm679_vm1, %v2124_v36  ;;  %v2127_v36 = vor.u32 %v2125_v62, %v2123_v57  ;;  %v4237_v57 = vld [vmem:[%s14887_s1 + $0x50] sm:$0xff] }
 0x1fb   : > { %v12191_v3 = vadd.f32 %v2603_v42, %v2388_v39 }
 0x1fc   : > { %v1255_v50 = vpop.f32.mrf.mxu2  ;;  %4337 = vperm.xlu0 %11442, %v4239_v7   ;;  %v2132_v4 = vsel %vm482_vm2, %v2127_v36, %v2131_v60  ;;  %v4240_v36 = vld [vmem:[%s14887_s1 + $0x68] sm:$0xff] }
 0x1fd   : > { %v1345_v19 = vadd.f32 %v1255_v50, %v11954_v37 }
 0x1fe   : > { %v1679_v22 = vpop.f32.mrf.mxu3 }
 0x1ff   : > { %v2301_v53 = vpop.f32.mrf.mxu0  ;;  %v1767_v37 = vadd.f32 %v1677_v49, %v1345_v19  ;;  %v1112_v49 = vsel %vm1071_vm3, %v1109_v48, %v1111_v20 }
 0x200   : > { %v2611_v42 = vpop.f32.mrf.mxu1  ;;  %4327 = vperm.xlu1 %11443, %v4237_v57   ;;  %v11458_v57 = vld [vmem:[%s11625_s20 + $0xa8] sm:$0xff] }
 0x201   : > { %v2389_v40 = vadd.f32 %v2299_v25, %v1767_v37  ;;  %v4242_v25 = vld [vmem:[%s14887_s1 + $0x78] sm:$0xff] }
 0x203   : > { %9796 = vmatmul.msk.bf16.gmra.mxu1 %vm679_vm1, %v2463_v26  ;;  %9654 = vmatmul.msk.bf16.gmra.mxu3 %vm679_vm1, %v10992_v38  ;;  %v12206_v30 = vadd.f32 %v2606_v21, %v2389_v40  ;;  %v2133_v40 = vshrl.u32 %v11016_v8, 16 }
 0x204   : > { %v1257_v15 = vpop.f32.mrf.mxu2  ;;  %4352 = vperm.xlu0 %11442, %v4242_v25   ;;  %v1113_v25 = vrot.slane %v11458_v57, 1  ;;  %v4232_v57 = vld [vmem:[%s14887_s1 + $0x28] sm:$0xff] }
 0x205   : > { %v1346_v39 = vadd.f32 %v1257_v15, %v11962_v29  ;;  %v12219_v29 = vld [vmem:[%s11625_s20 + $0xb4] sm:$0xff] }
 0x206   : > { %v1682_v14 = vpop.f32.mrf.mxu3  ;;  %v2464_v55 = vrot.slane %v12219_v29, 1 }
 0x207   : > { %v2304_v50 = vpop.f32.mrf.mxu0  ;;  %v1768_v21 = vadd.f32 %v1679_v22, %v1346_v39  ;;  %v2137_v22 = vshll.u32 %v12219_v29, 16 }
 0x208   : > { %v2613_v19 = vpop.f32.mrf.mxu1  ;;  %v2465_v15 = vsel %vm1071_vm3, %v2462_v34, %v2464_v55  ;;  %4342 = vperm.xlu1 %11443, %v4240_v36  }
 0x209   : > { %9533 = vmatmul.msk.bf16.gmra.mxu2 %vm679_vm1, %v1112_v49  ;;  %v2390_v62 = vadd.f32 %v2301_v53, %v1768_v21  ;;  %v4245_v53 = vld [vmem:[%s14887_s1 + $0x90] sm:$0xff]  ;;  %v2139_v8 = vrot.slane %v2137_v22, 1 }
 0x20a   : > { %9771 = vmatmul.msk.bf16.gmra.mxu0 %vm679_vm1, %v2132_v4  ;;  %v2135_v4 = vor.u32 %v2133_v40, %v2131_v60  ;;  %v4231_v60 = vld [vmem:[%s14887_s1 + $0x20] sm:$0xff] }
 0x20b   : > { %v12223_v7 = vadd.f32 %v2608_v10, %v2390_v62  ;;  %4297 = vperm.xlu2 %11444, %v4231_v60   ;;  %v12256_v40 = vld [vmem:[%s11625_s20 + $0xbc] sm:$0xff] }
 0x20c   : > { %v1260_v38 = vpop.f32.mrf.mxu2  ;;  %4367 = vperm.xlu0 %11442, %v4245_v53   ;;  %v2140_v36 = vsel %vm482_vm2, %v2135_v4, %v2139_v8  ;;  %v2466_v53 = vrot.slane %v12256_v40, 1  ;;  %v2145_v4 = vshll.u32 %v12256_v40, 16 }
 0x20d   : > { %v1347_v26 = vadd.f32 %v1260_v38, %v11972_v54 }
 0x20e   : > { %v1684_v37 = vpop.f32.mrf.mxu3 }
 0x20f   : > { %v2306_v48 = vpop.f32.mrf.mxu0  ;;  %v1769_v54 = vadd.f32 %v1682_v14, %v1347_v26  ;;  %v1114_v14 = vsel %vm1071_vm3, %v1111_v20, %v1113_v25 }
 0x210   : > { %v2616_v10 = vpop.f32.mrf.mxu1 }
 0x211   : > { %v2391_v39 = vadd.f32 %v2304_v50, %v1769_v54  ;;  %v4243_v50 = vld [vmem:[%s14887_s1 + $0x80] sm:$0xff] }
 0x212   : > { %4357 = vperm.xlu1 %11443, %v4243_v50   ;;  %v2147_v50 = vrot.slane %v2145_v4, 1 }
 0x213   : > { %9797 = vmatmul.msk.bf16.gmra.mxu1 %vm679_vm1, %v2465_v15  ;;  %9655 = vmatmul.msk.bf16.gmra.mxu3 %vm679_vm1, %v10993_v28  ;;  %v12238_v49 = vadd.f32 %v2611_v42, %v2391_v39  ;;  %v4248_v42 = vld [vmem:[%s14887_s1 + $0xa8] sm:$0xff] }
 0x214   : > { %v1262_v21 = vpop.f32.mrf.mxu2  ;;  %4382 = vperm.xlu0 %11442, %v4248_v42   ;;  %4302 = vperm.xlu2 %11444, %v4232_v57   ;;  %v11459_v42 = vld [vmem:[%s11625_s20 + $0xb0] sm:$0xff] }
 0x215   : > { %v1348_v62 = vadd.f32 %v1262_v21, %v11980_v52 }
 0x216   : > { %v1687_v34 = vpop.f32.mrf.mxu3 }
 0x217   : > { %v2309_v38 = vpop.f32.mrf.mxu0  ;;  %v1770_v52 = vadd.f32 %v1684_v37, %v1348_v62  ;;  %v2141_v37 = vshrl.u32 %v12219_v29, 16  ;;  %v2467_v62 = vsel %vm1071_vm3, %v2464_v55, %v2466_v53 }
 0x218   : > { %v12252_v26 = vpop.f32.mrf.mxu1 }
 0x219   : > { %14961 = vst [vmem:[#allocation16_spill] sm:$0xff] %v12252_v26  ;;  %9534 = vmatmul.msk.bf16.gmra.mxu2 %vm679_vm1, %v1114_v14  ;;  %v2392_v22 = vadd.f32 %v2306_v48, %v1770_v52  ;;  %v4246_v48 = vld [vmem:[%s14887_s1 + $0x98] sm:$0xff]  ;;  %v2143_v60 = vor.u32 %v2141_v37, %v2139_v8  ;;  %v1115_v14 = vrot.slane %v11459_v42, 1 }
 0x21a   : > { %9772 = vmatmul.msk.bf16.gmra.mxu0 %vm679_vm1, %v2140_v36  ;;  %4372 = vperm.xlu1 %11443, %v4246_v48   ;;  %v4254_v37 = vld [vmem:[%s14887_s1 + $0xd8] sm:$0xff]  ;;  %v12300_v48 = vld [vmem:[%s11625_s20 + $0xc4] sm:$0xff] }
 0x21b   : > { %v12260_v28 = vadd.f32 %v2613_v19, %v2392_v22  ;;  %v4251_v19 = vld [vmem:[%s14887_s1 + $0xc0] sm:$0xff]  ;;  %v11101_v22 = vld [vmem:[%s14891_s5 + $0x58] sm:$0xff]  ;;  %v2148_v8 = vsel %vm482_vm2, %v2143_v60, %v2147_v50  ;;  %v1116_v4 = vsel %vm1071_vm3, %v1113_v25, %v1115_v14  ;;  %v2149_v60 = vshrl.u32 %v12256_v40, 16 }
 0x21c   : > { %v1265_v15 = vpop.f32.mrf.mxu2  ;;  %4397 = vperm.xlu0 %11442, %v4251_v19   ;;  %5643 = vmatpush.bf16.msra.mxu1 %v11101_v22  ;;  %v4238_v42 = vld [vmem:[%s14887_s1 + $0x58] sm:$0xff] }
 0x21d   : > { %v1349_v20 = vadd.f32 %v1265_v15, %v11753_v11  ;;  %v10994_v11 = vld [vmem:[%s11625_s20 + $0xb4] sm:$0xff]  ;;  %v10995_v22 = vld [vmem:[%s11625_s20 + $0xbc] sm:$0xff] }
 0x21e   : > { %v1689_v39 = vpop.f32.mrf.mxu3 }
 0x21f   : > { %v2311_v54 = vpop.f32.mrf.mxu0  ;;  %v1771_v29 = vadd.f32 %v1687_v34, %v1349_v20  ;;  %v4235_v20 = vld [vmem:[%s14887_s1 + $0x40] sm:$0xff] }
 0x220   : > { %v2621_v21 = vpop.f32.mrf.mxu1  ;;  %4317 = vperm.xlu2 %11444, %v4235_v20   ;;  %v2151_v20 = vor.u32 %v2149_v60, %v2147_v50  ;;  %v4241_v50 = vld [vmem:[%s14887_s1 + $0x70] sm:$0xff] }
 0x221   : > { %v2393_v36 = vadd.f32 %v2309_v38, %v1771_v29 }
 0x223   : > { %9798 = vmatmul.msk.bf16.gmra.mxu1 %vm679_vm1, %v2467_v62  ;;  %9656 = vmatmul.msk.bf16.gmra.mxu3 %vm679_vm1, %v10994_v11  ;;  %v12279_v52 = vadd.f32 %v2616_v10, %v2393_v36  ;;  %v4249_v10 = vld [vmem:[%s14887_s1 + $0xb0] sm:$0xff]  ;;  %v2468_v11 = vrot.slane %v12300_v48, 1 }
 0x224   : > { %v1267_v55 = vpop.f32.mrf.mxu2  ;;  %4387 = vperm.xlu1 %11443, %v4249_v10   ;;  %4412 = vperm.xlu0 %11442, %v4254_v37   ;;  %v1843_v37 = vld [vmem:[%s11625_s20 + $0xcc] sm:$0x1] }
 0x225   : > { %v1350_v34 = vadd.f32 %v1267_v55, %v11766_v32  ;;  %v2469_v40 = vsel %vm1071_vm3, %v2466_v53, %v2468_v11  ;;  %v1943_v26 = vunpack.c.l.b16 %v1843_v37  ;;  %v10996_v37 = vld [vmem:[%s11625_s20 + $0xc4] sm:$0xff] }
 0x226   : > { %v1692_v38 = vpop.f32.mrf.mxu3 }
 0x227   : > { %v2314_v15 = vpop.f32.mrf.mxu0  ;;  %v1772_v57 = vadd.f32 %v1689_v39, %v1350_v34  ;;  %v2153_v39 = vshll.u32 %v12300_v48, 16 }
 0x228   : > { %v12296_v32 = vpop.f32.mrf.mxu1  ;;  %4332 = vperm.xlu2 %11444, %v4238_v42  }
 0x229   : > { %14962 = vst [vmem:[#allocation17_spill] sm:$0xff] %v12296_v32  ;;  %9535 = vmatmul.msk.bf16.gmra.mxu2 %vm679_vm1, %v1116_v4  ;;  %v12303_v19 = vadd.f32 %v2311_v54, %v1772_v57  ;;  %v4252_v54 = vld [vmem:[%s14887_s1 + $0xc8] sm:$0xff]  ;;  %v2155_v10 = vrot.slane %v2153_v39, 1  ;;  %v11460_v4 = vld [vmem:[%s11625_s20 + $0xb8] sm:$0xff] }
 0x22a   : > { %9773 = vmatmul.msk.bf16.gmra.mxu0 %vm679_vm1, %v2148_v8  ;;  %v1117_v57 = vrot.slane %v11460_v4, 1 }
 0x22c   : > { %v1270_v62 = vpop.f32.mrf.mxu2  ;;  %4402 = vperm.xlu1 %11443, %v4252_v54  }
 0x22d   : > { %v1351_v25 = vadd.f32 %v1270_v62, %v11778_v44  ;;  %v4257_v44 = vld [vmem:[%s14887_s1 + $0xf0] sm:$0xff] }
 0x22e   : > { %v1694_v36 = vpop.f32.mrf.mxu3  ;;  %4427 = vperm.xlu0 %11442, %v4257_v44  }
 0x22f   : > { %v2316_v29 = vpop.f32.mrf.mxu0  ;;  %v1773_v34 = vadd.f32 %v1692_v38, %v1351_v25  ;;  %v2156_v38 = vsel %vm482_vm2, %v2151_v20, %v2155_v10  ;;  %v1118_v25 = vsel %vm1071_vm3, %v1115_v14, %v1117_v57 }
 0x230   : > { %v2626_v55 = vpop.f32.mrf.mxu1  ;;  %4347 = vperm.xlu2 %11444, %v4241_v50  }
 0x231   : > { %v2395_v8 = vadd.f32 %v2314_v15, %v1773_v34  ;;  %v4255_v15 = vld [vmem:[%s14887_s1 + $0xe0] sm:$0xff] }
 0x233   : > { %9799 = vmatmul.msk.bf16.gmra.mxu1 %vm679_vm1, %v2469_v40  ;;  %9657 = vmatmul.msk.bf16.gmra.mxu3 %vm679_vm1, %v10995_v22  ;;  %v12324_v62 = vadd.f32 %v2621_v21, %v2395_v8  ;;  %v4260_v21 = vld [vmem:[%s14887_s1 + $0x108] sm:$0xff]  ;;  %v2157_v8 = vshrl.u32 %v12300_v48, 16 }
 0x234   : > { %v1272_v32 = vpop.f32.mrf.mxu2  ;;  %4417 = vperm.xlu1 %11443, %v4255_v15  }
 0x235   : > { %v1352_v53 = vadd.f32 %v1272_v32, %v11788_v61  ;;  %v1968_v32 = vpack.c.b16 %v1943_v26, %v1943_v26  ;;  %v4258_v26 = vld [vmem:[%s14887_s1 + $0xf8] sm:$0xff]  ;;  %v2159_v50 = vor.u32 %v2157_v8, %v2155_v10  ;;  %v4247_v10 = vld [vmem:[%s14887_s1 + $0xa0] sm:$0xff] }
 0x236   : > { %v1697_v54 = vpop.f32.mrf.mxu3  ;;  %4442 = vperm.xlu0 %11442, %v4260_v21   ;;  %v1119_v21 = vrot.slane %v11802_v9, 1  ;;  %v4261_v9 = vld [vmem:[%s14887_s1 + $0x110] sm:$0xff] }
 0x237   : > { %v2319_v42 = vpop.f32.mrf.mxu0  ;;  %v1774_v61 = vadd.f32 %v1694_v36, %v1352_v53  ;;  %v2470_v44 = vrot.slane %v1968_v32, 1  ;;  %v2161_v20 = vshll.u32 %v1968_v32, 16  ;;  %v4244_v36 = vld [vmem:[%s14887_s1 + $0x88] sm:$0xff]  ;;  %v11395_v53 = vld [vmem:[%s11625_s20 + $0x18] sm:$0xff]  }
 0x238   : > { %v12338_v60 = vpop.f32.mrf.mxu1  ;;  %4362 = vperm.xlu2 %11444, %v4244_v36   ;;  %v3323_v32 = vshll.u32 %v11395_v53, 16 }
 0x239   : > { %9536 = vmatmul.msk.bf16.gmra.mxu2 %vm679_vm1, %v1118_v25  ;;  %v12342_v39 = vadd.f32 %v2316_v29, %v1774_v61  ;;  %v4263_v29 = vld [vmem:[%s14887_s1 + $0x120] sm:$0xff]  ;;  %v2471_v4 = vsel %vm1071_vm3, %v2468_v11, %v2470_v44  ;;  %v2163_v15 = vrot.slane %v2161_v20, 1  ;;  %v3321_v20 = vshrl.u32 %v11395_v53, 16 }
 0x23a   : > { %9774 = vmatmul.msk.bf16.gmra.mxu0 %vm679_vm1, %v2156_v38  ;;  %v12364_v61 = vld [vmem:[%s11625_s20 + $0x20] sm:$0xff]  ;;  %v3325_v36 = vrot.slane %v3323_v32, 1  ;;  %v4269_v32 = vld [vmem:[%s14887_s1 + $0x150] sm:$0xff] }
 0x23c   : > { %v1275_v22 = vpop.f32.mrf.mxu2  ;;  %4432 = vperm.xlu1 %11443, %v4258_v26   ;;  %v3328_v26 = vshll.u32 %v12364_v61, 16 }
 0x23d   : > { %v1353_v40 = vadd.f32 %v1275_v22, %v11806_v18 }
 0x23e   : > { %v1699_v34 = vpop.f32.mrf.mxu3  ;;  %4457 = vperm.xlu0 %11442, %v4263_v29  }
 0x23f   : > { %v2321_v14 = vpop.f32.mrf.mxu0  ;;  %v1775_v48 = vadd.f32 %v1697_v54, %v1353_v40 }
 0x240   : > { %v2631_v18 = vpop.f32.mrf.mxu1  ;;  %4377 = vperm.xlu2 %11444, %v4247_v10  }
 0x241   : > { %v2397_v38 = vadd.f32 %v2319_v42, %v1775_v48  ;;  %v2164_v42 = vsel %vm482_vm2, %v2159_v50, %v2163_v15  ;;  %v3326_v48 = vor.u32 %v3325_v36, %v3321_v20  ;;  %v11020_v36 = vld [vmem:[%s11625_s20 + $0x18] sm:$0xff] }
 0x243   : > { %9800 = vmatmul.msk.bf16.gmra.mxu1 %vm679_vm1, %v2471_v4  ;;  %9658 = vmatmul.msk.bf16.gmra.mxu3 %vm679_vm1, %v10996_v37  ;;  %v12361_v25 = vadd.f32 %v2626_v55, %v2397_v38  ;;  %v4266_v55 = vld [vmem:[%s14887_s1 + $0x138] sm:$0xff] }
 0x244   : > { %v1277_v11 = vpop.f32.mrf.mxu2  ;;  %4447 = vperm.xlu1 %11443, %v4261_v9   ;;  %v11396_v37 = vld [vmem:[%s11625_s20 + $0x18] sm:$0xf0]  ;;  %v11397_v4 = vld [vmem:[%s11625_s20 + $0x18] sm:$0xe]  ;;  %v3775_v9 = vrot.slane %v12364_v61, 1 }
 0x245   : > { %v1354_v44 = vadd.f32 %v1277_v11, %v11822_v45  ;;  %v1120_v45 = vsel %vm1071_vm3, %v1117_v57, %v1119_v21  ;;  %v3330_v57 = vrot.slane %v3328_v26, 1  ;;  %v11398_v53 = vor.u32 %v11397_v4, %v11396_v37  ;;  %v4250_v21 = vld [vmem:[%s14887_s1 + $0xb8] sm:$0xff]  ;;  %v4267_v4 = vld [vmem:[%s14887_s1 + $0x140] sm:$0xff] }
 0x246   : > { %v1702_v22 = vpop.f32.mrf.mxu3  ;;  %4472 = vperm.xlu0 %11442, %v4266_v55  }
 0x247   : > { %v2324_v54 = vpop.f32.mrf.mxu0  ;;  %v1776_v8 = vadd.f32 %v1699_v34, %v1354_v44  ;;  %v3331_v44 = vsel %vm482_vm2, %v3326_v48, %v3330_v57  ;;  %v3774_v10 = vrot.slane %v11398_v53, 1  ;;  %v4272_v48 = vld [vmem:[%s14887_s1 + $0x168] sm:$0xff] }
 0x248   : > { %v12378_v40 = vpop.f32.mrf.mxu1  ;;  %4392 = vperm.xlu2 %11444, %v4250_v21  }
 0x249   : > { %9537 = vmatmul.msk.bf16.gmra.mxu2 %vm679_vm1, %v1120_v45  ;;  %v12383_v29 = vadd.f32 %v2321_v14, %v1776_v8  ;;  %v4264_v14 = vld [vmem:[%s14887_s1 + $0x128] sm:$0xff]  ;;  %v11100_v8 = vld [vmem:[%s14891_s5 + $0x50] sm:$0xff] }
 0x24a   : > { %9775 = vmatmul.msk.bf16.gmra.mxu0 %vm679_vm1, %v2164_v42  ;;  %v12403_v45 = vld [vmem:[%s11625_s20 + $0x28] sm:$0xff]  ;;  %5644 = vmatpush.bf16.msra.mxu1 %v11100_v8 }
 0x24b   : > { %v3336_v53 = vshll.u32 %v12403_v45, 16 }
 0x24c   : > { %v1280_v38 = vpop.f32.mrf.mxu2  ;;  %4462 = vperm.xlu1 %11443, %v4264_v14  }
 0x24d   : > { %v1355_v50 = vadd.f32 %v1280_v38, %v11834_v63 }
 0x24e   : > { %v1704_v34 = vpop.f32.mrf.mxu3  ;;  %4487 = vperm.xlu0 %11442, %v4269_v32   ;;  %v3338_v32 = vrot.slane %v3336_v53, 1 }
 0x24f   : > { %v2326_v15 = vpop.f32.mrf.mxu0  ;;  %v1777_v63 = vadd.f32 %v1702_v22, %v1355_v50  ;;  %v3332_v50 = vshrl.u32 %v12364_v61, 16  ;;  %v4256_v61 = vld [vmem:[%s14887_s1 + $0xe8] sm:$0xff] }
 0x250   : > { %v2636_v11 = vpop.f32.mrf.mxu1 }
 0x251   : > { %v2399_v42 = vadd.f32 %v2324_v54, %v1777_v63  ;;  %v3776_v54 = vsel %vm1071_vm3, %v3774_v10, %v3775_v9  ;;  %v3334_v14 = vor.u32 %v3332_v50, %v3330_v57  ;;  %v11021_v50 = vld [vmem:[%s11625_s20 + $0x20] sm:$0xff] }
 0x253   : > { %10015 = vmatmul.msk.bf16.vlgmr.msra.gmra.mxu3 %vm679_vm1, %v3331_v44  ;;  %v12400_v55 = vadd.f32 %v2631_v18, %v2399_v42  ;;  %v4253_v18 = vld [vmem:[%s14887_s1 + $0xd0] sm:$0xff] }
 0x254   : > { %v1282_v20 = vpop.f32.mrf.mxu2  ;;  %4407 = vperm.xlu2 %11444, %v4253_v18   ;;  %4477 = vperm.xlu1 %11443, %v4267_v4  }
 0x255   : > { %v1356_v22 = vadd.f32 %v1282_v20, %v11843_v27 }
 0x256   : > { %v1707_v37 = vpop.f32.mrf.mxu3  ;;  %4502 = vperm.xlu0 %11442, %v4272_v48  }
 0x257   : > { %v2329_v26 = vpop.f32.mrf.mxu0  ;;  %v1778_v27 = vadd.f32 %v1704_v34, %v1356_v22  ;;  %v4270_v34 = vld [vmem:[%s14887_s1 + $0x158] sm:$0xff]  ;;  %v12441_v22 = vld [vmem:[%s11625_s20 + $0x30] sm:$0xff] }
 0x258   : > { %v12420_v38 = vpop.f32.mrf.mxu1 }
 0x259   : > { %14963 = vst [vmem:[#allocation18_spill] sm:$0xff] %v12420_v38  ;;  %9898 = vmatmul.msk.bf16.vlgmr.msra.gmra.mxu2 %vm679_vm1, %v11020_v36  ;;  %v12426_v21 = vadd.f32 %v2326_v15, %v1778_v27  ;;  %v3339_v15 = vsel %vm482_vm2, %v3334_v14, %v3338_v32  ;;  %v3344_v14 = vshll.u32 %v12441_v22, 16 }
 0x25a   : > { %10040 = vmatmul.msk.bf16.vlgmr.msra.gmra.mxu0 %vm679_vm1, %v3776_v54 }
 0x25c   : > { %v1285_v63 = vpop.f32.mrf.mxu2  ;;  %4422 = vperm.xlu2 %11444, %v4256_v61   ;;  %4492 = vperm.xlu1 %11443, %v4270_v34  }
 0x25d   : > { %v1357_v44 = vadd.f32 %v1285_v63, %v11852_v43  ;;  %v3777_v43 = vrot.slane %v12403_v45, 1 }
 0x25e   : > { %v1709_v10 = vpop.f32.mrf.mxu3 }
 0x25f   : > { %v2331_v42 = vpop.f32.mrf.mxu0  ;;  %v1779_v57 = vadd.f32 %v1707_v37, %v1357_v44  ;;  %v3778_v27 = vsel %vm1071_vm3, %v3775_v9, %v3777_v43  ;;  %v4273_v37 = vld [vmem:[%s14887_s1 + $0x170] sm:$0xff]  ;;  %v3346_v44 = vrot.slane %v3344_v14, 1 }
 0x260   : > { %v2641_v8 = vpop.f32.mrf.mxu1 }
 0x261   : > { %v2401_v20 = vadd.f32 %v2329_v26, %v1779_v57  ;;  %v4259_v26 = vld [vmem:[%s14887_s1 + $0x100] sm:$0xff] }
 0x263   : > { %10016 = vmatmul.msk.bf16.gmra.mxu3 %vm679_vm1, %v3339_v15  ;;  %v12438_v36 = vadd.f32 %v2636_v11, %v2401_v20 }
 0x264   : > { %v1287_v54 = vpop.f32.mrf.mxu2  ;;  %4437 = vperm.xlu2 %11444, %v4259_v26   ;;  %4507 = vperm.xlu1 %11443, %v4273_v37  }
 0x265   : > { %v1358_v18 = vadd.f32 %v1287_v54, %v11861_v2  ;;  %v3340_v2 = vshrl.u32 %v12403_v45, 16  ;;  %v4262_v45 = vld [vmem:[%s14887_s1 + $0x118] sm:$0xff] }
 0x266   : > { %v1712_v48 = vpop.f32.mrf.mxu3 }
 0x267   : > { %v2334_v4 = vpop.f32.mrf.mxu0  ;;  %v1780_v53 = vadd.f32 %v1709_v10, %v1358_v18  ;;  %v3342_v63 = vor.u32 %v3340_v2, %v3338_v32  ;;  %v3779_v18 = vrot.slane %v12441_v22, 1  ;;  %v11022_v2 = vld [vmem:[%s11625_s20 + $0x28] sm:$0xff] }
 0x268   : > { %v12452_v11 = vpop.f32.mrf.mxu1 }
 0x269   : > { %14964 = vst [vmem:[#allocation19_spill] sm:$0xff] %v12452_v11  ;;  %9899 = vmatmul.msk.bf16.gmra.mxu2 %vm679_vm1, %v11021_v50  ;;  %v12458_v9 = vadd.f32 %v2331_v42, %v1780_v53  ;;  %v3347_v54 = vsel %vm482_vm2, %v3342_v63, %v3346_v44  ;;  %v3780_v53 = vsel %vm1071_vm3, %v3777_v43, %v3779_v18 }
 0x26a   : > { %10041 = vmatmul.msk.bf16.gmra.mxu0 %vm679_vm1, %v3778_v27 }
 0x26b   : > { %14965 = vst [vmem:[#allocation20_spill] sm:$0xff] %v12458_v9 }
 0x26c   : > { %v1290_v61 = vpop.f32.mrf.mxu2  ;;  %4452 = vperm.xlu2 %11444, %v4262_v45   ;;  %v14969_v45 = vld [vmem:[#allocation3_spill] sm:$0xff] }
 0x26d   : > { %v1359_v34 = vadd.f32 %v1290_v61, %v11870_v16  ;;  %v12470_v16 = vld [vmem:[%s11625_s20 + $0x38] sm:$0xff] }
 0x26e   : > { %v1714_v15 = vpop.f32.mrf.mxu3  ;;  %v3352_v63 = vshll.u32 %v12470_v16, 16 }
 0x26f   : > { %v2336_v57 = vpop.f32.mrf.mxu0  ;;  %v1781_v20 = vadd.f32 %v1712_v48, %v1359_v34 }
 0x270   : > { %v2646_v10 = vpop.f32.mrf.mxu1  ;;  %v3354_v61 = vrot.slane %v3352_v63, 1 }
 0x271   : > { %v2403_v42 = vadd.f32 %v2334_v4, %v1781_v20  ;;  %v4265_v4 = vld [vmem:[%s14887_s1 + $0x130] sm:$0xff] }
 0x273   : > { %10017 = vmatmul.msk.bf16.gmra.mxu3 %vm679_vm1, %v3347_v54  ;;  %v12467_v32 = vadd.f32 %v2641_v8, %v2403_v42  ;;  %v3348_v8 = vshrl.u32 %v12441_v22, 16  ;;  %v4268_v22 = vld [vmem:[%s14887_s1 + $0x148] sm:$0xff] }
 0x274   : > { %v1292_v27 = vpop.f32.mrf.mxu2  ;;  %4467 = vperm.xlu2 %11444, %v4265_v4   ;;  %v11099_v4 = vld [vmem:[%s14891_s5 + $0x48] sm:$0xff] }
 0x275   : > { %14966 = vst [vmem:[#allocation21_spill] sm:$0xff] %v12467_v32  ;;  %v1360_v50 = vadd.f32 %v1292_v27, %v11879_v41  ;;  %v3350_v43 = vor.u32 %v3348_v8, %v3346_v44  ;;  %v14971_v8 = vld [vmem:[#allocation4_spill] sm:$0xff]  ;;  %5645 = vmatpush.bf16.msra.mxu1 %v11099_v4 }
 0x276   : > { %v1717_v37 = vpop.f32.mrf.mxu3 }
 0x277   : > { %v2339_v26 = vpop.f32.mrf.mxu0  ;;  %v1782_v14 = vadd.f32 %v1714_v15, %v1360_v50  ;;  %v3355_v27 = vsel %vm482_vm2, %v3350_v43, %v3354_v61 }
 0x278   : > { %v12478_v48 = vpop.f32.mrf.mxu1 }
 0x279   : > { %14967 = vst [vmem:[#allocation22_spill] sm:$0xff] %v12478_v48  ;;  %9900 = vmatmul.msk.bf16.gmra.mxu2 %vm679_vm1, %v11022_v2  ;;  %v12484_v41 = vadd.f32 %v2336_v57, %v1782_v14  ;;  %v12496_v2 = vld [vmem:[%s11625_s20 + $0x40] sm:$0xff] }
 0x27a   : > { %10042 = vmatmul.msk.bf16.gmra.mxu0 %vm679_vm1, %v3780_v53  ;;  %v3781_v53 = vrot.slane %v12470_v16, 1 }
 0x27b   : > { %14968 = vst [vmem:[#allocation23_spill] sm:$0xff] %v12484_v41 }
 0x27c   : > { %v1295_v34 = vpop.f32.mrf.mxu2  ;;  %4482 = vperm.xlu2 %11444, %v4268_v22   ;;  %v3782_v43 = vsel %vm1071_vm3, %v3779_v18, %v3781_v53  ;;  %v3360_v22 = vshll.u32 %v12496_v2, 16 }
 0x27d   : > { %v1361_v20 = vadd.f32 %v1295_v34, %v14969_v45 }
 0x27e   : > { %v1719_v42 = vpop.f32.mrf.mxu3 }
 0x27f   : > { %v2341_v54 = vpop.f32.mrf.mxu0  ;;  %v1783_v15 = vadd.f32 %v1717_v37, %v1361_v20  ;;  %v3356_v20 = vshrl.u32 %v12470_v16, 16  ;;  %v4274_v16 = vld [vmem:[%s14887_s1 + $0x178] sm:$0xff] }
 0x280   : > { %v2651_v50 = vpop.f32.mrf.mxu1 }
 0x281   : > { %v2405_v57 = vadd.f32 %v2339_v26, %v1783_v15  ;;  %v11023_v26 = vld [vmem:[%s11625_s20 + $0x30] sm:$0xff] }
 0x283   : > { %10018 = vmatmul.msk.bf16.gmra.mxu3 %vm679_vm1, %v3355_v27  ;;  %v12493_v44 = vadd.f32 %v2646_v10, %v2405_v57  ;;  %v4271_v10 = vld [vmem:[%s14887_s1 + $0x160] sm:$0xff]  ;;  %v3358_v27 = vor.u32 %v3356_v20, %v3354_v61  ;;  %v3362_v57 = vrot.slane %v3360_v22, 1 }
 0x284   : > { %v1297_v14 = vpop.f32.mrf.mxu2  ;;  %4497 = vperm.xlu2 %11444, %v4271_v10  }
 0x285   : > { %14970 = vst [vmem:[#allocation3_spill] sm:$0xff] %v12493_v44  ;;  %v1362_v63 = vadd.f32 %v1297_v14, %v14971_v8  ;;  %v14974_v14 = vld [vmem:[#allocation5_spill] sm:$0xff] }
 0x286   : > { %v1722_v34 = vpop.f32.mrf.mxu3 }
 0x287   : > { %v2344_v37 = vpop.f32.mrf.mxu0  ;;  %v1784_v45 = vadd.f32 %v1719_v42, %v1362_v63 }
 0x288   : > { %v12513_v18 = vpop.f32.mrf.mxu1 }
 0x289   : > { %9901 = vmatmul.msk.bf16.gmra.mxu2 %vm679_vm1, %v11023_v26  ;;  %v12511_v15 = vadd.f32 %v2341_v54, %v1784_v45  ;;  %14973 = vst [vmem:[#allocation24_spill] sm:$0xff] %v12513_v18  ;;  %v3363_v54 = vsel %vm482_vm2, %v3358_v27, %v3362_v57  ;;  %v3783_v26 = vrot.slane %v12496_v2, 1  ;;  %v11049_v45 = vld [vmem:[%s11625_s20 + $0x48] sm:$0xff]  ;;  %v3364_v27 = vshrl.u32 %v12496_v2, 16 }
 0x28a   : > { %10043 = vmatmul.msk.bf16.gmra.mxu0 %vm679_vm1, %v3782_v43 }
 0x28b   : > { %14972 = vst [vmem:[#allocation4_spill] sm:$0xff] %v12511_v15  ;;  %v3784_v15 = vsel %vm1071_vm3, %v3781_v53, %v3783_v26 }
 0x28c   : > { %v1300_v4 = vpop.f32.mrf.mxu2  ;;  %4512 = vperm.xlu2 %11444, %v4274_v16   ;;  %v11024_v16 = vld [vmem:[%s11625_s20 + $0x38] sm:$0xff] }
 0x28d   : > { %v1363_v8 = vadd.f32 %v1300_v4, %v14974_v14  ;;  %v14976_v4 = vld [vmem:[#allocation6_spill] sm:$0xff] }
 0x28e   : > { %v1724_v42 = vpop.f32.mrf.mxu3 }
 0x28f   : > { %v2346_v10 = vpop.f32.mrf.mxu0  ;;  %v1785_v63 = vadd.f32 %v1722_v34, %v1363_v8  ;;  %v3366_v8 = vor.u32 %v3364_v27, %v3362_v57 }
 0x290   : > { %v2656_v22 = vpop.f32.mrf.mxu1 }
 0x291   : > { %v2407_v43 = vadd.f32 %v2344_v37, %v1785_v63  ;;  %v3368_v37 = vshll.u32 %v11049_v45, 16 }
 0x293   : > { %10019 = vmatmul.msk.bf16.gmra.mxu3 %vm679_vm1, %v3363_v54  ;;  %v12522_v61 = vadd.f32 %v2651_v50, %v2407_v43  ;;  %v3370_v63 = vrot.slane %v3368_v37, 1  ;;  %v14978_v43 = vld [vmem:[#allocation7_spill] sm:$0xff] }
 0x294   : > { %v1302_v20 = vpop.f32.mrf.mxu2 }
 0x295   : > { %14975 = vst [vmem:[#allocation5_spill] sm:$0xff] %v12522_v61  ;;  %v1364_v14 = vadd.f32 %v1302_v20, %v14976_v4  ;;  %v3371_v2 = vsel %vm482_vm2, %v3366_v8, %v3370_v63 }
 0x296   : > { %v1727_v48 = vpop.f32.mrf.mxu3 }
 0x297   : > { %v2349_v18 = vpop.f32.mrf.mxu0  ;;  %v1786_v34 = vadd.f32 %v1724_v42, %v1364_v14 }
 0x298   : > { %v12534_v61 = vpop.f32.mrf.mxu1 }
 0x299   : > { %9902 = vmatmul.msk.bf16.gmra.mxu2 %vm679_vm1, %v11024_v16  ;;  %v12531_v50 = vadd.f32 %v2346_v10, %v1786_v34  ;;  %14979 = vst [vmem:[#allocation7_spill] sm:$0xff] %v12534_v61  ;;  %v11050_v10 = vld [vmem:[%s11625_s20 + $0x50] sm:$0xff]  ;;  %v3372_v61 = vshrl.u32 %v11049_v45, 16 }
 0x29a   : > { %10044 = vmatmul.msk.bf16.gmra.mxu0 %vm679_vm1, %v3784_v15  ;;  %v3785_v15 = vrot.slane %v11049_v45, 1  ;;  %v14981_v34 = vld [vmem:[#allocation8_spill] sm:$0xff] }
 0x29b   : > { %14977 = vst [vmem:[#allocation6_spill] sm:$0xff] %v12531_v50  ;;  %v11025_v50 = vld [vmem:[%s11625_s20 + $0x40] sm:$0xff]  ;;  %v3374_v8 = vor.u32 %v3372_v61, %v3370_v63 }
 0x29c   : > { %v1305_v54 = vpop.f32.mrf.mxu2  ;;  %v11098_v61 = vld [vmem:[%s14891_s5 + $0x40] sm:$0xff] }
 0x29d   : > { %v1365_v20 = vadd.f32 %v1305_v54, %v14978_v43  ;;  %v3786_v43 = vsel %vm1071_vm3, %v3783_v26, %v3785_v15  ;;  %5646 = vmatpush.bf16.msra.mxu1 %v11098_v61 }
 0x29e   : > { %v1729_v53 = vpop.f32.mrf.mxu3 }
 0x29f   : > { %v2351_v4 = vpop.f32.mrf.mxu0  ;;  %v1787_v42 = vadd.f32 %v1727_v48, %v1365_v20  ;;  %v3376_v48 = vshll.u32 %v11050_v10, 16 }
 0x2a1   : > { %v2409_v14 = vadd.f32 %v2349_v18, %v1787_v42  ;;  %v2661_v18 = vpop.f32.mrf.mxu1  ;;  %v3378_v20 = vrot.slane %v3376_v48, 1 }
 0x2a3   : > { %10020 = vmatmul.msk.bf16.gmra.mxu3 %vm679_vm1, %v3371_v2  ;;  %v12538_v16 = vadd.f32 %v2656_v22, %v2409_v14  ;;  %v14983_v2 = vld [vmem:[#allocation9_spill] sm:$0xff]  ;;  %v3379_v45 = vsel %vm482_vm2, %v3374_v8, %v3378_v20  ;;  %v11026_v8 = vld [vmem:[%s11625_s20 + $0x48] sm:$0xff] }
 0x2a4   : > { %v1307_v57 = vpop.f32.mrf.mxu2 }
 0x2a5   : > { %14980 = vst [vmem:[#allocation25_spill] sm:$0xff] %v12538_v16  ;;  %v1366_v27 = vadd.f32 %v1307_v57, %v14981_v34 }
 0x2a6   : > { %v1732_v54 = vpop.f32.mrf.mxu3 }
 0x2a7   : > { %v2354_v37 = vpop.f32.mrf.mxu0  ;;  %v1788_v44 = vadd.f32 %v1729_v53, %v1366_v27  ;;  %v3787_v27 = vrot.slane %v11050_v10, 1 }
 0x2a9   : > { %9903 = vmatmul.msk.bf16.gmra.mxu2 %vm679_vm1, %v11025_v50  ;;  %v12546_v22 = vadd.f32 %v2351_v4, %v1788_v44  ;;  %v12556_v44 = vld [vmem:[%s11625_s20 + $0x58] sm:$0xff] }
 0x2aa   : > { %10045 = vmatmul.msk.bf16.gmra.mxu0 %vm679_vm1, %v3786_v43  ;;  %v12551_v43 = vpop.f32.mrf.mxu1  ;;  %v14986_v4 = vld [vmem:[#allocation10_spill] sm:$0xff] }
 0x2ab   : > { %14982 = vst [vmem:[#allocation8_spill] sm:$0xff] %v12546_v22 }
 0x2ac   : > { %v1310_v42 = vpop.f32.mrf.mxu2  ;;  %14984 = vst [vmem:[#allocation9_spill] sm:$0xff] %v12551_v43  ;;  %v14988_v43 = vld [vmem:[#allocation11_spill] sm:$0xff] }
 0x2ad   : > { %v1367_v14 = vadd.f32 %v1310_v42, %v14983_v2 }
 0x2ae   : > { %v1734_v26 = vpop.f32.mrf.mxu3 }
 0x2af   : > { %v2356_v57 = vpop.f32.mrf.mxu0  ;;  %v1789_v34 = vadd.f32 %v1732_v54, %v1367_v14  ;;  %v3380_v14 = vshrl.u32 %v11050_v10, 16 }
 0x2b1   : > { %v2411_v53 = vadd.f32 %v2354_v37, %v1789_v34  ;;  %v3788_v37 = vsel %vm1071_vm3, %v3785_v15, %v3787_v27 }
 0x2b3   : > { %10021 = vmatmul.msk.bf16.gmra.mxu3 %vm679_vm1, %v3379_v45  ;;  %v12553_v50 = vadd.f32 %v2661_v18, %v2411_v53  ;;  %v3384_v18 = vshll.u32 %v12556_v44, 16  ;;  %v3382_v45 = vor.u32 %v3380_v14, %v3378_v20 }
 0x2b4   : > { %v1312_v63 = vpop.f32.mrf.mxu2 }
 0x2b5   : > { %14985 = vst [vmem:[#allocation26_spill] sm:$0xff] %v12553_v50  ;;  %v1368_v48 = vadd.f32 %v1312_v63, %v14986_v4  ;;  %v3386_v53 = vrot.slane %v3384_v18, 1  ;;  %v2666_v4 = vpop.f32.mrf.mxu1 }
 0x2b6   : > { %v1737_v42 = vpop.f32.mrf.mxu3 }
 0x2b7   : > { %v2359_v54 = vpop.f32.mrf.mxu0  ;;  %v1790_v2 = vadd.f32 %v1734_v26, %v1368_v48  ;;  %v3387_v10 = vsel %vm482_vm2, %v3382_v45, %v3386_v53 }
 0x2b9   : > { %9904 = vmatmul.msk.bf16.gmra.mxu2 %vm679_vm1, %v11026_v8  ;;  %v12567_v34 = vadd.f32 %v2356_v57, %v1790_v2  ;;  %v12576_v57 = vld [vmem:[%s11625_s20 + $0x60] sm:$0xff]  ;;  %v14990_v2 = vld [vmem:[#allocation12_spill] sm:$0xff] }
 0x2ba   : > { %10046 = vmatmul.msk.bf16.gmra.mxu0 %vm679_vm1, %v3788_v37  ;;  %v3789_v37 = vrot.slane %v12556_v44, 1 }
 0x2bb   : > { %14987 = vst [vmem:[#allocation10_spill] sm:$0xff] %v12567_v34 }
 0x2bc   : > { %v1315_v63 = vpop.f32.mrf.mxu2 }
 0x2bd   : > { %v1369_v15 = vadd.f32 %v1315_v63, %v14988_v43  ;;  %v3790_v43 = vsel %vm1071_vm3, %v3787_v27, %v3789_v37  ;;  %v11027_v63 = vld [vmem:[%s11625_s20 + $0x50] sm:$0xff]  ;;  %v4569_v27 = vld [vmem:[#allocation2 + $0xc] sm:$0x1] }
 0x2be   : > { %v1739_v61 = vpop.f32.mrf.mxu3 }
 0x2bf   : > { %v2361_v50 = vpop.f32.mrf.mxu0  ;;  %v1791_v26 = vadd.f32 %v1737_v42, %v1369_v15  ;;  %v12581_v42 = vpop.f32.mrf.mxu1  ;;  %v3392_v15 = vshll.u32 %v12576_v57, 16 }
 0x2c0   : > { %14991 = vst [vmem:[#allocation12_spill] sm:$0xff] %v12581_v42 }
 0x2c1   : > { %v2413_v48 = vadd.f32 %v2359_v54, %v1791_v26  ;;  %v3388_v54 = vshrl.u32 %v12556_v44, 16  ;;  %v14993_v26 = vmov 0  ;;  %v4570_v44 = vsel %vm12590_vm6, 0, %v4569_v27 }
 0x2c2   : > { %v14994_v26 = vsel %vm12590_vm6, 4294967295, %v14993_v26  ;;  %4571 = vst [vmem:[#allocation2 + $0xc] sm:$0x1] %v4570_v44 }
 0x2c3   : > { %10022 = vmatmul.msk.bf16.gmra.mxu3 %vm679_vm1, %v3387_v10  ;;  %v12573_v8 = vadd.f32 %v2666_v4, %v2413_v48  ;;  %14995 = vst [vmem:[#allocation28_spill] sm:$0xff] %v14994_v26  ;;  %v3394_v10 = vrot.slane %v3392_v15, 1  ;;  %v14998_v15 = vld [vmem:[#allocation14_spill] sm:$0xff] }
 0x2c4   : > { %v1317_v20 = vpop.f32.mrf.mxu2 }
 0x2c5   : > { %14989 = vst [vmem:[#allocation11_spill] sm:$0xff] %v12573_v8  ;;  %v1370_v14 = vadd.f32 %v1317_v20, %v14990_v2  ;;  %v14996_v20 = vld [vmem:[#allocation13_spill] sm:$0xff] }
 0x2c6   : > { %v1742_v34 = vpop.f32.mrf.mxu3 }
 0x2c7   : > { %v2364_v18 = vpop.f32.mrf.mxu0  ;;  %v1792_v45 = vadd.f32 %v1739_v61, %v1370_v14  ;;  %v3390_v61 = vor.u32 %v3388_v54, %v3386_v53  ;;  %v12603_v53 = vld [vmem:[%s11625_s20 + $0x68] sm:$0xff] }
 0x2c9   : > { %9905 = vmatmul.msk.bf16.gmra.mxu2 %vm679_vm1, %v11027_v63  ;;  %v12587_v4 = vadd.f32 %v2361_v50, %v1792_v45  ;;  %v3395_v63 = vsel %vm482_vm2, %v3390_v61, %v3394_v10  ;;  %v2671_v45 = vpop.f32.mrf.mxu1  ;;  %v3396_v61 = vshrl.u32 %v12576_v57, 16 }
 0x2ca   : > { %10047 = vmatmul.msk.bf16.gmra.mxu0 %vm679_vm1, %v3790_v43 }
 0x2cb   : > { %14992 = vst [vmem:[#allocation27_spill] sm:$0xff] %v12587_v4  ;;  %v3791_v4 = vrot.slane %v12576_v57, 1  ;;  %v12618_v57 = vld [vmem:[%s14889_s3] ss:$0 sm:$0xff] }
 0x2cc   : > { %v1320_v48 = vpop.f32.mrf.mxu2 }
 0x2cd   : > { %v1371_v2 = vadd.f32 %v1320_v48, %v14996_v20  ;;  %v3792_v20 = vsel %vm1071_vm3, %v3789_v37, %v3791_v4 }
 0x2ce   : > { %v1744_v50 = vpop.f32.mrf.mxu3 }
 0x2cf   : > { %v2366_v14 = vpop.f32.mrf.mxu0  ;;  %v1793_v43 = vadd.f32 %v1742_v34, %v1371_v2  ;;  %v11028_v34 = vld [vmem:[%s11625_s20 + $0x58] sm:$0xff] }
 0x2d1   : > { %v2415_v42 = vadd.f32 %v2364_v18, %v1793_v43  ;;  %v3400_v18 = vshll.u32 %v12603_v53, 16  ;;  %v3398_v43 = vor.u32 %v3396_v61, %v3394_v10  ;;  %v12624_v10 = vld [vmem:[%s14890_s4] ss:$0 sm:$0xff] }
 0x2d3   : > { %10023 = vmatmul.msk.bf16.gmra.mxu3 %vm679_vm1, %v3395_v63  ;;  %v12600_v26 = vadd.f32 %v2671_v45, %v2415_v42  ;;  %v3402_v63 = vrot.slane %v3400_v18, 1 }
 0x2d4   : > { %v1322_v54 = vpop.f32.mrf.mxu2 }
 0x2d5   : > { %14997 = vst [vmem:[#allocation13_spill] sm:$0xff] %v12600_v26  ;;  %v1372_v27 = vadd.f32 %v1322_v54, %v14998_v15  ;;  %v15000_v54 = vld [vmem:[#allocation15_spill] sm:$0xff] }
 0x2d6   : > { %v3600_v48 = vpop.f32.mrf.mxu3 }
 0x2d7   : > { %v3907_v44 = vpop.f32.mrf.mxu0  ;;  %v1794_v2 = vadd.f32 %v1744_v50, %v1372_v27  ;;  %v3403_v27 = vsel %vm482_vm2, %v3398_v43, %v3402_v63 }
 0x2d9   : > { %9906 = vmatmul.msk.bf16.gmra.mxu2 %vm679_vm1, %v11028_v34  ;;  %v12612_v42 = vadd.f32 %v2366_v14, %v1794_v2  ;;  %v14896_v14 = vrot.slane %v12603_v53, 1  ;;  %v12629_v34 = vld [vmem:[%s11625_s20 + $0x70] sm:$0xff] }
 0x2da   : > { %10048 = vmatmul.msk.bf16.gmra.mxu0 %vm679_vm1, %v3792_v20  ;;  %v14898_v11 = vrot.slane %v12629_v34, 1 }
 0x2db   : > { %14999 = vst [vmem:[#allocation14_spill] sm:$0xff] %v12612_v42 }
 0x2dc   : > { %v2978_v45 = vpop.f32.mrf.mxu2 }
 0x2dd   : > { %v3098_v15 = vadd.f32 %v2978_v45, %v15000_v54  ;;  %v3794_v45 = vsel %vm1071_vm3, %v3791_v4, %v14896_v14  ;;  %v11029_v54 = vld [vmem:[%s11625_s20 + $0x60] sm:$0xff]  ;;  %v11097_v14 = vld [vmem:[%s14891_s5 + $0x38] sm:$0xff] }
 0x2de   : > { %v3602_v37 = vpop.f32.mrf.mxu3  ;;  %5840 = vmatpush.bf16.msrb.mxu2 %v11097_v14  ;;  %v12660_v14 = vld [vmem:[%s11625_s20 + $0x78] sm:$0xff] }
 0x2df   : > { %v3909_v26 = vpop.f32.mrf.mxu0  ;;  %v3720_v50 = vadd.f32 %v3600_v48, %v3098_v15  ;;  %v4278_v15 = vpop.permute.xlu0 %4277 }
 0x2e1   : > { %v4027_v20 = vadd.f32 %v3907_v44, %v3720_v50  ;;  %v3404_v50 = vshrl.u32 %v12603_v53, 16 }
 0x2e3   : > { %10024 = vmatmul.msk.bf16.gmra.mxu3 %vm679_vm1, %v3403_v27  ;;  %v4079_v48 = vmul.f32 %v12618_v57, %v4027_v20  ;;  %v3408_v27 = vshll.u32 %v12629_v34, 16 }
 0x2e4   : > { %v2980_v2 = vpop.f32.mrf.mxu2 }
 0x2e5   : > { %v4131_v61 = vadd.f32 %v12624_v10, %v4079_v48  ;;  %v3099_v18 = vadd.f32 %v2980_v2, %v12011_v46  ;;  %v3406_v46 = vor.u32 %v3404_v50, %v3402_v63  ;;  %v3410_v2 = vrot.slane %v3408_v27, 1 }
 0x2e6   : > { %v3605_v44 = vpop.f32.mrf.mxu3 }
 0x2e7   : > { %v3912_v43 = vpop.f32.mrf.mxu0  ;;  %v4179_v42 = vmax.f32 %v4131_v61, 0.0  ;;  %v3721_v8 = vadd.f32 %v3602_v37, %v3099_v18  ;;  %v11113_v37 = vld [vmem:[%s14891_s5 + $0xb8] sm:$0xff]  ;;  %v3411_v18 = vsel %vm482_vm2, %v3406_v46, %v3410_v2  ;;  %v4283_v27 = vpop.permute.xlu0 %4282 }
 0x2e8   : > { %6111 = vmatpush.bf16.msrb.mxu3 %v11113_v37  ;;  %v11265_v37 = vld [vmem:[#allocation2] sm:$0xff]  }
 0x2e9   : > { %v4515_v20 = vmul.f32 %v4278_v15, %v4179_v42  ;;  %v4028_v48 = vadd.f32 %v3909_v26, %v3721_v8  ;;  %9907 = vmatmul.msk.bf16.gmra.mxu2 %vm679_vm1, %v11029_v54 }
 0x2ea   : > { %10049 = vmatmul.msk.bf16.gmra.mxu0 %vm679_vm1, %v3794_v45 }
 0x2eb   : > { %v4572_v22 = vpack.c.bf16 %v4515_v20, %v4515_v20  ;;  %v4080_v16 = vmul.f32 %v12618_v57, %v4028_v48  ;;  %v15001_v20 = vmov 0 }
 0x2ec   : > { %v2983_v4 = vpop.f32.mrf.mxu2  ;;  %v15002_v20 = vsel %vm12653_vm8, 4294967295, %v15001_v20 }
 0x2ed   : > { %v4623_v61 = vshrl.u32 %v4572_v22, 16  ;;  %v4132_v8 = vadd.f32 %v12624_v10, %v4080_v16  ;;  %v3100_v26 = vadd.f32 %v2983_v4, %v12019_v35  ;;  %v4626_v54 = vshll.u32 %v4572_v22, 16  ;;  %15003 = vst [vmem:[#allocation15_spill] sm:$0xff] %v15002_v20  ;;  %v5105_v16 = vld [vmem:[#allocation2 + $0xc] sm:$0xf] }
 0x2ee   : > { %v3607_v63 = vpop.f32.mrf.mxu3  ;;  %v5374_v20 = vshll.u32 %v11265_v37, 16 }
 0x2ef   : > { %v3914_v42 = vpop.f32.mrf.mxu0  ;;  %v4625_v45 = vrot.slane %v4623_v61, 7  ;;  %v4180_v15 = vmax.f32 %v4132_v8, 0.0  ;;  %v3722_v50 = vadd.f32 %v3605_v44, %v3100_v26  ;;  %v11176_v8 = vld [vmem:[%s14891_s5 + $0x138] sm:$0xff] }
 0x2f0   : > { %7179 = vmatpush.bf16.msrb.mxu1 %v11176_v8 }
 0x2f1   : > { %v4628_v48 = vor.u32 %v4626_v54, %v4625_v45  ;;  %v4516_v35 = vmul.f32 %v4283_v27, %v4180_v15  ;;  %v4029_v4 = vadd.f32 %v3912_v43, %v3722_v50  ;;  %v11145_v43 = vld [vmem:[%s14891_s5 + $0xf8] sm:$0xff]  ;;  %v15004_v27 = vrot.slane %v12603_v53, 1 }
 0x2f2   : > { %6545 = vmatpush.bf16.msrb.mxu0 %v11145_v43  ;;  %v4629_v53 = vrot.slane %v4625_v45, 4 }
 0x2f3   : > { %10025 = vmatmul.msk.bf16.gmra.mxu3 %vm679_vm1, %v3411_v18  ;;  %v5106_v22 = vsel %vm12653_vm8, %v4628_v48, %v5105_v16  ;;  %v4573_v44 = vpack.c.bf16 %v4516_v35, %v4516_v35  ;;  %v4081_v46 = vmul.f32 %v12618_v57, %v4029_v4  ;;  %v3796_v16 = vsel %vm1071_vm3, %v15004_v27, %v14898_v11  ;;  %v11030_v48 = vld [vmem:[%s11625_s20 + $0x68] sm:$0xff]  ;;  %v4288_v35 = vpop.permute.xlu1 %4287 }
 0x2f4   : > { %5107 = vst [vmem:[#allocation2 + $0xc] sm:$0xf] %v5106_v22  ;;  %v2985_v61 = vpop.f32.mrf.mxu2  ;;  %v3412_v4 = vshrl.u32 %v12629_v34, 16  ;;  %v3416_v22 = vshll.u32 %v12660_v14, 16 }
 0x2f5   : > { %v4631_v26 = vshrl.u32 %v4573_v44, 16  ;;  %v4133_v18 = vadd.f32 %v12624_v10, %v4081_v46  ;;  %v3101_v54 = vadd.f32 %v2985_v61, %v12027_v0  ;;  %v4634_v41 = vshll.u32 %v4573_v44, 16 }
 0x2f6   : > { %v3610_v50 = vpop.f32.mrf.mxu3  ;;  %v3414_v38 = vor.u32 %v3412_v4, %v3410_v2  ;;  %v3418_v8 = vrot.slane %v3416_v22, 1  ;;  %v5376_v44 = vrot.slane %v5374_v20, 1 }
 0x2f7   : > { %v3917_v15 = vpop.f32.mrf.mxu0  ;;  %v4633_v46 = vrot.slane %v4631_v26, 7  ;;  %v4181_v0 = vmax.f32 %v4133_v18, 0.0  ;;  %v3723_v61 = vadd.f32 %v3607_v63, %v3101_v54  ;;  %v5372_v26 = vshrl.u32 %v11265_v37, 16 }
 0x2f8   : > { %v3419_v37 = vsel %vm482_vm2, %v3414_v38, %v3418_v8 }
 0x2f9   : > { %v4636_v43 = vor.u32 %v4634_v41, %v4633_v46  ;;  %v4517_v27 = vmul.f32 %v4288_v35, %v4181_v0  ;;  %v4030_v11 = vadd.f32 %v3914_v42, %v3723_v61  ;;  %9908 = vmatmul.msk.bf16.gmra.mxu2 %vm679_vm1, %v11030_v48  ;;  %v5377_v20 = vor.u32 %v5376_v44, %v5372_v26  ;;  %v12702_v26 = vld [vmem:[%s11625_s20 + $0x80] sm:$0xff] }
 0x2fa   : > { %10050 = vmatmul.msk.bf16.gmra.mxu0 %vm679_vm1, %v3796_v16 }
 0x2fb   : > { %v4637_v63 = vsel %vm12683_vm10, %v4629_v53, %v4636_v43  ;;  %v4574_v18 = vpack.c.bf16 %v4517_v27, %v4517_v27  ;;  %v4082_v54 = vmul.f32 %v12618_v57, %v4030_v11  ;;  %v12692_v9 = vld [vmem:[#allocation2 + $0x8] sm:$0xff]  ;;  %v4293_v61 = vpop.permute.xlu1 %4292  ;;  %v14899_v43 = vrot.slane %v12660_v14, 1 }
 0x2fc   : > { %5108 = vst [vmem:[#allocation2 + $0x10] sm:$0xf] %v4637_v63  ;;  %v2988_v16 = vpop.f32.mrf.mxu2  ;;  %v5379_v35 = vshll.u32 %v12692_v9, 16  ;;  %v4638_v27 = vrot.slane %v4633_v46, 4 }
 0x2fd   : > { %v4640_v45 = vshrl.u32 %v4574_v18, 16  ;;  %v4134_v41 = vadd.f32 %v12624_v10, %v4082_v54  ;;  %v3102_v42 = vadd.f32 %v2988_v16, %v12035_v1  ;;  %v4643_v22 = vshll.u32 %v4574_v18, 16 }
 0x2fe   : > { %v3612_v2 = vpop.f32.mrf.mxu3  ;;  %v5381_v53 = vrot.slane %v5379_v35, 1  ;;  %v11031_v35 = vld [vmem:[%s11625_s20 + $0x70] sm:$0xff] }
 0x2ff   : > { %v3919_v48 = vpop.f32.mrf.mxu0  ;;  %v4642_v4 = vrot.slane %v4640_v45, 7  ;;  %v4182_v11 = vmax.f32 %v4134_v41, 0.0  ;;  %v3724_v0 = vadd.f32 %v3610_v50, %v3102_v42 }
 0x300   : > { %v5382_v38 = vsel %vm482_vm2, %v5377_v20, %v5381_v53 }
 0x301   : > { %v4645_v63 = vor.u32 %v4643_v22, %v4642_v4  ;;  %v4518_v54 = vmul.f32 %v4293_v61, %v4182_v11  ;;  %v4031_v1 = vadd.f32 %v3917_v15, %v3724_v0  ;;  %5647 = vmatmul.bf16.vlgmr.msra.gmra.mxu1 %v5382_v38  ;;  %v4298_v22 = vpop.permute.xlu2 %4297  ;;  %v3420_v11 = vshrl.u32 %v12660_v14, 16 }
 0x302   : > { %v3424_v0 = vshll.u32 %v12702_v26, 16 }
 0x303   : > { %10026 = vmatmul.msk.bf16.gmra.mxu3 %vm679_vm1, %v3419_v37  ;;  %v4646_v44 = vsel %vm12683_vm10, %v4638_v27, %v4645_v63  ;;  %v4575_v18 = vpack.c.bf16 %v4518_v54, %v4518_v54  ;;  %v4083_v50 = vmul.f32 %v12618_v57, %v4031_v1  ;;  %v15007_v37 = vrot.slane %v12629_v34, 1 }
 0x304   : > { %5109 = vst [vmem:[#allocation2 + $0x14] sm:$0xf] %v4646_v44  ;;  %v2990_v16 = vpop.f32.mrf.mxu2  ;;  %v3422_v34 = vor.u32 %v3420_v11, %v3418_v8  ;;  %v5383_v11 = vshrl.u32 %v12692_v9, 16 }
 0x305   : > { %v4649_v46 = vshrl.u32 %v4575_v18, 16  ;;  %v4135_v45 = vadd.f32 %v12624_v10, %v4083_v50  ;;  %v3103_v15 = vadd.f32 %v2990_v16, %v12043_v12  ;;  %v3798_v20 = vsel %vm1071_vm3, %v15007_v37, %v14899_v43 }
 0x306   : > { %v3615_v42 = vpop.f32.mrf.mxu3  ;;  %v4652_v27 = vshll.u32 %v4575_v18, 16  ;;  %v4647_v12 = vrot.slane %v4642_v4, 4  ;;  %v12719_v50 = vrot.slane %v3424_v0, 1 }
 0x307   : > { %v3922_v41 = vpop.f32.mrf.mxu0  ;;  %v4651_v61 = vrot.slane %v4649_v46, 7  ;;  %v4183_v63 = vmax.f32 %v4135_v45, 0.0  ;;  %v3725_v54 = vadd.f32 %v3612_v2, %v3103_v15  ;;  %v12726_v2 = vld [vmem:[#allocation2 + $0xc] sm:$0xff]  }
 0x309   : > { %v4654_v1 = vor.u32 %v4652_v27, %v4651_v61  ;;  %v4519_v38 = vmul.f32 %v4298_v22, %v4183_v63  ;;  %v4032_v44 = vadd.f32 %v3919_v48, %v3725_v54  ;;  %9909 = vmatmul.msk.bf16.gmra.mxu2 %vm679_vm1, %v11031_v35  ;;  %v7356_v35 = vld [vmem:[#allocation2 + $0xc] sm:$0xe]  ;;  %v3427_v22 = vsel %vm482_vm2, %v3422_v34, %v12719_v50 }
 0x30a   : > { %10051 = vmatmul.msk.bf16.gmra.mxu0 %vm679_vm1, %v3798_v20 }
 0x30b   : > { %v4655_v16 = vsel %vm12683_vm10, %v4647_v12, %v4654_v1  ;;  %v4576_v37 = vpack.c.bf16 %v4519_v38, %v4519_v38  ;;  %v4084_v46 = vmul.f32 %v12618_v57, %v4032_v44  ;;  %v12724_v18 = vld [vmem:[#allocation2 + $0x10] sm:$0xff]  ;;  %v4303_v38 = vpop.permute.xlu2 %4302  ;;  %v5385_v44 = vor.u32 %v5383_v11, %v5381_v53 }
 0x30c   : > { %5110 = vst [vmem:[#allocation2 + $0x18] sm:$0xf] %v4655_v16  ;;  %v2993_v4 = vpop.f32.mrf.mxu2  ;;  %v5387_v0 = vshll.u32 %v12724_v18, 16  ;;  %v3799_v16 = vrot.slane %v12702_v26, 1 }
 0x30d   : > { %v4658_v45 = vshrl.u32 %v4576_v37, 16  ;;  %v4136_v48 = vadd.f32 %v12624_v10, %v4084_v46  ;;  %v3104_v15 = vadd.f32 %v2993_v4, %v12051_v47  ;;  %v4661_v54 = vshll.u32 %v4576_v37, 16  ;;  %v12742_v37 = vld [vmem:[%s11625_s20 + $0x88] sm:$0xff] }
 0x30e   : > { %v3617_v20 = vpop.f32.mrf.mxu3  ;;  %v12735_v47 = vrot.slane %v5387_v0, 1  ;;  %v7375_v46 = vunpack.c.l.b16 %v7356_v35  ;;  %v4656_v4 = vrot.slane %v4651_v61, 4 }
 0x30f   : > { %v3924_v8 = vpop.f32.mrf.mxu0  ;;  %v4660_v63 = vrot.slane %v4658_v45, 7  ;;  %v4184_v12 = vmax.f32 %v4136_v48, 0.0  ;;  %v3726_v1 = vadd.f32 %v3615_v42, %v3104_v15  ;;  %v15008_v42 = vunpack.c.h.b16 %v12726_v2 }
 0x310   : > { %v5390_v27 = vsel %vm482_vm2, %v5385_v44, %v12735_v47 }
 0x311   : > { %v4663_v34 = vor.u32 %v4661_v54, %v4660_v63  ;;  %v4520_v43 = vmul.f32 %v4303_v38, %v4184_v12  ;;  %v4033_v9 = vadd.f32 %v3922_v41, %v3726_v1  ;;  %v7376_v53 = vpack.c.b16 %v15008_v42, %v7375_v46  ;;  %5652 = vmatmul.bf16.gmra.mxu1 %v5390_v27  ;;  %v11032_v1 = vld [vmem:[%s11625_s20 + $0x78] sm:$0xff]  ;;  %v4308_v42 = vpop.permute.xlu0 %4307 }
 0x312   : > { %v15009_v12 = vrot.slane %v12660_v14, 1  ;;  %v3428_v27 = vshrl.u32 %v12702_v26, 16  ;;  %v3432_v38 = vshll.u32 %v12742_v37, 16 }
 0x313   : > { %10027 = vmatmul.msk.bf16.gmra.mxu3 %vm679_vm1, %v3427_v22  ;;  %v4664_v45 = vsel %vm12683_vm10, %v4656_v4, %v4663_v34  ;;  %v4577_v48 = vpack.c.bf16 %v4520_v43, %v4520_v43  ;;  %v4085_v61 = vmul.f32 %v12618_v57, %v4033_v9  ;;  %v12749_v15 = vld [vmem:[#allocation2 + $0x14] sm:$0xff]  ;;  %v7377_v44 = vrot.slane %v7376_v53, 1 }
 0x314   : > { %5111 = vst [vmem:[#allocation2 + $0x1c] sm:$0xf] %v4664_v45  ;;  %v2995_v41 = vpop.f32.mrf.mxu2  ;;  %v3800_v43 = vsel %vm1071_vm3, %v15009_v12, %v3799_v16  ;;  %v14900_v46 = vrot.slane %v12749_v15, 1  ;;  %v4665_v45 = vrot.slane %v4660_v63, 4  ;;  %v3430_v53 = vor.u32 %v3428_v27, %v12719_v50  ;;  %v11112_v50 = vld [vmem:[%s14891_s5 + $0xb0] sm:$0xff] }
 0x315   : > { %v4667_v35 = vshrl.u32 %v4577_v48, 16  ;;  %v4137_v22 = vadd.f32 %v12624_v10, %v4085_v61  ;;  %v3105_v11 = vadd.f32 %v2995_v41, %v12062_v23  ;;  %v4670_v34 = vshll.u32 %v4577_v48, 16  ;;  %6112 = vmatpush.bf16.msrb.mxu3 %v11112_v50  ;;  %v12797_v50 = vld [vmem:[%s11625_s20 + $0x90] sm:$0xff] }
 0x316   : > { %v3620_v54 = vpop.f32.mrf.mxu3  ;;  %v12766_v14 = vsel %vm1071_vm3, %v7377_v44, %v14900_v46 }
 0x317   : > { %v3927_v0 = vpop.f32.mrf.mxu0  ;;  %v4669_v4 = vrot.slane %v4667_v35, 7  ;;  %v4185_v9 = vmax.f32 %v4137_v22, 0.0  ;;  %v3727_v23 = vadd.f32 %v3617_v20, %v3105_v11  ;;  %15010 = vst [vmem:[#allocation29_spill] sm:$0xff] %v12766_v14  ;;  %v12770_v35 = vrot.slane %v3432_v38, 1 }
 0x319   : > { %v4672_v61 = vor.u32 %v4670_v34, %v4669_v4  ;;  %v4521_v41 = vmul.f32 %v4308_v42, %v4185_v9  ;;  %v4034_v12 = vadd.f32 %v3924_v8, %v3727_v23  ;;  %9910 = vmatmul.msk.bf16.gmra.mxu2 %vm679_vm1, %v11032_v1  ;;  %v11096_v8 = vld [vmem:[%s14891_s5 + $0x30] sm:$0xff]  ;;  %v3435_v34 = vsel %vm482_vm2, %v3430_v53, %v12770_v35 }
 0x31a   : > { %10052 = vmatmul.msk.bf16.gmra.mxu0 %vm679_vm1, %v3800_v43  ;;  %v5391_v9 = vshrl.u32 %v12724_v18, 16  ;;  %5841 = vmatpush.bf16.msrb.mxu2 %v11096_v8 }
 0x31b   : > { %v4673_v20 = vsel %vm12683_vm10, %v4665_v45, %v4672_v61  ;;  %v4578_v48 = vpack.c.bf16 %v4521_v41, %v4521_v41  ;;  %v4086_v22 = vmul.f32 %v12618_v57, %v4034_v12  ;;  %v12775_v11 = vld [vmem:[#allocation2 + $0x18] sm:$0xff]  ;;  %v4313_v12 = vpop.permute.xlu1 %4312 }
 0x31c   : > { %5112 = vst [vmem:[#allocation2 + $0x20] sm:$0xf] %v4673_v20  ;;  %v2998_v43 = vpop.f32.mrf.mxu2  ;;  %v5395_v23 = vshll.u32 %v12775_v11, 16  ;;  %v5393_v20 = vor.u32 %v5391_v9, %v12735_v47 }
 0x31d   : > { %v4676_v63 = vshrl.u32 %v4578_v48, 16  ;;  %v4138_v1 = vadd.f32 %v12624_v10, %v4086_v22  ;;  %v3106_v27 = vadd.f32 %v2998_v43, %v12070_v31  ;;  %v4679_v45 = vshll.u32 %v4578_v48, 16 }
 0x31e   : > { %v3622_v44 = vpop.f32.mrf.mxu3  ;;  %v12790_v31 = vrot.slane %v5395_v23, 1  ;;  %v3801_v22 = vrot.slane %v12742_v37, 1  ;;  %v4674_v43 = vrot.slane %v4669_v4, 4 }
 0x31f   : > { %v3929_v38 = vpop.f32.mrf.mxu0  ;;  %v4678_v42 = vrot.slane %v4676_v63, 7  ;;  %v4186_v61 = vmax.f32 %v4138_v1, 0.0  ;;  %v3728_v41 = vadd.f32 %v3620_v54, %v3106_v27  ;;  %v11175_v1 = vld [vmem:[%s14891_s5 + $0x130] sm:$0xff] }
 0x320   : > { %v5398_v8 = vsel %vm482_vm2, %v5393_v20, %v12790_v31  ;;  %v3440_v20 = vshll.u32 %v12797_v50, 16  ;;  %7180 = vmatpush.bf16.msrb.mxu1 %v11175_v1 }
 0x321   : > { %v4681_v53 = vor.u32 %v4679_v45, %v4678_v42  ;;  %v4522_v46 = vmul.f32 %v4313_v12, %v4186_v61  ;;  %v4035_v18 = vadd.f32 %v3927_v0, %v3728_v41  ;;  %5657 = vmatmul.bf16.gmra.mxu1 %v5398_v8  ;;  %v11144_v0 = vld [vmem:[%s14891_s5 + $0xf0] sm:$0xff]  ;;  %v3802_v45 = vsel %vm1071_vm3, %v3799_v16, %v3801_v22  ;;  %v11033_v61 = vld [vmem:[%s11625_s20 + $0x80] sm:$0xff]  ;;  %v4318_v8 = vpop.permute.xlu2 %4317 }
 0x322   : > { %6546 = vmatpush.bf16.msrb.mxu0 %v11144_v0  ;;  %v3436_v12 = vshrl.u32 %v12742_v37, 16  ;;  %v15011_v0 = vrot.slane %v12749_v15, 1 }
 0x323   : > { %10028 = vmatmul.msk.bf16.gmra.mxu3 %vm679_vm1, %v3435_v34  ;;  %v4682_v54 = vsel %vm12683_vm10, %v4674_v43, %v4681_v53  ;;  %v4579_v47 = vpack.c.bf16 %v4522_v46, %v4522_v46  ;;  %v4087_v48 = vmul.f32 %v12618_v57, %v4035_v18  ;;  %v12802_v63 = vld [vmem:[#allocation2 + $0x1c] sm:$0xff] }
 0x324   : > { %5113 = vst [vmem:[#allocation2 + $0x24] sm:$0xf] %v4682_v54  ;;  %v3000_v4 = vpop.f32.mrf.mxu2  ;;  %v4683_v54 = vrot.slane %v4678_v42, 4 }
 0x325   : > { %v4685_v27 = vshrl.u32 %v4579_v47, 16  ;;  %v4139_v34 = vadd.f32 %v12624_v10, %v4087_v48  ;;  %v3107_v46 = vadd.f32 %v3000_v4, %v12078_v58  ;;  %v4688_v41 = vshll.u32 %v4579_v47, 16 }
 0x326   : > { %v3625_v23 = vpop.f32.mrf.mxu3  ;;  %v7380_v58 = vrot.slane %v12802_v63, 1  ;;  %v3438_v47 = vor.u32 %v3436_v12, %v12770_v35  ;;  %v3442_v4 = vrot.slane %v3440_v20, 1  ;;  %v5399_v12 = vshrl.u32 %v12775_v11, 16 }
 0x327   : > { %v3932_v9 = vpop.f32.mrf.mxu0  ;;  %v4687_v43 = vrot.slane %v4685_v27, 7  ;;  %v4187_v53 = vmax.f32 %v4139_v34, 0.0  ;;  %v3729_v18 = vadd.f32 %v3622_v44, %v3107_v46 }
 0x328   : > { %v12829_v44 = vsel %vm1071_vm3, %v15011_v0, %v7380_v58  ;;  %v3803_v0 = vrot.slane %v12797_v50, 1 }
 0x329   : > { %v4690_v26 = vor.u32 %v4688_v41, %v4687_v43  ;;  %v4523_v48 = vmul.f32 %v4318_v8, %v4187_v53  ;;  %v4036_v16 = vadd.f32 %v3929_v38, %v3729_v18  ;;  %9911 = vmatmul.msk.bf16.gmra.mxu2 %vm679_vm1, %v11033_v61  ;;  %15012 = vst [vmem:[#allocation30_spill] sm:$0xff] %v12829_v44 }
 0x32a   : > { %10053 = vmatmul.msk.bf16.gmra.mxu0 %vm679_vm1, %v3802_v45  ;;  %v3443_v41 = vsel %vm482_vm2, %v3438_v47, %v3442_v4  ;;  %v12846_v47 = vld [vmem:[%s11625_s20 + $0x98] sm:$0xff] }
 0x32b   : > { %v4691_v1 = vsel %vm12683_vm10, %v4683_v54, %v4690_v26  ;;  %v4580_v27 = vpack.c.bf16 %v4523_v48, %v4523_v48  ;;  %v4088_v42 = vmul.f32 %v12618_v57, %v4036_v16  ;;  %v12834_v34 = vld [vmem:[#allocation2 + $0x20] sm:$0xff]  ;;  %v4323_v26 = vpop.permute.xlu0 %4322  ;;  %v5401_v48 = vor.u32 %v5399_v12, %v12790_v31 }
 0x32c   : > { %5114 = vst [vmem:[#allocation2 + $0x28] sm:$0xf] %v4691_v1  ;;  %v3003_v38 = vpop.f32.mrf.mxu2  ;;  %v5403_v20 = vshll.u32 %v12834_v34, 16 }
 0x32d   : > { %v4694_v46 = vshrl.u32 %v4580_v27, 16  ;;  %v4140_v35 = vadd.f32 %v12624_v10, %v4088_v42  ;;  %v3108_v45 = vadd.f32 %v3003_v38, %v12086_v5  ;;  %v4697_v18 = vshll.u32 %v4580_v27, 16 }
 0x32e   : > { %v3627_v15 = vpop.f32.mrf.mxu3  ;;  %v5405_v16 = vrot.slane %v5403_v20, 1  ;;  %v4692_v5 = vrot.slane %v4687_v43, 4  ;;  %v3804_v20 = vsel %vm1071_vm3, %v3801_v22, %v3803_v0 }
 0x32f   : > { %v3934_v61 = vpop.f32.mrf.mxu0  ;;  %v4696_v53 = vrot.slane %v4694_v46, 7  ;;  %v4188_v8 = vmax.f32 %v4140_v35, 0.0  ;;  %v3730_v54 = vadd.f32 %v3625_v23, %v3108_v45 }
 0x330   : > { %v5406_v11 = vsel %vm482_vm2, %v5401_v48, %v5405_v16 }
 0x331   : > { %v4699_v1 = vor.u32 %v4697_v18, %v4696_v53  ;;  %v4524_v42 = vmul.f32 %v4323_v26, %v4188_v8  ;;  %v4037_v38 = vadd.f32 %v3932_v9, %v3730_v54  ;;  %5662 = vmatmul.bf16.gmra.mxu1 %v5406_v11  ;;  %v11034_v18 = vld [vmem:[%s11625_s20 + $0x88] sm:$0xff]  ;;  %v3444_v8 = vshrl.u32 %v12797_v50, 16 }
 0x332   : > { %v3448_v54 = vshll.u32 %v12846_v47, 16 }
 0x333   : > { %10029 = vmatmul.msk.bf16.gmra.mxu3 %vm679_vm1, %v3443_v41  ;;  %v4700_v23 = vsel %vm12683_vm10, %v4692_v5, %v4699_v1  ;;  %v4581_v27 = vpack.c.bf16 %v4524_v42, %v4524_v42  ;;  %v4089_v31 = vmul.f32 %v12618_v57, %v4037_v38  ;;  %v12851_v43 = vld [vmem:[#allocation2 + $0x24] sm:$0xff]  ;;  %v4328_v42 = vpop.permute.xlu1 %4327  ;;  %v4701_v38 = vrot.slane %v4696_v53, 4 }
 0x334   : > { %5115 = vst [vmem:[#allocation2 + $0x2c] sm:$0xf] %v4700_v23  ;;  %v3005_v46 = vpop.f32.mrf.mxu2  ;;  %v3446_v22 = vor.u32 %v3444_v8, %v3442_v4 }
 0x335   : > { %v4703_v35 = vshrl.u32 %v4581_v27, 16  ;;  %v4141_v9 = vadd.f32 %v12624_v10, %v4089_v31  ;;  %v3109_v45 = vadd.f32 %v3005_v46, %v12094_v17  ;;  %v4706_v48 = vshll.u32 %v4581_v27, 16 }
 0x336   : > { %v3630_v12 = vpop.f32.mrf.mxu3  ;;  %v7382_v17 = vrot.slane %v12851_v43, 1  ;;  %v12866_v31 = vrot.slane %v3448_v54, 1  ;;  %v11111_v43 = vld [vmem:[%s14891_s5 + $0xa8] sm:$0xff] }
 0x337   : > { %v3937_v41 = vpop.f32.mrf.mxu0  ;;  %v4705_v26 = vrot.slane %v4703_v35, 7  ;;  %v4189_v5 = vmax.f32 %v4141_v9, 0.0  ;;  %v3731_v1 = vadd.f32 %v3627_v15, %v3109_v45  ;;  %6113 = vmatpush.bf16.msrb.mxu3 %v11111_v43 }
 0x338   : > { %v12873_v15 = vsel %vm1071_vm3, %v7380_v58, %v7382_v17  ;;  %v3451_v58 = vsel %vm482_vm2, %v3446_v22, %v12866_v31 }
 0x339   : > { %v4708_v11 = vor.u32 %v4706_v48, %v4705_v26  ;;  %v4525_v23 = vmul.f32 %v4328_v42, %v4189_v5  ;;  %v4038_v37 = vadd.f32 %v3934_v61, %v3731_v1  ;;  %9912 = vmatmul.msk.bf16.gmra.mxu2 %vm679_vm1, %v11034_v18  ;;  %15013 = vst [vmem:[#allocation31_spill] sm:$0xff] %v12873_v15  ;;  %v5407_v18 = vshrl.u32 %v12834_v34, 16  ;;  %v4333_v42 = vpop.permute.xlu2 %4332 }
 0x33a   : > { %10054 = vmatmul.msk.bf16.gmra.mxu0 %vm679_vm1, %v3804_v20 }
 0x33b   : > { %v4709_v27 = vsel %vm12683_vm10, %v4701_v38, %v4708_v11  ;;  %v4582_v46 = vpack.c.bf16 %v4525_v23, %v4525_v23  ;;  %v4090_v53 = vmul.f32 %v12618_v57, %v4038_v37  ;;  %v12878_v35 = vld [vmem:[#allocation2 + $0x28] sm:$0xff]  ;;  %v5409_v38 = vor.u32 %v5407_v18, %v5405_v16 }
 0x33c   : > { %5116 = vst [vmem:[#allocation2 + $0x30] sm:$0xf] %v4709_v27  ;;  %v3008_v61 = vpop.f32.mrf.mxu2  ;;  %v5411_v8 = vshll.u32 %v12878_v35, 16  ;;  %v12889_v23 = vld [vmem:[#allocation2 + $0x28] sm:$0xff]  ;;  %v4710_v37 = vrot.slane %v4705_v26, 4 }
 0x33d   : > { %v4712_v4 = vshrl.u32 %v4582_v46, 16  ;;  %v4142_v9 = vadd.f32 %v12624_v10, %v4090_v53  ;;  %v3110_v45 = vadd.f32 %v3008_v61, %v12102_v51  ;;  %v4715_v48 = vshll.u32 %v4582_v46, 16  ;;  %v12895_v46 = vld [vmem:[%s11625_s20 + $0xa0] sm:$0xff] }
 0x33e   : > { %v3632_v63 = vpop.f32.mrf.mxu3  ;;  %v12886_v11 = vrot.slane %v5411_v8, 1  ;;  %v14901_v51 = vrot.slane %v12846_v47, 1 }
 0x33f   : > { %v3939_v20 = vpop.f32.mrf.mxu0  ;;  %v4714_v54 = vrot.slane %v4712_v4, 7  ;;  %v4190_v5 = vmax.f32 %v4142_v9, 0.0  ;;  %v3732_v1 = vadd.f32 %v3630_v12, %v3110_v45  ;;  %v12897_v12 = vld [vmem:[#allocation2 + $0x20] sm:$0xff]  ;;  %v14904_v9 = vrot.slane %v12889_v23, 1 }
 0x340   : > { %v5414_v34 = vsel %vm482_vm2, %v5409_v38, %v12886_v11  ;;  %15014 = vst [vmem:[#allocation32_spill] sm:$0xff] %v12897_v12  ;;  %v3456_v38 = vshll.u32 %v12895_v46, 16 }
 0x341   : > { %v4717_v27 = vor.u32 %v4715_v48, %v4714_v54  ;;  %v4526_v22 = vmul.f32 %v4333_v42, %v4190_v5  ;;  %v4039_v53 = vadd.f32 %v3937_v41, %v3732_v1  ;;  %5667 = vmatmul.bf16.gmra.mxu1 %v5414_v34  ;;  %v3806_v5 = vsel %vm1071_vm3, %v3803_v0, %v14901_v51  ;;  %v11035_v1 = vld [vmem:[%s11625_s20 + $0x90] sm:$0xff] }
 0x342   : > { %v3452_v42 = vshrl.u32 %v12846_v47, 16  ;;  %v4719_v0 = vrot.slane %v4714_v54, 4 }
 0x343   : > { %10030 = vmatmul.msk.bf16.gmra.mxu3 %vm679_vm1, %v3451_v58  ;;  %v4718_v16 = vsel %vm12683_vm10, %v4710_v37, %v4717_v27  ;;  %v4583_v61 = vpack.c.bf16 %v4526_v22, %v4526_v22  ;;  %v4091_v4 = vmul.f32 %v12618_v57, %v4039_v53  ;;  %v12902_v41 = vld [vmem:[#allocation2 + $0x2c] sm:$0xff]  ;;  %v14902_v37 = vrot.slane %v12897_v12, 1 }
 0x344   : > { %5117 = vst [vmem:[#allocation2 + $0x34] sm:$0xf] %v4718_v16  ;;  %v3010_v26 = vpop.f32.mrf.mxu2  ;;  %v14903_v16 = vrot.slane %v12902_v41, 1 }
 0x345   : > { %v4721_v45 = vshrl.u32 %v4583_v61, 16  ;;  %v4143_v58 = vadd.f32 %v12624_v10, %v4091_v4  ;;  %v3111_v18 = vadd.f32 %v3010_v26, %v12113_v13  ;;  %v4724_v22 = vshll.u32 %v4583_v61, 16  ;;  %v4338_v13 = vpop.permute.xlu0 %4337 }
 0x346   : > { %v3635_v48 = vpop.f32.mrf.mxu3  ;;  %v12923_v50 = vsel %vm1071_vm3, %v14902_v37, %v14904_v9  ;;  %v12927_v61 = vrot.slane %v3456_v38, 1 }
 0x347   : > { %v3942_v8 = vpop.f32.mrf.mxu0  ;;  %v4723_v27 = vrot.slane %v4721_v45, 7  ;;  %v4191_v53 = vmax.f32 %v4143_v58, 0.0  ;;  %v3733_v34 = vadd.f32 %v3632_v63, %v3111_v18  ;;  %15015 = vst [vmem:[#allocation33_spill] sm:$0xff] %v12923_v50  ;;  %v3454_v63 = vor.u32 %v3452_v42, %v12866_v31  ;;  %v11095_v31 = vld [vmem:[%s14891_s5 + $0x28] sm:$0xff] }
 0x348   : > { %v12934_v45 = vsel %vm1071_vm3, %v7382_v17, %v14903_v16  ;;  %5842 = vmatpush.bf16.msrb.mxu2 %v11095_v31  ;;  %v12963_v31 = vld [vmem:[%s11625_s20 + $0xa8] sm:$0xff] }
 0x349   : > { %v4726_v4 = vor.u32 %v4724_v22, %v4723_v27  ;;  %v4527_v26 = vmul.f32 %v4338_v13, %v4191_v53  ;;  %v4040_v51 = vadd.f32 %v3939_v20, %v3733_v34  ;;  %9913 = vmatmul.msk.bf16.gmra.mxu2 %vm679_vm1, %v11035_v1  ;;  %15016 = vst [vmem:[#allocation34_spill] sm:$0xff] %v12934_v45  ;;  %v5415_v53 = vshrl.u32 %v12878_v35, 16 }
 0x34a   : > { %10055 = vmatmul.msk.bf16.gmra.mxu0 %vm679_vm1, %v3806_v5 }
 0x34b   : > { %v4727_v58 = vsel %vm12683_vm10, %v4719_v0, %v4726_v4  ;;  %v4584_v54 = vpack.c.bf16 %v4527_v26, %v4527_v26  ;;  %v4092_v18 = vmul.f32 %v12618_v57, %v4040_v51  ;;  %v12939_v20 = vld [vmem:[#allocation2 + $0x30] sm:$0xff]  ;;  %v3459_v51 = vsel %vm482_vm2, %v3454_v63, %v12927_v61 }
 0x34c   : > { %5118 = vst [vmem:[#allocation2 + $0x38] sm:$0xf] %v4727_v58  ;;  %v3013_v5 = vpop.f32.mrf.mxu2  ;;  %v5419_v34 = vshll.u32 %v12939_v20, 16  ;;  %v4343_v58 = vpop.permute.xlu1 %4342  ;;  %v12957_v37 = vld [vmem:[#allocation2 + $0x30] sm:$0xff]  ;;  %v4728_v63 = vrot.slane %v4723_v27, 4 }
 0x34d   : > { %v4730_v17 = vshrl.u32 %v4584_v54, 16  ;;  %v4144_v1 = vadd.f32 %v12624_v10, %v4092_v18  ;;  %v3112_v42 = vadd.f32 %v3013_v5, %v12121_v33  ;;  %v4733_v0 = vshll.u32 %v4584_v54, 16 }
 0x34e   : > { %v3637_v22 = vpop.f32.mrf.mxu3  ;;  %v5417_v18 = vor.u32 %v5415_v53, %v12886_v11  ;;  %v12954_v33 = vrot.slane %v5419_v34, 1  ;;  %v14905_v5 = vrot.slane %v12895_v46, 1 }
 0x34f   : > { %v3944_v38 = vpop.f32.mrf.mxu0  ;;  %v4732_v13 = vrot.slane %v4730_v17, 7  ;;  %v4192_v4 = vmax.f32 %v4144_v1, 0.0  ;;  %v3734_v26 = vadd.f32 %v3635_v48, %v3112_v42  ;;  %v11174_v17 = vld [vmem:[%s14891_s5 + $0x128] sm:$0xff]  ;;  %v8769_v42 = vrot.slane %v12957_v37, 1 }
 0x350   : > { %v5422_v54 = vsel %vm482_vm2, %v5417_v18, %v12954_v33  ;;  %v3464_v18 = vshll.u32 %v12963_v31, 16  ;;  %7181 = vmatpush.bf16.msrb.mxu1 %v11174_v17 }
 0x351   : > { %v4735_v35 = vor.u32 %v4733_v0, %v4732_v13  ;;  %v4528_v16 = vmul.f32 %v4343_v58, %v4192_v4  ;;  %v4041_v9 = vadd.f32 %v3942_v8, %v3734_v26  ;;  %5672 = vmatmul.bf16.gmra.mxu1 %v5422_v54  ;;  %v11143_v8 = vld [vmem:[%s14891_s5 + $0xe8] sm:$0xff]  ;;  %v15017_v0 = vrot.slane %v12846_v47, 1  ;;  %v11036_v26 = vld [vmem:[%s11625_s20 + $0x98] sm:$0xff] }
 0x352   : > { %6547 = vmatpush.bf16.msrb.mxu0 %v11143_v8  ;;  %v3460_v58 = vshrl.u32 %v12895_v46, 16  ;;  %v15018_v47 = vrot.slane %v12889_v23, 1  ;;  %v4737_v8 = vrot.slane %v4732_v13, 4 }
 0x353   : > { %10031 = vmatmul.msk.bf16.gmra.mxu3 %vm679_vm1, %v3459_v51  ;;  %v4736_v11 = vsel %vm12683_vm10, %v4728_v63, %v4735_v35  ;;  %v4585_v48 = vpack.c.bf16 %v4528_v16, %v4528_v16  ;;  %v4093_v43 = vmul.f32 %v12618_v57, %v4041_v9  ;;  %v12974_v1 = vld [vmem:[#allocation2 + $0x34] sm:$0xff]  ;;  %v3808_v4 = vsel %vm1071_vm3, %v15017_v0, %v14905_v5 }
 0x354   : > { %5119 = vst [vmem:[#allocation2 + $0x3c] sm:$0xf] %v4736_v11  ;;  %v3015_v27 = vpop.f32.mrf.mxu2 }
 0x355   : > { %v4739_v51 = vshrl.u32 %v4585_v48, 16  ;;  %v4145_v16 = vadd.f32 %v12624_v10, %v4093_v43  ;;  %v3113_v9 = vadd.f32 %v3015_v27, %v12132_v56  ;;  %v4742_v35 = vshll.u32 %v4585_v48, 16  ;;  %v4348_v56 = vpop.permute.xlu2 %4347 }
 0x356   : > { %v3640_v34 = vpop.f32.mrf.mxu3  ;;  %v7386_v43 = vrot.slane %v12974_v1, 1  ;;  %v12994_v27 = vsel %vm1071_vm3, %v15018_v47, %v8769_v42  ;;  %v12998_v48 = vrot.slane %v3464_v18, 1 }
 0x357   : > { %v3947_v53 = vpop.f32.mrf.mxu0  ;;  %v4741_v63 = vrot.slane %v4739_v51, 7  ;;  %v4193_v54 = vmax.f32 %v4145_v16, 0.0  ;;  %v3735_v11 = vadd.f32 %v3637_v22, %v3113_v9  ;;  %15019 = vst [vmem:[#allocation35_spill] sm:$0xff] %v12994_v27  ;;  %v3462_v22 = vor.u32 %v3460_v58, %v12927_v61 }
 0x358   : > { %v15020_v51 = vrot.slane %v12902_v41, 1 }
 0x359   : > { %v4744_v0 = vor.u32 %v4742_v35, %v4741_v63  ;;  %v4529_v5 = vmul.f32 %v4348_v56, %v4193_v54  ;;  %v4042_v17 = vadd.f32 %v3944_v38, %v3735_v11  ;;  %9914 = vmatmul.msk.bf16.gmra.mxu2 %vm679_vm1, %v11036_v26  ;;  %v3467_v35 = vsel %vm482_vm2, %v3462_v22, %v12998_v48 }
 0x35a   : > { %10056 = vmatmul.msk.bf16.gmra.mxu0 %vm679_vm1, %v3808_v4  ;;  %v13005_v16 = vsel %vm1071_vm3, %v15020_v51, %v7386_v43  ;;  %v5423_v54 = vshrl.u32 %v12939_v20, 16 }
 0x35b   : > { %15021 = vst [vmem:[#allocation36_spill] sm:$0xff] %v13005_v16  ;;  %v4745_v23 = vsel %vm12683_vm10, %v4737_v8, %v4744_v0  ;;  %v4586_v13 = vpack.c.bf16 %v4529_v5, %v4529_v5  ;;  %v4094_v9 = vmul.f32 %v12618_v57, %v4042_v17  ;;  %v13010_v38 = vld [vmem:[#allocation2 + $0x38] sm:$0xff]  ;;  %v4353_v0 = vpop.permute.xlu0 %4352 }
 0x35c   : > { %5120 = vst [vmem:[#allocation2 + $0x40] sm:$0xf] %v4745_v23  ;;  %v3018_v4 = vpop.f32.mrf.mxu2  ;;  %v5427_v5 = vshll.u32 %v13010_v38, 16  ;;  %v5425_v17 = vor.u32 %v5423_v54, %v12954_v33  ;;  %v13022_v51 = vld [vmem:[#allocation2 + $0x38] sm:$0xff]  ;;  %v4746_v23 = vrot.slane %v4741_v63, 4 }
 0x35d   : > { %v4748_v61 = vshrl.u32 %v4586_v13, 16  ;;  %v4146_v26 = vadd.f32 %v12624_v10, %v4094_v9  ;;  %v3114_v58 = vadd.f32 %v3018_v4, %v12144_v24  ;;  %v4751_v56 = vshll.u32 %v4586_v13, 16  ;;  %v13028_v4 = vld [vmem:[%s11625_s20 + $0xb0] sm:$0xff] }
 0x35e   : > { %v3642_v41 = vpop.f32.mrf.mxu3  ;;  %v13019_v10 = vrot.slane %v5427_v5, 1  ;;  %v14906_v24 = vrot.slane %v12963_v31, 1 }
 0x35f   : > { %v3949_v18 = vpop.f32.mrf.mxu0  ;;  %v4750_v11 = vrot.slane %v4748_v61, 7  ;;  %v4194_v47 = vmax.f32 %v4146_v26, 0.0  ;;  %v3736_v8 = vadd.f32 %v3640_v34, %v3114_v58 }
 0x360   : > { %v5430_v13 = vsel %vm482_vm2, %v5425_v17, %v13019_v10  ;;  %v3468_v17 = vshrl.u32 %v12963_v31, 16 }
 0x361   : > { %v4753_v22 = vor.u32 %v4751_v56, %v4750_v11  ;;  %v4530_v9 = vmul.f32 %v4353_v0, %v4194_v47  ;;  %v4043_v20 = vadd.f32 %v3947_v53, %v3736_v8  ;;  %5677 = vmatmul.bf16.gmra.mxu1 %v5430_v13  ;;  %v8771_v53 = vrot.slane %v13022_v51, 1  ;;  %v11037_v0 = vld [vmem:[%s11625_s20 + $0xa0] sm:$0xff] }
 0x363   : > { %10032 = vmatmul.msk.bf16.gmra.mxu3 %vm679_vm1, %v3467_v35  ;;  %v4754_v33 = vsel %vm12683_vm10, %v4746_v23, %v4753_v22  ;;  %v4587_v34 = vpack.c.bf16 %v4530_v9, %v4530_v9  ;;  %v4095_v61 = vmul.f32 %v12618_v57, %v4043_v20  ;;  %v13033_v26 = vld [vmem:[#allocation2 + $0x3c] sm:$0xff]  ;;  %v15022_v57 = vrot.slane %v12895_v46, 1 }
 0x364   : > { %5121 = vst [vmem:[#allocation2 + $0x44] sm:$0xf] %v4754_v33  ;;  %v3020_v63 = vpop.f32.mrf.mxu2  ;;  %v13039_v35 = vld [vmem:[%s14890_s4] ss:$0 sm:$0xff]  ;;  %v3472_v23 = vshll.u32 %v13028_v4, 16  ;;  %v4358_v33 = vpop.permute.xlu1 %4357  ;;  %v13058_v46 = vsel %vm1071_vm3, %v8769_v42, %v8771_v53 }
 0x365   : > { %v4757_v58 = vshrl.u32 %v4587_v34, 16  ;;  %v4147_v54 = vadd.f32 %v13039_v35, %v4095_v61  ;;  %v3115_v5 = vadd.f32 %v3020_v63, %v12158_v6  ;;  %v3810_v8 = vsel %vm1071_vm3, %v15022_v57, %v14906_v24  ;;  %15023 = vst [vmem:[#allocation37_spill] sm:$0xff] %v13058_v46 }
 0x366   : > { %v3645_v47 = vpop.f32.mrf.mxu3  ;;  %v4760_v9 = vshll.u32 %v4587_v34, 16  ;;  %v14907_v6 = vrot.slane %v13033_v26, 1  ;;  %v4755_v61 = vrot.slane %v4750_v11, 4  ;;  %v13062_v34 = vrot.slane %v3472_v23, 1 }
 0x367   : > { %v3952_v56 = vpop.f32.mrf.mxu0  ;;  %v4759_v22 = vrot.slane %v4757_v58, 7  ;;  %v4195_v20 = vmax.f32 %v4147_v54, 0.0  ;;  %v3737_v13 = vadd.f32 %v3642_v41, %v3115_v5  ;;  %v3470_v41 = vor.u32 %v3468_v17, %v12998_v48 }
 0x368   : > { %v13069_v58 = vsel %vm1071_vm3, %v7386_v43, %v14907_v6  ;;  %v5431_v23 = vshrl.u32 %v13010_v38, 16  ;;  %v13115_v6 = vpop.f32.mrf.mxu1 }
 0x369   : > { %v4762_v63 = vor.u32 %v4760_v9, %v4759_v22  ;;  %v4531_v57 = vmul.f32 %v4358_v33, %v4195_v20  ;;  %v4044_v24 = vadd.f32 %v3949_v18, %v3737_v13  ;;  %9915 = vmatmul.msk.bf16.gmra.mxu2 %vm679_vm1, %v11037_v0  ;;  %15024 = vst [vmem:[#allocation38_spill] sm:$0xff] %v13069_v58  ;;  %v13076_v18 = vld [vmem:[%s14889_s3] ss:$0 sm:$0xff] }
 0x36a   : > { %10057 = vmatmul.msk.bf16.gmra.mxu0 %vm679_vm1, %v3810_v8  ;;  %v3475_v17 = vsel %vm482_vm2, %v3470_v41, %v13062_v34 }
 0x36b   : > { %v4763_v37 = vsel %vm12683_vm10, %v4755_v61, %v4762_v63  ;;  %v4588_v42 = vpack.c.bf16 %v4531_v57, %v4531_v57  ;;  %v4096_v48 = vmul.f32 %v13076_v18, %v4044_v24  ;;  %v13079_v11 = vld [vmem:[#allocation2 + $0x40] sm:$0xff]  ;;  %v4363_v61 = vpop.permute.xlu2 %4362  ;;  %v5433_v63 = vor.u32 %v5431_v23, %v13019_v10 }
 0x36c   : > { %5122 = vst [vmem:[#allocation2 + $0x48] sm:$0xf] %v4763_v37  ;;  %v3023_v54 = vpop.f32.mrf.mxu2  ;;  %v5435_v9 = vshll.u32 %v13079_v11, 16  ;;  %v13091_v37 = vld [vmem:[#allocation2 + $0x40] sm:$0xff] }
 0x36d   : > { %v4766_v5 = vshrl.u32 %v4588_v42, 16  ;;  %v4148_v1 = vadd.f32 %v13039_v35, %v4096_v48  ;;  %v3116_v43 = vadd.f32 %v3023_v54, %v12174_v59  ;;  %v4769_v20 = vshll.u32 %v4588_v42, 16 }
 0x36e   : > { %v3647_v0 = vpop.f32.mrf.mxu3  ;;  %v13088_v57 = vrot.slane %v5435_v9, 1  ;;  %v14910_v59 = vrot.slane %v13028_v4, 1  ;;  %v4764_v48 = vrot.slane %v4759_v22, 4 }
 0x36f   : > { %v3954_v8 = vpop.f32.mrf.mxu0  ;;  %v4768_v24 = vrot.slane %v4766_v5, 7  ;;  %v4196_v13 = vmax.f32 %v4148_v1, 0.0  ;;  %v3738_v33 = vadd.f32 %v3645_v47, %v3116_v43  ;;  %v13097_v47 = vld [vmem:[%s11625_s20 + $0xb8] sm:$0xff] }
 0x370   : > { %v5438_v42 = vsel %vm482_vm2, %v5433_v63, %v13088_v57  ;;  %v11038_v63 = vld [vmem:[%s11625_s20 + $0xa8] sm:$0xff] }
 0x371   : > { %v4771_v41 = vor.u32 %v4769_v20, %v4768_v24  ;;  %v4532_v54 = vmul.f32 %v4363_v61, %v4196_v13  ;;  %v4045_v38 = vadd.f32 %v3952_v56, %v3738_v33  ;;  %5682 = vmatmul.bf16.gmra.mxu1 %v5438_v42  ;;  %v14909_v56 = vrot.slane %v13091_v37, 1 }
 0x372   : > { %v15025_v33 = vrot.slane %v12963_v31, 1 }
 0x373   : > { %10033 = vmatmul.msk.bf16.gmra.mxu3 %vm679_vm1, %v3475_v17  ;;  %v4772_v10 = vsel %vm12683_vm10, %v4764_v48, %v4771_v41  ;;  %v4589_v5 = vpack.c.bf16 %v4532_v54, %v4532_v54  ;;  %v4097_v1 = vmul.f32 %v13076_v18, %v4045_v38  ;;  %v13102_v43 = vld [vmem:[#allocation2 + $0x44] sm:$0xff]  ;;  %v3476_v48 = vshrl.u32 %v13028_v4, 16 }
 0x374   : > { %5123 = vst [vmem:[#allocation2 + $0x4c] sm:$0xf] %v4772_v10  ;;  %v3025_v22 = vpop.f32.mrf.mxu2  ;;  %v3812_v61 = vsel %vm1071_vm3, %v15025_v33, %v14910_v59  ;;  %v3480_v41 = vshll.u32 %v13097_v47, 16  ;;  %v13124_v31 = vsel %vm1071_vm3, %v8771_v53, %v14909_v56 }
 0x375   : > { %v4775_v17 = vshrl.u32 %v4589_v5, 16  ;;  %v4149_v23 = vadd.f32 %v13039_v35, %v4097_v1  ;;  %v3117_v9 = vadd.f32 %v3025_v22, %v12191_v3  ;;  %v4778_v38 = vshll.u32 %v4589_v5, 16  ;;  %v4368_v1 = vpop.permute.xlu0 %4367  ;;  %15026 = vst [vmem:[#allocation39_spill] sm:$0xff] %v13124_v31 }
 0x376   : > { %v3650_v13 = vpop.f32.mrf.mxu3  ;;  %v14908_v3 = vrot.slane %v13102_v43, 1  ;;  %v4773_v22 = vrot.slane %v4768_v24, 4 }
 0x377   : > { %v3957_v20 = vpop.f32.mrf.mxu0  ;;  %v4777_v54 = vrot.slane %v4775_v17, 7  ;;  %v4197_v42 = vmax.f32 %v4149_v23, 0.0  ;;  %v3739_v10 = vadd.f32 %v3647_v0, %v3117_v9  ;;  %v3478_v0 = vor.u32 %v3476_v48, %v13062_v34  ;;  %v11094_v34 = vld [vmem:[%s14891_s5 + $0x20] sm:$0xff] }
 0x378   : > { %v13128_v23 = vrot.slane %v3480_v41, 1  ;;  %v15027_v9 = vrot.slane %v13033_v26, 1  ;;  %v11110_v26 = vld [vmem:[%s14891_s5 + $0xa0] sm:$0xff]  ;;  %5843 = vmatpush.bf16.msrb.mxu2 %v11094_v34 }
 0x379   : > { %v4780_v33 = vor.u32 %v4778_v38, %v4777_v54  ;;  %v4533_v17 = vmul.f32 %v4368_v1, %v4197_v42  ;;  %v4046_v5 = vadd.f32 %v3954_v8, %v3739_v10  ;;  %9916 = vmatmul.msk.bf16.gmra.mxu2 %vm679_vm1, %v11038_v63  ;;  %6114 = vmatpush.bf16.msrb.mxu3 %v11110_v26 }
 0x37a   : > { %10058 = vmatmul.msk.bf16.gmra.mxu0 %vm679_vm1, %v3812_v61  ;;  %v13135_v61 = vsel %vm1071_vm3, %v15027_v9, %v14908_v3  ;;  %v3483_v1 = vsel %vm482_vm2, %v3478_v0, %v13128_v23  ;;  %v4373_v3 = vpop.permute.xlu1 %4372  ;;  %v14911_v0 = vrot.slane %v13097_v47, 1 }
 0x37b   : > { %15028 = vst [vmem:[#allocation40_spill] sm:$0xff] %v13135_v61  ;;  %v4781_v51 = vsel %vm12683_vm10, %v4773_v22, %v4780_v33  ;;  %v4590_v53 = vpack.c.bf16 %v4533_v17, %v4533_v17  ;;  %v4098_v24 = vmul.f32 %v13076_v18, %v4046_v5  ;;  %v13140_v8 = vld [vmem:[#allocation2 + $0x48] sm:$0xff]  ;;  %v5439_v22 = vshrl.u32 %v13079_v11, 16 }
 0x37c   : > { %5124 = vst [vmem:[#allocation2 + $0x50] sm:$0xf] %v4781_v51  ;;  %v3028_v63 = vpop.f32.mrf.mxu2  ;;  %v5443_v33 = vshll.u32 %v13140_v8, 16  ;;  %v13160_v56 = vld [vmem:[#allocation2 + $0x48] sm:$0xff]  ;;  %v4782_v11 = vrot.slane %v4777_v54, 4 }
 0x37d   : > { %v4784_v48 = vshrl.u32 %v4590_v53, 16  ;;  %v4150_v41 = vadd.f32 %v13039_v35, %v4098_v24  ;;  %v3118_v38 = vadd.f32 %v3028_v63, %v12206_v30  ;;  %v4787_v5 = vshll.u32 %v4590_v53, 16  ;;  %v13166_v53 = vld [vmem:[%s11625_s20 + $0xc0] sm:$0xff] }
 0x37e   : > { %v3652_v10 = vpop.f32.mrf.mxu3  ;;  %v13154_v24 = vpop.f32.mrf.mxu1  ;;  %v5441_v30 = vor.u32 %v5439_v22, %v13088_v57  ;;  %v13157_v63 = vrot.slane %v5443_v33, 1 }
 0x37f   : > { %v3959_v42 = vpop.f32.mrf.mxu0  ;;  %v4786_v17 = vrot.slane %v4784_v48, 7  ;;  %v4198_v9 = vmax.f32 %v4150_v41, 0.0  ;;  %v3740_v51 = vadd.f32 %v3650_v13, %v3118_v38 }
 0x380   : > { %v5446_v13 = vsel %vm482_vm2, %v5441_v30, %v13157_v63 }
 0x381   : > { %v4789_v59 = vor.u32 %v4787_v5, %v4786_v17  ;;  %v4534_v34 = vmul.f32 %v4373_v3, %v4198_v9  ;;  %v4047_v26 = vadd.f32 %v3957_v20, %v3740_v51  ;;  %5687 = vmatmul.bf16.gmra.mxu1 %v5446_v13  ;;  %v11142_v20 = vld [vmem:[%s14891_s5 + $0xe0] sm:$0xff]  ;;  %v15029_v51 = vrot.slane %v13028_v4, 1 }
 0x382   : > { %v11173_v3 = vld [vmem:[%s14891_s5 + $0x120] sm:$0xff]  ;;  %6548 = vmatpush.bf16.msrb.mxu0 %v11142_v20  ;;  %v15031_v20 = vrot.slane %v13091_v37, 1  ;;  %v4791_v31 = vrot.slane %v4786_v17, 4 }
 0x383   : > { %10034 = vmatmul.msk.bf16.gmra.mxu3 %vm679_vm1, %v3483_v1  ;;  %v4790_v57 = vsel %vm12683_vm10, %v4782_v11, %v4789_v59  ;;  %v4591_v48 = vpack.c.bf16 %v4534_v34, %v4534_v34  ;;  %v4099_v41 = vmul.f32 %v13076_v18, %v4047_v26  ;;  %v13177_v38 = vld [vmem:[#allocation2 + $0x4c] sm:$0xff]  ;;  %v3814_v30 = vsel %vm1071_vm3, %v15029_v51, %v14911_v0 }
 0x384   : > { %5125 = vst [vmem:[#allocation2 + $0x54] sm:$0xf] %v4790_v57  ;;  %v3030_v54 = vpop.f32.mrf.mxu2  ;;  %v11039_v11 = vld [vmem:[%s11625_s20 + $0xb0] sm:$0xff]  ;;  %v3484_v34 = vshrl.u32 %v13097_v47, 16  ;;  %v3488_v26 = vshll.u32 %v13166_v53, 16  ;;  %7182 = vmatpush.bf16.msrb.mxu1 %v11173_v3  ;;  %v14912_v4 = vrot.slane %v13177_v38, 1 }
 0x385   : > { %v4793_v59 = vshrl.u32 %v4591_v48, 16  ;;  %v4151_v22 = vadd.f32 %v13039_v35, %v4099_v41  ;;  %v3119_v33 = vadd.f32 %v3030_v54, %v12223_v7  ;;  %v4796_v57 = vshll.u32 %v4591_v48, 16  ;;  %v4378_v7 = vpop.permute.xlu2 %4377 }
 0x386   : > { %v3655_v9 = vpop.f32.mrf.mxu3  ;;  %v13191_v54 = vpop.f32.mrf.mxu1  ;;  %v15030_v51 = vrot.slane %v13160_v56, 1 }
 0x387   : > { %v3962_v5 = vpop.f32.mrf.mxu0  ;;  %v4795_v13 = vrot.slane %v4793_v59, 7  ;;  %v4199_v41 = vmax.f32 %v4151_v22, 0.0  ;;  %v3741_v1 = vadd.f32 %v3652_v10, %v3119_v33  ;;  %v3486_v10 = vor.u32 %v3484_v34, %v13128_v23 }
 0x388   : > { %v13199_v0 = vsel %vm1071_vm3, %v15031_v20, %v15030_v51  ;;  %v13203_v22 = vrot.slane %v3488_v26, 1  ;;  %v15033_v33 = vrot.slane %v13102_v43, 1 }
 0x389   : > { %15032 = vst [vmem:[#allocation41_spill] sm:$0xff] %v13199_v0  ;;  %v4798_v3 = vor.u32 %v4796_v57, %v4795_v13  ;;  %v4535_v59 = vmul.f32 %v4378_v7, %v4199_v41  ;;  %v4048_v48 = vadd.f32 %v3959_v42, %v3741_v1  ;;  %9917 = vmatmul.msk.bf16.gmra.mxu2 %vm679_vm1, %v11039_v11  ;;  %v5447_v7 = vshrl.u32 %v13140_v8, 16 }
 0x38a   : > { %10059 = vmatmul.msk.bf16.gmra.mxu0 %vm679_vm1, %v3814_v30  ;;  %v13210_v30 = vsel %vm1071_vm3, %v15033_v33, %v14912_v4  ;;  %v3491_v41 = vsel %vm482_vm2, %v3486_v10, %v13203_v22  ;;  %v4800_v10 = vrot.slane %v4795_v13, 4 }
 0x38b   : > { %15034 = vst [vmem:[#allocation42_spill] sm:$0xff] %v13210_v30  ;;  %v4799_v37 = vsel %vm12683_vm10, %v4791_v31, %v4798_v3  ;;  %v4592_v17 = vpack.c.bf16 %v4535_v59, %v4535_v59  ;;  %v4100_v57 = vmul.f32 %v13076_v18, %v4048_v48  ;;  %v13215_v42 = vld [vmem:[#allocation2 + $0x50] sm:$0xff]  ;;  %v4383_v48 = vpop.permute.xlu0 %4382 }
 0x38c   : > { %5126 = vst [vmem:[#allocation2 + $0x58] sm:$0xf] %v4799_v37  ;;  %v3033_v1 = vpop.f32.mrf.mxu2  ;;  %v5451_v31 = vshll.u32 %v13215_v42, 16  ;;  %v5449_v37 = vor.u32 %v5447_v7, %v13157_v63 }
 0x38d   : > { %v4802_v23 = vshrl.u32 %v4592_v17, 16  ;;  %v4152_v11 = vadd.f32 %v13039_v35, %v4100_v57  ;;  %v3120_v34 = vadd.f32 %v3033_v1, %v12238_v49  ;;  %v4805_v20 = vshll.u32 %v4592_v17, 16  ;;  %v13229_v1 = vld [vmem:[#allocation2 + $0x50] sm:$0xff]  ;;  %v13235_v17 = vld [vmem:[%s11625_s20 + $0xc8] sm:$0xff] }
 0x38e   : > { %v3657_v43 = vpop.f32.mrf.mxu3  ;;  %v13223_v33 = vpop.f32.mrf.mxu1  ;;  %v13226_v49 = vrot.slane %v5451_v31, 1  ;;  %v14913_v57 = vrot.slane %v13166_v53, 1 }
 0x38f   : > { %v3964_v26 = vpop.f32.mrf.mxu0  ;;  %v4804_v51 = vrot.slane %v4802_v23, 7  ;;  %v4200_v3 = vmax.f32 %v4152_v11, 0.0  ;;  %v3742_v59 = vadd.f32 %v3655_v9, %v3120_v34 }
 0x390   : > { %v5454_v9 = vsel %vm482_vm2, %v5449_v37, %v13226_v49  ;;  %v3496_v37 = vshll.u32 %v13235_v17, 16 }
 0x391   : > { %v4807_v8 = vor.u32 %v4805_v20, %v4804_v51  ;;  %v4536_v4 = vmul.f32 %v4383_v48, %v4200_v3  ;;  %v4049_v0 = vadd.f32 %v3962_v5, %v3742_v59  ;;  %5692 = vmatmul.bf16.gmra.mxu1 %v5454_v9  ;;  %v14915_v5 = vrot.slane %v13229_v1, 1  ;;  %v11040_v59 = vld [vmem:[%s11625_s20 + $0xb8] sm:$0xff] }
 0x392   : > { %v3492_v48 = vshrl.u32 %v13166_v53, 16 }
 0x393   : > { %10035 = vmatmul.msk.bf16.gmra.mxu3 %vm679_vm1, %v3491_v41  ;;  %v4808_v63 = vsel %vm12683_vm10, %v4800_v10, %v4807_v8  ;;  %v4593_v23 = vpack.c.bf16 %v4536_v4, %v4536_v4  ;;  %v4101_v11 = vmul.f32 %v13076_v18, %v4049_v0  ;;  %v13240_v34 = vld [vmem:[#allocation2 + $0x54] sm:$0xff]  ;;  %v15035_v4 = vrot.slane %v13097_v47, 1 }
 0x394   : > { %5127 = vst [vmem:[#allocation2 + $0x5c] sm:$0xf] %v4808_v63  ;;  %v3035_v13 = vpop.f32.mrf.mxu2  ;;  %v15036_v47 = vrot.slane %v13160_v56, 1 }
 0x395   : > { %v4811_v41 = vshrl.u32 %v4593_v23, 16  ;;  %v4153_v7 = vadd.f32 %v13039_v35, %v4101_v11  ;;  %v3121_v31 = vadd.f32 %v3035_v13, %v12260_v28  ;;  %v3816_v0 = vsel %vm1071_vm3, %v15035_v4, %v14913_v57  ;;  %v4388_v11 = vpop.permute.xlu1 %4387 }
 0x396   : > { %v3660_v3 = vpop.f32.mrf.mxu3  ;;  %v4814_v8 = vshll.u32 %v4593_v23, 16  ;;  %v13254_v28 = vpop.f32.mrf.mxu1  ;;  %v14914_v13 = vrot.slane %v13240_v34, 1  ;;  %v13262_v4 = vsel %vm1071_vm3, %v15036_v47, %v14915_v5  ;;  %v4809_v57 = vrot.slane %v4804_v51, 4 }
 0x397   : > { %v3967_v20 = vpop.f32.mrf.mxu0  ;;  %v4813_v10 = vrot.slane %v4811_v41, 7  ;;  %v4201_v9 = vmax.f32 %v4153_v7, 0.0  ;;  %v3743_v63 = vadd.f32 %v3657_v43, %v3121_v31  ;;  %15037 = vst [vmem:[#allocation43_spill] sm:$0xff] %v13262_v4  ;;  %v3494_v43 = vor.u32 %v3492_v48, %v13203_v22 }
 0x398   : > { %v13266_v7 = vrot.slane %v3496_v37, 1  ;;  %v15038_v31 = vrot.slane %v13177_v38, 1 }
 0x399   : > { %v4816_v46 = vor.u32 %v4814_v8, %v4813_v10  ;;  %v4537_v41 = vmul.f32 %v4388_v11, %v4201_v9  ;;  %v4050_v23 = vadd.f32 %v3964_v26, %v3743_v63  ;;  %9918 = vmatmul.msk.bf16.gmra.mxu2 %vm679_vm1, %v11040_v59  ;;  %v5455_v11 = vshrl.u32 %v13215_v42, 16 }
 0x39a   : > { %10060 = vmatmul.msk.bf16.gmra.mxu0 %vm679_vm1, %v3816_v0  ;;  %v13273_v0 = vsel %vm1071_vm3, %v15038_v31, %v14914_v13  ;;  %v3499_v63 = vsel %vm482_vm2, %v3494_v43, %v13266_v7  ;;  %v4393_v31 = vpop.permute.xlu2 %4392  ;;  %v4818_v43 = vrot.slane %v4813_v10, 4 }
 0x39b   : > { %15039 = vst [vmem:[#allocation44_spill] sm:$0xff] %v13273_v0  ;;  %v4817_v56 = vsel %vm12683_vm10, %v4809_v57, %v4816_v46  ;;  %v4594_v51 = vpack.c.bf16 %v4537_v41, %v4537_v41  ;;  %v4102_v8 = vmul.f32 %v13076_v18, %v4050_v23  ;;  %v13278_v26 = vld [vmem:[#allocation2 + $0x58] sm:$0xff] }
 0x39c   : > { %5128 = vst [vmem:[#allocation2 + $0x60] sm:$0xf] %v4817_v56  ;;  %v3038_v59 = vpop.f32.mrf.mxu2  ;;  %v5459_v46 = vshll.u32 %v13278_v26, 16  ;;  %v13292_v13 = vld [vmem:[#allocation2 + $0x58] sm:$0xff] }
 0x39d   : > { %v4820_v22 = vshrl.u32 %v4594_v51, 16  ;;  %v4154_v48 = vadd.f32 %v13039_v35, %v4102_v8  ;;  %v3122_v37 = vadd.f32 %v3038_v59, %v12279_v52  ;;  %v4823_v47 = vshll.u32 %v4594_v51, 16  ;;  %v13298_v51 = vld [vmem:[%s11625_s20 + $0xd0] sm:$0xff] }
 0x39e   : > { %v3662_v38 = vpop.f32.mrf.mxu3  ;;  %v13286_v56 = vpop.f32.mrf.mxu1  ;;  %v5457_v8 = vor.u32 %v5455_v11, %v13226_v49  ;;  %v13289_v52 = vrot.slane %v5459_v46, 1  ;;  %v14916_v59 = vrot.slane %v13235_v17, 1  ;;  %v11109_v49 = vld [vmem:[%s14891_s5 + $0x98] sm:$0xff]  ;;  %v14917_v46 = vrot.slane %v13292_v13, 1 }
 0x39f   : > { %v3969_v9 = vpop.f32.mrf.mxu0  ;;  %v4822_v57 = vrot.slane %v4820_v22, 7  ;;  %v4202_v41 = vmax.f32 %v4154_v48, 0.0  ;;  %v3744_v23 = vadd.f32 %v3660_v3, %v3122_v37  ;;  %v15040_v22 = vld [vmem:[#allocation16_spill] sm:$0xff]  ;;  %6115 = vmatpush.bf16.msrb.mxu3 %v11109_v49 }
 0x3a0   : > { %v5462_v3 = vsel %vm482_vm2, %v5457_v8, %v13289_v52  ;;  %v2701_v48 = vadd.f32 %v15040_v22, %v12303_v19  ;;  %v11041_v8 = vld [vmem:[%s11625_s20 + $0xc0] sm:$0xff] }
 0x3a1   : > { %v4825_v42 = vor.u32 %v4823_v47, %v4822_v57  ;;  %v4538_v5 = vmul.f32 %v4393_v31, %v4202_v41  ;;  %v4051_v4 = vadd.f32 %v3967_v20, %v3744_v23  ;;  %5697 = vmatmul.bf16.gmra.mxu1 %v5462_v3  ;;  %v11108_v3 = vld [vmem:[%s14891_s5 + $0x90] sm:$0xff] }
 0x3a3   : > { %10036 = vmatmul.msk.bf16.gmra.mxu3 %vm679_vm1, %v3499_v63  ;;  %v4826_v10 = vsel %vm12683_vm10, %v4818_v43, %v4825_v42  ;;  %v4595_v37 = vpack.c.bf16 %v4538_v5, %v4538_v5  ;;  %v4103_v20 = vmul.f32 %v13076_v18, %v4051_v4  ;;  %v13308_v11 = vld [vmem:[#allocation2 + $0x5c] sm:$0xff]  ;;  %v15041_v5 = vrot.slane %v13166_v53, 1 }
 0x3a4   : > { %5129 = vst [vmem:[#allocation2 + $0x64] sm:$0xf] %v4826_v10  ;;  %v3040_v63 = vpop.f32.mrf.mxu2  ;;  %v3500_v43 = vshrl.u32 %v13235_v17, 16  ;;  %v3504_v42 = vshll.u32 %v13298_v51, 16  ;;  %6116 = vmatpush.bf16.msrb.mxu3 %v11108_v3  ;;  %v11093_v3 = vld [vmem:[%s14891_s5 + $0x18] sm:$0xff] }
 0x3a5   : > { %v4829_v47 = vshrl.u32 %v4595_v37, 16  ;;  %v4155_v41 = vadd.f32 %v13039_v35, %v4103_v20  ;;  %v3123_v23 = vadd.f32 %v3040_v63, %v2701_v48  ;;  %v3818_v4 = vsel %vm1071_vm3, %v15041_v5, %v14916_v59  ;;  %v4398_v20 = vpop.permute.xlu0 %4397  ;;  %v11141_v63 = vld [vmem:[%s14891_s5 + $0xd8] sm:$0xff]  ;;  %5844 = vmatpush.bf16.msrb.mxu2 %v11093_v3 }
 0x3a6   : > { %v3665_v31 = vpop.f32.mrf.mxu3  ;;  %v4832_v22 = vshll.u32 %v4595_v37, 16  ;;  %v13328_v53 = vpop.f32.mrf.mxu1  ;;  %v3502_v59 = vor.u32 %v3500_v43, %v13266_v7  ;;  %v13347_v5 = vrot.slane %v3504_v42, 1  ;;  %6549 = vmatpush.bf16.msrb.mxu0 %v11141_v63  ;;  %v3194_v42 = vld [vmem:[%s11625_s20 + $0xd8] sm:$0x1] }
 0x3a7   : > { %v13312_v19 = vpop.f32.mrf.mxu0  ;;  %v13325_v49 = vrot.slane %v4829_v47, 7  ;;  %v4203_v48 = vmax.f32 %v4155_v41, 0.0  ;;  %v3745_v10 = vadd.f32 %v3662_v38, %v3123_v23  ;;  %v15042_v47 = vrot.slane %v13229_v1, 1  ;;  %v11107_v1 = vld [vmem:[%s14891_s5 + $0x88] sm:$0xff] }
 0x3a8   : > { %v4827_v38 = vrot.slane %v4822_v57, 4  ;;  %v15044_v57 = vrot.slane %v13308_v11, 1  ;;  %6117 = vmatpush.bf16.msrb.mxu3 %v11107_v1  ;;  %v3507_v3 = vsel %vm482_vm2, %v3502_v59, %v13347_v5  ;;  %v5463_v1 = vshrl.u32 %v13278_v26, 16 }
 0x3a9   : > { %v13339_v37 = vsel %vm1071_vm3, %v15042_v47, %v14917_v46  ;;  %v4834_v41 = vor.u32 %v4832_v22, %v13325_v49  ;;  %v4539_v23 = vmul.f32 %v4398_v20, %v4203_v48  ;;  %9919 = vmatmul.msk.bf16.gmra.mxu2 %vm679_vm1, %v11041_v8  ;;  %v15045_v22 = vrot.slane %v13240_v34, 1  ;;  %v11140_v34 = vld [vmem:[%s14891_s5 + $0xd0] sm:$0xff] }
 0x3aa   : > { %10061 = vmatmul.msk.bf16.gmra.mxu0 %vm679_vm1, %v3818_v4  ;;  %15043 = vst [vmem:[#allocation16_spill] sm:$0xff] %v13339_v37  ;;  %v4052_v4 = vadd.f32 %v3969_v9, %v3745_v10  ;;  %v4403_v37 = vpop.permute.xlu1 %4402  ;;  %v5465_v59 = vor.u32 %v5463_v1, %v13289_v52  ;;  %v11091_v52 = vld [vmem:[%s14891_s5 + $0x8] sm:$0xff] }
 0x3ab   : > { %v13357_v9 = vsel %vm1071_vm3, %v15045_v22, %v15044_v57  ;;  %v4835_v8 = vsel %vm12683_vm10, %v4827_v38, %v4834_v41  ;;  %v4596_v48 = vpack.c.bf16 %v4539_v23, %v4539_v23  ;;  %v13362_v43 = vld [vmem:[#allocation2 + $0x60] sm:$0xff]  ;;  %v3294_v22 = vunpack.c.l.b16 %v3194_v42  ;;  %6550 = vmatpush.bf16.msrb.mxu0 %v11140_v34  ;;  %v11139_v34 = vld [vmem:[%s14891_s5 + $0xc8] sm:$0xff] }
 0x3ac   : > { %15046 = vst [vmem:[#allocation45_spill] sm:$0xff] %v13357_v9  ;;  %v4104_v7 = vmul.f32 %v13076_v18, %v4052_v4  ;;  %v3043_v10 = vpop.f32.mrf.mxu2  ;;  %v13368_v20 = vld [vmem:[#allocation2 + $0x60] sm:$0xff]  ;;  %v11092_v4 = vld [vmem:[%s14891_s5 + $0x10] sm:$0xff]  ;;  %v5467_v57 = vshll.u32 %v13362_v43, 16  ;;  %v14918_v42 = vrot.slane %v13298_v51, 1 }
 0x3ad   : > { %5130 = vst [vmem:[#allocation2 + $0x68] sm:$0xf] %v4835_v8  ;;  %v4838_v63 = vshrl.u32 %v4596_v48, 16  ;;  %v3124_v38 = vadd.f32 %v3043_v10, %v12324_v62  ;;  %v11106_v62 = vld [vmem:[%s14891_s5 + $0x80] sm:$0xff]  ;;  %5845 = vmatpush.bf16.msrb.mxu2 %v11092_v4  ;;  %v15047_v4 = vld [vmem:[#allocation17_spill] sm:$0xff] }
 0x3ae   : > { %v4156_v47 = vadd.f32 %v13039_v35, %v4104_v7  ;;  %v3667_v23 = vpop.f32.mrf.mxu3  ;;  %v4841_v7 = vshll.u32 %v4596_v48, 16  ;;  %v13386_v27 = vpop.f32.mrf.mxu1  ;;  %v13389_v26 = vrot.slane %v5467_v57, 1  ;;  %6118 = vmatpush.bf16.msrb.mxu3 %v11106_v62  ;;  %v4836_v48 = vrot.slane %v13325_v49, 4 }
 0x3af   : > { %v13372_v41 = vpop.f32.mrf.mxu0  ;;  %v13384_v8 = vrot.slane %v4838_v63, 7  ;;  %v3746_v46 = vadd.f32 %v3665_v31, %v3124_v38  ;;  %v14919_v63 = vrot.slane %v13368_v20, 1  ;;  %v2703_v1 = vadd.f32 %v15047_v4, %v12342_v39  ;;  %6551 = vmatpush.bf16.msrb.mxu0 %v11139_v34 }
 0x3b0   : > { %v4204_v10 = vmax.f32 %v4156_v47, 0.0  ;;  %v5470_v57 = vsel %vm482_vm2, %v5465_v59, %v13389_v26  ;;  %v13407_v62 = vpack.c.b16 %v3294_v22, %v3294_v22  ;;  %v15048_v22 = vrot.slane %v13292_v13, 1 }
 0x3b1   : > { %v4843_v31 = vor.u32 %v4841_v7, %v13384_v8  ;;  %v4053_v38 = vadd.f32 %v13312_v19, %v3746_v46  ;;  %5702 = vmatmul.bf16.gmra.mxu1 %v5470_v57  ;;  %5846 = vmatpush.bf16.msrb.mxu2 %v11091_v52  ;;  %v11042_v52 = vld [vmem:[%s11625_s20 + $0xc8] sm:$0xff]  ;;  %v3508_v4 = vshrl.u32 %v13298_v51, 16  ;;  %v11138_v57 = vld [vmem:[%s14891_s5 + $0xc0] sm:$0xff] }
 0x3b2   : > { %v4540_v47 = vmul.f32 %v4403_v37, %v4204_v10  ;;  %v13422_v7 = vsel %vm1071_vm3, %v15048_v22, %v14919_v63  ;;  %v3512_v13 = vshll.u32 %v13407_v62, 16 }
 0x3b3   : > { %10037 = vmatmul.msk.bf16.gmra.mxu3 %vm679_vm1, %v3507_v3  ;;  %v4844_v49 = vsel %vm12683_vm10, %v4836_v48, %v4843_v31  ;;  %v4105_v19 = vmul.f32 %v13076_v18, %v4053_v38  ;;  %v11172_v3 = vld [vmem:[%s14891_s5 + $0x118] sm:$0xff]  ;;  %15049 = vst [vmem:[#allocation17_spill] sm:$0xff] %v13422_v7  ;;  %6552 = vmatpush.bf16.msrb.mxu0 %v11138_v57 }
 0x3b4   : > { %v4597_v46 = vpack.c.bf16 %v4540_v47, %v4540_v47  ;;  %v13412_v37 = vld [vmem:[#allocation2 + $0x64] sm:$0xff]  ;;  %5131 = vst [vmem:[#allocation2 + $0x6c] sm:$0xf] %v4844_v49  ;;  %v3045_v39 = vpop.f32.mrf.mxu2  ;;  %v15050_v47 = vrot.slane %v13235_v17, 1  ;;  %7183 = vmatpush.bf16.msrb.mxu1 %v11172_v3  ;;  %v15051_v3 = vrot.slane %v13308_v11, 1 }
 0x3b5   : > { %v4157_v59 = vadd.f32 %v13039_v35, %v4105_v19  ;;  %v3125_v34 = vadd.f32 %v3045_v39, %v2703_v1  ;;  %v14920_v1 = vrot.slane %v13412_v37, 1  ;;  %v11090_v17 = vld [vmem:[%s14891_s5] sm:$0xff] }
 0x3b6   : > { %v4847_v10 = vshrl.u32 %v4597_v46, 16  ;;  %v3670_v31 = vpop.f32.mrf.mxu3  ;;  %v3820_v38 = vsel %vm1071_vm3, %v15050_v47, %v14918_v42  ;;  %v4850_v19 = vshll.u32 %v4597_v46, 16  ;;  %v4408_v47 = vpop.permute.xlu2 %4407  ;;  %v4845_v46 = vrot.slane %v13384_v8, 4  ;;  %5847 = vmatpush.bf16.msrb.mxu2 %v11090_v17 }
 0x3b7   : > { %v3977_v48 = vpop.f32.mrf.mxu0  ;;  %v4205_v39 = vmax.f32 %v4157_v59, 0.0  ;;  %v3747_v22 = vadd.f32 %v3667_v23, %v3125_v34  ;;  %v13441_v42 = vpop.f32.mrf.mxu1  ;;  %v13448_v63 = vsel %vm1071_vm3, %v15051_v3, %v14920_v1  ;;  %v3510_v34 = vor.u32 %v3508_v4, %v13347_v5 }
 0x3b8   : > { %v4849_v49 = vrot.slane %v4847_v10, 7  ;;  %15052 = vst [vmem:[#allocation46_spill] sm:$0xff] %v13448_v63 }
 0x3b9   : > { %v4541_v23 = vmul.f32 %v4408_v47, %v4205_v39  ;;  %v4054_v59 = vadd.f32 %v13372_v41, %v3747_v22  ;;  %9920 = vmatmul.msk.bf16.gmra.mxu2 %vm679_vm1, %v11042_v52  ;;  %v5471_v39 = vshrl.u32 %v13362_v43, 16 }
 0x3ba   : > { %10062 = vmatmul.msk.bf16.gmra.mxu0 %vm679_vm1, %v3820_v38  ;;  %v4852_v10 = vor.u32 %v4850_v19, %v4849_v49  ;;  %v3514_v38 = vrot.slane %v3512_v13, 1 }
 0x3bb   : > { %v4598_v11 = vpack.c.bf16 %v4541_v23, %v4541_v23  ;;  %v4106_v3 = vmul.f32 %v13076_v18, %v4054_v59  ;;  %v13457_v1 = vld [vmem:[#allocation2 + $0x68] sm:$0xff]  ;;  %v5473_v59 = vor.u32 %v5471_v39, %v13389_v26 }
 0x3bc   : > { %v4853_v7 = vsel %vm12683_vm10, %v4845_v46, %v4852_v10  ;;  %v3048_v8 = vpop.f32.mrf.mxu2  ;;  %v13459_v19 = vld [vmem:[#allocation2 + $0x68] sm:$0xff]  ;;  %v3515_v13 = vsel %vm482_vm2, %v3510_v34, %v3514_v38  ;;  %v5475_v22 = vshll.u32 %v13457_v1, 16  ;;  %v4413_v10 = vpop.permute.xlu0 %4412  ;;  %v4854_v34 = vrot.slane %v4849_v49, 4 }
 0x3bd   : > { %5132 = vst [vmem:[#allocation2 + $0x70] sm:$0xf] %v4853_v7  ;;  %v4856_v41 = vshrl.u32 %v4598_v11, 16  ;;  %v4158_v52 = vadd.f32 %v13039_v35, %v4106_v3  ;;  %v3126_v57 = vadd.f32 %v3048_v8, %v12361_v25  ;;  %v4859_v47 = vshll.u32 %v4598_v11, 16 }
 0x3be   : > { %v3672_v4 = vpop.f32.mrf.mxu3  ;;  %v13469_v3 = vrot.slane %v5475_v22, 1  ;;  %v3821_v25 = vrot.slane %v13407_v62, 1  ;;  %v14922_v8 = vrot.slane %v13459_v19, 1  ;;  %v2705_v11 = vadd.f32 %v12338_v60, %v12383_v29 }
 0x3bf   : > { %v3979_v5 = vpop.f32.mrf.mxu0  ;;  %v4858_v17 = vrot.slane %v4856_v41, 7  ;;  %v4206_v46 = vmax.f32 %v4158_v52, 0.0  ;;  %v3748_v7 = vadd.f32 %v3670_v31, %v3126_v57  ;;  %v13466_v23 = vpop.f32.mrf.mxu1 }
 0x3c0   : > { %v5478_v31 = vsel %vm482_vm2, %v5473_v59, %v13469_v3 }
 0x3c1   : > { %v4861_v38 = vor.u32 %v4859_v47, %v4858_v17  ;;  %v4542_v43 = vmul.f32 %v4413_v10, %v4206_v46  ;;  %v4055_v50 = vadd.f32 %v3977_v48, %v3748_v7  ;;  %5707 = vmatmul.bf16.gmra.mxu1 %v5478_v31  ;;  %v15053_v48 = vrot.slane %v13368_v20, 1  ;;  %v11043_v46 = vld [vmem:[%s11625_s20 + $0xd0] sm:$0xff]  ;;  %v11399_v7 = vld [vmem:[#allocation2] sm:$0xf0]  ;;  %v11400_v10 = vld [vmem:[#allocation2] sm:$0xe]  ;;  %v4418_v31 = vpop.permute.xlu1 %4417 }
 0x3c3   : > { %10038 = vmatmul.msk.bf16.gmra.mxu3 %vm679_vm1, %v3515_v13  ;;  %v4862_v26 = vsel %vm12683_vm10, %v4854_v34, %v4861_v38  ;;  %v4599_v41 = vpack.c.bf16 %v4542_v43, %v4542_v43  ;;  %v4107_v62 = vmul.f32 %v13076_v18, %v4055_v50  ;;  %v13488_v60 = vsel %vm1071_vm3, %v15053_v48, %v14922_v8 }
 0x3c4   : > { %v13481_v49 = vld [vmem:[#allocation2 + $0x6c] sm:$0xff]  ;;  %15054 = vst [vmem:[#allocation47_spill] sm:$0xff] %v13488_v60  ;;  %v3050_v29 = vpop.f32.mrf.mxu2  ;;  %v15055_v50 = vrot.slane %v13298_v51, 1  ;;  %v15056_v51 = vrot.slane %v13412_v37, 1 }
 0x3c5   : > { %5133 = vst [vmem:[#allocation2 + $0x74] sm:$0xf] %v4862_v26  ;;  %v4865_v52 = vshrl.u32 %v4599_v41, 16  ;;  %v4159_v57 = vadd.f32 %v13039_v35, %v4107_v62  ;;  %v3127_v13 = vadd.f32 %v3050_v29, %v2705_v11  ;;  %v14921_v20 = vrot.slane %v13481_v49, 1 }
 0x3c6   : > { %v3675_v22 = vpop.f32.mrf.mxu3  ;;  %v3822_v47 = vsel %vm1071_vm3, %v15055_v50, %v3821_v25  ;;  %v4868_v34 = vshll.u32 %v4599_v41, 16  ;;  %v11401_v11 = vor.u32 %v11400_v10, %v11399_v7  ;;  %v4863_v62 = vrot.slane %v4858_v17, 4 }
 0x3c7   : > { %v3982_v39 = vpop.f32.mrf.mxu0  ;;  %v4867_v59 = vrot.slane %v4865_v52, 7  ;;  %v4207_v38 = vmax.f32 %v4159_v57, 0.0  ;;  %v3749_v43 = vadd.f32 %v3672_v4, %v3127_v13  ;;  %v13497_v26 = vpop.f32.mrf.mxu1  ;;  %v13504_v25 = vsel %vm1071_vm3, %v15056_v51, %v14921_v20 }
 0x3c8   : > { %15057 = vst [vmem:[#allocation48_spill] sm:$0xff] %v13504_v25  ;;  %v5990_v37 = vrot.slane %v11401_v11, 1 }
 0x3c9   : > { %v4870_v48 = vor.u32 %v4868_v34, %v4867_v59  ;;  %v4543_v29 = vmul.f32 %v4418_v31, %v4207_v38  ;;  %v4056_v52 = vadd.f32 %v3979_v5, %v3749_v43  ;;  %9921 = vmatmul.msk.bf16.gmra.mxu2 %vm679_vm1, %v11043_v46  ;;  %v5479_v43 = vshrl.u32 %v13457_v1, 16 }
 0x3ca   : > { %10063 = vmatmul.msk.bf16.gmra.mxu0 %vm679_vm1, %v3822_v47  ;;  %v13512_v47 = vld [vmem:[#allocation2 + $0x8] sm:$0xff]  ;;  %v4872_v1 = vrot.slane %v4867_v59, 4 }
 0x3cb   : > { %v4871_v4 = vsel %vm12683_vm10, %v4863_v62, %v4870_v48  ;;  %v4600_v41 = vpack.c.bf16 %v4543_v29, %v4543_v29  ;;  %v4108_v57 = vmul.f32 %v13076_v18, %v4056_v52  ;;  %v5991_v17 = vrot.slane %v13512_v47, 1  ;;  %v4423_v29 = vpop.permute.xlu2 %4422 }
 0x3cc   : > { %v13510_v13 = vld [vmem:[#allocation2 + $0x70] sm:$0xff]  ;;  %5134 = vst [vmem:[#allocation2 + $0x78] sm:$0xf] %v4871_v4  ;;  %v3053_v50 = vpop.f32.mrf.mxu2 }
 0x3cd   : > { %v13515_v7 = vld [vmem:[#allocation2 + $0x70] sm:$0xff]  ;;  %v4874_v5 = vshrl.u32 %v4600_v41, 16  ;;  %v4160_v46 = vadd.f32 %v13039_v35, %v4108_v57  ;;  %v3128_v10 = vadd.f32 %v3053_v50, %v12400_v55  ;;  %v5483_v31 = vshll.u32 %v13510_v13, 16 }
 0x3ce   : > { %v3677_v38 = vpop.f32.mrf.mxu3  ;;  %v4877_v62 = vshll.u32 %v4600_v41, 16  ;;  %v5992_v4 = vsel %vm1071_vm3, %v5990_v37, %v5991_v17  ;;  %v5481_v57 = vor.u32 %v5479_v43, %v13469_v3  ;;  %v14924_v50 = vrot.slane %v13515_v7, 1 }
 0x3cf   : > { %v3984_v34 = vpop.f32.mrf.mxu0  ;;  %v4876_v51 = vrot.slane %v4874_v5, 7  ;;  %v4208_v11 = vmax.f32 %v4160_v46, 0.0  ;;  %v3750_v48 = vadd.f32 %v3675_v22, %v3128_v10  ;;  %v13521_v52 = vpop.f32.mrf.mxu1  ;;  %v13527_v55 = vrot.slane %v5483_v31, 1 }
 0x3d0   : > { %v2707_v22 = vadd.f32 %v12378_v40, %v12426_v21 }
 0x3d1   : > { %v4879_v20 = vor.u32 %v4877_v62, %v4876_v51  ;;  %v4544_v8 = vmul.f32 %v4423_v29, %v4208_v11  ;;  %v4057_v5 = vadd.f32 %v3982_v39, %v3750_v48  ;;  %v5486_v41 = vsel %vm482_vm2, %v5481_v57, %v13527_v55  ;;  %v11114_v62 = vld [vmem:[#allocation2 + $0xc] sm:$0xff] }
 0x3d2   : > { %5712 = vmatmul.bf16.gmra.mxu1 %v5486_v41  ;;  %v15058_v39 = vrot.slane %v13459_v19, 1 }
 0x3d3   : > { %6119 = vmatmul.bf16.vlgmr.msrb.gmra.mxu3 %v5992_v4  ;;  %v4880_v37 = vsel %vm12683_vm10, %v4872_v1, %v4879_v20  ;;  %v4601_v46 = vpack.c.bf16 %v4544_v8, %v4544_v8  ;;  %v4109_v3 = vmul.f32 %v13076_v18, %v4057_v5  ;;  %v13537_v10 = vld [vmem:[#allocation2 + $0x74] sm:$0xff]  ;;  %v4428_v1 = vpop.permute.xlu0 %4427  ;;  %v15060_v5 = vrot.slane %v13481_v49, 1 }
 0x3d4   : > { %v13544_v59 = vsel %vm1071_vm3, %v15058_v39, %v14924_v50  ;;  %5135 = vst [vmem:[#allocation2 + $0x7c] sm:$0xf] %v4880_v37  ;;  %v3055_v40 = vpop.f32.mrf.mxu2  ;;  %v14923_v11 = vrot.slane %v13537_v10, 1  ;;  %v11464_v39 = vld [vmem:[#allocation2] sm:$0xff]   ;;  %v13562_v49 = vld [vmem:[#allocation2 + $0x10] sm:$0xff] }
 0x3d5   : > { %15059 = vst [vmem:[#allocation49_spill] sm:$0xff] %v13544_v59  ;;  %v4883_v21 = vshrl.u32 %v4601_v46, 16  ;;  %v4161_v43 = vadd.f32 %v13039_v35, %v4109_v3  ;;  %v3129_v31 = vadd.f32 %v3055_v40, %v2707_v22  ;;  %v4886_v29 = vshll.u32 %v4601_v46, 16 }
 0x3d6   : > { %v3680_v8 = vpop.f32.mrf.mxu3  ;;  %v13555_v35 = vsel %vm1071_vm3, %v15060_v5, %v14923_v11  ;;  %v4881_v22 = vrot.slane %v4876_v51, 4  ;;  %v15069_v60 = vrot.slane %v13562_v49, 1 }
 0x3d7   : > { %v3987_v20 = vpop.f32.mrf.mxu0  ;;  %v4885_v48 = vrot.slane %v4883_v21, 7  ;;  %v4209_v4 = vmax.f32 %v4161_v43, 0.0  ;;  %v3751_v57 = vadd.f32 %v3677_v38, %v3129_v31  ;;  %v13548_v19 = vpop.f32.mrf.mxu1  ;;  %15061 = vst [vmem:[#allocation50_spill] sm:$0xff] %v13555_v35  ;;  %v14925_v31 = vrot.slane %v13562_v49, 1 }
 0x3d9   : > { %v4888_v41 = vor.u32 %v4886_v29, %v4885_v48  ;;  %v4545_v37 = vmul.f32 %v4428_v1, %v4209_v4  ;;  %v4058_v3 = vadd.f32 %v3984_v34, %v3751_v57  ;;  %5848 = vmatmul.bf16.vlgmr.msrb.gmra.mxu2 %v11464_v39  ;;  %v13570_v34 = vld [vmem:[%s14890_s4] ss:$0 sm:$0xff]  ;;  %v5487_v1 = vshrl.u32 %v13510_v13, 16  ;;  %v4433_v39 = vpop.permute.xlu1 %4432 }
 0x3da   : > { %6553 = vmatmul.bf16.vlgmr.msrb.gmra.mxu0 %v11114_v62  ;;  %v4890_v11 = vrot.slane %v4885_v48, 4 }
 0x3db   : > { %v4889_v38 = vsel %vm12683_vm10, %v4881_v22, %v4888_v41  ;;  %v4602_v46 = vpack.c.bf16 %v4545_v37, %v4545_v37  ;;  %v4110_v40 = vmul.f32 %v13076_v18, %v4058_v3  ;;  %v13560_v21 = vld [vmem:[#allocation2 + $0x78] sm:$0xff] }
 0x3dc   : > { %5136 = vst [vmem:[#allocation2 + $0x80] sm:$0xf] %v4889_v38  ;;  %v3058_v43 = vpop.f32.mrf.mxu2  ;;  %v13565_v51 = vld [vmem:[#allocation2 + $0x78] sm:$0xff]  ;;  %v5491_v5 = vshll.u32 %v13560_v21, 16 }
 0x3dd   : > { %v4892_v62 = vshrl.u32 %v4602_v46, 16  ;;  %v4162_v29 = vadd.f32 %v13570_v34, %v4110_v40  ;;  %v3130_v18 = vadd.f32 %v3058_v43, %v12438_v36  ;;  %v4895_v41 = vshll.u32 %v4602_v46, 16 }
 0x3de   : > { %v3682_v57 = vpop.f32.mrf.mxu3  ;;  %v5994_v40 = vsel %vm1071_vm3, %v5991_v17, %v14925_v31  ;;  %v5489_v36 = vor.u32 %v5487_v1, %v13527_v55  ;;  %v13584_v43 = vrot.slane %v5491_v5, 1  ;;  %v14926_v13 = vrot.slane %v13565_v51, 1  ;;  %v13596_v55 = vld [vmem:[%s14889_s3] ss:$0 sm:$0xff] }
 0x3df   : > { %v3989_v4 = vpop.f32.mrf.mxu0  ;;  %v4894_v22 = vrot.slane %v4892_v62, 7  ;;  %v4210_v37 = vmax.f32 %v4162_v29, 0.0  ;;  %v3752_v3 = vadd.f32 %v3680_v8, %v3130_v18  ;;  %v13576_v38 = vpop.f32.mrf.mxu1  ;;  %v15062_v8 = vld [vmem:[#allocation20_spill] sm:$0xff]  ;;  %v15063_v18 = vld [vmem:[#allocation18_spill] sm:$0xff]  ;;  %v15064_v1 = vrot.slane %v13515_v7, 1 }
 0x3e0   : > { %v2709_v50 = vadd.f32 %v15063_v18, %v15062_v8  ;;  %v5494_v59 = vsel %vm482_vm2, %v5489_v36, %v13584_v43  ;;  %v11115_v36 = vld [vmem:[#allocation2 + $0x14] sm:$0xff]  ;;  %v4438_v18 = vpop.permute.xlu2 %4437 }
 0x3e1   : > { %v4897_v62 = vor.u32 %v4895_v41, %v4894_v22  ;;  %v4546_v46 = vmul.f32 %v4433_v39, %v4210_v37  ;;  %v4059_v29 = vadd.f32 %v3987_v20, %v3752_v3  ;;  %v13606_v5 = vsel %vm1071_vm3, %v15064_v1, %v14926_v13  ;;  %v11171_v41 = vld [vmem:[%s14891_s5 + $0x110] sm:$0xff] }
 0x3e2   : > { %5717 = vmatmul.bf16.gmra.mxu1 %v5494_v59  ;;  %15065 = vst [vmem:[#allocation20_spill] sm:$0xff] %v13606_v5  ;;  %v15066_v1 = vrot.slane %v13537_v10, 1  ;;  %v13628_v10 = vld [vmem:[#allocation2 + $0x18] sm:$0xff] }
 0x3e3   : > { %6124 = vmatmul.bf16.gmra.mxu3 %v5994_v40  ;;  %v4898_v17 = vsel %vm12683_vm10, %v4890_v11, %v4897_v62  ;;  %v4603_v31 = vpack.c.bf16 %v4546_v46, %v4546_v46  ;;  %v4111_v48 = vmul.f32 %v13596_v55, %v4059_v29  ;;  %v13599_v20 = vld [vmem:[#allocation2 + $0x7c] sm:$0xff]  ;;  %7184 = vmatpush.bf16.msrb.mxu1 %v11171_v41 }
 0x3e4   : > { %5137 = vst [vmem:[#allocation2 + $0x84] sm:$0xf] %v4898_v17  ;;  %v3060_v11 = vpop.f32.mrf.mxu2  ;;  %v14927_v62 = vrot.slane %v13599_v20, 1 }
 0x3e5   : > { %v4901_v37 = vshrl.u32 %v4603_v31, 16  ;;  %v4163_v3 = vadd.f32 %v13570_v34, %v4111_v48  ;;  %v3131_v39 = vadd.f32 %v3060_v11, %v2709_v50  ;;  %v4904_v46 = vshll.u32 %v4603_v31, 16 }
 0x3e6   : > { %v3685_v40 = vpop.f32.mrf.mxu3  ;;  %v13620_v50 = vsel %vm1071_vm3, %v15066_v1, %v14927_v62  ;;  %v4899_v48 = vrot.slane %v4894_v22, 4  ;;  %v5495_v1 = vshrl.u32 %v13560_v21, 16  ;;  %v4443_v62 = vpop.permute.xlu0 %4442 }
 0x3e7   : > { %v3992_v59 = vpop.f32.mrf.mxu0  ;;  %v4903_v7 = vrot.slane %v4901_v37, 7  ;;  %v4211_v29 = vmax.f32 %v4163_v3, 0.0  ;;  %v3753_v8 = vadd.f32 %v3682_v57, %v3131_v39  ;;  %v13613_v17 = vpop.f32.mrf.mxu1  ;;  %15067 = vst [vmem:[#allocation18_spill] sm:$0xff] %v13620_v50 }
 0x3e9   : > { %v4906_v11 = vor.u32 %v4904_v46, %v4903_v7  ;;  %v4547_v41 = vmul.f32 %v4438_v18, %v4211_v29  ;;  %v4060_v13 = vadd.f32 %v3989_v4, %v3753_v8  ;;  %5853 = vmatmul.bf16.gmra.mxu2 %v13512_v47  ;;  %v15068_v47 = vld [vmem:[#allocation21_spill] sm:$0xff]  ;;  %v4908_v50 = vrot.slane %v4903_v7, 4 }
 0x3ea   : > { %6558 = vmatmul.bf16.gmra.mxu0 %v11115_v36  ;;  %v5995_v36 = vrot.slane %v13628_v10, 1 }
 0x3eb   : > { %v4907_v31 = vsel %vm12683_vm10, %v4899_v48, %v4906_v11  ;;  %v4604_v57 = vpack.c.bf16 %v4547_v41, %v4547_v41  ;;  %v4112_v37 = vmul.f32 %v13596_v55, %v4060_v13  ;;  %v13626_v3 = vld [vmem:[#allocation2 + $0x80] sm:$0xff] }
 0x3ec   : > { %5138 = vst [vmem:[#allocation2 + $0x88] sm:$0xf] %v4907_v31  ;;  %v3063_v39 = vpop.f32.mrf.mxu2  ;;  %v13631_v22 = vld [vmem:[#allocation2 + $0x80] sm:$0xff]  ;;  %v5499_v13 = vshll.u32 %v13626_v3, 16 }
 0x3ed   : > { %v4910_v46 = vshrl.u32 %v4604_v57, 16  ;;  %v4164_v4 = vadd.f32 %v13570_v34, %v4112_v37  ;;  %v3132_v29 = vadd.f32 %v3063_v39, %v15068_v47  ;;  %v4913_v11 = vshll.u32 %v4604_v57, 16 }
 0x3ee   : > { %v3687_v18 = vpop.f32.mrf.mxu3  ;;  %v5996_v37 = vsel %vm1071_vm3, %v15069_v60, %v5995_v36  ;;  %v5497_v39 = vor.u32 %v5495_v1, %v13584_v43  ;;  %v5501_v47 = vrot.slane %v5499_v13, 1  ;;  %v14930_v21 = vrot.slane %v13631_v22, 1 }
 0x3ef   : > { %v3994_v8 = vpop.f32.mrf.mxu0  ;;  %v4912_v48 = vrot.slane %v4910_v46, 7  ;;  %v4212_v41 = vmax.f32 %v4164_v4, 0.0  ;;  %v3754_v31 = vadd.f32 %v3685_v40, %v3132_v29  ;;  %v13637_v5 = vpop.f32.mrf.mxu1  ;;  %v15070_v4 = vld [vmem:[#allocation23_spill] sm:$0xff] }
 0x3f0   : > { %v15071_v40 = vld [vmem:[#allocation19_spill] sm:$0xff]  ;;  %v5502_v25 = vsel %vm482_vm2, %v5497_v39, %v5501_v47 }
 0x3f1   : > { %v4915_v35 = vor.u32 %v4913_v11, %v4912_v48  ;;  %v4548_v46 = vmul.f32 %v4443_v62, %v4212_v41  ;;  %v4061_v57 = vadd.f32 %v3992_v59, %v3754_v31  ;;  %v2711_v29 = vadd.f32 %v15071_v40, %v15070_v4  ;;  %v11116_v41 = vld [vmem:[#allocation2 + $0x1c] sm:$0xff] }
 0x3f2   : > { %5722 = vmatmul.bf16.gmra.mxu1 %v5502_v25  ;;  %v15072_v62 = vrot.slane %v13565_v51, 1  ;;  %v4917_v40 = vrot.slane %v4912_v48, 4 }
 0x3f3   : > { %6129 = vmatmul.bf16.gmra.mxu3 %v5996_v37  ;;  %v4916_v12 = vsel %vm12683_vm10, %v4908_v50, %v4915_v35  ;;  %v4605_v63 = vpack.c.bf16 %v4548_v46, %v4548_v46  ;;  %v4113_v60 = vmul.f32 %v13596_v55, %v4061_v57  ;;  %v13652_v43 = vld [vmem:[#allocation2 + $0x84] sm:$0xff]  ;;  %v4448_v57 = vpop.permute.xlu1 %4447 }
 0x3f4   : > { %v13659_v59 = vsel %vm1071_vm3, %v15072_v62, %v14930_v21  ;;  %5139 = vst [vmem:[#allocation2 + $0x8c] sm:$0xf] %v4916_v12  ;;  %v3065_v7 = vpop.f32.mrf.mxu2  ;;  %v14929_v25 = vrot.slane %v13652_v43, 1  ;;  %v15074_v12 = vrot.slane %v13599_v20, 1  ;;  %v13678_v20 = vld [vmem:[#allocation2 + $0x20] sm:$0xff] }
 0x3f5   : > { %15073 = vst [vmem:[#allocation21_spill] sm:$0xff] %v13659_v59  ;;  %v4919_v1 = vshrl.u32 %v4605_v63, 16  ;;  %v4165_v13 = vadd.f32 %v13570_v34, %v4113_v60  ;;  %v3133_v11 = vadd.f32 %v3065_v7, %v2711_v29  ;;  %v4922_v37 = vshll.u32 %v4605_v63, 16 }
 0x3f6   : > { %v3690_v50 = vpop.f32.mrf.mxu3  ;;  %v13670_v4 = vsel %vm1071_vm3, %v15074_v12, %v14929_v25 }
 0x3f7   : > { %v3997_v35 = vpop.f32.mrf.mxu0  ;;  %v4921_v31 = vrot.slane %v4919_v1, 7  ;;  %v4213_v39 = vmax.f32 %v4165_v13, 0.0  ;;  %v3755_v46 = vadd.f32 %v3687_v18, %v3133_v11  ;;  %v13663_v51 = vpop.f32.mrf.mxu1  ;;  %15075 = vst [vmem:[#allocation23_spill] sm:$0xff] %v13670_v4  ;;  %v5997_v11 = vrot.slane %v13678_v20, 1 }
 0x3f9   : > { %v4924_v29 = vor.u32 %v4922_v37, %v4921_v31  ;;  %v4549_v60 = vmul.f32 %v4448_v57, %v4213_v39  ;;  %v4062_v62 = vadd.f32 %v3994_v8, %v3755_v46  ;;  %5858 = vmatmul.bf16.gmra.mxu2 %v13562_v49  ;;  %v15076_v49 = vld [vmem:[#allocation3_spill] sm:$0xff]  ;;  %v5503_v57 = vshrl.u32 %v13626_v3, 16 }
 0x3fa   : > { %6563 = vmatmul.bf16.gmra.mxu0 %v11116_v41  ;;  %v4926_v3 = vrot.slane %v4921_v31, 4  ;;  %v15079_v31 = vrot.slane %v13631_v22, 1 }
 0x3fb   : > { %v4925_v63 = vsel %vm12683_vm10, %v4917_v40, %v4924_v29  ;;  %v4606_v18 = vpack.c.bf16 %v4549_v60, %v4549_v60  ;;  %v4114_v7 = vmul.f32 %v13596_v55, %v4062_v62  ;;  %v13676_v1 = vld [vmem:[#allocation2 + $0x88] sm:$0xff] }
 0x3fc   : > { %5140 = vst [vmem:[#allocation2 + $0x90] sm:$0xf] %v4925_v63  ;;  %v3068_v13 = vpop.f32.mrf.mxu2  ;;  %v13681_v48 = vld [vmem:[#allocation2 + $0x88] sm:$0xff]  ;;  %v5507_v12 = vshll.u32 %v13676_v1, 16  ;;  %v4453_v63 = vpop.permute.xlu2 %4452 }
 0x3fd   : > { %v4928_v41 = vshrl.u32 %v4606_v18, 16  ;;  %v4166_v8 = vadd.f32 %v13570_v34, %v4114_v7  ;;  %v3134_v37 = vadd.f32 %v3068_v13, %v15076_v49  ;;  %v4931_v29 = vshll.u32 %v4606_v18, 16  ;;  %v15077_v18 = vld [vmem:[#allocation4_spill] sm:$0xff] }
 0x3fe   : > { %v3692_v46 = vpop.f32.mrf.mxu3  ;;  %v5998_v7 = vsel %vm1071_vm3, %v5995_v36, %v5997_v11  ;;  %v5505_v13 = vor.u32 %v5503_v57, %v5501_v47  ;;  %v5509_v49 = vrot.slane %v5507_v12, 1  ;;  %v14932_v21 = vrot.slane %v13681_v48, 1 }
 0x3ff   : > { %v3999_v39 = vpop.f32.mrf.mxu0  ;;  %v4930_v40 = vrot.slane %v4928_v41, 7  ;;  %v4214_v60 = vmax.f32 %v4166_v8, 0.0  ;;  %v3756_v62 = vadd.f32 %v3690_v50, %v3134_v37  ;;  %v13687_v25 = vpop.f32.mrf.mxu1  ;;  %v15078_v8 = vld [vmem:[#allocation22_spill] sm:$0xff] }
 0x400   : > { %v2713_v50 = vadd.f32 %v15078_v8, %v15077_v18  ;;  %v5510_v37 = vsel %vm482_vm2, %v5505_v13, %v5509_v49  ;;  %v4458_v18 = vpop.permute.xlu0 %4457 }
 0x401   : > { %v4933_v59 = vor.u32 %v4931_v29, %v4930_v40  ;;  %v4550_v4 = vmul.f32 %v4453_v63, %v4214_v60  ;;  %v4063_v41 = vadd.f32 %v3997_v35, %v3756_v62  ;;  %v13708_v35 = vsel %vm1071_vm3, %v15079_v31, %v14932_v21  ;;  %v11117_v62 = vld [vmem:[#allocation2 + $0x24] sm:$0xff] }
 0x402   : > { %5727 = vmatmul.bf16.gmra.mxu1 %v5510_v37  ;;  %15080 = vst [vmem:[#allocation19_spill] sm:$0xff] %v13708_v35 }
 0x403   : > { %6134 = vmatmul.bf16.gmra.mxu3 %v5998_v7  ;;  %v4934_v9 = vsel %vm12683_vm10, %v4926_v3, %v4933_v59  ;;  %v4607_v0 = vpack.c.bf16 %v4550_v4, %v4550_v4  ;;  %v4115_v36 = vmul.f32 %v13596_v55, %v4063_v41  ;;  %v13701_v47 = vld [vmem:[#allocation2 + $0x8c] sm:$0xff] }
 0x404   : > { %5141 = vst [vmem:[#allocation2 + $0x94] sm:$0xf] %v4934_v9  ;;  %v3070_v57 = vpop.f32.mrf.mxu2  ;;  %v14931_v63 = vrot.slane %v13701_v47, 1  ;;  %v15081_v9 = vrot.slane %v13652_v43, 1  ;;  %v13727_v43 = vld [vmem:[#allocation2 + $0x28] sm:$0xff] }
 0x405   : > { %v4937_v12 = vshrl.u32 %v4607_v0, 16  ;;  %v4167_v29 = vadd.f32 %v13570_v34, %v4115_v36  ;;  %v3135_v60 = vadd.f32 %v3070_v57, %v2713_v50  ;;  %v4940_v13 = vshll.u32 %v4607_v0, 16 }
 0x406   : > { %v3695_v4 = vpop.f32.mrf.mxu3  ;;  %v13719_v8 = vsel %vm1071_vm3, %v15081_v9, %v14931_v63  ;;  %v4935_v50 = vrot.slane %v4930_v40, 4 }
 0x407   : > { %v4002_v59 = vpop.f32.mrf.mxu0  ;;  %v4939_v7 = vrot.slane %v4937_v12, 7  ;;  %v4215_v3 = vmax.f32 %v4167_v29, 0.0  ;;  %v3757_v41 = vadd.f32 %v3692_v46, %v3135_v60  ;;  %v13712_v22 = vpop.f32.mrf.mxu1  ;;  %15082 = vst [vmem:[#allocation3_spill] sm:$0xff] %v13719_v8  ;;  %v5999_v60 = vrot.slane %v13727_v43, 1 }
 0x409   : > { %v4942_v37 = vor.u32 %v4940_v13, %v4939_v7  ;;  %v4551_v36 = vmul.f32 %v4458_v18, %v4215_v3  ;;  %v4064_v31 = vadd.f32 %v3999_v39, %v3757_v41  ;;  %5863 = vmatmul.bf16.gmra.mxu2 %v13628_v10  ;;  %v15083_v10 = vld [vmem:[#allocation5_spill] sm:$0xff]  ;;  %v5511_v18 = vshrl.u32 %v13676_v1, 16 }
 0x40a   : > { %6568 = vmatmul.bf16.gmra.mxu0 %v11117_v62  ;;  %v4944_v21 = vrot.slane %v4939_v7, 4 }
 0x40b   : > { %v4943_v0 = vsel %vm12683_vm10, %v4935_v50, %v4942_v37  ;;  %v4608_v46 = vpack.c.bf16 %v4551_v36, %v4551_v36  ;;  %v4116_v57 = vmul.f32 %v13596_v55, %v4064_v31  ;;  %v13725_v12 = vld [vmem:[#allocation2 + $0x90] sm:$0xff] }
 0x40c   : > { %5142 = vst [vmem:[#allocation2 + $0x98] sm:$0xf] %v4943_v0  ;;  %v3073_v29 = vpop.f32.mrf.mxu2  ;;  %v13730_v40 = vld [vmem:[#allocation2 + $0x90] sm:$0xff]  ;;  %v5515_v9 = vshll.u32 %v13725_v12, 16  ;;  %v4463_v0 = vpop.permute.xlu1 %4462 }
 0x40d   : > { %v4946_v62 = vshrl.u32 %v4608_v46, 16  ;;  %v4168_v39 = vadd.f32 %v13570_v34, %v4116_v57  ;;  %v3136_v13 = vadd.f32 %v3073_v29, %v15083_v10  ;;  %v4949_v37 = vshll.u32 %v4608_v46, 16 }
 0x40e   : > { %v3697_v41 = vpop.f32.mrf.mxu3  ;;  %v6000_v57 = vsel %vm1071_vm3, %v5997_v11, %v5999_v60  ;;  %v5513_v29 = vor.u32 %v5511_v18, %v5509_v49  ;;  %v13743_v10 = vrot.slane %v5515_v9, 1  ;;  %v14934_v1 = vrot.slane %v13730_v40, 1 }
 0x40f   : > { %v4004_v3 = vpop.f32.mrf.mxu0  ;;  %v4948_v50 = vrot.slane %v4946_v62, 7  ;;  %v4216_v36 = vmax.f32 %v4168_v39, 0.0  ;;  %v3758_v31 = vadd.f32 %v3695_v4, %v3136_v13  ;;  %v13736_v63 = vpop.f32.mrf.mxu1  ;;  %v15084_v39 = vld [vmem:[#allocation6_spill] sm:$0xff]  ;;  %v15085_v4 = vld [vmem:[#allocation24_spill] sm:$0xff] }
 0x410   : > { %v2715_v13 = vadd.f32 %v15085_v4, %v15084_v39  ;;  %v5518_v8 = vsel %vm482_vm2, %v5513_v29, %v13743_v10  ;;  %v15088_v4 = vrot.slane %v13701_v47, 1  ;;  %v13782_v47 = vld [vmem:[#allocation2 + $0x30] sm:$0xff] }
 0x411   : > { %v4951_v35 = vor.u32 %v4949_v37, %v4948_v50  ;;  %v4552_v62 = vmul.f32 %v4463_v0, %v4216_v36  ;;  %v4065_v46 = vadd.f32 %v4002_v59, %v3758_v31  ;;  %v15086_v59 = vrot.slane %v13681_v48, 1  ;;  %v11170_v37 = vld [vmem:[%s14891_s5 + $0x108] sm:$0xff] }
 0x412   : > { %5732 = vmatmul.bf16.gmra.mxu1 %v5518_v8  ;;  %v11118_v0 = vld [vmem:[#allocation2 + $0x2c] sm:$0xff] }
 0x413   : > { %6139 = vmatmul.bf16.gmra.mxu3 %v6000_v57  ;;  %v4952_v30 = vsel %vm12683_vm10, %v4944_v21, %v4951_v35  ;;  %v4609_v11 = vpack.c.bf16 %v4552_v62, %v4552_v62  ;;  %v4117_v49 = vmul.f32 %v13596_v55, %v4065_v46  ;;  %v13753_v18 = vld [vmem:[#allocation2 + $0x94] sm:$0xff]  ;;  %v13760_v7 = vsel %vm1071_vm3, %v15086_v59, %v14934_v1 }
 0x414   : > { %15087 = vst [vmem:[#allocation4_spill] sm:$0xff] %v13760_v7  ;;  %v3075_v9 = vpop.f32.mrf.mxu2  ;;  %7185 = vmatpush.bf16.msrb.mxu1 %v11170_v37  ;;  %v14933_v57 = vrot.slane %v13753_v18, 1 }
 0x415   : > { %5143 = vst [vmem:[#allocation2 + $0x9c] sm:$0xf] %v4952_v30  ;;  %v4955_v21 = vshrl.u32 %v4609_v11, 16  ;;  %v4169_v35 = vadd.f32 %v13570_v34, %v4117_v49  ;;  %v3137_v36 = vadd.f32 %v3075_v9, %v2715_v13  ;;  %v4958_v29 = vshll.u32 %v4609_v11, 16  ;;  %v4468_v30 = vpop.permute.xlu2 %4467 }
 0x416   : > { %v3700_v31 = vpop.f32.mrf.mxu3  ;;  %v13774_v13 = vsel %vm1071_vm3, %v15088_v4, %v14933_v57  ;;  %v4953_v49 = vrot.slane %v4948_v50, 4  ;;  %v5519_v4 = vshrl.u32 %v13725_v12, 16  ;;  %v4473_v57 = vpop.permute.xlu0 %4472 }
 0x417   : > { %v4007_v8 = vpop.f32.mrf.mxu0  ;;  %v4957_v48 = vrot.slane %v4955_v21, 7  ;;  %v4217_v62 = vmax.f32 %v4169_v35, 0.0  ;;  %v3759_v46 = vadd.f32 %v3697_v41, %v3137_v36  ;;  %v13767_v39 = vpop.f32.mrf.mxu1  ;;  %15089 = vst [vmem:[#allocation22_spill] sm:$0xff] %v13774_v13 }
 0x419   : > { %v4960_v59 = vor.u32 %v4958_v29, %v4957_v48  ;;  %v4553_v9 = vmul.f32 %v4468_v30, %v4217_v62  ;;  %v4066_v37 = vadd.f32 %v4004_v3, %v3759_v46  ;;  %5868 = vmatmul.bf16.gmra.mxu2 %v13678_v20  ;;  %v15090_v20 = vld [vmem:[#allocation25_spill] sm:$0xff]  ;;  %v4962_v7 = vrot.slane %v4957_v48, 4 }
 0x41a   : > { %6573 = vmatmul.bf16.gmra.mxu0 %v11118_v0  ;;  %v6001_v0 = vrot.slane %v13782_v47, 1 }
 0x41b   : > { %v4961_v41 = vsel %vm12683_vm10, %v4953_v49, %v4960_v59  ;;  %v4610_v11 = vpack.c.bf16 %v4553_v9, %v4553_v9  ;;  %v4118_v21 = vmul.f32 %v13596_v55, %v4066_v37 }
 0x41c   : > { %v13780_v35 = vld [vmem:[#allocation2 + $0x98] sm:$0xff]  ;;  %5144 = vst [vmem:[#allocation2 + $0xa0] sm:$0xf] %v4961_v41  ;;  %v3078_v36 = vpop.f32.mrf.mxu2 }
 0x41d   : > { %v13785_v50 = vld [vmem:[#allocation2 + $0x98] sm:$0xff]  ;;  %v4964_v29 = vshrl.u32 %v4610_v11, 16  ;;  %v4170_v3 = vadd.f32 %v13570_v34, %v4118_v21  ;;  %v3138_v62 = vadd.f32 %v3078_v36, %v15090_v20  ;;  %v5523_v49 = vshll.u32 %v13780_v35, 16 }
 0x41e   : > { %v3702_v30 = vpop.f32.mrf.mxu3  ;;  %v4967_v9 = vshll.u32 %v4610_v11, 16  ;;  %v6002_v21 = vsel %vm1071_vm3, %v5999_v60, %v6001_v0  ;;  %v5521_v36 = vor.u32 %v5519_v4, %v13743_v10  ;;  %v14936_v12 = vrot.slane %v13785_v50, 1 }
 0x41f   : > { %v4009_v46 = vpop.f32.mrf.mxu0  ;;  %v4966_v59 = vrot.slane %v4964_v29, 7  ;;  %v4218_v37 = vmax.f32 %v4170_v3, 0.0  ;;  %v3760_v41 = vadd.f32 %v3700_v31, %v3138_v62  ;;  %v13791_v1 = vpop.f32.mrf.mxu1  ;;  %v5525_v20 = vrot.slane %v5523_v49, 1  ;;  %v15091_v3 = vld [vmem:[#allocation8_spill] sm:$0xff]  ;;  %v15092_v31 = vld [vmem:[#allocation7_spill] sm:$0xff] }
 0x420   : > { %v2717_v62 = vadd.f32 %v15092_v31, %v15091_v3 }
 0x421   : > { %v4969_v13 = vor.u32 %v4967_v9, %v4966_v59  ;;  %v4554_v29 = vmul.f32 %v4473_v57, %v4218_v37  ;;  %v4067_v11 = vadd.f32 %v4007_v8, %v3760_v41  ;;  %v5526_v61 = vsel %vm482_vm2, %v5521_v36, %v5525_v20  ;;  %v11119_v37 = vld [vmem:[#allocation2 + $0x34] sm:$0xff] }
 0x422   : > { %5737 = vmatmul.bf16.gmra.mxu1 %v5526_v61  ;;  %v15093_v57 = vrot.slane %v13730_v40, 1  ;;  %v4971_v31 = vrot.slane %v4966_v59, 4 }
 0x423   : > { %6144 = vmatmul.bf16.gmra.mxu3 %v6002_v21  ;;  %v4970_v58 = vsel %vm12683_vm10, %v4962_v7, %v4969_v13  ;;  %v4611_v16 = vpack.c.bf16 %v4554_v29, %v4554_v29  ;;  %v4119_v60 = vmul.f32 %v13596_v55, %v4067_v11  ;;  %v13806_v10 = vld [vmem:[#allocation2 + $0x9c] sm:$0xff]  ;;  %v4478_v11 = vpop.permute.xlu1 %4477 }
 0x424   : > { %v13813_v8 = vsel %vm1071_vm3, %v15093_v57, %v14936_v12  ;;  %5145 = vst [vmem:[#allocation2 + $0xa4] sm:$0xf] %v4970_v58  ;;  %v3080_v48 = vpop.f32.mrf.mxu2  ;;  %v14935_v61 = vrot.slane %v13806_v10, 1  ;;  %v15095_v58 = vrot.slane %v13753_v18, 1  ;;  %v13832_v18 = vld [vmem:[#allocation2 + $0x38] sm:$0xff] }
 0x425   : > { %15094 = vst [vmem:[#allocation5_spill] sm:$0xff] %v13813_v8  ;;  %v4973_v4 = vshrl.u32 %v4611_v16, 16  ;;  %v4171_v49 = vadd.f32 %v13570_v34, %v4119_v60  ;;  %v3139_v9 = vadd.f32 %v3080_v48, %v2717_v62  ;;  %v4976_v21 = vshll.u32 %v4611_v16, 16 }
 0x426   : > { %v3705_v13 = vpop.f32.mrf.mxu3  ;;  %v13824_v3 = vsel %vm1071_vm3, %v15095_v58, %v14935_v61 }
 0x427   : > { %v4012_v7 = vpop.f32.mrf.mxu0  ;;  %v4975_v41 = vrot.slane %v4973_v4, 7  ;;  %v4219_v36 = vmax.f32 %v4171_v49, 0.0  ;;  %v3761_v29 = vadd.f32 %v3702_v30, %v3139_v9  ;;  %v13817_v40 = vpop.f32.mrf.mxu1  ;;  %15096 = vst [vmem:[#allocation6_spill] sm:$0xff] %v13824_v3  ;;  %v6003_v9 = vrot.slane %v13832_v18, 1 }
 0x429   : > { %v4978_v62 = vor.u32 %v4976_v21, %v4975_v41  ;;  %v4555_v60 = vmul.f32 %v4478_v11, %v4219_v36  ;;  %v4068_v57 = vadd.f32 %v4009_v46, %v3761_v29  ;;  %5873 = vmatmul.bf16.gmra.mxu2 %v13727_v43  ;;  %v15097_v43 = vld [vmem:[#allocation26_spill] sm:$0xff]  ;;  %v5527_v11 = vshrl.u32 %v13780_v35, 16 }
 0x42a   : > { %6578 = vmatmul.bf16.gmra.mxu0 %v11119_v37  ;;  %v4980_v35 = vrot.slane %v4975_v41, 4  ;;  %v15100_v41 = vrot.slane %v13785_v50, 1 }
 0x42b   : > { %v4979_v16 = vsel %vm12683_vm10, %v4971_v31, %v4978_v62  ;;  %v4612_v30 = vpack.c.bf16 %v4555_v60, %v4555_v60  ;;  %v4120_v48 = vmul.f32 %v13596_v55, %v4068_v57  ;;  %v13830_v4 = vld [vmem:[#allocation2 + $0xa0] sm:$0xff] }
 0x42c   : > { %5146 = vst [vmem:[#allocation2 + $0xa8] sm:$0xf] %v4979_v16  ;;  %v3083_v49 = vpop.f32.mrf.mxu2  ;;  %v13835_v59 = vld [vmem:[#allocation2 + $0xa0] sm:$0xff]  ;;  %v5531_v58 = vshll.u32 %v13830_v4, 16  ;;  %v4483_v16 = vpop.permute.xlu2 %4482 }
 0x42d   : > { %v4982_v37 = vshrl.u32 %v4612_v30, 16  ;;  %v4172_v46 = vadd.f32 %v13570_v34, %v4120_v48  ;;  %v3140_v21 = vadd.f32 %v3083_v49, %v15097_v43  ;;  %v4985_v62 = vshll.u32 %v4612_v30, 16  ;;  %v15098_v30 = vld [vmem:[#allocation10_spill] sm:$0xff] }
 0x42e   : > { %v3707_v29 = vpop.f32.mrf.mxu3  ;;  %v6004_v48 = vsel %vm1071_vm3, %v6001_v0, %v6003_v9  ;;  %v5529_v49 = vor.u32 %v5527_v11, %v5525_v20  ;;  %v5533_v43 = vrot.slane %v5531_v58, 1  ;;  %v14938_v12 = vrot.slane %v13835_v59, 1 }
 0x42f   : > { %v4014_v36 = vpop.f32.mrf.mxu0  ;;  %v4984_v31 = vrot.slane %v4982_v37, 7  ;;  %v4220_v60 = vmax.f32 %v4172_v46, 0.0  ;;  %v3762_v57 = vadd.f32 %v3705_v13, %v3140_v21  ;;  %v13841_v61 = vpop.f32.mrf.mxu1  ;;  %v15099_v46 = vld [vmem:[#allocation9_spill] sm:$0xff] }
 0x430   : > { %v2719_v13 = vadd.f32 %v15099_v46, %v15098_v30  ;;  %v5534_v21 = vsel %vm482_vm2, %v5529_v49, %v5533_v43  ;;  %v4488_v30 = vpop.permute.xlu0 %4487 }
 0x431   : > { %v4987_v8 = vor.u32 %v4985_v62, %v4984_v31  ;;  %v4556_v3 = vmul.f32 %v4483_v16, %v4220_v60  ;;  %v4069_v37 = vadd.f32 %v4012_v7, %v3762_v57  ;;  %v13862_v7 = vsel %vm1071_vm3, %v15100_v41, %v14938_v12  ;;  %v11120_v57 = vld [vmem:[#allocation2 + $0x3c] sm:$0xff] }
 0x432   : > { %5742 = vmatmul.bf16.gmra.mxu1 %v5534_v21  ;;  %15101 = vst [vmem:[#allocation24_spill] sm:$0xff] %v13862_v7 }
 0x433   : > { %6149 = vmatmul.bf16.gmra.mxu3 %v6004_v48  ;;  %v4988_v45 = vsel %vm12683_vm10, %v4980_v35, %v4987_v8  ;;  %v4613_v15 = vpack.c.bf16 %v4556_v3, %v4556_v3  ;;  %v4121_v0 = vmul.f32 %v13596_v55, %v4069_v37  ;;  %v13855_v20 = vld [vmem:[#allocation2 + $0xa4] sm:$0xff] }
 0x434   : > { %5147 = vst [vmem:[#allocation2 + $0xac] sm:$0xf] %v4988_v45  ;;  %v3085_v11 = vpop.f32.mrf.mxu2  ;;  %v14937_v16 = vrot.slane %v13855_v20, 1  ;;  %v15102_v45 = vrot.slane %v13806_v10, 1  ;;  %v13881_v10 = vld [vmem:[#allocation2 + $0x40] sm:$0xff] }
 0x435   : > { %v4991_v58 = vshrl.u32 %v4613_v15, 16  ;;  %v4173_v62 = vadd.f32 %v13570_v34, %v4121_v0  ;;  %v3141_v60 = vadd.f32 %v3085_v11, %v2719_v13  ;;  %v4994_v49 = vshll.u32 %v4613_v15, 16 }
 0x436   : > { %v3710_v3 = vpop.f32.mrf.mxu3  ;;  %v13873_v46 = vsel %vm1071_vm3, %v15102_v45, %v14937_v16  ;;  %v4989_v13 = vrot.slane %v4984_v31, 4 }
 0x437   : > { %v4017_v8 = vpop.f32.mrf.mxu0  ;;  %v4993_v48 = vrot.slane %v4991_v58, 7  ;;  %v4221_v35 = vmax.f32 %v4173_v62, 0.0  ;;  %v3763_v37 = vadd.f32 %v3707_v29, %v3141_v60  ;;  %v13866_v50 = vpop.f32.mrf.mxu1  ;;  %15103 = vst [vmem:[#allocation25_spill] sm:$0xff] %v13873_v46  ;;  %v6005_v60 = vrot.slane %v13881_v10, 1 }
 0x439   : > { %v4996_v21 = vor.u32 %v4994_v49, %v4993_v48  ;;  %v4557_v0 = vmul.f32 %v4488_v30, %v4221_v35  ;;  %v4070_v41 = vadd.f32 %v4014_v36, %v3763_v37  ;;  %5878 = vmatmul.bf16.gmra.mxu2 %v13782_v47  ;;  %v15104_v47 = vld [vmem:[#allocation11_spill] sm:$0xff]  ;;  %v5535_v30 = vshrl.u32 %v13830_v4, 16 }
 0x43a   : > { %6583 = vmatmul.bf16.gmra.mxu0 %v11120_v57  ;;  %v4998_v12 = vrot.slane %v4993_v48, 4 }
 0x43b   : > { %v4997_v15 = vsel %vm12683_vm10, %v4989_v13, %v4996_v21  ;;  %v4614_v29 = vpack.c.bf16 %v4557_v0, %v4557_v0  ;;  %v4122_v11 = vmul.f32 %v13596_v55, %v4070_v41  ;;  %v13879_v58 = vld [vmem:[#allocation2 + $0xa8] sm:$0xff] }
 0x43c   : > { %5148 = vst [vmem:[#allocation2 + $0xb0] sm:$0xf] %v4997_v15  ;;  %v3088_v62 = vpop.f32.mrf.mxu2  ;;  %v13884_v31 = vld [vmem:[#allocation2 + $0xa8] sm:$0xff]  ;;  %v5539_v45 = vshll.u32 %v13879_v58, 16  ;;  %v4493_v15 = vpop.permute.xlu1 %4492 }
 0x43d   : > { %v5000_v57 = vshrl.u32 %v4614_v29, 16  ;;  %v4174_v36 = vadd.f32 %v13570_v34, %v4122_v11  ;;  %v3142_v49 = vadd.f32 %v3088_v62, %v15104_v47  ;;  %v5003_v21 = vshll.u32 %v4614_v29, 16 }
 0x43e   : > { %v3712_v37 = vpop.f32.mrf.mxu3  ;;  %v6006_v11 = vsel %vm1071_vm3, %v6003_v9, %v6005_v60  ;;  %v5537_v62 = vor.u32 %v5535_v30, %v5533_v43  ;;  %v13897_v47 = vrot.slane %v5539_v45, 1  ;;  %v14940_v4 = vrot.slane %v13884_v31, 1 }
 0x43f   : > { %v4019_v35 = vpop.f32.mrf.mxu0  ;;  %v5002_v13 = vrot.slane %v5000_v57, 7  ;;  %v4222_v0 = vmax.f32 %v4174_v36, 0.0  ;;  %v3764_v41 = vadd.f32 %v3710_v3, %v3142_v49  ;;  %v13890_v16 = vpop.f32.mrf.mxu1  ;;  %v15105_v36 = vld [vmem:[#allocation27_spill] sm:$0xff]  ;;  %v15106_v3 = vld [vmem:[#allocation12_spill] sm:$0xff] }
 0x440   : > { %v2721_v49 = vadd.f32 %v15106_v3, %v15105_v36  ;;  %v5542_v46 = vsel %vm482_vm2, %v5537_v62, %v13897_v47  ;;  %v15109_v3 = vrot.slane %v13855_v20, 1  ;;  %v13936_v20 = vld [vmem:[#allocation2 + $0x48] sm:$0xff] }
 0x441   : > { %v5005_v7 = vor.u32 %v5003_v21, %v5002_v13  ;;  %v4558_v57 = vmul.f32 %v4493_v15, %v4222_v0  ;;  %v4071_v29 = vadd.f32 %v4017_v8, %v3764_v41  ;;  %v15107_v8 = vrot.slane %v13835_v59, 1  ;;  %v11169_v21 = vld [vmem:[%s14891_s5 + $0x100] sm:$0xff] }
 0x442   : > { %5747 = vmatmul.bf16.gmra.mxu1 %v5542_v46  ;;  %v11121_v15 = vld [vmem:[#allocation2 + $0x44] sm:$0xff] }
 0x443   : > { %6154 = vmatmul.bf16.gmra.mxu3 %v6006_v11  ;;  %v5006_v44 = vsel %vm12683_vm10, %v4998_v12, %v5005_v7  ;;  %v4615_v9 = vpack.c.bf16 %v4558_v57, %v4558_v57  ;;  %v4123_v43 = vmul.f32 %v13596_v55, %v4071_v29  ;;  %v13907_v30 = vld [vmem:[#allocation2 + $0xac] sm:$0xff]  ;;  %v13914_v48 = vsel %vm1071_vm3, %v15107_v8, %v14940_v4 }
 0x444   : > { %15108 = vst [vmem:[#allocation8_spill] sm:$0xff] %v13914_v48  ;;  %v3090_v45 = vpop.f32.mrf.mxu2  ;;  %7186 = vmatpush.bf16.msrb.mxu1 %v11169_v21  ;;  %v14939_v11 = vrot.slane %v13907_v30, 1 }
 0x445   : > { %5149 = vst [vmem:[#allocation2 + $0xb4] sm:$0xf] %v5006_v44  ;;  %v5009_v12 = vshrl.u32 %v4615_v9, 16  ;;  %v4175_v7 = vadd.f32 %v13570_v34, %v4123_v43  ;;  %v3143_v0 = vadd.f32 %v3090_v45, %v2721_v49  ;;  %v5012_v62 = vshll.u32 %v4615_v9, 16  ;;  %v4498_v44 = vpop.permute.xlu2 %4497 }
 0x446   : > { %v3715_v41 = vpop.f32.mrf.mxu3  ;;  %v13928_v49 = vsel %vm1071_vm3, %v15109_v3, %v14939_v11  ;;  %v5007_v43 = vrot.slane %v5002_v13, 4  ;;  %v5543_v3 = vshrl.u32 %v13879_v58, 16  ;;  %v4503_v11 = vpop.permute.xlu0 %4502 }
 0x447   : > { %v4022_v46 = vpop.f32.mrf.mxu0  ;;  %v5011_v59 = vrot.slane %v5009_v12, 7  ;;  %v4223_v57 = vmax.f32 %v4175_v7, 0.0  ;;  %v3765_v29 = vadd.f32 %v3712_v37, %v3143_v0  ;;  %v13921_v36 = vpop.f32.mrf.mxu1  ;;  %15110 = vst [vmem:[#allocation7_spill] sm:$0xff] %v13928_v49 }
 0x449   : > { %v5014_v8 = vor.u32 %v5012_v62, %v5011_v59  ;;  %v4559_v45 = vmul.f32 %v4498_v44, %v4223_v57  ;;  %v4072_v21 = vadd.f32 %v4019_v35, %v3765_v29  ;;  %5883 = vmatmul.bf16.gmra.mxu2 %v13832_v18  ;;  %v15111_v18 = vld [vmem:[#allocation13_spill] sm:$0xff]  ;;  %v5016_v49 = vrot.slane %v5011_v59, 4 }
 0x44a   : > { %6588 = vmatmul.bf16.gmra.mxu0 %v11121_v15  ;;  %v14941_v15 = vrot.slane %v13936_v20, 1 }
 0x44b   : > { %v5015_v37 = vsel %vm12683_vm10, %v5007_v43, %v5014_v8  ;;  %v4616_v9 = vpack.c.bf16 %v4559_v45, %v4559_v45  ;;  %v4124_v12 = vmul.f32 %v13596_v55, %v4072_v21 }
 0x44c   : > { %v13934_v7 = vld [vmem:[#allocation2 + $0xb0] sm:$0xff]  ;;  %5150 = vst [vmem:[#allocation2 + $0xb8] sm:$0xf] %v5015_v37  ;;  %v3093_v0 = vpop.f32.mrf.mxu2 }
 0x44d   : > { %v13939_v13 = vld [vmem:[#allocation2 + $0xb0] sm:$0xff]  ;;  %v5018_v62 = vshrl.u32 %v4616_v9, 16  ;;  %v4176_v35 = vadd.f32 %v13570_v34, %v4124_v12  ;;  %v3144_v57 = vadd.f32 %v3093_v0, %v15111_v18  ;;  %v5547_v43 = vshll.u32 %v13934_v7, 16 }
 0x44e   : > { %v3717_v44 = vpop.f32.mrf.mxu3  ;;  %v5021_v45 = vshll.u32 %v4616_v9, 16  ;;  %v6008_v12 = vsel %vm1071_vm3, %v6005_v60, %v14941_v15  ;;  %v5545_v0 = vor.u32 %v5543_v3, %v13897_v47  ;;  %v14943_v48 = vrot.slane %v13939_v13, 1 }
 0x44f   : > { %v4024_v29 = vpop.f32.mrf.mxu0  ;;  %v5020_v8 = vrot.slane %v5018_v62, 7  ;;  %v4224_v21 = vmax.f32 %v4176_v35, 0.0  ;;  %v3766_v37 = vadd.f32 %v3715_v41, %v3144_v57  ;;  %v13945_v4 = vpop.f32.mrf.mxu1  ;;  %v13953_v18 = vrot.slane %v5547_v43, 1  ;;  %v15112_v41 = vld [vmem:[#allocation14_spill] sm:$0xff] }
 0x450   : > { %v2723_v57 = vadd.f32 %v13115_v6, %v15112_v41  ;;  %v11184_v41 = vld [vmem:[%s14891_s5 + $0x178] sm:$0xff] }
 0x451   : > { %v5023_v62 = vor.u32 %v5021_v45, %v5020_v8  ;;  %v4560_v9 = vmul.f32 %v4503_v11, %v4224_v21  ;;  %v4073_v35 = vadd.f32 %v4022_v46, %v3766_v37  ;;  %v5550_v14 = vsel %vm482_vm2, %v5545_v0, %v13953_v18  ;;  %v11122_v37 = vld [vmem:[#allocation2 + $0x4c] sm:$0xff]  ;;  %7498 = vmatpush.bf16.msra.mxu2 %v11184_v41 }
 0x452   : > { %5752 = vmatmul.bf16.gmra.mxu1 %v5550_v14  ;;  %v15113_v46 = vrot.slane %v13884_v31, 1 }
 0x453   : > { %6159 = vmatmul.bf16.gmra.mxu3 %v6008_v12  ;;  %v5024_v60 = vsel %vm12683_vm10, %v5016_v49, %v5023_v62  ;;  %v4617_v15 = vpack.c.bf16 %v4560_v9, %v4560_v9  ;;  %v4125_v47 = vmul.f32 %v13596_v55, %v4073_v35  ;;  %v13963_v3 = vld [vmem:[#allocation2 + $0xb4] sm:$0xff]  ;;  %v4508_v35 = vpop.permute.xlu1 %4507 }
 0x454   : > { %v13970_v11 = vsel %vm1071_vm3, %v15113_v46, %v14943_v48  ;;  %5151 = vst [vmem:[#allocation2 + $0xbc] sm:$0xf] %v5024_v60  ;;  %v3095_v6 = vpop.f32.mrf.mxu2  ;;  %v14942_v14 = vrot.slane %v13963_v3, 1 }
 0x455   : > { %15114 = vst [vmem:[#allocation26_spill] sm:$0xff] %v13970_v11  ;;  %v5027_v59 = vshrl.u32 %v4617_v15, 16  ;;  %v4177_v43 = vadd.f32 %v13570_v34, %v4125_v47  ;;  %v3145_v45 = vadd.f32 %v3095_v6, %v2723_v57  ;;  %v5030_v0 = vshll.u32 %v4617_v15, 16 }
 0x456   : > { %v6120_v21 = vpop.f32.mrf.mxu3  ;;  %v15115_v57 = vrot.slane %v13907_v30, 1  ;;  %v5025_v47 = vrot.slane %v5020_v8, 4 }
 0x457   : > { %v6554_v49 = vpop.f32.mrf.mxu0  ;;  %v5029_v12 = vrot.slane %v5027_v59, 7  ;;  %v4225_v62 = vmax.f32 %v4177_v43, 0.0  ;;  %v3767_v9 = vadd.f32 %v3717_v44, %v3145_v45  ;;  %v13974_v31 = vpop.f32.mrf.mxu1  ;;  %v11216_v44 = vld [vmem:[%s14891_s5 + $0x1b8] sm:$0xff] }
 0x458   : > { %v13984_v60 = vsel %vm1071_vm3, %v15115_v57, %v14942_v14  ;;  %7932 = vmatpush.bf16.msra.mxu3 %v11216_v44  ;;  %v4513_v44 = vpop.permute.xlu2 %4512  ;;  %v15117_v14 = vrot.slane %v13936_v20, 1 }
 0x459   : > { %15116 = vst [vmem:[#allocation10_spill] sm:$0xff] %v13984_v60  ;;  %v5032_v46 = vor.u32 %v5030_v0, %v5029_v12  ;;  %v4561_v15 = vmul.f32 %v4508_v35, %v4225_v62  ;;  %v4074_v6 = vadd.f32 %v4024_v29, %v3767_v9  ;;  %5888 = vmatmul.bf16.gmra.mxu2 %v13881_v10 }
 0x45a   : > { %6593 = vmatmul.bf16.gmra.mxu0 %v11122_v37  ;;  %v13995_v37 = vld [vmem:[#allocation2 + $0x50] sm:$0xff] }
 0x45b   : > { %v5033_v59 = vsel %vm12683_vm10, %v5025_v47, %v5032_v46  ;;  %v4618_v43 = vpack.c.bf16 %v4561_v15, %v4561_v15  ;;  %v4126_v30 = vmul.f32 %v13596_v55, %v4074_v6  ;;  %v13993_v45 = vld [vmem:[#allocation2 + $0xb8] sm:$0xff]  ;;  %v14944_v10 = vrot.slane %v13995_v37, 1 }
 0x45c   : > { %5152 = vst [vmem:[#allocation2 + $0xc0] sm:$0xf] %v5033_v59  ;;  %v5849_v8 = vpop.f32.mrf.mxu2  ;;  %v13998_v29 = vld [vmem:[#allocation2 + $0xb8] sm:$0xff]  ;;  %v5551_v55 = vshrl.u32 %v13934_v7, 16  ;;  %v5555_v57 = vshll.u32 %v13993_v45, 16 }
 0x45d   : > { %v5036_v0 = vshrl.u32 %v4618_v43, 16  ;;  %v4178_v62 = vadd.f32 %v13570_v34, %v4126_v30  ;;  %v5850_v9 = vadd.f32 %v5849_v8, %v13154_v24  ;;  %v5039_v46 = vshll.u32 %v4618_v43, 16  ;;  %v11247_v8 = vld [vmem:[%s14891_s5 + $0x1f8] sm:$0xff] }
 0x45e   : > { %v6122_v41 = vpop.f32.mrf.mxu3  ;;  %v6010_v34 = vsel %vm1071_vm3, %v15117_v14, %v14944_v10  ;;  %v5553_v24 = vor.u32 %v5551_v55, %v13953_v18  ;;  %v5557_v30 = vrot.slane %v5555_v57, 1  ;;  %v8803_v43 = vrot.slane %v13998_v29, 1  ;;  %8566 = vmatpush.bf16.msra.mxu0 %v11247_v8  ;;  %v11255_v57 = vld [vmem:[%s14891_s5 + $0x238] sm:$0xff] }
 0x45f   : > { %v6556_v35 = vpop.f32.mrf.mxu0  ;;  %v5038_v47 = vrot.slane %v5036_v0, 7  ;;  %v4226_v15 = vmax.f32 %v4178_v62, 0.0  ;;  %v6240_v6 = vadd.f32 %v6120_v21, %v5850_v9  ;;  %v14004_v59 = vpop.f32.mrf.mxu1  ;;  %v5034_v0 = vrot.slane %v5029_v12, 4  ;;  %8885 = vmatpush.bf16.msra.mxu1 %v11255_v57 }
 0x460   : > { %v5558_v48 = vsel %vm482_vm2, %v5553_v24, %v5557_v30  ;;  %v15118_v12 = vrot.slane %v13939_v13, 1  ;;  %v11123_v24 = vld [vmem:[#allocation2 + $0x54] sm:$0xff] }
 0x461   : > { %v5041_v21 = vor.u32 %v5039_v46, %v5038_v47  ;;  %v4562_v62 = vmul.f32 %v4513_v44, %v4226_v15  ;;  %v14016_v9 = vadd.f32 %v6554_v49, %v6240_v6 }
 0x462   : > { %5757 = vmatmul.bf16.gmra.mxu1 %v5558_v48  ;;  %v14027_v29 = vsel %vm1071_vm3, %v15118_v12, %v8803_v43  ;;  %v5155_v12 = vld [vmem:[#allocation2 + $0xcc] sm:$0x1] }
 0x463   : > { %6164 = vmatmul.bf16.gmra.mxu3 %v6010_v34  ;;  %v5042_v14 = vsel %vm12683_vm10, %v5034_v0, %v5041_v21  ;;  %v4619_v18 = vpack.c.bf16 %v4562_v62, %v4562_v62  ;;  %v5230_v55 = vld [vmem:[#allocation2 + $0xc0] sm:$0x1]  ;;  %15119 = vst [vmem:[#allocation9_spill] sm:$0xff] %v14027_v29 }
 0x464   : > { %5153 = vst [vmem:[#allocation2 + $0xc4] sm:$0xf] %v5042_v14  ;;  %v5851_v49 = vpop.f32.mrf.mxu2  ;;  %v5345_v46 = vunpack.c.l.b16 %v5230_v55  ;;  %v14029_v15 = vld [vmem:[#allocation2 + $0xbc] sm:$0xff]  ;;  %v15120_v55 = vrot.slane %v13963_v3, 1 }
 0x465   : > { %v5045_v6 = vshrl.u32 %v4619_v18, 16  ;;  %v5852_v44 = vadd.f32 %v5851_v49, %v13191_v54  ;;  %v7420_v0 = vrot.slane %v14029_v15, 1  ;;  %v5048_v21 = vshll.u32 %v4619_v18, 16 }
 0x466   : > { %v6125_v48 = vpop.f32.mrf.mxu3  ;;  %v14032_v8 = vpack.c.b16 %v5345_v46, %v5345_v46  ;;  %v5043_v54 = vrot.slane %v5038_v47, 4 }
 0x467   : > { %v6559_v34 = vpop.f32.mrf.mxu0  ;;  %v5047_v13 = vrot.slane %v5045_v6, 7  ;;  %v6241_v62 = vadd.f32 %v6122_v41, %v5852_v44  ;;  %v14035_v14 = vpop.f32.mrf.mxu1  ;;  %v14040_v10 = vsel %vm1071_vm3, %v15120_v55, %v7420_v0 }
 0x468   : > { %15121 = vst [vmem:[#allocation11_spill] sm:$0xff] %v14040_v10  ;;  %v5563_v15 = vshll.u32 %v14032_v8, 16 }
 0x469   : > { %v5050_v49 = vor.u32 %v5048_v21, %v5047_v13  ;;  %v5052_v57 = vrot.slane %v5047_v13, 4  ;;  %5893 = vmatmul.bf16.gmra.mxu2 %v13936_v20  ;;  %v14043_v46 = vadd.f32 %v6556_v35, %v6241_v62  ;;  %v14053_v20 = vld [vmem:[#allocation2 + $0x58] sm:$0xff]  ;;  %v5559_v21 = vshrl.u32 %v13993_v45, 16 }
 0x46a   : > { %6598 = vmatmul.bf16.gmra.mxu0 %v11123_v24  ;;  %v6011_v35 = vrot.slane %v14053_v20, 1  ;;  %v5565_v32 = vrot.slane %v5563_v15, 1 }
 0x46b   : > { %v5051_v41 = vsel %vm12683_vm10, %v5043_v54, %v5050_v49  ;;  %v5156_v6 = vsel %vm12590_vm6, %v5052_v57, %v5155_v12  ;;  %v14050_v44 = vld [vmem:[#allocation2 + $0xc0] sm:$0xff]  ;;  %v5561_v54 = vor.u32 %v5559_v21, %v5557_v30  ;;  %v11477_v49 = vld [vmem:[#allocation2 + $0xc] sm:$0xff]   ;;  %v15125_v30 = vunpack.c.h.b16 %v12726_v2 }
 0x46c   : > { %5154 = vst [vmem:[#allocation2 + $0xc8] sm:$0xf] %v5051_v41  ;;  %v5854_v3 = vpop.f32.mrf.mxu2  ;;  %v8805_v62 = vrot.slane %v14050_v44, 1  ;;  %v6837_v57 = vunpack.c.l.b16 %v11477_v49 }
 0x46d   : > { %5157 = vst [vmem:[#allocation2 + $0xcc] sm:$0x1] %v5156_v6  ;;  %v5855_v47 = vadd.f32 %v5854_v3, %v13223_v33  ;;  %v15124_v33 = vrot.slane %v13995_v37, 1  ;;  %v5566_v15 = vsel %vm482_vm2, %v5561_v54, %v5565_v32 }
 0x46e   : > { %v6127_v13 = vpop.f32.mrf.mxu3  ;;  %v14061_v41 = vsel %vm1071_vm3, %v8803_v43, %v8805_v62 }
 0x46f   : > { %v6561_v24 = vpop.f32.mrf.mxu0  ;;  %v6242_v55 = vadd.f32 %v6125_v48, %v5855_v47  ;;  %v14058_v12 = vpop.f32.mrf.mxu1  ;;  %15123 = vst [vmem:[#allocation27_spill] sm:$0xff] %v14061_v41  ;;  %v6012_v18 = vsel %vm1071_vm3, %v15124_v33, %v6011_v35  ;;  %v6886_v47 = vpack.c.b16 %v15125_v30, %v6837_v57  ;;  %v11478_v57 = vld [vmem:[#allocation2 + $0x14] sm:$0xff] }
 0x471   : > { %v14066_v6 = vadd.f32 %v6559_v34, %v6242_v55  ;;  %v11124_v34 = vld [vmem:[#allocation2 + $0x5c] sm:$0xff]  ;;  %v6914_v54 = vshll.u32 %v6886_v47, 16 }
 0x472   : > { %5762 = vmatmul.bf16.gmra.mxu1 %v5566_v15  ;;  %v6919_v15 = vshll.u32 %v11478_v57, 16 }
 0x473   : > { %6169 = vmatmul.bf16.gmra.mxu3 %v6012_v18  ;;  %v11168_v44 = vld [vmem:[#allocation2 + $0xc4] sm:$0xff] }
 0x474   : > { %v5158_v48 = vld [vmem:[#allocation2 + $0xcc] sm:$0xf]  ;;  %v5856_v3 = vpop.f32.mrf.mxu2  ;;  %v7422_v55 = vrot.slane %v11168_v44, 1 }
 0x475   : > { %v5159_v43 = vsel %vm12653_vm8, 0, %v5158_v48  ;;  %v5857_v49 = vadd.f32 %v5856_v3, %v13254_v28  ;;  %v6916_v48 = vrot.slane %v6914_v54, 1 }
 0x476   : > { %v6130_v29 = vpop.f32.mrf.mxu3  ;;  %5160 = vst [vmem:[#allocation2 + $0xcc] sm:$0xf] %v5159_v43  ;;  %v14077_v18 = vsel %vm1071_vm3, %v7420_v0, %v7422_v55  ;;  %v6912_v0 = vshrl.u32 %v6886_v47, 16 }
 0x477   : > { %v6564_v41 = vpop.f32.mrf.mxu0  ;;  %v6243_v33 = vadd.f32 %v6127_v13, %v5857_v49  ;;  %v14074_v32 = vpop.f32.mrf.mxu1  ;;  %15127 = vst [vmem:[#allocation12_spill] sm:$0xff] %v14077_v18  ;;  %v14083_v13 = vld [vmem:[#allocation2 + $0x60] sm:$0xff] }
 0x478   : > { %v6013_v21 = vrot.slane %v14083_v13, 1  ;;  %v6917_v54 = vor.u32 %v6916_v48, %v6912_v0 }
 0x479   : > { %5898 = vmatmul.bf16.gmra.mxu2 %v13995_v37  ;;  %v14080_v2 = vadd.f32 %v6561_v24, %v6243_v33 }
 0x47a   : > { %6603 = vmatmul.bf16.gmra.mxu0 %v11124_v34  ;;  %v6921_v34 = vrot.slane %v6919_v15, 1 }
 0x47c   : > { %v5859_v28 = vpop.f32.mrf.mxu2  ;;  %v6922_v47 = vsel %vm482_vm2, %v6917_v54, %v6921_v34 }
 0x47d   : > { %v5860_v3 = vadd.f32 %v5859_v28, %v13286_v56  ;;  %v6770_v43 = vld [vmem:[#allocation2 + $0xcc] sm:$0x1]  ;;  %v6014_v56 = vsel %vm1071_vm3, %v6011_v35, %v6013_v21 }
 0x47e   : > { %v6132_v44 = vpop.f32.mrf.mxu3  ;;  %v14086_v49 = vld [vmem:[#allocation2 + $0xc8] sm:$0xff]  ;;  %v6885_v37 = vunpack.c.l.b16 %v6770_v43 }
 0x47f   : > { %v6566_v30 = vpop.f32.mrf.mxu0  ;;  %15128 = vst [vmem:[#allocation13_spill] sm:$0xff] %v14086_v49  ;;  %v6244_v24 = vadd.f32 %v6130_v29, %v5860_v3  ;;  %v14945_v33 = vrot.slane %v14086_v49, 1  ;;  %v14089_v11 = vpop.f32.mrf.mxu1  ;;  %v11125_v43 = vld [vmem:[#allocation2 + $0x64] sm:$0xff] }
 0x480   : > { %v14091_v18 = vpack.c.b16 %v6885_v37, %v6885_v37 }
 0x481   : > { %v14094_v28 = vadd.f32 %v6564_v41, %v6244_v24  ;;  %v14099_v10 = vsel %vm1071_vm3, %v8805_v62, %v14945_v33  ;;  %v11183_v62 = vld [vmem:[%s14891_s5 + $0x170] sm:$0xff] }
 0x482   : > { %15129 = vst [vmem:[#allocation14_spill] sm:$0xff] %v14091_v18  ;;  %v7424_v29 = vrot.slane %v14091_v18, 1  ;;  %7187 = vmatmul.bf16.vlgmr.msrb.gmra.mxu1 %v6922_v47  ;;  %7499 = vmatpush.bf16.msra.mxu2 %v11183_v62 }
 0x483   : > { %15130 = vst [vmem:[#allocation28_spill] sm:$0xff] %v14099_v10  ;;  %6174 = vmatmul.bf16.gmra.mxu3 %v6014_v56 }
 0x484   : > { %v5861_v15 = vpop.f32.mrf.mxu2  ;;  %v14104_v48 = vsel %vm1071_vm3, %v7422_v55, %v7424_v29  ;;  %v11215_v55 = vld [vmem:[%s14891_s5 + $0x1b0] sm:$0xff] }
 0x485   : > { %15131 = vst [vmem:[#allocation15_spill] sm:$0xff] %v14104_v48  ;;  %v5862_v3 = vadd.f32 %v5861_v15, %v13328_v53  ;;  %v11480_v53 = vld [vmem:[#allocation2 + $0x1c] sm:$0xff]  ;;  %7933 = vmatpush.bf16.msra.mxu3 %v11215_v55  ;;  %v11481_v15 = vld [vmem:[#allocation2 + $0x68] sm:$0xff] }
 0x486   : > { %v6135_v41 = vpop.f32.mrf.mxu3  ;;  %v6927_v54 = vshll.u32 %v11480_v53, 16  ;;  %v6931_v48 = vshrl.u32 %v11480_v53, 16 }
 0x487   : > { %v6569_v35 = vpop.f32.mrf.mxu0  ;;  %v6245_v0 = vadd.f32 %v6132_v44, %v5862_v3  ;;  %v14107_v37 = vpop.f32.mrf.mxu1  ;;  %v6015_v3 = vrot.slane %v11481_v15, 1 }
 0x488   : > { %v6929_v33 = vrot.slane %v6927_v54, 1 }
 0x489   : > { %5903 = vmatmul.bf16.gmra.mxu2 %v14053_v20  ;;  %v14116_v24 = vadd.f32 %v6566_v30, %v6245_v0  ;;  %v11246_v30 = vld [vmem:[%s14891_s5 + $0x1f0] sm:$0xff]  ;;  %v6016_v0 = vsel %vm1071_vm3, %v6013_v21, %v6015_v3 }
 0x48a   : > { %6608 = vmatmul.bf16.gmra.mxu0 %v11125_v43  ;;  %v6923_v43 = vshrl.u32 %v11478_v57, 16  ;;  %v11254_v57 = vld [vmem:[%s14891_s5 + $0x230] sm:$0xff] }
 0x48b   : > { %8567 = vmatpush.bf16.msra.mxu0 %v11246_v30  ;;  %8886 = vmatpush.bf16.msra.mxu1 %v11254_v57 }
 0x48c   : > { %v5864_v44 = vpop.f32.mrf.mxu2  ;;  %v6925_v10 = vor.u32 %v6923_v43, %v6921_v34 }
 0x48d   : > { %v5865_v56 = vadd.f32 %v5864_v44, %v13386_v27  ;;  %v11126_v44 = vld [vmem:[#allocation2 + $0x6c] sm:$0xff] }
 0x48e   : > { %v6137_v29 = vpop.f32.mrf.mxu3  ;;  %v6930_v27 = vsel %vm482_vm2, %v6925_v10, %v6929_v33 }
 0x48f   : > { %v6571_v47 = vpop.f32.mrf.mxu0  ;;  %v6246_v20 = vadd.f32 %v6135_v41, %v5865_v56  ;;  %v14119_v49 = vpop.f32.mrf.mxu1 }
 0x491   : > { %v14125_v62 = vadd.f32 %v6569_v35, %v6246_v20  ;;  %v11482_v35 = vld [vmem:[#allocation2 + $0x24] sm:$0xff] }
 0x492   : > { %7192 = vmatmul.bf16.gmra.mxu1 %v6930_v27  ;;  %v6935_v43 = vshll.u32 %v11482_v35, 16 }
 0x493   : > { %6179 = vmatmul.bf16.gmra.mxu3 %v6016_v0 }
 0x494   : > { %v5866_v41 = vpop.f32.mrf.mxu2  ;;  %v6937_v57 = vrot.slane %v6935_v43, 1 }
 0x495   : > { %v5867_v34 = vadd.f32 %v5866_v41, %v13441_v42  ;;  %v11483_v42 = vld [vmem:[#allocation2 + $0x70] sm:$0xff] }
 0x496   : > { %v6140_v54 = vpop.f32.mrf.mxu3  ;;  %v6017_v41 = vrot.slane %v11483_v42, 1 }
 0x497   : > { %v6574_v55 = vpop.f32.mrf.mxu0  ;;  %v6247_v56 = vadd.f32 %v6137_v29, %v5867_v34  ;;  %v14132_v21 = vpop.f32.mrf.mxu1  ;;  %v6933_v34 = vor.u32 %v6931_v48, %v6929_v33  ;;  %v11484_v48 = vld [vmem:[#allocation2 + $0x2c] sm:$0xff] }
 0x498   : > { %15132 = vst [vmem:[#allocation51_spill] sm:$0xff] %v14132_v21  ;;  %v11127_v21 = vld [vmem:[#allocation2 + $0x74] sm:$0xff] }
 0x499   : > { %5908 = vmatmul.bf16.gmra.mxu2 %v14083_v13  ;;  %v14135_v10 = vadd.f32 %v6571_v47, %v6247_v56  ;;  %v6938_v47 = vsel %vm482_vm2, %v6933_v34, %v6937_v57  ;;  %v11485_v34 = vld [vmem:[#allocation2 + $0x78] sm:$0xff] }
 0x49a   : > { %6613 = vmatmul.bf16.gmra.mxu0 %v11126_v44  ;;  %v6018_v44 = vsel %vm1071_vm3, %v6015_v3, %v6017_v41 }
 0x49c   : > { %v5869_v20 = vpop.f32.mrf.mxu2 }
 0x49d   : > { %v5870_v30 = vadd.f32 %v5869_v20, %v13466_v23 }
 0x49e   : > { %v6142_v27 = vpop.f32.mrf.mxu3 }
 0x49f   : > { %v6576_v0 = vpop.f32.mrf.mxu0  ;;  %v6248_v60 = vadd.f32 %v6140_v54, %v5870_v30  ;;  %v14138_v29 = vpop.f32.mrf.mxu1 }
 0x4a0   : > { %15133 = vst [vmem:[#allocation52_spill] sm:$0xff] %v14138_v29 }
 0x4a1   : > { %v14141_v13 = vadd.f32 %v6574_v55, %v6248_v60  ;;  %v6943_v60 = vshll.u32 %v11484_v48, 16 }
 0x4a2   : > { %7197 = vmatmul.bf16.gmra.mxu1 %v6938_v47 }
 0x4a3   : > { %6184 = vmatmul.bf16.gmra.mxu3 %v6018_v44  ;;  %v6019_v44 = vrot.slane %v11485_v34, 1  ;;  %v6945_v47 = vrot.slane %v6943_v60, 1  ;;  %v11486_v60 = vld [vmem:[#allocation2 + $0x34] sm:$0xff] }
 0x4a4   : > { %v5871_v56 = vpop.f32.mrf.mxu2 }
 0x4a5   : > { %v5872_v23 = vadd.f32 %v5871_v56, %v13497_v26  ;;  %v6939_v26 = vshrl.u32 %v11482_v35, 16 }
 0x4a6   : > { %v6145_v18 = vpop.f32.mrf.mxu3 }
 0x4a7   : > { %v6579_v20 = vpop.f32.mrf.mxu0  ;;  %v6249_v53 = vadd.f32 %v6142_v27, %v5872_v23  ;;  %v14145_v54 = vpop.f32.mrf.mxu1  ;;  %v6020_v27 = vsel %vm1071_vm3, %v6017_v41, %v6019_v44  ;;  %v11182_v41 = vld [vmem:[%s14891_s5 + $0x168] sm:$0xff] }
 0x4a8   : > { %15134 = vst [vmem:[#allocation53_spill] sm:$0xff] %v14145_v54  ;;  %v11128_v54 = vld [vmem:[#allocation2 + $0x7c] sm:$0xff]  ;;  %7500 = vmatpush.bf16.msra.mxu2 %v11182_v41 }
 0x4a9   : > { %5913 = vmatmul.bf16.gmra.mxu2 %v11481_v15  ;;  %v14147_v33 = vadd.f32 %v6576_v0, %v6249_v53 }
 0x4aa   : > { %6618 = vmatmul.bf16.gmra.mxu0 %v11127_v21  ;;  %v6941_v21 = vor.u32 %v6939_v26, %v6937_v57  ;;  %v11214_v57 = vld [vmem:[%s14891_s5 + $0x1a8] sm:$0xff] }
 0x4ab   : > { %7934 = vmatpush.bf16.msra.mxu3 %v11214_v57 }
 0x4ac   : > { %v5874_v3 = vpop.f32.mrf.mxu2  ;;  %v6946_v0 = vsel %vm482_vm2, %v6941_v21, %v6945_v47 }
 0x4ad   : > { %v5875_v55 = vadd.f32 %v5874_v3, %v13521_v52 }
 0x4ae   : > { %v6147_v30 = vpop.f32.mrf.mxu3 }
 0x4af   : > { %v6581_v43 = vpop.f32.mrf.mxu0  ;;  %v6250_v56 = vadd.f32 %v6145_v18, %v5875_v55  ;;  %v14150_v29 = vpop.f32.mrf.mxu1 }
 0x4b0   : > { %15135 = vst [vmem:[#allocation54_spill] sm:$0xff] %v14150_v29 }
 0x4b1   : > { %v14153_v15 = vadd.f32 %v6579_v20, %v6250_v56  ;;  %v11487_v56 = vld [vmem:[#allocation2 + $0x80] sm:$0xff] }
 0x4b2   : > { %7202 = vmatmul.bf16.gmra.mxu1 %v6946_v0  ;;  %v6021_v21 = vrot.slane %v11487_v56, 1 }
 0x4b3   : > { %6189 = vmatmul.bf16.gmra.mxu3 %v6020_v27  ;;  %v6947_v27 = vshrl.u32 %v11484_v48, 16  ;;  %v11253_v48 = vld [vmem:[%s14891_s5 + $0x228] sm:$0xff] }
 0x4b4   : > { %v5876_v23 = vpop.f32.mrf.mxu2  ;;  %8887 = vmatpush.bf16.msra.mxu1 %v11253_v48 }
 0x4b5   : > { %v5877_v52 = vadd.f32 %v5876_v23, %v13548_v19  ;;  %v6951_v19 = vshll.u32 %v11486_v60, 16 }
 0x4b6   : > { %v6150_v3 = vpop.f32.mrf.mxu3 }
 0x4b7   : > { %v6584_v53 = vpop.f32.mrf.mxu0  ;;  %v6251_v35 = vadd.f32 %v6147_v30, %v5877_v52  ;;  %v14157_v18 = vpop.f32.mrf.mxu1  ;;  %v6953_v0 = vrot.slane %v6951_v19, 1  ;;  %v6949_v52 = vor.u32 %v6947_v27, %v6945_v47  ;;  %v11488_v27 = vld [vmem:[#allocation2 + $0x3c] sm:$0xff] }
 0x4b8   : > { %15136 = vst [vmem:[#allocation55_spill] sm:$0xff] %v14157_v18 }
 0x4b9   : > { %5918 = vmatmul.bf16.gmra.mxu2 %v11483_v42  ;;  %v14165_v20 = vadd.f32 %v6581_v43, %v6251_v35  ;;  %v11245_v43 = vld [vmem:[%s14891_s5 + $0x1e8] sm:$0xff]  ;;  %v6022_v35 = vsel %vm1071_vm3, %v6019_v44, %v6021_v21 }
 0x4ba   : > { %6623 = vmatmul.bf16.gmra.mxu0 %v11128_v54 }
 0x4bb   : > { %8568 = vmatpush.bf16.msra.mxu0 %v11245_v43 }
 0x4bc   : > { %v5879_v55 = vpop.f32.mrf.mxu2 }
 0x4bd   : > { %v5880_v54 = vadd.f32 %v5879_v55, %v13576_v38  ;;  %v6954_v38 = vsel %vm482_vm2, %v6949_v52, %v6953_v0  ;;  %v11129_v55 = vld [vmem:[#allocation2 + $0x84] sm:$0xff] }
 0x4be   : > { %v6152_v26 = vpop.f32.mrf.mxu3 }
 0x4bf   : > { %v6586_v30 = vpop.f32.mrf.mxu0  ;;  %v6252_v42 = vadd.f32 %v6150_v3, %v5880_v54  ;;  %v14168_v23 = vpop.f32.mrf.mxu1 }
 0x4c0   : > { %15137 = vst [vmem:[#allocation56_spill] sm:$0xff] %v14168_v23  ;;  %v11489_v23 = vld [vmem:[#allocation2 + $0x88] sm:$0xff] }
 0x4c1   : > { %v14174_v41 = vadd.f32 %v6584_v53, %v6252_v42  ;;  %v6959_v42 = vshll.u32 %v11488_v27, 16 }
 0x4c2   : > { %7207 = vmatmul.bf16.gmra.mxu1 %v6954_v38 }
 0x4c3   : > { %6194 = vmatmul.bf16.gmra.mxu3 %v6022_v35  ;;  %v6961_v18 = vrot.slane %v6959_v42, 1 }
 0x4c4   : > { %v5881_v3 = vpop.f32.mrf.mxu2 }
 0x4c5   : > { %v5882_v47 = vadd.f32 %v5881_v3, %v13613_v17  ;;  %v6023_v17 = vrot.slane %v11489_v23, 1  ;;  %v6955_v3 = vshrl.u32 %v11486_v60, 16 }
 0x4c6   : > { %v6155_v19 = vpop.f32.mrf.mxu3 }
 0x4c7   : > { %v6589_v57 = vpop.f32.mrf.mxu0  ;;  %v6253_v54 = vadd.f32 %v6152_v26, %v5882_v47  ;;  %v14181_v44 = vpop.f32.mrf.mxu1  ;;  %v6957_v26 = vor.u32 %v6955_v3, %v6953_v0  ;;  %v6024_v47 = vsel %vm1071_vm3, %v6021_v21, %v6023_v17  ;;  %v11490_v21 = vld [vmem:[#allocation2 + $0x44] sm:$0xff] }
 0x4c8   : > { %15138 = vst [vmem:[#allocation57_spill] sm:$0xff] %v14181_v44  ;;  %v11130_v44 = vld [vmem:[#allocation2 + $0x8c] sm:$0xff] }
 0x4c9   : > { %5923 = vmatmul.bf16.gmra.mxu2 %v11485_v34  ;;  %v14183_v53 = vadd.f32 %v6586_v30, %v6253_v54  ;;  %v6962_v30 = vsel %vm482_vm2, %v6957_v26, %v6961_v18  ;;  %v11491_v26 = vld [vmem:[#allocation2 + $0x90] sm:$0xff] }
 0x4ca   : > { %6628 = vmatmul.bf16.gmra.mxu0 %v11129_v55 }
 0x4cc   : > { %v5884_v52 = vpop.f32.mrf.mxu2 }
 0x4cd   : > { %v5885_v43 = vadd.f32 %v5884_v52, %v13637_v5 }
 0x4ce   : > { %v6157_v38 = vpop.f32.mrf.mxu3 }
 0x4cf   : > { %v6591_v35 = vpop.f32.mrf.mxu0  ;;  %v6254_v48 = vadd.f32 %v6155_v19, %v5885_v43  ;;  %v14186_v29 = vpop.f32.mrf.mxu1 }
 0x4d0   : > { %15139 = vst [vmem:[#allocation58_spill] sm:$0xff] %v14186_v29 }
 0x4d1   : > { %v14189_v34 = vadd.f32 %v6589_v57, %v6254_v48  ;;  %v6967_v57 = vshll.u32 %v11490_v21, 16 }
 0x4d2   : > { %7212 = vmatmul.bf16.gmra.mxu1 %v6962_v30 }
 0x4d3   : > { %6199 = vmatmul.bf16.gmra.mxu3 %v6024_v47  ;;  %v6025_v47 = vrot.slane %v11491_v26, 1  ;;  %v6969_v30 = vrot.slane %v6967_v57, 1  ;;  %v11492_v57 = vld [vmem:[#allocation2 + $0x4c] sm:$0xff] }
 0x4d4   : > { %v5886_v55 = vpop.f32.mrf.mxu2 }
 0x4d5   : > { %v5887_v5 = vadd.f32 %v5886_v55, %v13663_v51  ;;  %v6963_v51 = vshrl.u32 %v11488_v27, 16 }
 0x4d6   : > { %v6160_v52 = vpop.f32.mrf.mxu3 }
 0x4d7   : > { %v6594_v54 = vpop.f32.mrf.mxu0  ;;  %v6255_v60 = vadd.f32 %v6157_v38, %v5887_v5  ;;  %v14193_v19 = vpop.f32.mrf.mxu1  ;;  %v6026_v38 = vsel %vm1071_vm3, %v6023_v17, %v6025_v47  ;;  %v11213_v17 = vld [vmem:[%s14891_s5 + $0x1a0] sm:$0xff] }
 0x4d8   : > { %15140 = vst [vmem:[#allocation59_spill] sm:$0xff] %v14193_v19  ;;  %v11131_v19 = vld [vmem:[#allocation2 + $0x94] sm:$0xff]  ;;  %7935 = vmatpush.bf16.msra.mxu3 %v11213_v17 }
 0x4d9   : > { %5928 = vmatmul.bf16.gmra.mxu2 %v11487_v56  ;;  %v14195_v0 = vadd.f32 %v6591_v35, %v6255_v60 }
 0x4da   : > { %6633 = vmatmul.bf16.gmra.mxu0 %v11130_v44  ;;  %v6965_v44 = vor.u32 %v6963_v51, %v6961_v18  ;;  %v11181_v18 = vld [vmem:[%s14891_s5 + $0x160] sm:$0xff] }
 0x4db   : > { %7501 = vmatpush.bf16.msra.mxu2 %v11181_v18 }
 0x4dc   : > { %v5889_v42 = vpop.f32.mrf.mxu2  ;;  %v6970_v35 = vsel %vm482_vm2, %v6965_v44, %v6969_v30 }
 0x4dd   : > { %v5890_v43 = vadd.f32 %v5889_v42, %v13687_v25 }
 0x4de   : > { %v6162_v48 = vpop.f32.mrf.mxu3 }
 0x4df   : > { %v6596_v3 = vpop.f32.mrf.mxu0  ;;  %v6256_v55 = vadd.f32 %v6160_v52, %v5890_v43  ;;  %v14198_v29 = vpop.f32.mrf.mxu1 }
 0x4e0   : > { %15141 = vst [vmem:[#allocation60_spill] sm:$0xff] %v14198_v29 }
 0x4e1   : > { %v14201_v56 = vadd.f32 %v6594_v54, %v6256_v55  ;;  %v11493_v55 = vld [vmem:[#allocation2 + $0x98] sm:$0xff] }
 0x4e2   : > { %7217 = vmatmul.bf16.gmra.mxu1 %v6970_v35  ;;  %v6027_v44 = vrot.slane %v11493_v55, 1 }
 0x4e3   : > { %6204 = vmatmul.bf16.gmra.mxu3 %v6026_v38  ;;  %v6971_v38 = vshrl.u32 %v11490_v21, 16  ;;  %v11252_v21 = vld [vmem:[%s14891_s5 + $0x220] sm:$0xff] }
 0x4e4   : > { %v5891_v5 = vpop.f32.mrf.mxu2  ;;  %8888 = vmatpush.bf16.msra.mxu1 %v11252_v21 }
 0x4e5   : > { %v5892_v25 = vadd.f32 %v5891_v5, %v13712_v22  ;;  %v6975_v22 = vshll.u32 %v11492_v57, 16 }
 0x4e6   : > { %v6165_v42 = vpop.f32.mrf.mxu3 }
 0x4e7   : > { %v6599_v60 = vpop.f32.mrf.mxu0  ;;  %v6257_v27 = vadd.f32 %v6162_v48, %v5892_v25  ;;  %v14205_v52 = vpop.f32.mrf.mxu1  ;;  %v6977_v35 = vrot.slane %v6975_v22, 1  ;;  %v6973_v25 = vor.u32 %v6971_v38, %v6969_v30  ;;  %v11132_v22 = vld [vmem:[#allocation2 + $0x9c] sm:$0xff]  ;;  %v11494_v38 = vld [vmem:[#allocation2 + $0x54] sm:$0xff] }
 0x4e8   : > { %15142 = vst [vmem:[#allocation61_spill] sm:$0xff] %v14205_v52 }
 0x4e9   : > { %5933 = vmatmul.bf16.gmra.mxu2 %v11489_v23  ;;  %v14213_v54 = vadd.f32 %v6596_v3, %v6257_v27  ;;  %v6028_v3 = vsel %vm1071_vm3, %v6025_v47, %v6027_v44  ;;  %v11244_v27 = vld [vmem:[%s14891_s5 + $0x1e0] sm:$0xff] }
 0x4ea   : > { %6638 = vmatmul.bf16.gmra.mxu0 %v11131_v19 }
 0x4eb   : > { %8569 = vmatpush.bf16.msra.mxu0 %v11244_v27 }
 0x4ec   : > { %v5894_v43 = vpop.f32.mrf.mxu2 }
 0x4ed   : > { %v5895_v19 = vadd.f32 %v5894_v43, %v13736_v63  ;;  %v6978_v63 = vsel %vm482_vm2, %v6973_v25, %v6977_v35 }
 0x4ee   : > { %v6167_v51 = vpop.f32.mrf.mxu3 }
 0x4ef   : > { %v6601_v48 = vpop.f32.mrf.mxu0  ;;  %v6258_v23 = vadd.f32 %v6165_v42, %v5895_v19  ;;  %v14216_v5 = vpop.f32.mrf.mxu1 }
 0x4f0   : > { %15143 = vst [vmem:[#allocation62_spill] sm:$0xff] %v14216_v5  ;;  %v11495_v5 = vld [vmem:[#allocation2 + $0xa0] sm:$0xff] }
 0x4f1   : > { %v14222_v18 = vadd.f32 %v6599_v60, %v6258_v23  ;;  %v6983_v23 = vshll.u32 %v11494_v38, 16 }
 0x4f2   : > { %7222 = vmatmul.bf16.gmra.mxu1 %v6978_v63 }
 0x4f3   : > { %6209 = vmatmul.bf16.gmra.mxu3 %v6028_v3  ;;  %v6985_v52 = vrot.slane %v6983_v23, 1  ;;  %v11133_v23 = vld [vmem:[#allocation2 + $0xa4] sm:$0xff] }
 0x4f4   : > { %v5896_v42 = vpop.f32.mrf.mxu2 }
 0x4f5   : > { %v5897_v30 = vadd.f32 %v5896_v42, %v13767_v39  ;;  %v6029_v39 = vrot.slane %v11495_v5, 1  ;;  %v6979_v42 = vshrl.u32 %v11492_v57, 16 }
 0x4f6   : > { %v6170_v47 = vpop.f32.mrf.mxu3 }
 0x4f7   : > { %v6604_v17 = vpop.f32.mrf.mxu0  ;;  %v6259_v43 = vadd.f32 %v6167_v51, %v5897_v30  ;;  %v14229_v60 = vpop.f32.mrf.mxu1  ;;  %v6981_v51 = vor.u32 %v6979_v42, %v6977_v35 }
 0x4f9   : > { %5938 = vmatmul.bf16.gmra.mxu2 %v11491_v26  ;;  %v14231_v19 = vadd.f32 %v6601_v48, %v6259_v43  ;;  %v6030_v26 = vsel %vm1071_vm3, %v6027_v44, %v6029_v39  ;;  %v11496_v44 = vld [vmem:[#allocation2 + $0x5c] sm:$0xff] }
 0x4fa   : > { %6643 = vmatmul.bf16.gmra.mxu0 %v11132_v22  ;;  %v6986_v22 = vsel %vm482_vm2, %v6981_v51, %v6985_v52 }
 0x4fc   : > { %v5899_v25 = vpop.f32.mrf.mxu2 }
 0x4fd   : > { %v5900_v3 = vadd.f32 %v5899_v25, %v13791_v1 }
 0x4fe   : > { %v6172_v63 = vpop.f32.mrf.mxu3 }
 0x4ff   : > { %v6606_v27 = vpop.f32.mrf.mxu0  ;;  %v6260_v21 = vadd.f32 %v6170_v47, %v5900_v3  ;;  %v7188_v29 = vpop.f32.mrf.mxu1 }
 0x500   : > { %v14235_v30 = vadd.f32 %v7188_v29, %v14016_v9 }
 0x501   : > { %v14238_v48 = vadd.f32 %v6604_v17, %v6260_v21  ;;  %v6991_v17 = vshll.u32 %v11496_v44, 16 }
 0x502   : > { %7227 = vmatmul.bf16.gmra.mxu1 %v6986_v22 }
 0x503   : > { %6214 = vmatmul.bf16.gmra.mxu3 %v6030_v26  ;;  %v6987_v26 = vshrl.u32 %v11494_v38, 16  ;;  %v6993_v22 = vrot.slane %v6991_v17, 1 }
 0x504   : > { %v5901_v1 = vpop.f32.mrf.mxu2 }
 0x505   : > { %v5902_v43 = vadd.f32 %v5901_v1, %v13817_v40  ;;  %v6031_v40 = vrot.slane %v13879_v58, 1 }
 0x506   : > { %v6175_v57 = vpop.f32.mrf.mxu3 }
 0x507   : > { %v6609_v25 = vpop.f32.mrf.mxu0  ;;  %v6261_v47 = vadd.f32 %v6172_v63, %v5902_v43  ;;  %v7190_v35 = vpop.f32.mrf.mxu1  ;;  %v6989_v43 = vor.u32 %v6987_v26, %v6985_v52 }
 0x508   : > { %v14243_v9 = vadd.f32 %v7190_v35, %v14043_v46  ;;  %v11134_v35 = vld [vmem:[#allocation2 + $0xac] sm:$0xff] }
 0x509   : > { %5943 = vmatmul.bf16.gmra.mxu2 %v11493_v55  ;;  %v14245_v29 = vadd.f32 %v6606_v27, %v6261_v47  ;;  %v6032_v55 = vsel %vm1071_vm3, %v6029_v39, %v6031_v40 }
 0x50a   : > { %6648 = vmatmul.bf16.gmra.mxu0 %v11133_v23  ;;  %v6994_v23 = vsel %vm482_vm2, %v6989_v43, %v6993_v22 }
 0x50c   : > { %v5904_v3 = vpop.f32.mrf.mxu2 }
 0x50d   : > { %v5905_v42 = vadd.f32 %v5904_v3, %v13841_v61 }
 0x50e   : > { %v6177_v51 = vpop.f32.mrf.mxu3 }
 0x50f   : > { %v6611_v21 = vpop.f32.mrf.mxu0  ;;  %v6262_v63 = vadd.f32 %v6175_v57, %v5905_v42  ;;  %v7193_v1 = vpop.f32.mrf.mxu1 }
 0x510   : > { %v14250_v46 = vadd.f32 %v7193_v1, %v14066_v6  ;;  %v11180_v6 = vld [vmem:[%s14891_s5 + $0x158] sm:$0xff]  ;;  %v6033_v1 = vrot.slane %v13934_v7, 1 }
 0x511   : > { %v14253_v27 = vadd.f32 %v6609_v25, %v6262_v63  ;;  %v11212_v25 = vld [vmem:[%s14891_s5 + $0x198] sm:$0xff]  ;;  %7502 = vmatpush.bf16.msra.mxu2 %v11180_v6 }
 0x512   : > { %7232 = vmatmul.bf16.gmra.mxu1 %v6994_v23  ;;  %7936 = vmatpush.bf16.msra.mxu3 %v11212_v25  ;;  %v11251_v7 = vld [vmem:[%s14891_s5 + $0x218] sm:$0xff]  ;;  %v11498_v25 = vld [vmem:[#allocation2 + $0xa8] sm:$0xff] }
 0x513   : > { %6219 = vmatmul.bf16.gmra.mxu3 %v6032_v55  ;;  %8889 = vmatpush.bf16.msra.mxu1 %v11251_v7 }
 0x514   : > { %v5906_v61 = vpop.f32.mrf.mxu2 }
 0x515   : > { %v5907_v47 = vadd.f32 %v5906_v61, %v13866_v50  ;;  %v11497_v50 = vld [vmem:[#allocation2 + $0x64] sm:$0xff] }
 0x516   : > { %v6180_v38 = vpop.f32.mrf.mxu3  ;;  %v6999_v3 = vshll.u32 %v11497_v50, 16 }
 0x517   : > { %v6614_v58 = vpop.f32.mrf.mxu0  ;;  %v6263_v57 = vadd.f32 %v6177_v51, %v5907_v47  ;;  %v7195_v52 = vpop.f32.mrf.mxu1  ;;  %v11243_v47 = vld [vmem:[%s14891_s5 + $0x1d8] sm:$0xff] }
 0x518   : > { %v14261_v39 = vadd.f32 %v7195_v52, %v14080_v2  ;;  %v6995_v2 = vshrl.u32 %v11496_v44, 16  ;;  %v7001_v43 = vrot.slane %v6999_v3, 1  ;;  %8570 = vmatpush.bf16.msra.mxu0 %v11243_v47  ;;  %v11211_v52 = vld [vmem:[%s14891_s5 + $0x190] sm:$0xff] }
 0x519   : > { %5948 = vmatmul.bf16.gmra.mxu2 %v11495_v5  ;;  %v14266_v17 = vadd.f32 %v6611_v21, %v6263_v57  ;;  %v6034_v21 = vsel %vm1071_vm3, %v6031_v40, %v6033_v1  ;;  %7937 = vmatpush.bf16.msra.mxu3 %v11211_v52 }
 0x51a   : > { %6653 = vmatmul.bf16.gmra.mxu0 %v11134_v35  ;;  %v6997_v23 = vor.u32 %v6995_v2, %v6993_v22 }
 0x51c   : > { %v5909_v42 = vpop.f32.mrf.mxu2 }
 0x51d   : > { %v5910_v51 = vadd.f32 %v5909_v42, %v13890_v16  ;;  %v7002_v16 = vsel %vm482_vm2, %v6997_v23, %v7001_v43  ;;  %v11499_v42 = vld [vmem:[#allocation2 + $0x6c] sm:$0xff]  ;;  %v6035_v23 = vrot.slane %v13993_v45, 1 }
 0x51e   : > { %v6182_v63 = vpop.f32.mrf.mxu3 }
 0x51f   : > { %v6616_v26 = vpop.f32.mrf.mxu0  ;;  %v6264_v5 = vadd.f32 %v6180_v38, %v5910_v51  ;;  %v7198_v55 = vpop.f32.mrf.mxu1  ;;  %v11135_v38 = vld [vmem:[#allocation2 + $0xb4] sm:$0xff]  ;;  %v11210_v51 = vld [vmem:[%s14891_s5 + $0x188] sm:$0xff] }
 0x520   : > { %v14271_v61 = vadd.f32 %v7198_v55, %v14094_v28  ;;  %7938 = vmatpush.bf16.msra.mxu3 %v11210_v51 }
 0x521   : > { %v14277_v35 = vadd.f32 %v6614_v58, %v6264_v5 }
 0x522   : > { %7237 = vmatmul.bf16.gmra.mxu1 %v7002_v16  ;;  %v11179_v16 = vld [vmem:[%s14891_s5 + $0x150] sm:$0xff] }
 0x523   : > { %6224 = vmatmul.bf16.gmra.mxu3 %v6034_v21  ;;  %7503 = vmatpush.bf16.msra.mxu2 %v11179_v16 }
 0x524   : > { %v5911_v44 = vpop.f32.mrf.mxu2 }
 0x525   : > { %v5912_v28 = vadd.f32 %v5911_v44, %v13921_v36  ;;  %v7007_v36 = vshll.u32 %v11499_v42, 16 }
 0x526   : > { %v6185_v40 = vpop.f32.mrf.mxu3 }
 0x527   : > { %v6619_v22 = vpop.f32.mrf.mxu0  ;;  %v6265_v57 = vadd.f32 %v6182_v63, %v5912_v28  ;;  %v7200_v58 = vpop.f32.mrf.mxu1  ;;  %v7009_v21 = vrot.slane %v7007_v36, 1  ;;  %v6036_v28 = vsel %vm1071_vm3, %v6033_v1, %v6035_v23  ;;  %v11240_v36 = vld [vmem:[%s14891_s5 + $0x1c0] sm:$0xff] }
 0x528   : > { %v14288_v6 = vadd.f32 %v7200_v58, %v14116_v24  ;;  %v7003_v24 = vshrl.u32 %v11497_v50, 16 }
 0x529   : > { %5953 = vmatmul.bf16.gmra.mxu2 %v11498_v25  ;;  %v14290_v3 = vadd.f32 %v6616_v26, %v6265_v57  ;;  %v11242_v26 = vld [vmem:[%s14891_s5 + $0x1d0] sm:$0xff]  ;;  %v11136_v25 = vld [vmem:[#allocation2 + $0xbc] sm:$0xff] }
 0x52a   : > { %6658 = vmatmul.bf16.gmra.mxu0 %v11135_v38  ;;  %v7005_v44 = vor.u32 %v7003_v24, %v7001_v43  ;;  %v11178_v38 = vld [vmem:[%s14891_s5 + $0x148] sm:$0xff]  ;;  %v11500_v24 = vld [vmem:[#allocation2 + $0xb0] sm:$0xff] }
 0x52b   : > { %8571 = vmatpush.bf16.msra.mxu0 %v11242_v26  ;;  %7504 = vmatpush.bf16.msra.mxu2 %v11178_v38  ;;  %v11501_v26 = vld [vmem:[#allocation2 + $0x74] sm:$0xff] }
 0x52c   : > { %v5914_v63 = vpop.f32.mrf.mxu2  ;;  %v7010_v43 = vsel %vm482_vm2, %v7005_v44, %v7009_v21  ;;  %v6037_v44 = vrot.slane %v14032_v8, 1 }
 0x52d   : > { %v5915_v2 = vadd.f32 %v5914_v63, %v13945_v4  ;;  %v11209_v4 = vld [vmem:[%s14891_s5 + $0x180] sm:$0xff] }
 0x52e   : > { %v6187_v55 = vpop.f32.mrf.mxu3  ;;  %7939 = vmatpush.bf16.msra.mxu3 %v11209_v4 }
 0x52f   : > { %v6621_v5 = vpop.f32.mrf.mxu0  ;;  %v6266_v47 = vadd.f32 %v6185_v40, %v5915_v2  ;;  %v7203_v7 = vpop.f32.mrf.mxu1  ;;  %v11241_v40 = vld [vmem:[%s14891_s5 + $0x1c8] sm:$0xff] }
 0x530   : > { %v14307_v50 = vadd.f32 %v7203_v7, %v14125_v62  ;;  %8572 = vmatpush.bf16.msra.mxu0 %v11241_v40 }
 0x531   : > { %v14316_v57 = vadd.f32 %v6619_v22, %v6266_v47  ;;  %v11177_v22 = vld [vmem:[%s14891_s5 + $0x140] sm:$0xff]  ;;  %v7015_v47 = vshll.u32 %v11501_v26, 16 }
 0x532   : > { %7242 = vmatmul.bf16.gmra.mxu1 %v7010_v43  ;;  %7505 = vmatpush.bf16.msra.mxu2 %v11177_v22 }
 0x533   : > { %6229 = vmatmul.bf16.gmra.mxu3 %v6036_v28  ;;  %v7011_v28 = vshrl.u32 %v11499_v42, 16  ;;  %v7017_v40 = vrot.slane %v7015_v47, 1 }
 0x534   : > { %v5916_v62 = vpop.f32.mrf.mxu2  ;;  %8573 = vmatpush.bf16.msra.mxu0 %v11240_v36 }
 0x535   : > { %v5917_v1 = vadd.f32 %v5916_v62, %v13974_v31  ;;  %v7013_v43 = vor.u32 %v7011_v28, %v7009_v21 }
 0x536   : > { %v6190_v52 = vpop.f32.mrf.mxu3 }
 0x537   : > { %v6624_v58 = vpop.f32.mrf.mxu0  ;;  %v6267_v51 = vadd.f32 %v6187_v55, %v5917_v1  ;;  %v7205_v63 = vpop.f32.mrf.mxu1 }
 0x538   : > { %v14327_v2 = vadd.f32 %v7205_v63, %v14135_v10  ;;  %v11402_v63 = vld [vmem:[#allocation2 + $0x18] sm:$0xff]  }
 0x539   : > { %5958 = vmatmul.bf16.gmra.mxu2 %v11500_v24  ;;  %v14329_v31 = vadd.f32 %v6621_v5, %v6267_v51  ;;  %v6038_v5 = vsel %vm1071_vm3, %v6035_v23, %v6037_v44  ;;  %v11137_v51 = vld [vmem:[#allocation2 + $0xc4] sm:$0xff]  ;;  %v7019_v44 = vshrl.u32 %v11501_v26, 16  ;;  %v11250_v26 = vld [vmem:[%s14891_s5 + $0x210] sm:$0xff] }
 0x53a   : > { %6663 = vmatmul.bf16.gmra.mxu0 %v11136_v25  ;;  %v7018_v25 = vsel %vm482_vm2, %v7013_v43, %v7017_v40  ;;  %v11185_v43 = vld [vmem:[#allocation2 + $0x18] sm:$0xff]  ;;  %8890 = vmatpush.bf16.msra.mxu1 %v11250_v26  ;;  %v11186_v26 = vld [vmem:[#allocation2 + $0x20] sm:$0xff] }
 0x53c   : > { %v5919_v16 = vpop.f32.mrf.mxu2 }
 0x53d   : > { %v5920_v55 = vadd.f32 %v5919_v16, %v14004_v59 }
 0x53e   : > { %v6192_v7 = vpop.f32.mrf.mxu3 }
 0x53f   : > { %v6626_v4 = vpop.f32.mrf.mxu0  ;;  %v6268_v38 = vadd.f32 %v6190_v52, %v5920_v55  ;;  %v7208_v10 = vpop.f32.mrf.mxu1  ;;  %v8301_v55 = vshll.u32 %v11402_v63, 16 }
 0x540   : > { %v14334_v62 = vadd.f32 %v7208_v10, %v14141_v13 }
 0x541   : > { %v14337_v1 = vadd.f32 %v6624_v58, %v6268_v38  ;;  %v11502_v58 = vld [vmem:[#allocation2 + $0x7c] sm:$0xff] }
 0x542   : > { %7247 = vmatmul.bf16.gmra.mxu1 %v7018_v25  ;;  %v7023_v22 = vshll.u32 %v11502_v58, 16  ;;  %v11503_v38 = vld [vmem:[#allocation2 + $0x20] sm:$0xff] }
 0x543   : > { %6234 = vmatmul.bf16.gmra.mxu3 %v6038_v5  ;;  %v8306_v10 = vshll.u32 %v11503_v38, 16  ;;  %v7021_v5 = vor.u32 %v7019_v44, %v7017_v40 }
 0x544   : > { %v5921_v59 = vpop.f32.mrf.mxu2 }
 0x545   : > { %v5922_v36 = vadd.f32 %v5921_v59, %v14035_v14  ;;  %v8299_v59 = vshrl.u32 %v11402_v63, 16  ;;  %v15144_v63 = vld [vmem:[#allocation29_spill] sm:$0xff] }
 0x546   : > { %v6195_v42 = vpop.f32.mrf.mxu3 }
 0x547   : > { %v6629_v8 = vpop.f32.mrf.mxu0  ;;  %v6269_v52 = vadd.f32 %v6192_v7, %v5922_v36  ;;  %v7210_v21 = vpop.f32.mrf.mxu1  ;;  %v7025_v7 = vrot.slane %v7023_v22, 1  ;;  %v8308_v36 = vrot.slane %v8306_v10, 1 }
 0x548   : > { %v14342_v13 = vadd.f32 %v7210_v21, %v14147_v33 }
 0x549   : > { %5963 = vmatmul.bf16.gmra.mxu2 %v13993_v45  ;;  %v14345_v23 = vadd.f32 %v6626_v4, %v6269_v52  ;;  %v8303_v4 = vrot.slane %v8301_v55, 1  ;;  %v11504_v55 = vld [vmem:[#allocation2 + $0x84] sm:$0xff] }
 0x54a   : > { %6668 = vmatmul.bf16.gmra.mxu0 %v11137_v51  ;;  %v7031_v44 = vshll.u32 %v11504_v55, 16 }
 0x54c   : > { %v5924_v24 = vpop.f32.mrf.mxu2 }
 0x54d   : > { %v5925_v47 = vadd.f32 %v5924_v24, %v14058_v12  ;;  %v7026_v12 = vsel %vm482_vm2, %v7021_v5, %v7025_v7 }
 0x54e   : > { %v6197_v16 = vpop.f32.mrf.mxu3 }
 0x54f   : > { %v6631_v14 = vpop.f32.mrf.mxu0  ;;  %v6270_v28 = vadd.f32 %v6195_v42, %v5925_v47  ;;  %v7213_v33 = vpop.f32.mrf.mxu1 }
 0x550   : > { %v14349_v45 = vadd.f32 %v7213_v33, %v14153_v15  ;;  %v8304_v15 = vor.u32 %v8303_v4, %v8299_v59  ;;  %v11505_v4 = vld [vmem:[#allocation2 + $0x28] sm:$0xff] }
 0x551   : > { %v14351_v25 = vadd.f32 %v6629_v8, %v6270_v28 }
 0x552   : > { %7252 = vmatmul.bf16.gmra.mxu1 %v7026_v12  ;;  %v8309_v8 = vsel %vm482_vm2, %v8304_v15, %v8308_v36  ;;  %v8314_v12 = vshll.u32 %v11505_v4, 16 }
 0x553   : > { %7940 = vmatmul.bf16.vlgmr.msra.gmra.mxu3 %v11185_v43  ;;  %v7027_v43 = vshrl.u32 %v11502_v58, 16 }
 0x554   : > { %v5926_v42 = vpop.f32.mrf.mxu2  ;;  %v8316_v15 = vrot.slane %v8314_v12, 1 }
 0x555   : > { %v5927_v51 = vadd.f32 %v5926_v42, %v14074_v32 }
 0x556   : > { %v6200_v52 = vpop.f32.mrf.mxu3 }
 0x557   : > { %v6634_v40 = vpop.f32.mrf.mxu0  ;;  %v6271_v21 = vadd.f32 %v6197_v16, %v5927_v51  ;;  %v7215_v22 = vpop.f32.mrf.mxu1  ;;  %v7033_v16 = vrot.slane %v7031_v44, 1  ;;  %v15145_v44 = vld [vmem:[#allocation30_spill] sm:$0xff] }
 0x558   : > { %v14360_v24 = vadd.f32 %v7215_v22, %v14165_v20  ;;  %v7029_v20 = vor.u32 %v7027_v43, %v7025_v7 }
 0x559   : > { %7506 = vmatmul.bf16.vlgmr.msra.gmra.mxu2 %v15144_v63  ;;  %v14363_v47 = vadd.f32 %v6631_v14, %v6271_v21 }
 0x55a   : > { %8574 = vmatmul.bf16.vlgmr.msra.gmra.mxu0 %v8309_v8  ;;  %v7034_v51 = vsel %vm482_vm2, %v7029_v20, %v7033_v16 }
 0x55c   : > { %v5929_v28 = vpop.f32.mrf.mxu2 }
 0x55d   : > { %v5930_v32 = vadd.f32 %v5929_v28, %v14089_v11  ;;  %v8310_v11 = vshrl.u32 %v11503_v38, 16  ;;  %v11506_v38 = vld [vmem:[#allocation2 + $0x8c] sm:$0xff] }
 0x55e   : > { %v6202_v33 = vpop.f32.mrf.mxu3 }
 0x55f   : > { %v6636_v10 = vpop.f32.mrf.mxu0  ;;  %v6272_v5 = vadd.f32 %v6200_v52, %v5930_v32  ;;  %v7218_v59 = vpop.f32.mrf.mxu1  ;;  %v8312_v22 = vor.u32 %v8310_v11, %v8308_v36  ;;  %v7039_v32 = vshll.u32 %v11506_v38, 16  ;;  %v7035_v36 = vshrl.u32 %v11504_v55, 16  ;;  %v11187_v11 = vld [vmem:[#allocation2 + $0x28] sm:$0xff] }
 0x560   : > { %v14367_v42 = vadd.f32 %v7218_v59, %v14174_v41  ;;  %v15146_v55 = vld [vmem:[#allocation51_spill] sm:$0xff] }
 0x561   : > { %v14369_v14 = vadd.f32 %v6634_v40, %v6272_v5  ;;  %v8317_v7 = vsel %vm482_vm2, %v8312_v22, %v8316_v15 }
 0x562   : > { %7257 = vmatmul.bf16.gmra.mxu1 %v7034_v51 }
 0x563   : > { %7945 = vmatmul.bf16.gmra.mxu3 %v11186_v26  ;;  %v11507_v26 = vld [vmem:[#allocation2 + $0x30] sm:$0xff] }
 0x564   : > { %v5931_v21 = vpop.f32.mrf.mxu2  ;;  %v8322_v20 = vshll.u32 %v11507_v26, 16 }
 0x565   : > { %v5932_v58 = vadd.f32 %v5931_v21, %v14107_v37 }
 0x566   : > { %v6205_v8 = vpop.f32.mrf.mxu3  ;;  %v8324_v22 = vrot.slane %v8322_v20, 1  ;;  %v15148_v20 = vld [vmem:[#allocation52_spill] sm:$0xff] }
 0x567   : > { %v6639_v52 = vpop.f32.mrf.mxu0  ;;  %v6273_v63 = vadd.f32 %v6202_v33, %v5932_v58  ;;  %v7220_v41 = vpop.f32.mrf.mxu1  ;;  %v7041_v33 = vrot.slane %v7039_v32, 1 }
 0x568   : > { %v14375_v40 = vadd.f32 %v7220_v41, %v14183_v53  ;;  %v7037_v53 = vor.u32 %v7035_v36, %v7033_v16 }
 0x569   : > { %7511 = vmatmul.bf16.gmra.mxu2 %v15145_v44  ;;  %v14378_v28 = vadd.f32 %v6636_v10, %v6273_v63 }
 0x56a   : > { %8579 = vmatmul.bf16.gmra.mxu0 %v8317_v7  ;;  %v7042_v58 = vsel %vm482_vm2, %v7037_v53, %v7041_v33 }
 0x56c   : > { %v5934_v43 = vpop.f32.mrf.mxu2 }
 0x56d   : > { %v5935_v37 = vadd.f32 %v5934_v43, %v14119_v49  ;;  %v8318_v49 = vshrl.u32 %v11505_v4, 16  ;;  %v15147_v43 = vld [vmem:[#allocation31_spill] sm:$0xff]  ;;  %v11508_v4 = vld [vmem:[#allocation2 + $0x94] sm:$0xff] }
 0x56e   : > { %v6207_v12 = vpop.f32.mrf.mxu3  ;;  %v7047_v36 = vshll.u32 %v11508_v4, 16 }
 0x56f   : > { %v6641_v5 = vpop.f32.mrf.mxu0  ;;  %v6274_v59 = vadd.f32 %v6205_v8, %v5935_v37  ;;  %v7223_v51 = vpop.f32.mrf.mxu1  ;;  %v8320_v44 = vor.u32 %v8318_v49, %v8316_v15  ;;  %v7043_v15 = vshrl.u32 %v11506_v38, 16  ;;  %v11509_v49 = vld [vmem:[#allocation2 + $0x38] sm:$0xff]  ;;  %v11249_v38 = vld [vmem:[%s14891_s5 + $0x208] sm:$0xff] }
 0x570   : > { %v14382_v21 = vadd.f32 %v7223_v51, %v14189_v34  ;;  %8891 = vmatpush.bf16.msra.mxu1 %v11249_v38 }
 0x571   : > { %v14384_v10 = vadd.f32 %v6639_v52, %v6274_v59  ;;  %v8325_v16 = vsel %vm482_vm2, %v8320_v44, %v8324_v22 }
 0x572   : > { %7262 = vmatmul.bf16.gmra.mxu1 %v7042_v58 }
 0x573   : > { %7950 = vmatmul.bf16.gmra.mxu3 %v11187_v11 }
 0x574   : > { %v5936_v63 = vpop.f32.mrf.mxu2 }
 0x575   : > { %v5937_v7 = vadd.f32 %v5936_v63, %v15146_v55  ;;  %v8330_v63 = vshll.u32 %v11509_v49, 16 }
 0x576   : > { %v6210_v41 = vpop.f32.mrf.mxu3 }
 0x577   : > { %v6644_v8 = vpop.f32.mrf.mxu0  ;;  %v6275_v32 = vadd.f32 %v6207_v12, %v5937_v7  ;;  %v7225_v34 = vpop.f32.mrf.mxu1  ;;  %v7049_v12 = vrot.slane %v7047_v36, 1  ;;  %v11188_v7 = vld [vmem:[#allocation2 + $0x30] sm:$0xff] }
 0x578   : > { %v14390_v52 = vadd.f32 %v7225_v34, %v14195_v0  ;;  %v7045_v0 = vor.u32 %v7043_v15, %v7041_v33  ;;  %v8332_v34 = vrot.slane %v8330_v63, 1  ;;  %v11510_v63 = vld [vmem:[#allocation2 + $0x9c] sm:$0xff] }
 0x579   : > { %7516 = vmatmul.bf16.gmra.mxu2 %v15147_v43  ;;  %v14393_v37 = vadd.f32 %v6641_v5, %v6275_v32  ;;  %v15150_v43 = vld [vmem:[#allocation53_spill] sm:$0xff] }
 0x57a   : > { %8584 = vmatmul.bf16.gmra.mxu0 %v8325_v16  ;;  %v7050_v32 = vsel %vm482_vm2, %v7045_v0, %v7049_v12  ;;  %v8326_v16 = vshrl.u32 %v11507_v26, 16  ;;  %v15152_v26 = vld [vmem:[#allocation34_spill] sm:$0xff] }
 0x57b   : > { %v15153_v0 = vld [vmem:[#allocation54_spill] sm:$0xff] }
 0x57c   : > { %v5939_v59 = vpop.f32.mrf.mxu2 }
 0x57d   : > { %v5940_v51 = vadd.f32 %v5939_v59, %v15148_v20  ;;  %v8328_v20 = vor.u32 %v8326_v16, %v8324_v22  ;;  %v7051_v16 = vshrl.u32 %v11508_v4, 16  ;;  %v15155_v4 = vld [vmem:[#allocation55_spill] sm:$0xff] }
 0x57e   : > { %v6212_v53 = vpop.f32.mrf.mxu3 }
 0x57f   : > { %v6646_v11 = vpop.f32.mrf.mxu0  ;;  %v6276_v58 = vadd.f32 %v6210_v41, %v5940_v51  ;;  %v7228_v55 = vpop.f32.mrf.mxu1 }
 0x580   : > { %v14397_v44 = vadd.f32 %v7228_v55, %v14201_v56  ;;  %v7055_v55 = vshll.u32 %v11510_v63, 16 }
 0x581   : > { %v14399_v5 = vadd.f32 %v6644_v8, %v6276_v58  ;;  %v8333_v8 = vsel %vm482_vm2, %v8328_v20, %v8332_v34 }
 0x582   : > { %15149 = vst [vmem:[#allocation29_spill] sm:$0xff] %v14397_v44  ;;  %7267 = vmatmul.bf16.gmra.mxu1 %v7050_v32 }
 0x583   : > { %7955 = vmatmul.bf16.gmra.mxu3 %v11188_v7 }
 0x584   : > { %v5941_v41 = vpop.f32.mrf.mxu2 }
 0x585   : > { %v5942_v36 = vadd.f32 %v5941_v41, %v15150_v43  ;;  %v11511_v43 = vld [vmem:[#allocation2 + $0x40] sm:$0xff] }
 0x586   : > { %v6215_v33 = vpop.f32.mrf.mxu3 }
 0x587   : > { %v6649_v59 = vpop.f32.mrf.mxu0  ;;  %v6277_v56 = vadd.f32 %v6212_v53, %v5942_v36  ;;  %v7230_v51 = vpop.f32.mrf.mxu1  ;;  %v7057_v53 = vrot.slane %v7055_v55, 1  ;;  %v8338_v36 = vshll.u32 %v11511_v43, 16 }
 0x588   : > { %v14408_v15 = vadd.f32 %v7230_v51, %v14213_v54  ;;  %v7053_v54 = vor.u32 %v7051_v16, %v7049_v12  ;;  %v15157_v16 = vld [vmem:[#allocation36_spill] sm:$0xff] }
 0x589   : > { %7521 = vmatmul.bf16.gmra.mxu2 %v15152_v26  ;;  %v14411_v58 = vadd.f32 %v6646_v11, %v6277_v56  ;;  %v8334_v26 = vshrl.u32 %v11509_v49, 16  ;;  %v11512_v49 = vld [vmem:[#allocation2 + $0xa4] sm:$0xff] }
 0x58a   : > { %8589 = vmatmul.bf16.gmra.mxu0 %v8333_v8  ;;  %15151 = vst [vmem:[#allocation30_spill] sm:$0xff] %v14408_v15  ;;  %v11189_v8 = vld [vmem:[#allocation2 + $0x38] sm:$0xff]  ;;  %v7058_v56 = vsel %vm482_vm2, %v7053_v54, %v7057_v53 }
 0x58b   : > { %v8336_v15 = vor.u32 %v8334_v26, %v8332_v34  ;;  %v7059_v34 = vshrl.u32 %v11510_v63, 16  ;;  %v15160_v63 = vld [vmem:[#allocation57_spill] sm:$0xff] }
 0x58c   : > { %v5944_v7 = vpop.f32.mrf.mxu2 }
 0x58d   : > { %v5945_v32 = vadd.f32 %v5944_v7, %v15153_v0  ;;  %v8340_v7 = vrot.slane %v8338_v36, 1  ;;  %v7063_v36 = vshll.u32 %v11512_v49, 16 }
 0x58e   : > { %v6217_v22 = vpop.f32.mrf.mxu3 }
 0x58f   : > { %v6651_v41 = vpop.f32.mrf.mxu0  ;;  %v6278_v38 = vadd.f32 %v6215_v33, %v5945_v32  ;;  %v7233_v20 = vpop.f32.mrf.mxu1  ;;  %v8341_v12 = vsel %vm482_vm2, %v8336_v15, %v8340_v7  ;;  %v11513_v15 = vld [vmem:[#allocation2 + $0x48] sm:$0xff] }
 0x590   : > { %v14415_v51 = vadd.f32 %v7233_v20, %v14222_v18 }
 0x591   : > { %v14417_v11 = vadd.f32 %v6649_v59, %v6278_v38 }
 0x592   : > { %15154 = vst [vmem:[#allocation51_spill] sm:$0xff] %v14415_v51  ;;  %7272 = vmatmul.bf16.gmra.mxu1 %v7058_v56 }
 0x593   : > { %7960 = vmatmul.bf16.gmra.mxu3 %v11189_v8  ;;  %v15158_v8 = vld [vmem:[#allocation56_spill] sm:$0xff] }
 0x594   : > { %v5946_v0 = vpop.f32.mrf.mxu2 }
 0x595   : > { %v5947_v55 = vadd.f32 %v5946_v0, %v15155_v4  ;;  %v8346_v4 = vshll.u32 %v11513_v15, 16 }
 0x596   : > { %v6220_v32 = vpop.f32.mrf.mxu3 }
 0x597   : > { %v6654_v33 = vpop.f32.mrf.mxu0  ;;  %v6279_v44 = vadd.f32 %v6217_v22, %v5947_v55  ;;  %v7235_v18 = vpop.f32.mrf.mxu1  ;;  %v7065_v22 = vrot.slane %v7063_v36, 1 }
 0x598   : > { %v14423_v59 = vadd.f32 %v7235_v18, %v14231_v19  ;;  %v7061_v19 = vor.u32 %v7059_v34, %v7057_v53  ;;  %v15162_v34 = vld [vmem:[#allocation38_spill] sm:$0xff] }
 0x599   : > { %7526 = vmatmul.bf16.gmra.mxu2 %v15157_v16  ;;  %v14426_v38 = vadd.f32 %v6651_v41, %v6279_v44  ;;  %v8342_v16 = vshrl.u32 %v11511_v43, 16  ;;  %v11514_v43 = vld [vmem:[#allocation2 + $0xac] sm:$0xff] }
 0x59a   : > { %8594 = vmatmul.bf16.gmra.mxu0 %v8341_v12  ;;  %15156 = vst [vmem:[#allocation31_spill] sm:$0xff] %v14423_v59  ;;  %v11190_v12 = vld [vmem:[#allocation2 + $0x40] sm:$0xff]  ;;  %v7066_v41 = vsel %vm482_vm2, %v7061_v19, %v7065_v22 }
 0x59b   : > { %v8344_v59 = vor.u32 %v8342_v16, %v8340_v7  ;;  %v7067_v7 = vshrl.u32 %v11512_v49, 16  ;;  %v11248_v49 = vld [vmem:[%s14891_s5 + $0x200] sm:$0xff] }
 0x59c   : > { %v5949_v20 = vpop.f32.mrf.mxu2  ;;  %8892 = vmatpush.bf16.msra.mxu1 %v11248_v49 }
 0x59d   : > { %v5950_v54 = vadd.f32 %v5949_v20, %v15158_v8  ;;  %v8348_v20 = vrot.slane %v8346_v4, 1  ;;  %v7071_v4 = vshll.u32 %v11514_v43, 16 }
 0x59e   : > { %v6222_v0 = vpop.f32.mrf.mxu3 }
 0x59f   : > { %v6656_v56 = vpop.f32.mrf.mxu0  ;;  %v6280_v26 = vadd.f32 %v6220_v32, %v5950_v54  ;;  %v7238_v55 = vpop.f32.mrf.mxu1  ;;  %v8349_v53 = vsel %vm482_vm2, %v8344_v59, %v8348_v20  ;;  %v11515_v59 = vld [vmem:[#allocation2 + $0x50] sm:$0xff] }
 0x5a0   : > { %v14430_v18 = vadd.f32 %v7238_v55, %v14238_v48 }
 0x5a1   : > { %v14432_v44 = vadd.f32 %v6654_v33, %v6280_v26 }
 0x5a2   : > { %15159 = vst [vmem:[#allocation52_spill] sm:$0xff] %v14430_v18  ;;  %7277 = vmatmul.bf16.gmra.mxu1 %v7066_v41 }
 0x5a3   : > { %7965 = vmatmul.bf16.gmra.mxu3 %v11190_v12  ;;  %v15163_v12 = vld [vmem:[#allocation58_spill] sm:$0xff] }
 0x5a4   : > { %v5951_v8 = vpop.f32.mrf.mxu2 }
 0x5a5   : > { %v5952_v36 = vadd.f32 %v5951_v8, %v15160_v63  ;;  %v8354_v63 = vshll.u32 %v11515_v59, 16 }
 0x5a6   : > { %v6225_v54 = vpop.f32.mrf.mxu3 }
 0x5a7   : > { %v6659_v32 = vpop.f32.mrf.mxu0  ;;  %v6281_v51 = vadd.f32 %v6222_v0, %v5952_v36  ;;  %v7240_v48 = vpop.f32.mrf.mxu1  ;;  %v7073_v0 = vrot.slane %v7071_v4, 1  ;;  %v15165_v4 = vld [vmem:[#allocation59_spill] sm:$0xff] }
 0x5a8   : > { %v14438_v33 = vadd.f32 %v7240_v48, %v14245_v29  ;;  %v7069_v29 = vor.u32 %v7067_v7, %v7065_v22 }
 0x5a9   : > { %7531 = vmatmul.bf16.gmra.mxu2 %v15162_v34  ;;  %v14441_v26 = vadd.f32 %v6656_v56, %v6281_v51  ;;  %v8350_v34 = vshrl.u32 %v11513_v15, 16  ;;  %v15167_v15 = vld [vmem:[#allocation40_spill] sm:$0xff] }
 0x5aa   : > { %8599 = vmatmul.bf16.gmra.mxu0 %v8349_v53  ;;  %15161 = vst [vmem:[#allocation53_spill] sm:$0xff] %v14438_v33  ;;  %v11191_v53 = vld [vmem:[#allocation2 + $0x48] sm:$0xff]  ;;  %v7074_v56 = vsel %vm482_vm2, %v7069_v29, %v7073_v0  ;;  %v11192_v33 = vld [vmem:[#allocation2 + $0x50] sm:$0xff] }
 0x5ab   : > { %v8352_v7 = vor.u32 %v8350_v34, %v8348_v20  ;;  %v7075_v34 = vshrl.u32 %v11514_v43, 16  ;;  %v15169_v43 = vld [vmem:[#allocation61_spill] sm:$0xff] }
 0x5ac   : > { %v5954_v55 = vpop.f32.mrf.mxu2 }
 0x5ad   : > { %v5955_v19 = vadd.f32 %v5954_v55, %v15163_v12  ;;  %v8356_v55 = vrot.slane %v8354_v63, 1 }
 0x5ae   : > { %v6227_v8 = vpop.f32.mrf.mxu3 }
 0x5af   : > { %v6661_v41 = vpop.f32.mrf.mxu0  ;;  %v6282_v16 = vadd.f32 %v6225_v54, %v5955_v19  ;;  %v7243_v36 = vpop.f32.mrf.mxu1 }
 0x5b0   : > { %v14445_v48 = vadd.f32 %v7243_v36, %v14253_v27 }
 0x5b1   : > { %v14447_v51 = vadd.f32 %v6659_v32, %v6282_v16  ;;  %v8357_v32 = vsel %vm482_vm2, %v8352_v7, %v8356_v55 }
 0x5b2   : > { %15164 = vst [vmem:[#allocation34_spill] sm:$0xff] %v14445_v48  ;;  %7282 = vmatmul.bf16.gmra.mxu1 %v7074_v56 }
 0x5b3   : > { %7970 = vmatmul.bf16.gmra.mxu3 %v11191_v53  ;;  %v11516_v53 = vld [vmem:[#allocation2 + $0xb4] sm:$0xff] }
 0x5b4   : > { %v5956_v54 = vpop.f32.mrf.mxu2  ;;  %v7079_v29 = vshll.u32 %v11516_v53, 16 }
 0x5b5   : > { %v5957_v12 = vadd.f32 %v5956_v54, %v15165_v4  ;;  %v15168_v54 = vld [vmem:[#allocation60_spill] sm:$0xff] }
 0x5b6   : > { %v6230_v22 = vpop.f32.mrf.mxu3 }
 0x5b7   : > { %v6664_v19 = vpop.f32.mrf.mxu0  ;;  %v6283_v27 = vadd.f32 %v6227_v8, %v5957_v12  ;;  %v7245_v16 = vpop.f32.mrf.mxu1  ;;  %v7081_v8 = vrot.slane %v7079_v29, 1  ;;  %v11517_v12 = vld [vmem:[#allocation2 + $0x58] sm:$0xff] }
 0x5b8   : > { %v14456_v36 = vadd.f32 %v7245_v16, %v14266_v17  ;;  %v8362_v7 = vshll.u32 %v11517_v12, 16  ;;  %v7077_v17 = vor.u32 %v7075_v34, %v7073_v0 }
 0x5b9   : > { %7536 = vmatmul.bf16.gmra.mxu2 %v15167_v15  ;;  %v14459_v63 = vadd.f32 %v6661_v41, %v6283_v27  ;;  %v8358_v15 = vshrl.u32 %v11515_v59, 16  ;;  %v11518_v59 = vld [vmem:[#allocation2 + $0xbc] sm:$0xff] }
 0x5ba   : > { %8604 = vmatmul.bf16.gmra.mxu0 %v8357_v32  ;;  %15166 = vst [vmem:[#allocation54_spill] sm:$0xff] %v14456_v36  ;;  %v7082_v27 = vsel %vm482_vm2, %v7077_v17, %v7081_v8 }
 0x5bb   : > { %v8360_v36 = vor.u32 %v8358_v15, %v8356_v55  ;;  %v7083_v55 = vshrl.u32 %v11516_v53, 16 }
 0x5bc   : > { %v5959_v56 = vpop.f32.mrf.mxu2 }
 0x5bd   : > { %v5960_v4 = vadd.f32 %v5959_v56, %v15168_v54  ;;  %v8364_v56 = vrot.slane %v8362_v7, 1 }
 0x5be   : > { %v6232_v20 = vpop.f32.mrf.mxu3 }
 0x5bf   : > { %v6666_v48 = vpop.f32.mrf.mxu0  ;;  %v6284_v49 = vadd.f32 %v6230_v22, %v5960_v4  ;;  %v7248_v32 = vpop.f32.mrf.mxu1  ;;  %v8365_v0 = vsel %vm482_vm2, %v8360_v36, %v8364_v56  ;;  %v11519_v36 = vld [vmem:[#allocation2 + $0x60] sm:$0xff] }
 0x5c0   : > { %v14463_v16 = vadd.f32 %v7248_v32, %v14277_v35  ;;  %v15172_v32 = vld [vmem:[#allocation62_spill] sm:$0xff] }
 0x5c1   : > { %v14465_v41 = vadd.f32 %v6664_v19, %v6284_v49  ;;  %v7087_v49 = vshll.u32 %v11518_v59, 16 }
 0x5c2   : > { %7287 = vmatmul.bf16.gmra.mxu1 %v7082_v27 }
 0x5c3   : > { %7975 = vmatmul.bf16.gmra.mxu3 %v11192_v33  ;;  %v15171_v33 = vld [vmem:[#allocation42_spill] sm:$0xff] }
 0x5c4   : > { %v5961_v54 = vpop.f32.mrf.mxu2 }
 0x5c5   : > { %v5962_v29 = vadd.f32 %v5961_v54, %v15169_v43  ;;  %v8370_v43 = vshll.u32 %v11519_v36, 16 }
 0x5c6   : > { %v6235_v4 = vpop.f32.mrf.mxu3 }
 0x5c7   : > { %v6669_v22 = vpop.f32.mrf.mxu0  ;;  %v6285_v18 = vadd.f32 %v6232_v20, %v5962_v29  ;;  %v7250_v35 = vpop.f32.mrf.mxu1  ;;  %v7089_v20 = vrot.slane %v7087_v49, 1 }
 0x5c8   : > { %v14471_v19 = vadd.f32 %v7250_v35, %v14290_v3  ;;  %v7085_v3 = vor.u32 %v7083_v55, %v7081_v8  ;;  %v15173_v55 = vld [vmem:[#allocation44_spill] sm:$0xff] }
 0x5c9   : > { %7541 = vmatmul.bf16.gmra.mxu2 %v15171_v33  ;;  %v14474_v34 = vadd.f32 %v6666_v48, %v6285_v18  ;;  %v8366_v33 = vshrl.u32 %v11517_v12, 16  ;;  %v11520_v12 = vld [vmem:[#allocation2 + $0xc4] sm:$0xff] }
 0x5ca   : > { %8609 = vmatmul.bf16.gmra.mxu0 %v8365_v0  ;;  %15170 = vst [vmem:[#allocation55_spill] sm:$0xff] %v14471_v19  ;;  %v11193_v0 = vld [vmem:[#allocation2 + $0x58] sm:$0xff]  ;;  %v7090_v48 = vsel %vm482_vm2, %v7085_v3, %v7089_v20 }
 0x5cc   : > { %v5964_v7 = vpop.f32.mrf.mxu2 }
 0x5cd   : > { %v5965_v17 = vadd.f32 %v5964_v7, %v15172_v32  ;;  %v8372_v7 = vrot.slane %v8370_v43, 1  ;;  %v7095_v43 = vshll.u32 %v11520_v12, 16 }
 0x5ce   : > { %v6237_v54 = vpop.f32.mrf.mxu3 }
 0x5cf   : > { %v6671_v27 = vpop.f32.mrf.mxu0  ;;  %v6286_v15 = vadd.f32 %v6235_v4, %v5965_v17  ;;  %v7253_v29 = vpop.f32.mrf.mxu1  ;;  %v8368_v17 = vor.u32 %v8366_v33, %v8364_v56  ;;  %v7091_v56 = vshrl.u32 %v11518_v59, 16  ;;  %v11521_v33 = vld [vmem:[#allocation2 + $0x68] sm:$0xff] }
 0x5d0   : > { %v14478_v35 = vadd.f32 %v7253_v29, %v14316_v57 }
 0x5d1   : > { %v14480_v18 = vadd.f32 %v6669_v22, %v6286_v15  ;;  %v8373_v8 = vsel %vm482_vm2, %v8368_v17, %v8372_v7  ;;  %v11194_v17 = vld [vmem:[#allocation2 + $0x60] sm:$0xff] }
 0x5d2   : > { %7292 = vmatmul.bf16.gmra.mxu1 %v7090_v48 }
 0x5d3   : > { %7980 = vmatmul.bf16.gmra.mxu3 %v11193_v0 }
 0x5d4   : > { %v5966_v32 = vpop.f32.mrf.mxu2 }
 0x5d5   : > { %v5967_v53 = vadd.f32 %v5966_v32, %v14229_v60  ;;  %v8378_v32 = vshll.u32 %v11521_v33, 16 }
 0x5d6   : > { %v7941_v49 = vpop.f32.mrf.mxu3 }
 0x5d7   : > { %v8575_v4 = vpop.f32.mrf.mxu0  ;;  %v6287_v19 = vadd.f32 %v6237_v54, %v5967_v53  ;;  %v7255_v57 = vpop.f32.mrf.mxu1  ;;  %v7097_v54 = vrot.slane %v7095_v43, 1 }
 0x5d8   : > { %v14486_v22 = vadd.f32 %v7255_v57, %v14329_v31  ;;  %v7093_v31 = vor.u32 %v7091_v56, %v7089_v20  ;;  %v8380_v57 = vrot.slane %v8378_v32, 1  ;;  %v15174_v56 = vld [vmem:[#allocation45_spill] sm:$0xff] }
 0x5d9   : > { %7546 = vmatmul.bf16.gmra.mxu2 %v15173_v55  ;;  %v14489_v15 = vadd.f32 %v6671_v27, %v6287_v19 }
 0x5da   : > { %8614 = vmatmul.bf16.gmra.mxu0 %v8373_v8  ;;  %v7098_v27 = vsel %vm482_vm2, %v7093_v31, %v7097_v54 }
 0x5dc   : > { %v7507_v29 = vpop.f32.mrf.mxu2 }
 0x5dd   : > { %v7627_v60 = vadd.f32 %v7507_v29, %v14235_v30  ;;  %v8374_v30 = vshrl.u32 %v11519_v36, 16  ;;  %v15175_v36 = vld [vmem:[#allocation14_spill] sm:$0xff] }
 0x5de   : > { %v7943_v3 = vpop.f32.mrf.mxu3  ;;  %v7103_v32 = vshll.u32 %v15175_v36, 16 }
 0x5df   : > { %v8577_v0 = vpop.f32.mrf.mxu0  ;;  %v8061_v48 = vadd.f32 %v7941_v49, %v7627_v60  ;;  %v7258_v53 = vpop.f32.mrf.mxu1  ;;  %v8376_v29 = vor.u32 %v8374_v30, %v8372_v7  ;;  %v7099_v7 = vshrl.u32 %v11520_v12, 16  ;;  %v11522_v30 = vld [vmem:[#allocation2 + $0x70] sm:$0xff] }
 0x5e0   : > { %v14493_v8 = vadd.f32 %v7258_v53, %v14337_v1 }
 0x5e1   : > { %v14495_v19 = vadd.f32 %v8575_v4, %v8061_v48  ;;  %v8381_v20 = vsel %vm482_vm2, %v8376_v29, %v8380_v57  ;;  %v11195_v29 = vld [vmem:[#allocation2 + $0x68] sm:$0xff] }
 0x5e2   : > { %7297 = vmatmul.bf16.gmra.mxu1 %v7098_v27 }
 0x5e3   : > { %7985 = vmatmul.bf16.gmra.mxu3 %v11194_v17 }
 0x5e4   : > { %v7509_v55 = vpop.f32.mrf.mxu2 }
 0x5e5   : > { %v7628_v59 = vadd.f32 %v7509_v55, %v14243_v9  ;;  %v8386_v55 = vshll.u32 %v11522_v30, 16 }
 0x5e6   : > { %v7946_v43 = vpop.f32.mrf.mxu3 }
 0x5e7   : > { %v8580_v49 = vpop.f32.mrf.mxu0  ;;  %v8062_v60 = vadd.f32 %v7943_v3, %v7628_v59  ;;  %v7260_v1 = vpop.f32.mrf.mxu1  ;;  %v7105_v3 = vrot.slane %v7103_v32, 1 }
 0x5e8   : > { %v14501_v4 = vadd.f32 %v7260_v1, %v14345_v23  ;;  %v7101_v23 = vor.u32 %v7099_v7, %v7097_v54  ;;  %v8388_v1 = vrot.slane %v8386_v55, 1  ;;  %v11403_v7 = vld [vmem:[#allocation2 + $0x18] sm:$0xf0] }
 0x5e9   : > { %7551 = vmatmul.bf16.gmra.mxu2 %v15174_v56  ;;  %v14504_v48 = vadd.f32 %v8577_v0, %v8062_v60 }
 0x5ea   : > { %8619 = vmatmul.bf16.gmra.mxu0 %v8381_v20  ;;  %v7106_v60 = vsel %vm482_vm2, %v7101_v23, %v7105_v3 }
 0x5ec   : > { %v7512_v53 = vpop.f32.mrf.mxu2 }
 0x5ed   : > { %v7629_v9 = vadd.f32 %v7512_v53, %v14250_v46  ;;  %v8382_v46 = vshrl.u32 %v11521_v33, 16  ;;  %v11404_v33 = vld [vmem:[#allocation2 + $0x18] sm:$0xe] }
 0x5ee   : > { %v7948_v31 = vpop.f32.mrf.mxu3  ;;  %v11405_v55 = vor.u32 %v11404_v33, %v11403_v7 }
 0x5ef   : > { %v8582_v17 = vpop.f32.mrf.mxu0  ;;  %v8063_v27 = vadd.f32 %v7946_v43, %v7629_v9  ;;  %v7263_v59 = vpop.f32.mrf.mxu1  ;;  %v8384_v32 = vor.u32 %v8382_v46, %v8380_v57  ;;  %v15176_v9 = vld [vmem:[#allocation46_spill] sm:$0xff]  ;;  %v11196_v46 = vld [vmem:[#allocation2 + $0x70] sm:$0xff] }
 0x5f0   : > { %v14509_v20 = vadd.f32 %v7263_v59, %v14351_v25 }
 0x5f1   : > { %v14511_v0 = vadd.f32 %v8580_v49, %v8063_v27  ;;  %v8389_v54 = vsel %vm482_vm2, %v8384_v32, %v8388_v1 }
 0x5f2   : > { %7302 = vmatmul.bf16.gmra.mxu1 %v7106_v60 }
 0x5f3   : > { %7990 = vmatmul.bf16.gmra.mxu3 %v11195_v29  ;;  %v11523_v29 = vld [vmem:[#allocation2 + $0x78] sm:$0xff] }
 0x5f4   : > { %v7514_v56 = vpop.f32.mrf.mxu2  ;;  %v8394_v23 = vshll.u32 %v11523_v29, 16 }
 0x5f5   : > { %v7630_v12 = vadd.f32 %v7514_v56, %v14261_v39  ;;  %v8764_v56 = vrot.slane %v11405_v55, 1 }
 0x5f6   : > { %v7951_v36 = vpop.f32.mrf.mxu3 }
 0x5f7   : > { %v8585_v43 = vpop.f32.mrf.mxu0  ;;  %v8064_v53 = vadd.f32 %v7948_v31, %v7630_v12  ;;  %v7265_v25 = vpop.f32.mrf.mxu1 }
 0x5f8   : > { %v14517_v49 = vadd.f32 %v7265_v25, %v14363_v47 }
 0x5f9   : > { %7556 = vmatmul.bf16.gmra.mxu2 %v15176_v9  ;;  %v14520_v3 = vadd.f32 %v8582_v17, %v8064_v53  ;;  %v15177_v17 = vld [vmem:[#allocation32_spill] sm:$0xff] }
 0x5fa   : > { %8624 = vmatmul.bf16.gmra.mxu0 %v8389_v54  ;;  %v15178_v32 = vrot.slane %v15177_v17, 1  ;;  %v8396_v54 = vrot.slane %v8394_v23, 1  ;;  %v11197_v17 = vld [vmem:[#allocation2 + $0x78] sm:$0xff] }
 0x5fc   : > { %v7517_v27 = vpop.f32.mrf.mxu2  ;;  %v8766_v53 = vsel %vm1071_vm3, %v8764_v56, %v15178_v32  ;;  %v11524_v56 = vld [vmem:[#allocation2 + $0x80] sm:$0xff] }
 0x5fd   : > { %v7631_v39 = vadd.f32 %v7517_v27, %v14271_v61  ;;  %v8390_v61 = vshrl.u32 %v11522_v30, 16 }
 0x5fe   : > { %v7953_v57 = vpop.f32.mrf.mxu3 }
 0x5ff   : > { %v8587_v59 = vpop.f32.mrf.mxu0  ;;  %v8065_v31 = vadd.f32 %v7951_v36, %v7631_v39  ;;  %v7268_v60 = vpop.f32.mrf.mxu1  ;;  %v8392_v33 = vor.u32 %v8390_v61, %v8388_v1  ;;  %v15179_v39 = vld [vmem:[#allocation48_spill] sm:$0xff]  ;;  %v8402_v1 = vshll.u32 %v11524_v56, 16 }
 0x600   : > { %v14524_v47 = vadd.f32 %v7268_v60, %v14369_v14 }
 0x601   : > { %v14526_v12 = vadd.f32 %v8585_v43, %v8065_v31  ;;  %v8397_v14 = vsel %vm482_vm2, %v8392_v33, %v8396_v54  ;;  %v8404_v61 = vrot.slane %v8402_v1, 1  ;;  %v11525_v1 = vld [vmem:[#allocation2 + $0x88] sm:$0xff] }
 0x602   : > { %8893 = vmatmul.bf16.vlgmr.msra.gmra.mxu1 %v8766_v53 }
 0x603   : > { %7995 = vmatmul.bf16.gmra.mxu3 %v11196_v46 }
 0x604   : > { %v7519_v25 = vpop.f32.mrf.mxu2 }
 0x605   : > { %v7632_v36 = vadd.f32 %v7519_v25, %v14288_v6 }
 0x606   : > { %v7956_v7 = vpop.f32.mrf.mxu3 }
 0x607   : > { %v8590_v9 = vpop.f32.mrf.mxu0  ;;  %v8066_v27 = vadd.f32 %v7953_v57, %v7632_v36  ;;  %v7270_v43 = vpop.f32.mrf.mxu1 }
 0x608   : > { %v14534_v55 = vadd.f32 %v7270_v43, %v14378_v28  ;;  %v15180_v28 = vld [vmem:[#allocation33_spill] sm:$0xff] }
 0x609   : > { %7561 = vmatmul.bf16.gmra.mxu2 %v15179_v39  ;;  %v14537_v31 = vadd.f32 %v8587_v59, %v8066_v27  ;;  %v8398_v59 = vshrl.u32 %v11523_v29, 16 }
 0x60a   : > { %8629 = vmatmul.bf16.gmra.mxu0 %v8397_v14 }
 0x60c   : > { %v7522_v30 = vpop.f32.mrf.mxu2 }
 0x60d   : > { %v7633_v23 = vadd.f32 %v7522_v30, %v14307_v50 }
 0x60e   : > { %v7958_v6 = vpop.f32.mrf.mxu3 }
 0x60f   : > { %v8592_v60 = vpop.f32.mrf.mxu0  ;;  %v8067_v46 = vadd.f32 %v7956_v7, %v7633_v23  ;;  %v7273_v57 = vpop.f32.mrf.mxu1  ;;  %v8400_v7 = vor.u32 %v8398_v59, %v8396_v54  ;;  %v8410_v54 = vshll.u32 %v11525_v1, 16 }
 0x610   : > { %v14541_v32 = vadd.f32 %v7273_v57, %v14384_v10  ;;  %v11198_v57 = vld [vmem:[#allocation2 + $0x80] sm:$0xff] }
 0x611   : > { %v14543_v53 = vadd.f32 %v8590_v9, %v8067_v46  ;;  %v8405_v14 = vsel %vm482_vm2, %v8400_v7, %v8404_v61  ;;  %v15181_v9 = vld [vmem:[#allocation50_spill] sm:$0xff]  ;;  %v8412_v59 = vrot.slane %v8410_v54, 1  ;;  %v11526_v54 = vld [vmem:[#allocation2 + $0x90] sm:$0xff] }
 0x612   : > { %8898 = vmatmul.bf16.gmra.mxu1 %v15180_v28 }
 0x613   : > { %8000 = vmatmul.bf16.gmra.mxu3 %v11197_v17 }
 0x614   : > { %v7524_v25 = vpop.f32.mrf.mxu2 }
 0x615   : > { %v7634_v50 = vadd.f32 %v7524_v25, %v14327_v2 }
 0x616   : > { %v7961_v33 = vpop.f32.mrf.mxu3 }
 0x617   : > { %v8595_v36 = vpop.f32.mrf.mxu0  ;;  %v8068_v27 = vadd.f32 %v7958_v6, %v7634_v50  ;;  %v7275_v43 = vpop.f32.mrf.mxu1 }
 0x618   : > { %v14549_v10 = vadd.f32 %v7275_v43, %v14393_v37  ;;  %v15182_v37 = vld [vmem:[#allocation35_spill] sm:$0xff] }
 0x619   : > { %7566 = vmatmul.bf16.gmra.mxu2 %v15181_v9  ;;  %v14552_v39 = vadd.f32 %v8592_v60, %v8068_v27  ;;  %v8406_v60 = vshrl.u32 %v11524_v56, 16 }
 0x61a   : > { %8634 = vmatmul.bf16.gmra.mxu0 %v8405_v14 }
 0x61c   : > { %v7527_v29 = vpop.f32.mrf.mxu2 }
 0x61d   : > { %v7635_v30 = vadd.f32 %v7527_v29, %v14334_v62 }
 0x61e   : > { %v7963_v2 = vpop.f32.mrf.mxu3 }
 0x61f   : > { %v8597_v23 = vpop.f32.mrf.mxu0  ;;  %v8069_v46 = vadd.f32 %v7961_v33, %v7635_v30  ;;  %v7278_v6 = vpop.f32.mrf.mxu1  ;;  %v8408_v33 = vor.u32 %v8406_v60, %v8404_v61  ;;  %v8418_v61 = vshll.u32 %v11526_v54, 16 }
 0x620   : > { %v14556_v17 = vadd.f32 %v7278_v6, %v14399_v5  ;;  %v11199_v6 = vld [vmem:[#allocation2 + $0x88] sm:$0xff] }
 0x621   : > { %v14558_v28 = vadd.f32 %v8595_v36, %v8069_v46  ;;  %v8413_v14 = vsel %vm482_vm2, %v8408_v33, %v8412_v59  ;;  %v15183_v36 = vld [vmem:[#allocation18_spill] sm:$0xff]  ;;  %v8420_v60 = vrot.slane %v8418_v61, 1 }
 0x622   : > { %8903 = vmatmul.bf16.gmra.mxu1 %v15182_v37  ;;  %v11527_v61 = vld [vmem:[#allocation2 + $0x98] sm:$0xff] }
 0x623   : > { %8005 = vmatmul.bf16.gmra.mxu3 %v11198_v57 }
 0x624   : > { %v7529_v25 = vpop.f32.mrf.mxu2 }
 0x625   : > { %v7636_v62 = vadd.f32 %v7529_v25, %v14342_v13 }
 0x626   : > { %v7966_v7 = vpop.f32.mrf.mxu3 }
 0x627   : > { %v8600_v50 = vpop.f32.mrf.mxu0  ;;  %v8070_v27 = vadd.f32 %v7963_v2, %v7636_v62  ;;  %v7280_v43 = vpop.f32.mrf.mxu1 }
 0x628   : > { %v14564_v5 = vadd.f32 %v7280_v43, %v14411_v58  ;;  %v15184_v58 = vld [vmem:[#allocation37_spill] sm:$0xff] }
 0x629   : > { %7571 = vmatmul.bf16.gmra.mxu2 %v15183_v36  ;;  %v14567_v9 = vadd.f32 %v8597_v23, %v8070_v27  ;;  %v8414_v23 = vshrl.u32 %v11525_v1, 16 }
 0x62a   : > { %8639 = vmatmul.bf16.gmra.mxu0 %v8413_v14 }
 0x62c   : > { %v7532_v56 = vpop.f32.mrf.mxu2 }
 0x62d   : > { %v7637_v29 = vadd.f32 %v7532_v56, %v14349_v45 }
 0x62e   : > { %v7968_v13 = vpop.f32.mrf.mxu3 }
 0x62f   : > { %v8602_v30 = vpop.f32.mrf.mxu0  ;;  %v8071_v46 = vadd.f32 %v7966_v7, %v7637_v29  ;;  %v7283_v2 = vpop.f32.mrf.mxu1  ;;  %v8416_v7 = vor.u32 %v8414_v23, %v8412_v59  ;;  %v8426_v59 = vshll.u32 %v11527_v61, 16 }
 0x630   : > { %v14571_v57 = vadd.f32 %v7283_v2, %v14417_v11  ;;  %v11200_v2 = vld [vmem:[#allocation2 + $0x90] sm:$0xff] }
 0x631   : > { %v14573_v37 = vadd.f32 %v8600_v50, %v8071_v46  ;;  %v8421_v14 = vsel %vm482_vm2, %v8416_v7, %v8420_v60  ;;  %v15185_v50 = vld [vmem:[#allocation23_spill] sm:$0xff]  ;;  %v8428_v23 = vrot.slane %v8426_v59, 1 }
 0x632   : > { %8908 = vmatmul.bf16.gmra.mxu1 %v15184_v58  ;;  %v11528_v59 = vld [vmem:[#allocation2 + $0xa0] sm:$0xff] }
 0x633   : > { %8010 = vmatmul.bf16.gmra.mxu3 %v11199_v6 }
 0x634   : > { %v7534_v25 = vpop.f32.mrf.mxu2 }
 0x635   : > { %v7638_v45 = vadd.f32 %v7534_v25, %v14360_v24 }
 0x636   : > { %v7971_v33 = vpop.f32.mrf.mxu3 }
 0x637   : > { %v8605_v62 = vpop.f32.mrf.mxu0  ;;  %v8072_v27 = vadd.f32 %v7968_v13, %v7638_v45  ;;  %v7285_v43 = vpop.f32.mrf.mxu1 }
 0x638   : > { %v14579_v11 = vadd.f32 %v7285_v43, %v14426_v38  ;;  %v15186_v38 = vld [vmem:[#allocation39_spill] sm:$0xff] }
 0x639   : > { %7576 = vmatmul.bf16.gmra.mxu2 %v15185_v50  ;;  %v14582_v36 = vadd.f32 %v8602_v30, %v8072_v27  ;;  %v8422_v30 = vshrl.u32 %v11526_v54, 16 }
 0x63a   : > { %8644 = vmatmul.bf16.gmra.mxu0 %v8421_v14 }
 0x63c   : > { %v7537_v1 = vpop.f32.mrf.mxu2 }
 0x63d   : > { %v7639_v56 = vadd.f32 %v7537_v1, %v14367_v42 }
 0x63e   : > { %v7973_v24 = vpop.f32.mrf.mxu3 }
 0x63f   : > { %v8607_v29 = vpop.f32.mrf.mxu0  ;;  %v8073_v46 = vadd.f32 %v7971_v33, %v7639_v56  ;;  %v7288_v13 = vpop.f32.mrf.mxu1  ;;  %v8424_v33 = vor.u32 %v8422_v30, %v8420_v60  ;;  %v8434_v60 = vshll.u32 %v11528_v59, 16 }
 0x640   : > { %v14586_v6 = vadd.f32 %v7288_v13, %v14432_v44  ;;  %v11201_v13 = vld [vmem:[#allocation2 + $0x98] sm:$0xff] }
 0x641   : > { %v14588_v58 = vadd.f32 %v8605_v62, %v8073_v46  ;;  %v8429_v14 = vsel %vm482_vm2, %v8424_v33, %v8428_v23  ;;  %v15187_v62 = vld [vmem:[#allocation3_spill] sm:$0xff]  ;;  %v8436_v30 = vrot.slane %v8434_v60, 1 }
 0x642   : > { %8913 = vmatmul.bf16.gmra.mxu1 %v15186_v38 }
 0x643   : > { %8015 = vmatmul.bf16.gmra.mxu3 %v11200_v2 }
 0x644   : > { %v7539_v25 = vpop.f32.mrf.mxu2 }
 0x645   : > { %v7640_v42 = vadd.f32 %v7539_v25, %v14375_v40 }
 0x646   : > { %v7976_v7 = vpop.f32.mrf.mxu3 }
 0x647   : > { %v8610_v45 = vpop.f32.mrf.mxu0  ;;  %v8074_v27 = vadd.f32 %v7973_v24, %v7640_v42  ;;  %v7290_v43 = vpop.f32.mrf.mxu1 }
 0x648   : > { %v14594_v44 = vadd.f32 %v7290_v43, %v14441_v26  ;;  %v15188_v26 = vld [vmem:[#allocation41_spill] sm:$0xff] }
 0x649   : > { %7581 = vmatmul.bf16.gmra.mxu2 %v15187_v62  ;;  %v14597_v50 = vadd.f32 %v8607_v29, %v8074_v27  ;;  %v8430_v29 = vshrl.u32 %v11527_v61, 16 }
 0x64a   : > { %8649 = vmatmul.bf16.gmra.mxu0 %v8429_v14 }
 0x64c   : > { %v7542_v54 = vpop.f32.mrf.mxu2 }
 0x64d   : > { %v7641_v1 = vadd.f32 %v7542_v54, %v14382_v21  ;;  %v15190_v54 = vld [vmem:[#allocation29_spill] sm:$0xff] }
 0x64e   : > { %v7978_v40 = vpop.f32.mrf.mxu3 }
 0x64f   : > { %v8612_v56 = vpop.f32.mrf.mxu0  ;;  %v8075_v46 = vadd.f32 %v7976_v7, %v7641_v1  ;;  %v7293_v24 = vpop.f32.mrf.mxu1  ;;  %v8432_v7 = vor.u32 %v8430_v29, %v8428_v23 }
 0x650   : > { %v14601_v2 = vadd.f32 %v7293_v24, %v14447_v51  ;;  %v11529_v24 = vld [vmem:[#allocation2 + $0xa8] sm:$0xff] }
 0x651   : > { %v14603_v38 = vadd.f32 %v8610_v45, %v8075_v46  ;;  %v8437_v14 = vsel %vm482_vm2, %v8432_v7, %v8436_v30  ;;  %v15189_v45 = vld [vmem:[#allocation22_spill] sm:$0xff]  ;;  %v8442_v23 = vshll.u32 %v11529_v24, 16 }
 0x652   : > { %8918 = vmatmul.bf16.gmra.mxu1 %v15188_v26  ;;  %v15193_v7 = vld [vmem:[#allocation30_spill] sm:$0xff] }
 0x653   : > { %8020 = vmatmul.bf16.gmra.mxu3 %v11201_v13  ;;  %v11202_v13 = vld [vmem:[#allocation2 + $0xa0] sm:$0xff] }
 0x654   : > { %v7544_v25 = vpop.f32.mrf.mxu2 }
 0x655   : > { %v7642_v21 = vadd.f32 %v7544_v25, %v14390_v52  ;;  %v8444_v25 = vrot.slane %v8442_v23, 1 }
 0x656   : > { %v7981_v33 = vpop.f32.mrf.mxu3 }
 0x657   : > { %v8615_v42 = vpop.f32.mrf.mxu0  ;;  %v8076_v27 = vadd.f32 %v7978_v40, %v7642_v21  ;;  %v7295_v43 = vpop.f32.mrf.mxu1 }
 0x658   : > { %v14609_v51 = vadd.f32 %v7295_v43, %v14459_v63  ;;  %v15192_v63 = vld [vmem:[#allocation43_spill] sm:$0xff] }
 0x659   : > { %7586 = vmatmul.bf16.gmra.mxu2 %v15189_v45  ;;  %v14612_v62 = vadd.f32 %v8612_v56, %v8076_v27  ;;  %v8438_v56 = vshrl.u32 %v11528_v59, 16 }
 0x65a   : > { %8654 = vmatmul.bf16.gmra.mxu0 %v8437_v14 }
 0x65b   : > { %v8440_v43 = vor.u32 %v8438_v56, %v8436_v30 }
 0x65c   : > { %v7547_v61 = vpop.f32.mrf.mxu2 }
 0x65d   : > { %v7643_v1 = vadd.f32 %v7547_v61, %v15190_v54  ;;  %v8445_v61 = vsel %vm482_vm2, %v8440_v43, %v8444_v25 }
 0x65e   : > { %v7983_v52 = vpop.f32.mrf.mxu3 }
 0x65f   : > { %v8617_v46 = vpop.f32.mrf.mxu0  ;;  %v8077_v60 = vadd.f32 %v7981_v33, %v7643_v1  ;;  %v7298_v40 = vpop.f32.mrf.mxu1 }
 0x660   : > { %v14616_v26 = vadd.f32 %v7298_v40, %v14465_v41 }
 0x661   : > { %v14618_v29 = vadd.f32 %v8615_v42, %v8077_v60  ;;  %v15195_v42 = vld [vmem:[#allocation6_spill] sm:$0xff]  ;;  %v15196_v60 = vld [vmem:[#allocation51_spill] sm:$0xff] }
 0x662   : > { %15191 = vst [vmem:[#allocation36_spill] sm:$0xff] %v14616_v26  ;;  %8923 = vmatmul.bf16.gmra.mxu1 %v15192_v63  ;;  %v11530_v63 = vld [vmem:[#allocation2 + $0xb0] sm:$0xff] }
 0x663   : > { %8025 = vmatmul.bf16.gmra.mxu3 %v11202_v13  ;;  %v8450_v30 = vshll.u32 %v11530_v63, 16 }
 0x664   : > { %v7549_v21 = vpop.f32.mrf.mxu2 }
 0x665   : > { %v7644_v27 = vadd.f32 %v7549_v21, %v15193_v7  ;;  %v11203_v21 = vld [vmem:[#allocation2 + $0xa8] sm:$0xff]  ;;  %v8452_v43 = vrot.slane %v8450_v30, 1 }
 0x666   : > { %v7986_v14 = vpop.f32.mrf.mxu3  ;;  %v15202_v30 = vld [vmem:[#allocation52_spill] sm:$0xff] }
 0x667   : > { %v8620_v33 = vpop.f32.mrf.mxu0  ;;  %v8078_v45 = vadd.f32 %v7983_v52, %v7644_v27  ;;  %v7300_v54 = vpop.f32.mrf.mxu1 }
 0x668   : > { %v14624_v41 = vadd.f32 %v7300_v54, %v14474_v34  ;;  %v15198_v34 = vld [vmem:[#allocation16_spill] sm:$0xff] }
 0x669   : > { %7591 = vmatmul.bf16.gmra.mxu2 %v15195_v42  ;;  %v14627_v1 = vadd.f32 %v8617_v46, %v8078_v45  ;;  %v8446_v46 = vshrl.u32 %v11529_v24, 16 }
 0x66a   : > { %8659 = vmatmul.bf16.gmra.mxu0 %v8445_v61  ;;  %15194 = vst [vmem:[#allocation56_spill] sm:$0xff] %v14624_v41  ;;  %v15199_v61 = vld [vmem:[#allocation31_spill] sm:$0xff] }
 0x66b   : > { %v8448_v42 = vor.u32 %v8446_v46, %v8444_v25  ;;  %v11204_v46 = vld [vmem:[#allocation2 + $0xb0] sm:$0xff] }
 0x66c   : > { %v7552_v59 = vpop.f32.mrf.mxu2 }
 0x66d   : > { %v7645_v23 = vadd.f32 %v7552_v59, %v15196_v60  ;;  %v8453_v59 = vsel %vm482_vm2, %v8448_v42, %v8452_v43  ;;  %v15203_v42 = vld [vmem:[#allocation17_spill] sm:$0xff] }
 0x66e   : > { %v7988_v40 = vpop.f32.mrf.mxu3 }
 0x66f   : > { %v8079_v13 = vadd.f32 %v7986_v14, %v7645_v23  ;;  %v8622_v56 = vpop.f32.mrf.mxu0  ;;  %v7303_v52 = vpop.f32.mrf.mxu1 }
 0x670   : > { %v14631_v7 = vadd.f32 %v7303_v52, %v14480_v18 }
 0x671   : > { %v14633_v27 = vadd.f32 %v8620_v33, %v8079_v13  ;;  %v15201_v33 = vld [vmem:[#allocation25_spill] sm:$0xff] }
 0x672   : > { %15197 = vst [vmem:[#allocation57_spill] sm:$0xff] %v14631_v7  ;;  %8928 = vmatmul.bf16.gmra.mxu1 %v15198_v34 }
 0x673   : > { %8030 = vmatmul.bf16.gmra.mxu3 %v11203_v21 }
 0x674   : > { %v7554_v45 = vpop.f32.mrf.mxu2 }
 0x675   : > { %v7646_v54 = vadd.f32 %v7554_v45, %v15199_v61  ;;  %v11531_v45 = vld [vmem:[#allocation2 + $0xb8] sm:$0xff] }
 0x676   : > { %v7991_v60 = vpop.f32.mrf.mxu3  ;;  %v8458_v25 = vshll.u32 %v11531_v45, 16 }
 0x677   : > { %v8080_v14 = vadd.f32 %v7988_v40, %v7646_v54  ;;  %v7305_v23 = vpop.f32.mrf.mxu1  ;;  %v8625_v52 = vpop.f32.mrf.mxu0 }
 0x678   : > { %v14639_v18 = vadd.f32 %v7305_v23, %v14489_v15 }
 0x679   : > { %7596 = vmatmul.bf16.gmra.mxu2 %v15201_v33  ;;  %v14642_v13 = vadd.f32 %v8622_v56, %v8080_v14  ;;  %v14651_v56 = vld [vmem:[%s14892_s6] ss:$0 sm:$0xff]  ;;  %v8454_v14 = vshrl.u32 %v11530_v63, 16  ;;  %v15204_v33 = vld [vmem:[#allocation53_spill] sm:$0xff] }
 0x67a   : > { %8664 = vmatmul.bf16.gmra.mxu0 %v8453_v59  ;;  %15200 = vst [vmem:[#allocation38_spill] sm:$0xff] %v14639_v18  ;;  %v8460_v59 = vrot.slane %v8458_v25, 1  ;;  %v15205_v25 = vld [vmem:[#allocation7_spill] sm:$0xff] }
 0x67c   : > { %v7557_v24 = vpop.f32.mrf.mxu2 }
 0x67d   : > { %v7647_v21 = vadd.f32 %v7557_v24, %v15202_v30 }
 0x67e   : > { %v7993_v54 = vpop.f32.mrf.mxu3 }
 0x67f   : > { %v8081_v34 = vadd.f32 %v7991_v60, %v7647_v21  ;;  %v8894_v40 = vpop.f32.mrf.mxu1  ;;  %v8627_v60 = vpop.f32.mrf.mxu0 }
 0x680   : > { %v9014_v15 = vadd.f32 %v8894_v40, %v14495_v19  ;;  %v14659_v19 = vld [vmem:[%s14893_s7] ss:$0 sm:$0xff] }
 0x681   : > { %v14645_v61 = vadd.f32 %v8625_v52, %v8081_v34  ;;  %v8456_v52 = vor.u32 %v8454_v14, %v8452_v43 }
 0x682   : > { %8933 = vmatmul.bf16.gmra.mxu1 %v15203_v42  ;;  %v9066_v30 = vmul.f32 %v14651_v56, %v9014_v15 }
 0x683   : > { %8035 = vmatmul.bf16.gmra.mxu3 %v11204_v46  ;;  %v8461_v34 = vsel %vm482_vm2, %v8456_v52, %v8460_v59 }
 0x684   : > { %v7559_v23 = vpop.f32.mrf.mxu2  ;;  %v9118_v43 = vadd.f32 %v14659_v19, %v9066_v30  ;;  %v11205_v30 = vld [vmem:[#allocation2 + $0xb8] sm:$0xff] }
 0x685   : > { %v7648_v24 = vadd.f32 %v7559_v23, %v15204_v33 }
 0x686   : > { %v7996_v42 = vpop.f32.mrf.mxu3  ;;  %v9166_v52 = vmax.f32 %v9118_v43, 0.0  ;;  %v15207_v43 = vld [vmem:[#allocation47_spill] sm:$0xff] }
 0x687   : > { %v8082_v21 = vadd.f32 %v7993_v54, %v7648_v24  ;;  %v8896_v40 = vpop.f32.mrf.mxu1  ;;  %v15206_v54 = vld [vmem:[#allocation34_spill] sm:$0xff]  ;;  %v8630_v24 = vpop.f32.mrf.mxu0 }
 0x688   : > { %v9015_v63 = vadd.f32 %v8896_v40, %v14504_v48  ;;  %v11532_v48 = vld [vmem:[#allocation2 + $0xc0] sm:$0xff] }
 0x689   : > { %7601 = vmatmul.bf16.gmra.mxu2 %v15205_v25  ;;  %v14664_v46 = vadd.f32 %v8627_v60, %v8082_v21  ;;  %v8466_v40 = vshll.u32 %v11532_v48, 16 }
 0x68a   : > { %8669 = vmatmul.bf16.gmra.mxu0 %v8461_v34  ;;  %v9067_v15 = vmul.f32 %v14651_v56, %v9015_v63 }
 0x68c   : > { %v7562_v14 = vpop.f32.mrf.mxu2  ;;  %v9119_v23 = vadd.f32 %v14659_v19, %v9067_v15  ;;  %v8462_v15 = vshrl.u32 %v11531_v45, 16 }
 0x68d   : > { %v7649_v33 = vadd.f32 %v7562_v14, %v15206_v54 }
 0x68e   : > { %v9167_v34 = vmax.f32 %v9119_v23, 0.0  ;;  %v15208_v23 = vld [vmem:[#allocation54_spill] sm:$0xff]  ;;  %v7998_v7 = vpop.f32.mrf.mxu3 }
 0x68f   : > { %v8083_v18 = vadd.f32 %v7996_v42, %v7649_v33  ;;  %v8899_v60 = vpop.f32.mrf.mxu1  ;;  %v8468_v42 = vrot.slane %v8466_v40, 1  ;;  %v8464_v33 = vor.u32 %v8462_v15, %v8460_v59  ;;  %v11206_v15 = vld [vmem:[#allocation2 + $0xc0] sm:$0xff] }
 0x690   : > { %v11275_v21 = vpack.c.bf16 %v9167_v34, %v9166_v52  ;;  %v9016_v25 = vadd.f32 %v8899_v60, %v14511_v0  ;;  %v15209_v34 = vld [vmem:[#allocation10_spill] sm:$0xff] }
 0x691   : > { %v14676_v63 = vadd.f32 %v8630_v24, %v8083_v18  ;;  %v8469_v52 = vsel %vm482_vm2, %v8464_v33, %v8468_v42  ;;  %v8632_v18 = vpop.f32.mrf.mxu0 }
 0x692   : > { %11276 = vst [vmem:[%s14674_s16] sm:$0xff] %v11275_v21   ;;  %8938 = vmatmul.bf16.gmra.mxu1 %v15207_v43  ;;  %v9068_v41 = vmul.f32 %v14651_v56, %v9016_v25  ;;  %v11533_v21 = vld [vmem:[#allocation2 + $0xc8] sm:$0xff] }
 0x693   : > { %8040 = vmatmul.bf16.gmra.mxu3 %v11205_v30  ;;  %v8474_v25 = vshll.u32 %v11533_v21, 16 }
 0x694   : > { %v7564_v14 = vpop.f32.mrf.mxu2  ;;  %v9120_v40 = vadd.f32 %v14659_v19, %v9068_v41 }
 0x695   : > { %v7650_v54 = vadd.f32 %v7564_v14, %v15208_v23  ;;  %v15210_v23 = vld [vmem:[#allocation49_spill] sm:$0xff] }
 0x696   : > { %v9168_v30 = vmax.f32 %v9120_v40, 0.0 }
 0x697   : > { %v8084_v26 = vadd.f32 %v7998_v7, %v7650_v54  ;;  %v8901_v24 = vpop.f32.mrf.mxu1  ;;  %v8476_v54 = vrot.slane %v8474_v25, 1 }
 0x698   : > { %v9017_v0 = vadd.f32 %v8901_v24, %v14520_v3 }
 0x699   : > { %7606 = vmatmul.bf16.gmra.mxu2 %v15209_v34  ;;  %v14686_v45 = vadd.f32 %v8632_v18, %v8084_v26  ;;  %v8470_v26 = vshrl.u32 %v11532_v48, 16  ;;  %v14701_v48 = vld [vmem:[#allocation2 + $0xd0] sm:$0xff] }
 0x69a   : > { %8674 = vmatmul.bf16.gmra.mxu0 %v8469_v52  ;;  %v9069_v59 = vmul.f32 %v14651_v56, %v9017_v0  ;;  %v15211_v0 = vld [vmem:[#allocation11_spill] sm:$0xff] }
 0x69b   : > { %v8472_v41 = vor.u32 %v8470_v26, %v8468_v42 }
 0x69c   : > { %v9121_v60 = vadd.f32 %v14659_v19, %v9069_v59 }
 0x69d   : > { %v8477_v52 = vsel %vm482_vm2, %v8472_v41, %v8476_v54 }
 0x69e   : > { %v9169_v7 = vmax.f32 %v9121_v60, 0.0  ;;  %v8482_v60 = vshll.u32 %v14701_v48, 16 }
 0x69f   : > { %v8904_v43 = vpop.f32.mrf.mxu1 }
 0x6a0   : > { %v11280_v14 = vpack.c.bf16 %v9169_v7, %v9168_v30  ;;  %v9018_v3 = vadd.f32 %v8904_v43, %v14526_v12  ;;  %v11207_v7 = vld [vmem:[#allocation2 + $0xc8] sm:$0xff]  ;;  %v8478_v43 = vshrl.u32 %v11533_v21, 16 }
 0x6a2   : > { %11406 = vst [vmem:[%s14674_s16 + $0x8] sm:$0xff] %v11280_v14   ;;  %8943 = vmatmul.bf16.gmra.mxu1 %v15210_v23  ;;  %v9070_v33 = vmul.f32 %v14651_v56, %v9018_v3  ;;  %v8480_v14 = vor.u32 %v8478_v43, %v8476_v54  ;;  %v8484_v3 = vrot.slane %v8482_v60, 1  ;;  %v8157_v23 = vld [vmem:[#allocation2 + $0xd8] sm:$0x1] }
 0x6a3   : > { %8045 = vmatmul.bf16.gmra.mxu3 %v11206_v15  ;;  %v15212_v15 = vld [vmem:[#allocation20_spill] sm:$0xff]  ;;  %v8272_v26 = vunpack.c.l.b16 %v8157_v23  ;;  %v15214_v43 = vld [vmem:[#allocation21_spill] sm:$0xff] }
 0x6a4   : > { %v9122_v34 = vadd.f32 %v14659_v19, %v9070_v33  ;;  %v8485_v33 = vsel %vm482_vm2, %v8480_v14, %v8484_v3 }
 0x6a5   : > { %v14711_v21 = vpack.c.b16 %v8272_v26, %v8272_v26  ;;  %v15215_v26 = vld [vmem:[#allocation15_spill] sm:$0xff] }
 0x6a6   : > { %v9170_v42 = vmax.f32 %v9122_v34, 0.0  ;;  %v8486_v34 = vshrl.u32 %v14701_v48, 16 }
 0x6a7   : > { %v8906_v18 = vpop.f32.mrf.mxu1 }
 0x6a8   : > { %v9019_v24 = vadd.f32 %v8906_v18, %v14537_v31 }
 0x6a9   : > { %7611 = vmatmul.bf16.gmra.mxu2 %v15211_v0 }
 0x6aa   : > { %8679 = vmatmul.bf16.gmra.mxu0 %v8477_v52  ;;  %v9071_v12 = vmul.f32 %v14651_v56, %v9019_v24  ;;  %v15213_v24 = vld [vmem:[#allocation12_spill] sm:$0xff] }
 0x6ac   : > { %v9123_v40 = vadd.f32 %v14659_v19, %v9071_v12  ;;  %v8490_v12 = vshll.u32 %v14711_v21, 16 }
 0x6ae   : > { %v9171_v59 = vmax.f32 %v9123_v40, 0.0  ;;  %v11208_v40 = vld [vmem:[#allocation2 + $0xd0] sm:$0xff] }
 0x6af   : > { %v8909_v30 = vpop.f32.mrf.mxu1 }
 0x6b0   : > { %v11285_v25 = vpack.c.bf16 %v9171_v59, %v9170_v42  ;;  %v9020_v31 = vadd.f32 %v8909_v30, %v14543_v53  ;;  %v8488_v30 = vor.u32 %v8486_v34, %v8484_v3 }
 0x6b2   : > { %11407 = vst [vmem:[%s14674_s16 + $0x10] sm:$0xff] %v11285_v25   ;;  %8948 = vmatmul.bf16.gmra.mxu1 %v15212_v15  ;;  %v9072_v41 = vmul.f32 %v14651_v56, %v9020_v31 }
 0x6b3   : > { %8050 = vmatmul.bf16.gmra.mxu3 %v11207_v7  ;;  %v8492_v7 = vrot.slane %v8490_v12, 1 }
 0x6b4   : > { %v9124_v53 = vadd.f32 %v14659_v19, %v9072_v41 }
 0x6b5   : > { %v8493_v31 = vsel %vm482_vm2, %v8488_v30, %v8492_v7  ;;  %v15217_v7 = vld [vmem:[#allocation4_spill] sm:$0xff] }
 0x6b6   : > { %v9172_v42 = vmax.f32 %v9124_v53, 0.0 }
 0x6b7   : > { %v8911_v52 = vpop.f32.mrf.mxu1 }
 0x6b8   : > { %v9021_v18 = vadd.f32 %v8911_v52, %v14552_v39 }
 0x6b9   : > { %7616 = vmatmul.bf16.gmra.mxu2 %v15213_v24 }
 0x6ba   : > { %8684 = vmatmul.bf16.gmra.mxu0 %v8485_v33  ;;  %v9073_v54 = vmul.f32 %v14651_v56, %v9021_v18 }
 0x6bc   : > { %v9125_v0 = vadd.f32 %v14659_v19, %v9073_v54  ;;  %v15216_v54 = vld [vmem:[#allocation19_spill] sm:$0xff] }
 0x6be   : > { %v9173_v59 = vmax.f32 %v9125_v0, 0.0 }
 0x6bf   : > { %v8914_v60 = vpop.f32.mrf.mxu1 }
 0x6c0   : > { %v11290_v39 = vpack.c.bf16 %v9173_v59, %v9172_v42  ;;  %v9022_v25 = vadd.f32 %v8914_v60, %v14558_v28 }
 0x6c2   : > { %11408 = vst [vmem:[%s14674_s16 + $0x18] sm:$0xff] %v11290_v39   ;;  %8953 = vmatmul.bf16.gmra.mxu1 %v15214_v43  ;;  %v9074_v15 = vmul.f32 %v14651_v56, %v9022_v25 }
 0x6c3   : > { %8055 = vmatmul.bf16.gmra.mxu3 %v11208_v40 }
 0x6c4   : > { %v9126_v3 = vadd.f32 %v14659_v19, %v9074_v15 }
 0x6c6   : > { %v9174_v52 = vmax.f32 %v9126_v3, 0.0 }
 0x6c7   : > { %v8916_v14 = vpop.f32.mrf.mxu1 }
 0x6c8   : > { %v9023_v23 = vadd.f32 %v8916_v14, %v14567_v9 }
 0x6c9   : > { %7621 = vmatmul.bf16.gmra.mxu2 %v15215_v26 }
 0x6ca   : > { %8689 = vmatmul.bf16.gmra.mxu0 %v8493_v31  ;;  %v9075_v41 = vmul.f32 %v14651_v56, %v9023_v23 }
 0x6cc   : > { %v9127_v33 = vadd.f32 %v14659_v19, %v9075_v41 }
 0x6ce   : > { %v9175_v28 = vmax.f32 %v9127_v33, 0.0  ;;  %v15218_v33 = vld [vmem:[#allocation5_spill] sm:$0xff] }
 0x6cf   : > { %v8919_v18 = vpop.f32.mrf.mxu1 }
 0x6d0   : > { %v11295_v24 = vpack.c.bf16 %v9175_v28, %v9174_v52  ;;  %v9024_v53 = vadd.f32 %v8919_v18, %v14573_v37 }
 0x6d2   : > { %11409 = vst [vmem:[%s14674_s16 + $0x20] sm:$0xff] %v11295_v24   ;;  %8958 = vmatmul.bf16.gmra.mxu1 %v15216_v54  ;;  %v9076_v9 = vmul.f32 %v14651_v56, %v9024_v53 }
 0x6d4   : > { %v9128_v12 = vadd.f32 %v14659_v19, %v9076_v9 }
 0x6d6   : > { %v9176_v59 = vmax.f32 %v9128_v12, 0.0  ;;  %v15219_v12 = vld [vmem:[#allocation24_spill] sm:$0xff] }
 0x6d7   : > { %v8921_v0 = vpop.f32.mrf.mxu1 }
 0x6d8   : > { %v9025_v34 = vadd.f32 %v8921_v0, %v14582_v36 }
 0x6da   : > { %v9077_v40 = vmul.f32 %v14651_v56, %v9025_v34 }
 0x6dc   : > { %v9129_v42 = vadd.f32 %v14659_v19, %v9077_v40  ;;  %v7567_v40 = vpop.f32.mrf.mxu2 }
 0x6de   : > { %v9177_v60 = vmax.f32 %v9129_v42, 0.0 }
 0x6df   : > { %v8924_v39 = vpop.f32.mrf.mxu1 }
 0x6e0   : > { %v11300_v30 = vpack.c.bf16 %v9177_v60, %v9176_v59  ;;  %v9026_v37 = vadd.f32 %v8924_v39, %v14588_v58 }
 0x6e2   : > { %11410 = vst [vmem:[%s14674_s16 + $0x28] sm:$0xff] %v11300_v30   ;;  %8963 = vmatmul.bf16.gmra.mxu1 %v15217_v7  ;;  %v9078_v25 = vmul.f32 %v14651_v56, %v9026_v37  ;;  %v8001_v30 = vpop.f32.mrf.mxu3  ;;  %v8635_v7 = vpop.f32.mrf.mxu0 }
 0x6e4   : > { %v9130_v31 = vadd.f32 %v14659_v19, %v9078_v25 }
 0x6e6   : > { %v9178_v23 = vmax.f32 %v9130_v31, 0.0 }
 0x6e7   : > { %v8926_v43 = vpop.f32.mrf.mxu1 }
 0x6e8   : > { %v9027_v36 = vadd.f32 %v8926_v43, %v14597_v50 }
 0x6ea   : > { %v9079_v15 = vmul.f32 %v14651_v56, %v9027_v36 }
 0x6ec   : > { %v9131_v14 = vadd.f32 %v14659_v19, %v9079_v15 }
 0x6ee   : > { %v9179_v26 = vmax.f32 %v9131_v14, 0.0  ;;  %v15220_v14 = vld [vmem:[#allocation8_spill] sm:$0xff] }
 0x6ef   : > { %v8929_v3 = vpop.f32.mrf.mxu1 }
 0x6f0   : > { %v11305_v41 = vpack.c.bf16 %v9179_v26, %v9178_v23  ;;  %v9028_v58 = vadd.f32 %v8929_v3, %v14603_v38  ;;  %v8637_v3 = vpop.f32.mrf.mxu0 }
 0x6f2   : > { %11411 = vst [vmem:[%s14674_s16 + $0x30] sm:$0xff] %v11305_v41   ;;  %8968 = vmatmul.bf16.gmra.mxu1 %v15218_v33  ;;  %v9080_v52 = vmul.f32 %v14651_v56, %v9028_v58 }
 0x6f4   : > { %v9132_v18 = vadd.f32 %v14659_v19, %v9080_v52 }
 0x6f6   : > { %v9180_v54 = vmax.f32 %v9132_v18, 0.0 }
 0x6f7   : > { %v8931_v28 = vpop.f32.mrf.mxu1 }
 0x6f8   : > { %v9029_v50 = vadd.f32 %v8931_v28, %v14612_v62 }
 0x6fa   : > { %v9081_v24 = vmul.f32 %v14651_v56, %v9029_v50 }
 0x6fc   : > { %v9133_v53 = vadd.f32 %v14659_v19, %v9081_v24 }
 0x6fe   : > { %v9181_v9 = vmax.f32 %v9133_v53, 0.0 }
 0x6ff   : > { %v8934_v0 = vpop.f32.mrf.mxu1 }
 0x700   : > { %v11310_v34 = vpack.c.bf16 %v9181_v9, %v9180_v54  ;;  %v9030_v38 = vadd.f32 %v8934_v0, %v14618_v29  ;;  %v7569_v29 = vpop.f32.mrf.mxu2  ;;  %v8640_v54 = vpop.f32.mrf.mxu0  ;;  %v15221_v0 = vld [vmem:[#allocation26_spill] sm:$0xff] }
 0x702   : > { %11412 = vst [vmem:[%s14674_s16 + $0x38] sm:$0xff] %v11310_v34   ;;  %8973 = vmatmul.bf16.gmra.mxu1 %v15219_v12  ;;  %v9082_v42 = vmul.f32 %v14651_v56, %v9030_v38 }
 0x704   : > { %v9134_v60 = vadd.f32 %v14659_v19, %v9082_v42 }
 0x706   : > { %v9182_v25 = vmax.f32 %v9134_v60, 0.0 }
 0x707   : > { %v8936_v62 = vpop.f32.mrf.mxu1 }
 0x708   : > { %v9031_v59 = vadd.f32 %v8936_v62, %v14627_v1  ;;  %v8003_v1 = vpop.f32.mrf.mxu3  ;;  %v7572_v58 = vpop.f32.mrf.mxu2 }
 0x709   : > { %v8642_v60 = vpop.f32.mrf.mxu0 }
 0x70a   : > { %v9083_v39 = vmul.f32 %v14651_v56, %v9031_v59 }
 0x70c   : > { %v9135_v37 = vadd.f32 %v14659_v19, %v9083_v39 }
 0x70e   : > { %v9183_v43 = vmax.f32 %v9135_v37, 0.0 }
 0x70f   : > { %v8939_v36 = vpop.f32.mrf.mxu1 }
 0x710   : > { %v11315_v31 = vpack.c.bf16 %v9183_v43, %v9182_v25  ;;  %v9032_v15 = vadd.f32 %v8939_v36, %v14633_v27  ;;  %v8006_v27 = vpop.f32.mrf.mxu3 }
 0x712   : > { %11413 = vst [vmem:[%s14674_s16 + $0x40] sm:$0xff] %v11315_v31   ;;  %8978 = vmatmul.bf16.gmra.mxu1 %v15220_v14  ;;  %v9084_v23 = vmul.f32 %v14651_v56, %v9032_v15  ;;  %v15222_v15 = vld [vmem:[#allocation9_spill] sm:$0xff] }
 0x714   : > { %v9136_v33 = vadd.f32 %v14659_v19, %v9084_v23 }
 0x716   : > { %v9184_v50 = vmax.f32 %v9136_v33, 0.0  ;;  %v7651_v33 = vadd.f32 %v7567_v40, %v14463_v16 }
 0x717   : > { %v8941_v26 = vpop.f32.mrf.mxu1 }
 0x718   : > { %v9033_v41 = vadd.f32 %v8941_v26, %v14642_v13  ;;  %v7574_v13 = vpop.f32.mrf.mxu2  ;;  %v8008_v42 = vpop.f32.mrf.mxu3 }
 0x71a   : > { %v9085_v52 = vmul.f32 %v14651_v56, %v9033_v41 }
 0x71c   : > { %v9137_v28 = vadd.f32 %v14659_v19, %v9085_v52 }
 0x71e   : > { %v9185_v18 = vmax.f32 %v9137_v28, 0.0 }
 0x71f   : > { %v8944_v24 = vpop.f32.mrf.mxu1 }
 0x720   : > { %v11320_v53 = vpack.c.bf16 %v9185_v18, %v9184_v50  ;;  %v9034_v9 = vadd.f32 %v8944_v24, %v14645_v61  ;;  %v7577_v37 = vpop.f32.mrf.mxu2  ;;  %v8011_v14 = vpop.f32.mrf.mxu3  ;;  %v8085_v18 = vadd.f32 %v8001_v30, %v7651_v33  ;;  %v7654_v33 = vadd.f32 %v7574_v13, %v14486_v22 }
 0x722   : > { %11414 = vst [vmem:[%s14674_s16 + $0x48] sm:$0xff] %v11320_v53   ;;  %8983 = vmatmul.bf16.gmra.mxu1 %v15221_v0  ;;  %v9086_v34 = vmul.f32 %v14651_v56, %v9034_v9  ;;  %v15223_v53 = vld [vmem:[#allocation55_spill] sm:$0xff] }
 0x723   : > { %v7652_v9 = vadd.f32 %v7569_v29, %v15223_v53  ;;  %v15225_v53 = vld [vmem:[#allocation28_spill] sm:$0xff] }
 0x724   : > { %v9138_v62 = vadd.f32 %v14659_v19, %v9086_v34 }
 0x725   : > { %v8086_v40 = vadd.f32 %v8003_v1, %v7652_v9 }
 0x726   : > { %v9186_v25 = vmax.f32 %v9138_v62, 0.0 }
 0x727   : > { %v8946_v38 = vpop.f32.mrf.mxu1  ;;  %v8720_v30 = vadd.f32 %v8637_v3, %v8086_v40 }
 0x728   : > { %v9035_v12 = vadd.f32 %v8946_v38, %v14664_v46  ;;  %v14779_v46 = vpop.f32.mrf.mxu0  ;;  %v7579_v26 = vpop.f32.mrf.mxu2 }
 0x729   : > { %v8013_v24 = vpop.f32.mrf.mxu3 }
 0x72a   : > { %v9087_v59 = vmul.f32 %v14651_v56, %v9035_v12 }
 0x72c   : > { %v9139_v39 = vadd.f32 %v14659_v19, %v9087_v59  ;;  %v8719_v59 = vadd.f32 %v8635_v7, %v8085_v18 }
 0x72e   : > { %v9187_v61 = vmax.f32 %v9139_v39, 0.0  ;;  %v15224_v39 = vld [vmem:[#allocation27_spill] sm:$0xff] }
 0x72f   : > { %v8949_v43 = vpop.f32.mrf.mxu1 }
 0x730   : > { %v11325_v36 = vpack.c.bf16 %v9187_v61, %v9186_v25  ;;  %v9036_v31 = vadd.f32 %v8949_v43, %v14676_v63  ;;  %v8647_v12 = vpop.f32.mrf.mxu0  ;;  %v7582_v16 = vpop.f32.mrf.mxu2 }
 0x731   : > { %v8016_v61 = vpop.f32.mrf.mxu3 }
 0x732   : > { %11415 = vst [vmem:[%s14674_s16 + $0x50] sm:$0xff] %v11325_v36   ;;  %8988 = vmatmul.bf16.gmra.mxu1 %v15222_v15  ;;  %v9088_v23 = vmul.f32 %v14651_v56, %v9036_v31  ;;  %v7653_v36 = vadd.f32 %v7572_v58, %v14478_v35  ;;  %v8088_v58 = vadd.f32 %v8008_v42, %v7654_v33 }
 0x733   : > { %v7657_v33 = vadd.f32 %v7582_v16, %v14509_v20 }
 0x734   : > { %v9140_v28 = vadd.f32 %v14659_v19, %v9088_v23  ;;  %v8087_v23 = vadd.f32 %v8006_v27, %v7653_v36  ;;  %v8722_v27 = vadd.f32 %v8642_v60, %v8088_v58 }
 0x736   : > { %v9188_v0 = vmax.f32 %v9140_v28, 0.0  ;;  %v8721_v18 = vadd.f32 %v8640_v54, %v8087_v23 }
 0x737   : > { %v8951_v41 = vpop.f32.mrf.mxu1 }
 0x738   : > { %v9037_v52 = vadd.f32 %v8951_v41, %v14686_v45  ;;  %v14792_v31 = vpop.f32.mrf.mxu0  ;;  %v7584_v1 = vpop.f32.mrf.mxu2 }
 0x739   : > { %v8018_v35 = vpop.f32.mrf.mxu3 }
 0x73a   : > { %v9089_v50 = vmul.f32 %v14651_v56, %v9037_v52 }
 0x73c   : > { %v9141_v63 = vadd.f32 %v14659_v19, %v9089_v50 }
 0x73e   : > { %v9189_v34 = vmax.f32 %v9141_v63, 0.0 }
 0x73f   : > { %v8954_v38 = vpop.f32.mrf.mxu1 }
 0x740   : > { %v11330_v62 = vpack.c.bf16 %v9189_v34, %v9188_v0  ;;  %v9038_v45 = vadd.f32 %v8954_v38, %v8719_v59  ;;  %v8652_v9 = vpop.f32.mrf.mxu0  ;;  %v7587_v0 = vpop.f32.mrf.mxu2 }
 0x741   : > { %v8021_v59 = vpop.f32.mrf.mxu3 }
 0x742   : > { %11416 = vst [vmem:[%s14674_s16 + $0x58] sm:$0xff] %v11330_v62   ;;  %8993 = vmatmul.bf16.gmra.mxu1 %v15224_v39  ;;  %v9090_v25 = vmul.f32 %v14651_v56, %v9038_v45  ;;  %v7655_v62 = vadd.f32 %v7577_v37, %v14493_v8  ;;  %v8809_v45 = vrot.slane %v14701_v48, 1  ;;  %v7656_v39 = vadd.f32 %v7579_v26, %v14501_v4 }
 0x744   : > { %v9142_v15 = vadd.f32 %v14659_v19, %v9090_v25  ;;  %v8089_v42 = vadd.f32 %v8011_v14, %v7655_v62  ;;  %v8090_v23 = vadd.f32 %v8013_v24, %v7656_v39  ;;  %v8811_v24 = vrot.slane %v14711_v21, 1 }
 0x746   : > { %v9190_v52 = vmax.f32 %v9142_v15, 0.0  ;;  %v8723_v37 = vadd.f32 %v14779_v46, %v8089_v42  ;;  %v8724_v4 = vadd.f32 %v8647_v12, %v8090_v23  ;;  %v8812_v20 = vsel %vm1071_vm3, %v8809_v45, %v8811_v24 }
 0x747   : > { %v8956_v43 = vpop.f32.mrf.mxu1 }
 0x748   : > { %v9039_v29 = vadd.f32 %v8956_v43, %v8720_v30  ;;  %v8655_v25 = vpop.f32.mrf.mxu0  ;;  %v7589_v43 = vpop.f32.mrf.mxu2 }
 0x74a   : > { %v9091_v7 = vmul.f32 %v14651_v56, %v9039_v29  ;;  %v15226_v29 = vld [vmem:[#allocation13_spill] sm:$0xff] }
 0x74b   : > { %v15227_v15 = vrot.slane %v15226_v29, 1 }
 0x74c   : > { %v9143_v41 = vadd.f32 %v14659_v19, %v9091_v7 }
 0x74d   : > { %v8810_v7 = vsel %vm1071_vm3, %v15227_v15, %v8809_v45 }
 0x74e   : > { %v9191_v3 = vmax.f32 %v9143_v41, 0.0  ;;  %v8023_v41 = vpop.f32.mrf.mxu3 }
 0x74f   : > { %v8959_v28 = vpop.f32.mrf.mxu1 }
 0x750   : > { %v11335_v50 = vpack.c.bf16 %v9191_v3, %v9190_v52  ;;  %v9040_v63 = vadd.f32 %v8959_v28, %v8721_v18  ;;  %v8657_v52 = vpop.f32.mrf.mxu0  ;;  %v7592_v28 = vpop.f32.mrf.mxu2  ;;  %v8091_v18 = vadd.f32 %v8016_v61, %v7657_v33 }
 0x752   : > { %11417 = vst [vmem:[%s14674_s16 + $0x60] sm:$0xff] %v11335_v50   ;;  %8998 = vmatmul.bf16.gmra.mxu1 %v15225_v53  ;;  %v9092_v34 = vmul.f32 %v14651_v56, %v9040_v63  ;;  %v7658_v63 = vadd.f32 %v7584_v1, %v14517_v49  ;;  %v7659_v49 = vadd.f32 %v7587_v0, %v14524_v47 }
 0x754   : > { %v9144_v13 = vadd.f32 %v14659_v19, %v9092_v34  ;;  %v8092_v62 = vadd.f32 %v8018_v35, %v7658_v63 }
 0x756   : > { %v9192_v30 = vmax.f32 %v9144_v13, 0.0  ;;  %v8026_v34 = vpop.f32.mrf.mxu3 }
 0x757   : > { %v8961_v38 = vpop.f32.mrf.mxu1 }
 0x758   : > { %v9041_v22 = vadd.f32 %v8961_v38, %v8722_v27  ;;  %v8725_v38 = vadd.f32 %v14792_v31, %v8091_v18  ;;  %v7594_v21 = vpop.f32.mrf.mxu2  ;;  %v8093_v31 = vadd.f32 %v8021_v59, %v7659_v49 }
 0x75a   : > { %v9093_v54 = vmul.f32 %v14651_v56, %v9041_v22  ;;  %v8660_v22 = vpop.f32.mrf.mxu0  ;;  %v8727_v15 = vadd.f32 %v8655_v25, %v8093_v31 }
 0x75c   : > { %v9145_v40 = vadd.f32 %v14659_v19, %v9093_v54  ;;  %v8726_v54 = vadd.f32 %v8652_v9, %v8092_v62 }
 0x75e   : > { %v9193_v60 = vmax.f32 %v9145_v40, 0.0  ;;  %v8028_v40 = vpop.f32.mrf.mxu3 }
 0x75f   : > { %v8964_v36 = vpop.f32.mrf.mxu1 }
 0x760   : > { %v11340_v8 = vpack.c.bf16 %v9193_v60, %v9192_v30  ;;  %v9042_v14 = vadd.f32 %v8964_v36, %v8723_v37  ;;  %v7597_v60 = vpop.f32.mrf.mxu2  ;;  %v7660_v36 = vadd.f32 %v7589_v43, %v14534_v55 }
 0x762   : > { %11418 = vst [vmem:[%s14674_s16 + $0x68] sm:$0xff] %v11340_v8   ;;  %9003 = vmatmul.bf16.gmra.mxu1 %v8810_v7  ;;  %v9094_v48 = vmul.f32 %v14651_v56, %v9042_v14  ;;  %v8662_v35 = vpop.f32.mrf.mxu0  ;;  %v8094_v47 = vadd.f32 %v8023_v41, %v7660_v36 }
 0x764   : > { %v9146_v46 = vadd.f32 %v14659_v19, %v9094_v48  ;;  %v8728_v48 = vadd.f32 %v8657_v52, %v8094_v47 }
 0x766   : > { %v9194_v53 = vmax.f32 %v9146_v46, 0.0  ;;  %v8031_v7 = vpop.f32.mrf.mxu3  ;;  %v7662_v46 = vadd.f32 %v7594_v21, %v14549_v10 }
 0x767   : > { %v8966_v26 = vpop.f32.mrf.mxu1 }
 0x768   : > { %v9043_v3 = vadd.f32 %v8966_v26, %v8724_v4  ;;  %v7599_v59 = vpop.f32.mrf.mxu2  ;;  %v7661_v26 = vadd.f32 %v7592_v28, %v14541_v32  ;;  %v8096_v32 = vadd.f32 %v8028_v40, %v7662_v46 }
 0x76a   : > { %v9095_v50 = vmul.f32 %v14651_v56, %v9043_v3  ;;  %v8665_v23 = vpop.f32.mrf.mxu0  ;;  %v8095_v3 = vadd.f32 %v8026_v34, %v7661_v26 }
 0x76c   : > { %v9147_v58 = vadd.f32 %v14659_v19, %v9095_v50  ;;  %v8729_v63 = vadd.f32 %v8660_v22, %v8095_v3 }
 0x76e   : > { %v9195_v12 = vmax.f32 %v9147_v58, 0.0  ;;  %v8033_v41 = vpop.f32.mrf.mxu3 }
 0x76f   : > { %v8969_v27 = vpop.f32.mrf.mxu1 }
 0x770   : > { %v11345_v16 = vpack.c.bf16 %v9195_v12, %v9194_v53  ;;  %v9044_v13 = vadd.f32 %v8969_v27, %v8725_v38  ;;  %v7602_v53 = vpop.f32.mrf.mxu2  ;;  %v8730_v27 = vadd.f32 %v8662_v35, %v8096_v32 }
 0x772   : > { %11419 = vst [vmem:[%s14674_s16 + $0x70] sm:$0xff] %v11345_v16   ;;  %9008 = vmatmul.bf16.gmra.mxu1 %v8812_v20  ;;  %v9096_v61 = vmul.f32 %v14651_v56, %v9044_v13  ;;  %v8667_v52 = vpop.f32.mrf.mxu0  ;;  %v7663_v16 = vadd.f32 %v7597_v60, %v14556_v17 }
 0x774   : > { %v9148_v45 = vadd.f32 %v14659_v19, %v9096_v61  ;;  %v8097_v22 = vadd.f32 %v8031_v7, %v7663_v16 }
 0x776   : > { %v9196_v8 = vmax.f32 %v9148_v45, 0.0  ;;  %v8036_v20 = vpop.f32.mrf.mxu3  ;;  %v8731_v45 = vadd.f32 %v8665_v23, %v8097_v22 }
 0x777   : > { %v8971_v42 = vpop.f32.mrf.mxu1 }
 0x778   : > { %v9045_v1 = vadd.f32 %v8971_v42, %v8726_v54  ;;  %v7604_v21 = vpop.f32.mrf.mxu2  ;;  %v7664_v54 = vadd.f32 %v7599_v59, %v14564_v5 }
 0x779   : > { %v7666_v7 = vadd.f32 %v7604_v21, %v14579_v11 }
 0x77a   : > { %v9097_v39 = vmul.f32 %v14651_v56, %v9045_v1  ;;  %v8670_v10 = vpop.f32.mrf.mxu0  ;;  %v8098_v17 = vadd.f32 %v8033_v41, %v7664_v54 }
 0x77c   : > { %v9149_v30 = vadd.f32 %v14659_v19, %v9097_v39  ;;  %v8732_v36 = vadd.f32 %v8667_v52, %v8098_v17 }
 0x77e   : > { %v9197_v37 = vmax.f32 %v9149_v30, 0.0  ;;  %v8038_v39 = vpop.f32.mrf.mxu3 }
 0x77f   : > { %v8974_v9 = vpop.f32.mrf.mxu1 }
 0x780   : > { %v11350_v29 = vpack.c.bf16 %v9197_v37, %v9196_v8  ;;  %v9046_v0 = vadd.f32 %v8974_v9, %v8727_v15  ;;  %v7607_v30 = vpop.f32.mrf.mxu2  ;;  %v7665_v37 = vadd.f32 %v7602_v53, %v14571_v57  ;;  %v8100_v57 = vadd.f32 %v8038_v39, %v7666_v7 }
 0x781   : > { %v7667_v46 = vadd.f32 %v7607_v30, %v14586_v6 }
 0x782   : > { %11420 = vst [vmem:[%s14674_s16 + $0x78] sm:$0xff] %v11350_v29   ;;  %v9098_v14 = vmul.f32 %v14651_v56, %v9046_v0  ;;  %v8672_v35 = vpop.f32.mrf.mxu0  ;;  %v8099_v47 = vadd.f32 %v8036_v20, %v7665_v37 }
 0x784   : > { %v9150_v55 = vadd.f32 %v14659_v19, %v9098_v14 }
 0x786   : > { %v9198_v50 = vmax.f32 %v9150_v55, 0.0  ;;  %v8041_v15 = vpop.f32.mrf.mxu3 }
 0x787   : > { %v8976_v4 = vpop.f32.mrf.mxu1 }
 0x788   : > { %v9047_v33 = vadd.f32 %v8976_v4, %v8728_v48  ;;  %v7609_v59 = vpop.f32.mrf.mxu2 }
 0x789   : > { %v7668_v53 = vadd.f32 %v7609_v59, %v14594_v44 }
 0x78a   : > { %v9099_v43 = vmul.f32 %v14651_v56, %v9047_v33  ;;  %v8675_v23 = vpop.f32.mrf.mxu0  ;;  %v8733_v33 = vadd.f32 %v8670_v10, %v8099_v47  ;;  %v15228_v47 = vld [vmem:[#allocation36_spill] sm:$0xff] }
 0x78c   : > { %v9151_v25 = vadd.f32 %v14659_v19, %v9099_v43 }
 0x78e   : > { %v9199_v24 = vmax.f32 %v9151_v25, 0.0  ;;  %v8043_v43 = vpop.f32.mrf.mxu3  ;;  %v8734_v25 = vadd.f32 %v8672_v35, %v8100_v57 }
 0x78f   : > { %v8979_v18 = vpop.f32.mrf.mxu1  ;;  %v8102_v6 = vadd.f32 %v8043_v43, %v7668_v53 }
 0x790   : > { %v11355_v58 = vpack.c.bf16 %v9199_v24, %v9198_v50  ;;  %v9048_v28 = vadd.f32 %v8979_v18, %v8729_v63  ;;  %v7612_v24 = vpop.f32.mrf.mxu2 }
 0x791   : > { %v7669_v22 = vadd.f32 %v7612_v24, %v14601_v2 }
 0x792   : > { %11421 = vst [vmem:[%s14674_s16 + $0x80] sm:$0xff] %v11355_v58   ;;  %v9100_v12 = vmul.f32 %v14651_v56, %v9048_v28  ;;  %v8677_v50 = vpop.f32.mrf.mxu0  ;;  %v8101_v58 = vadd.f32 %v8041_v15, %v7667_v46 }
 0x794   : > { %v9152_v62 = vadd.f32 %v14659_v19, %v9100_v12 }
 0x796   : > { %v9200_v42 = vmax.f32 %v9152_v62, 0.0  ;;  %v8046_v12 = vpop.f32.mrf.mxu3 }
 0x797   : > { %v8981_v34 = vpop.f32.mrf.mxu1 }
 0x798   : > { %v9049_v38 = vadd.f32 %v8981_v34, %v8730_v27  ;;  %v8735_v34 = vadd.f32 %v8675_v23, %v8101_v58  ;;  %v7614_v10 = vpop.f32.mrf.mxu2  ;;  %v15230_v58 = vld [vmem:[#allocation57_spill] sm:$0xff] }
 0x799   : > { %v7670_v39 = vadd.f32 %v7614_v10, %v14609_v51 }
 0x79a   : > { %v9101_v13 = vmul.f32 %v14651_v56, %v9049_v38  ;;  %v8680_v16 = vpop.f32.mrf.mxu0 }
 0x79c   : > { %v9153_v61 = vadd.f32 %v14659_v19, %v9101_v13  ;;  %v8736_v13 = vadd.f32 %v8677_v50, %v8102_v6  ;;  %v15231_v6 = vld [vmem:[#allocation38_spill] sm:$0xff] }
 0x79e   : > { %v9201_v49 = vmax.f32 %v9153_v61, 0.0  ;;  %v8048_v44 = vpop.f32.mrf.mxu3 }
 0x79f   : > { %v8984_v1 = vpop.f32.mrf.mxu1  ;;  %v8104_v2 = vadd.f32 %v8048_v44, %v7670_v39 }
 0x7a0   : > { %v11360_v40 = vpack.c.bf16 %v9201_v49, %v9200_v42  ;;  %v9050_v31 = vadd.f32 %v8984_v1, %v8731_v45  ;;  %v8103_v49 = vadd.f32 %v8046_v12, %v7669_v22  ;;  %v7617_v45 = vpop.f32.mrf.mxu2 }
 0x7a2   : > { %11422 = vst [vmem:[%s14674_s16 + $0x88] sm:$0xff] %v11360_v40   ;;  %v9102_v60 = vmul.f32 %v14651_v56, %v9050_v31  ;;  %v8682_v1 = vpop.f32.mrf.mxu0 }
 0x7a4   : > { %v9154_v5 = vadd.f32 %v14659_v19, %v9102_v60  ;;  %v8737_v60 = vadd.f32 %v8680_v16, %v8103_v49 }
 0x7a6   : > { %v9202_v14 = vmax.f32 %v9154_v5, 0.0  ;;  %v8738_v5 = vadd.f32 %v8682_v1, %v8104_v2 }
 0x7a7   : > { %v8986_v8 = vpop.f32.mrf.mxu1 }
 0x7a8   : > { %v9051_v9 = vadd.f32 %v8986_v8, %v8732_v36  ;;  %v8051_v8 = vpop.f32.mrf.mxu3 }
 0x7aa   : > { %v9103_v29 = vmul.f32 %v14651_v56, %v9051_v9  ;;  %v8685_v37 = vpop.f32.mrf.mxu0 }
 0x7ac   : > { %v9155_v0 = vadd.f32 %v14659_v19, %v9103_v29  ;;  %v7619_v29 = vpop.f32.mrf.mxu2 }
 0x7ae   : > { %v9203_v48 = vmax.f32 %v9155_v0, 0.0  ;;  %v7671_v0 = vadd.f32 %v7617_v45, %v15228_v47 }
 0x7af   : > { %v8989_v4 = vpop.f32.mrf.mxu1 }
 0x7b0   : > { %v11365_v26 = vpack.c.bf16 %v9203_v48, %v9202_v14  ;;  %v9052_v55 = vadd.f32 %v8989_v4, %v8733_v33  ;;  %v8105_v14 = vadd.f32 %v8051_v8, %v7671_v0  ;;  %v8053_v59 = vpop.f32.mrf.mxu3  ;;  %v15229_v4 = vld [vmem:[#allocation56_spill] sm:$0xff] }
 0x7b2   : > { %11423 = vst [vmem:[%s14674_s16 + $0x90] sm:$0xff] %v11365_v26   ;;  %v9104_v3 = vmul.f32 %v14651_v56, %v9052_v55  ;;  %v7672_v26 = vadd.f32 %v7619_v29, %v15229_v4 }
 0x7b4   : > { %v9156_v18 = vadd.f32 %v14659_v19, %v9104_v3  ;;  %v8739_v3 = vadd.f32 %v8685_v37, %v8105_v14  ;;  %v8106_v46 = vadd.f32 %v8053_v59, %v7672_v26 }
 0x7b6   : > { %v9204_v32 = vmax.f32 %v9156_v18, 0.0 }
 0x7b7   : > { %v8991_v41 = vpop.f32.mrf.mxu1 }
 0x7b8   : > { %v9053_v11 = vadd.f32 %v8991_v41, %v8734_v25  ;;  %v8687_v25 = vpop.f32.mrf.mxu0  ;;  %v7622_v41 = vpop.f32.mrf.mxu2 }
 0x7b9   : > { %v8740_v18 = vadd.f32 %v8687_v25, %v8106_v46 }
 0x7ba   : > { %v9105_v52 = vmul.f32 %v14651_v56, %v9053_v11  ;;  %v8056_v11 = vpop.f32.mrf.mxu3 }
 0x7bc   : > { %v9157_v63 = vadd.f32 %v14659_v19, %v9105_v52 }
 0x7be   : > { %v9205_v28 = vmax.f32 %v9157_v63, 0.0  ;;  %v7673_v63 = vadd.f32 %v7622_v41, %v15230_v58 }
 0x7bf   : > { %v8994_v27 = vpop.f32.mrf.mxu1 }
 0x7c0   : > { %v11370_v20 = vpack.c.bf16 %v9205_v28, %v9204_v32  ;;  %v9054_v38 = vadd.f32 %v8994_v27, %v8735_v34  ;;  %v8690_v32 = vpop.f32.mrf.mxu0  ;;  %v7624_v27 = vpop.f32.mrf.mxu2 }
 0x7c1   : > { %v7674_v16 = vadd.f32 %v7624_v27, %v15231_v6 }
 0x7c2   : > { %11424 = vst [vmem:[%s14674_s16 + $0x98] sm:$0xff] %v11370_v20   ;;  %v9106_v62 = vmul.f32 %v14651_v56, %v9054_v38  ;;  %v8107_v20 = vadd.f32 %v8056_v11, %v7673_v63 }
 0x7c4   : > { %v9158_v54 = vadd.f32 %v14659_v19, %v9106_v62  ;;  %v8058_v62 = vpop.f32.mrf.mxu3 }
 0x7c6   : > { %v9206_v17 = vmax.f32 %v9158_v54, 0.0 }
 0x7c7   : > { %v8996_v21 = vpop.f32.mrf.mxu1 }
 0x7c8   : > { %v9055_v61 = vadd.f32 %v8996_v21, %v8736_v13  ;;  %v8741_v21 = vadd.f32 %v8690_v32, %v8107_v20  ;;  %v8692_v54 = vpop.f32.mrf.mxu0 }
 0x7ca   : > { %v9107_v42 = vmul.f32 %v14651_v56, %v9055_v61  ;;  %v8108_v61 = vadd.f32 %v8058_v62, %v7674_v16 }
 0x7cc   : > { %v9159_v40 = vadd.f32 %v14659_v19, %v9107_v42  ;;  %v8742_v42 = vadd.f32 %v8692_v54, %v8108_v61 }
 0x7ce   : > { %v9207_v31 = vmax.f32 %v9159_v40, 0.0 }
 0x7cf   : > { %v8999_v35 = vpop.f32.mrf.mxu1 }
 0x7d0   : > { %v11375_v30 = vpack.c.bf16 %v9207_v31, %v9206_v17  ;;  %v9056_v36 = vadd.f32 %v8999_v35, %v8737_v60 }
 0x7d2   : > { %11425 = vst [vmem:[%s14674_s16 + $0xa0] sm:$0xff] %v11375_v30   ;;  %v9108_v9 = vmul.f32 %v14651_v56, %v9056_v36 }
 0x7d4   : > { %v9160_v51 = vadd.f32 %v14659_v19, %v9108_v9 }
 0x7d6   : > { %v9208_v33 = vmax.f32 %v9160_v51, 0.0 }
 0x7d7   : > { %v9001_v15 = vpop.f32.mrf.mxu1 }
 0x7d8   : > { %v9057_v7 = vadd.f32 %v9001_v15, %v8738_v5 }
 0x7da   : > { %v9109_v23 = vmul.f32 %v14651_v56, %v9057_v7 }
 0x7dc   : > { %v9161_v48 = vadd.f32 %v14659_v19, %v9109_v23 }
 0x7de   : > { %v9209_v57 = vmax.f32 %v9161_v48, 0.0 }
 0x7df   : > { %v9004_v55 = vpop.f32.mrf.mxu1 }
 0x7e0   : > { %v11380_v43 = vpack.c.bf16 %v9209_v57, %v9208_v33  ;;  %v9058_v50 = vadd.f32 %v9004_v55, %v8739_v3 }
 0x7e2   : > { %11426 = vst [vmem:[%s14674_s16 + $0xa8] sm:$0xff] %v11380_v43   ;;  %v9110_v24 = vmul.f32 %v14651_v56, %v9058_v50 }
 0x7e4   : > { %v9162_v28 = vadd.f32 %v14659_v19, %v9110_v24 }
 0x7e6   : > { %v9210_v38 = vmax.f32 %v9162_v28, 0.0 }
 0x7e7   : > { %v9006_v52 = vpop.f32.mrf.mxu1 }
 0x7e8   : > { %v9059_v53 = vadd.f32 %v9006_v52, %v8740_v18 }
 0x7ea   : > { %v9111_v12 = vmul.f32 %v14651_v56, %v9059_v53 }
 0x7ec   : > { %v9163_v34 = vadd.f32 %v14659_v19, %v9111_v12 }
 0x7ee   : > { %v9211_v10 = vmax.f32 %v9163_v34, 0.0 }
 0x7ef   : > { %v9009_v13 = vpop.f32.mrf.mxu1 }
 0x7f0   : > { %v11385_v22 = vpack.c.bf16 %v9211_v10, %v9210_v38  ;;  %v9060_v44 = vadd.f32 %v9009_v13, %v8741_v21 }
 0x7f2   : > { %11427 = vst [vmem:[%s14674_s16 + $0xb0] sm:$0xff] %v11385_v22   ;;  %v9112_v49 = vmul.f32 %v14651_v56, %v9060_v44 }
 0x7f4   : > { %v9164_v45 = vadd.f32 %v14659_v19, %v9112_v49 }
 0x7f6   : > { %v9212_v31 = vmax.f32 %v9164_v45, 0.0 }
 0x7f7   : > { %v9011_v1 = vpop.f32.mrf.mxu1 }
 0x7f8   : > { %v9061_v40 = vadd.f32 %v9011_v1, %v8742_v42 }
 0x7fa   : > { %v9113_v39 = vmul.f32 %v14651_v56, %v9061_v40 }
 0x7fc   : > { %v9165_v17 = vadd.f32 %v14659_v19, %v9113_v39 }
 0x7fe   : > { %v9213_v35 = vmax.f32 %v9165_v17, 0.0 }
 0x800   : > { %v11390_v30 = vpack.c.bf16 %v9213_v35, %v9212_v31 }
 0x802   : > { %11428 = vst [vmem:[%s14674_s16 + $0xb8] sm:$0xff] %v11390_v30  }
 0x803 PF: > { %s18_s27 = sadd.s32 1, %s11543_s27  }
 0x804   : > { %p15_p4 = scmp.ge.s32.totalorder %s18_s27, 4  }
 0x806   :  { %17 = sbr.rel (!%p15_p4) target bundleno = 1 (0x1), region = 98 }

</bundles_post_ra>
